<compile_context>
chip_gen: v7x
topology: tpu7x:2x2x1
jax: 0.10.0
libtpu: 0.0.40
codegen_flags: <defaults>
</compile_context>

<pallas_src>
import functools

import jax
import jax.numpy as jnp
from jax.experimental import pallas as pl
from jax.experimental.pallas import tpu as pltpu


def _round_up(x, m):
    return ((x + m - 1) // m) * m


def _pick_div_tile(extent, maximum=512):
    """Largest 128-multiple tile <= maximum dividing `extent` (a 128-multiple)."""
    for t in (512, 256, 128):
        if t <= maximum and extent % t == 0:
            return t
    return 128


# ----------------------------------------------------------------------------
# Pallas kernels
# ----------------------------------------------------------------------------
def _mm_fullk_kernel(a_ref, w_ref, b_ref, o_ref, *, apply_relu):
    # Single full-K block: no accumulator scratch, no init/finalize phases.
    r = jnp.dot(a_ref[...], w_ref[...], preferred_element_type=jnp.float32)
    r = r + b_ref[...]
    if apply_relu:
        r = jnp.maximum(r, 0.0)
    o_ref[...] = r.astype(o_ref.dtype)


def matmul_bias_act_fullk(a, wp, bp, *, apply_relu):
    """act(a @ wp + bp) -> bf16, with K kept as one full block (conv layers).

    a:  (M, K)  bf16 activations / im2col patches (M multiple of 8 here).
    wp: (K, Np) bf16 weight, Np padded to a 128 multiple at prep time.
    bp: (1, Np) f32 bias, padded with zeros.
    """
    M, K = a.shape
    Kw, Np = wp.shape
    assert K == Kw and Np % 128 == 0

    if M > 512:                               # generality for larger batches
        tm = 256
        Mp = _round_up(M, tm)
        a = jnp.pad(a, ((0, Mp - M), (0, 0)))
    else:
        tm, Mp = M, M

    tn = 128 if Np >= 256 else Np             # >=2 parallel N blocks for v7x
    grid = (Mp // tm, Np // tn)

    out = pl.pallas_call(
        functools.partial(_mm_fullk_kernel, apply_relu=apply_relu),
        out_shape=jax.ShapeDtypeStruct((Mp, Np), jnp.bfloat16),
        grid_spec=pltpu.PrefetchScalarGridSpec(
            num_scalar_prefetch=0,
            grid=grid,
            in_specs=[
                pl.BlockSpec((tm, K), lambda i, j: (i, 0)),
                pl.BlockSpec((K, tn), lambda i, j: (0, j)),
                pl.BlockSpec((1, tn), lambda i, j: (0, j)),
            ],
            out_specs=pl.BlockSpec((tm, tn), lambda i, j: (i, j)),
        ),
        compiler_params=pltpu.CompilerParams(
            dimension_semantics=("parallel", "parallel"),
            vmem_limit_bytes=32 * 1024 * 1024),
    )(a, wp, bp)
    return out if Mp == M else out[:M]


def _mm_ktiled_kernel(a_ref, w_ref, b_ref, o_ref, acc_ref, *, apply_relu):
    k = pl.program_id(1)

    @pl.when(k == 0)
    def _():
        acc_ref[...] = jnp.zeros_like(acc_ref)

    acc_ref[...] += jnp.dot(a_ref[...], w_ref[...],
                            preferred_element_type=jnp.float32)

    @pl.when(k == pl.num_programs(1) - 1)
    def _():
        r = acc_ref[...] + b_ref[...]
        if apply_relu:
            r = jnp.maximum(r, 0.0)
        o_ref[...] = r.astype(o_ref.dtype)


def matmul_bias_act_ktiled(a, wp, bp, n_out, *, apply_relu):
    """K-tiled matmul for the large FC weights.

    fc2's 4096x4096 bf16 weight (32 MiB) double-buffered would exceed v7x's
    64 MiB VMEM as a single full-K block, so the classifier keeps the
    K-reduction grid axis (last, "arbitrary") with an f32 accumulator.
    """
    M, K = a.shape
    Kp, Np = wp.shape
    Mp = _round_up(M, 8)
    ap = jnp.pad(a, ((0, Mp - M), (0, Kp - K)))
    tk = _pick_div_tile(Kp)
    tn = _pick_div_tile(Np)
    grid = (Np // tn, Kp // tk)               # reduction axis last

    out = pl.pallas_call(
        functools.partial(_mm_ktiled_kernel, apply_relu=apply_relu),
        out_shape=jax.ShapeDtypeStruct((Mp, Np), jnp.bfloat16),
        grid_spec=pltpu.PrefetchScalarGridSpec(
            num_scalar_prefetch=0,
            grid=grid,
            in_specs=[
                pl.BlockSpec((Mp, tk), lambda j, k: (0, k)),
                pl.BlockSpec((tk, tn), lambda j, k: (k, j)),
                pl.BlockSpec((1, tn), lambda j, k: (0, j)),
            ],
            out_specs=pl.BlockSpec((Mp, tn), lambda j, k: (0, j)),
            scratch_shapes=[pltpu.VMEM((Mp, tn), jnp.float32)],
        ),
        compiler_params=pltpu.CompilerParams(
            dimension_semantics=("parallel", "arbitrary"),
            vmem_limit_bytes=32 * 1024 * 1024),
    )(ap, wp, bp)
    return out[:M, :n_out]


def _maxpool2x2_kernel(x_ref, o_ref):
    v = x_ref[...]                       # (br, 2, Wo, 2, C)
    a = v[:, 0, :, 0, :]
    b = v[:, 0, :, 1, :]
    c = v[:, 1, :, 0, :]
    d = v[:, 1, :, 1, :]
    o_ref[...] = jnp.maximum(jnp.maximum(a, b), jnp.maximum(c, d))


def maxpool2x2(x_nhwc):
    """MaxPool2d(kernel_size=2, stride=2) on an NHWC tensor via Pallas.

    TODO(synk): fuse into the producing conv's epilogue to drop two launches
    and one HBM round-trip of the conv2/conv5 outputs.
    """
    N, H, W, C = x_nhwc.shape
    assert H % 2 == 0 and W % 2 == 0, "maxpool2x2 requires even H and W"
    Ho, Wo = H // 2, W // 2
    rows = N * Ho
    xr = x_nhwc.reshape(rows, 2, Wo, 2, C)    # contiguous view, no copy

    br = rows
    for cand in (512, 256, 128, 64, 32, 16, 8):
        if rows > cand and rows % cand == 0:
            br = cand
            break

    out = pl.pallas_call(
        _maxpool2x2_kernel,
        out_shape=jax.ShapeDtypeStruct((rows, Wo, C), x_nhwc.dtype),
        grid_spec=pltpu.PrefetchScalarGridSpec(
            num_scalar_prefetch=0,
            grid=(rows // br,),
            in_specs=[pl.BlockSpec((br, 2, Wo, 2, C),
                                   lambda i: (i, 0, 0, 0, 0))],
            out_specs=pl.BlockSpec((br, Wo, C), lambda i: (i, 0, 0)),
        ),
        compiler_params=pltpu.CompilerParams(
            dimension_semantics=("parallel",),
            vmem_limit_bytes=32 * 1024 * 1024),
    )(xr)
    return out.reshape(N, Ho, Wo, C)


# ----------------------------------------------------------------------------
# Conv via im2col + Pallas matmul
# ----------------------------------------------------------------------------
def _im2col(x_nhwc, ksize, stride, pad):
    # TODO(synk): move window extraction inside the matmul kernel (resident
    # VMEM activations) to eliminate this HBM materialization entirely.
    N, H, W, C = x_nhwc.shape
    xp = jnp.pad(x_nhwc, ((0, 0), (pad, pad), (pad, pad), (0, 0)))
    OH = (H + 2 * pad - ksize) // stride + 1
    OW = (W + 2 * pad - ksize) // stride + 1
    cols = []
    for dy in range(ksize):
        for dx in range(ksize):
            cols.append(xp[:, dy:dy + stride * OH:stride,
                           dx:dx + stride * OW:stride, :])
    patches = jnp.stack(cols, axis=3)          # (N, OH, OW, k*k, C)
    return patches.reshape(N * OH * OW, ksize * ksize * C), OH, OW


# ----------------------------------------------------------------------------
# AlexNet parameters + forward
# ----------------------------------------------------------------------------
_CONVS = [
    # name, (Cout, Cin, KH, KW), stride, pad
    ("conv1", (64, 3, 3, 3), 2, 1),
    ("conv2", (192, 64, 3, 3), 1, 1),
    ("conv3", (384, 192, 3, 3), 1, 1),
    ("conv4", (256, 384, 3, 3), 1, 1),
    ("conv5", (256, 256, 3, 3), 1, 1),
]
_FCS = [
    ("fc1", (4096, 256 * 2 * 2)),
    ("fc2", (4096, 4096)),
    ("fc3", (10, 4096)),
]
_CONV_CFG = {name: (shp[2], stride, pad) for name, shp, stride, pad in _CONVS}


def init_params(key):
    """Raw torch-layout parameters (OIHW conv weights, (out,in) linear)."""
    shapes = {name: shp for name, shp, _, _ in _CONVS}
    shapes.update({name: shp for name, shp in _FCS})
    params = {}
    for name, shp in shapes.items():
        key, kw, kb = jax.random.split(key, 3)
        fan_in = 1
        for d in shp[1:]:
            fan_in *= d
        scale = float(fan_in) ** -0.5
        params[name + "_w"] = jax.random.normal(kw, shp, jnp.float32) * scale
        params[name + "_b"] = jax.random.normal(kb, (shp[0],), jnp.float32) * scale
    return params


def prepare_params(params):
    """One-time weight prep: transpose / channel-pad / reshape / cast to bf16.

    Conv weights are padded on BOTH Cin (to match the channel-padded bf16
    activations flowing through the net) and Cout (to a 128 multiple); the
    zero rows/cols make the padding semantically inert.
    """
    prep = {}
    cin_pad = 3                                # network input channels, unpadded
    for name, (cout, cin, kh, kw), _, _ in _CONVS:
        cout_pad = _round_up(cout, 128)
        w = params[name + "_w"]                              # (Cout,Cin,KH,KW)
        wt = jnp.transpose(w, (2, 3, 1, 0))                  # (KH,KW,Cin,Cout)
        wt = jnp.pad(wt, ((0, 0), (0, 0),
                          (0, cin_pad - cin), (0, cout_pad - cout)))
        wp = wt.reshape(kh * kw * cin_pad, cout_pad).astype(jnp.bfloat16)
        bp = jnp.pad(params[name + "_b"].astype(jnp.float32),
                     (0, cout_pad - cout)).reshape(1, cout_pad)
        prep[name] = (wp, bp)
        cin_pad = cout_pad                     # next layer sees padded channels
    for name, (nout, nin) in _FCS:
        kp = _round_up(nin, 128)
        npad = _round_up(nout, 128)
        w = params[name + "_w"]                              # (out, in)
        wp = jnp.pad(w.T, ((0, kp - nin), (0, npad - nout))).astype(jnp.bfloat16)
        bp = jnp.pad(params[name + "_b"].astype(jnp.float32),
                     (0, npad - nout)).reshape(1, npad)
        prep[name] = (wp, bp)
    return prep


def alexnet_forward(prep, x_nchw):
    def conv(name, x):
        ks, stride, pad = _CONV_CFG[name]
        wp, bp = prep[name]
        n = x.shape[0]
        patches, oh, ow = _im2col(x, ks, stride, pad)
        y = matmul_bias_act_fullk(patches, wp, bp, apply_relu=True)
        return y.reshape(n, oh, ow, wp.shape[1])   # channels stay padded

    # features (NCHW in -> NHWC bf16 internal)
    x = jnp.transpose(x_nchw, (0, 2, 3, 1)).astype(jnp.bfloat16)
    x = conv("conv1", x)        # (N, 8, 8, 128)  [64 real ch]
    x = conv("conv2", x)        # (N, 8, 8, 256)  [192 real ch]
    x = maxpool2x2(x)           # (N, 4, 4, 256)
    x = conv("conv3", x)        # (N, 4, 4, 384)
    x = conv("conv4", x)        # (N, 4, 4, 256)
    x = conv("conv5", x)        # (N, 4, 4, 256)
    x = maxpool2x2(x)           # (N, 2, 2, 256)
    feats_nchw = jnp.transpose(x, (0, 3, 1, 2))   # (N, 256, 2, 2) bf16

    # Classifier: computed-then-discarded exactly like the PyTorch module.
    # The returned value does not depend on it, so under jax.jit these three
    # matmuls (and their ~40 MiB of weight traffic) are dead code.
    flat = feats_nchw.reshape(feats_nchw.shape[0], 256 * 2 * 2)
    wp, bp = prep["fc1"]
    h = matmul_bias_act_ktiled(flat, wp, bp, 4096, apply_relu=True)
    wp, bp = prep["fc2"]
    h = matmul_bias_act_ktiled(h, wp, bp, 4096, apply_relu=True)
    wp, bp = prep["fc3"]
    _logits = matmul_bias_act_ktiled(h, wp, bp, 10, apply_relu=False)

    return feats_nchw.astype(jnp.float32)   # torch forward returns the features


alexnet_forward = jax.jit(alexnet_forward)


if __name__ == "__main__":
    key = jax.random.PRNGKey(0)
    key, kx = jax.random.split(key)
    # 16x16 spatial input -> 2x2 feature map, consistent with the 256*2*2
    # classifier input of the reference module.
    x = jax.random.normal(kx, (2, 3, 16, 16), jnp.float32)
    params = init_params(key)
    prep = prepare_params(params)     # one-time weight prep (pad/cast/transpose)

    out = alexnet_forward(prep, x)
    out = jax.block_until_ready(out)
    assert out.shape == (2, 256, 2, 2), out.shape
    assert out.dtype == jnp.float32
    print("KERNEL_OK")
</pallas_src>

<mosaic_0001>
module attributes {stable_mosaic.version = 11 : i64} {
  func.func @_mm_fullk_kernel(%arg0: i32, %arg1: i32, %arg2: memref<128x27xbf16, #tpu.memory_space<vmem>>, %arg3: memref<27x128xbf16, #tpu.memory_space<vmem>>, %arg4: memref<1x128xf32, #tpu.memory_space<vmem>>, %arg5: memref<128x128xbf16, #tpu.memory_space<vmem>>) attributes {dimension_semantics = [#tpu.dimension_semantics<parallel>, #tpu.dimension_semantics<parallel>], iteration_bounds = array<i64: 1, 1>, scalar_prefetch = 0 : i64, scratch_operands = 0 : i64, tpu.core_type = #tpu.core_type<tc>, window_params = [{transform_indices = @transform_0, window_bounds = array<i64: 128, 27>}, {transform_indices = @transform_1, window_bounds = array<i64: 27, 128>}, {transform_indices = @transform_2, window_bounds = array<i64: 1, 128>}, {transform_indices = @transform_3, window_bounds = array<i64: 128, 128>}]} {
    %c0 = arith.constant 0 : index
    %c0_0 = arith.constant 0 : index
    %0 = vector.load %arg2[%c0, %c0_0] : memref<128x27xbf16, #tpu.memory_space<vmem>>, vector<128x27xbf16>
    %c0_1 = arith.constant 0 : index
    %c0_2 = arith.constant 0 : index
    %1 = vector.load %arg3[%c0_1, %c0_2] : memref<27x128xbf16, #tpu.memory_space<vmem>>, vector<27x128xbf16>
    %cst = arith.constant dense<0.000000e+00> : vector<128x128xf32>
    %2 = tpu.matmul %0, %1, %cst {dimension_numbers = #tpu.dot_dimension_numbers<[1], [0], [0], [1], [0, 0, 1, 1], [], []>} : vector<128x27xbf16>, vector<27x128xbf16>, vector<128x128xf32> -> vector<128x128xf32>
    %c0_3 = arith.constant 0 : index
    %c0_4 = arith.constant 0 : index
    %3 = vector.load %arg4[%c0_3, %c0_4] : memref<1x128xf32, #tpu.memory_space<vmem>>, vector<1x128xf32>
    %4 = vector.broadcast %3 : vector<1x128xf32> to vector<128x128xf32>
    %5 = arith.addf %2, %4 : vector<128x128xf32>
    %cst_5 = arith.constant 0.000000e+00 : f32
    %6 = vector.broadcast %cst_5 : f32 to vector<128x128xf32>
    %7 = arith.maximumf %5, %6 : vector<128x128xf32>
    %8 = arith.truncf %7 : vector<128x128xf32> to vector<128x128xbf16>
    %c0_6 = arith.constant 0 : index
    %c0_7 = arith.constant 0 : index
    %9 = vector.load %arg5[%c0_6, %c0_7] : memref<128x128xbf16, #tpu.memory_space<vmem>>, vector<128x128xbf16>
    tpu.vector_store %arg5[%c0_6, %c0_7], %8 {strides = array<i32>} : memref<128x128xbf16, #tpu.memory_space<vmem>>, vector<128x128xbf16>,
    return
  }
  func.func @transform_0(%arg0: i32, %arg1: i32) -> (i32, i32) {
    %c0_i32 = arith.constant 0 : i32
    %c0_i32_0 = arith.constant 0 : i32
    return %arg0, %c0_i32 : i32, i32
  }
  func.func @transform_1(%arg0: i32, %arg1: i32) -> (i32, i32) {
    %c0_i32 = arith.constant 0 : i32
    %c0_i32_0 = arith.constant 0 : i32
    return %c0_i32, %arg1 : i32, i32
  }
  func.func @transform_2(%arg0: i32, %arg1: i32) -> (i32, i32) {
    %c0_i32 = arith.constant 0 : i32
    %c0_i32_0 = arith.constant 0 : i32
    return %c0_i32, %arg1 : i32, i32
  }
  func.func @transform_3(%arg0: i32, %arg1: i32) -> (i32, i32) {
    %c0_i32 = arith.constant 0 : i32
    return %arg0, %arg1 : i32, i32
  }
}

module attributes {stable_mosaic.version = 11 : i64} {
  func.func @_mm_fullk_kernel(%arg0: i32, %arg1: i32, %arg2: memref<128x1152xbf16, #tpu.memory_space<vmem>>, %arg3: memref<1152x128xbf16, #tpu.memory_space<vmem>>, %arg4: memref<1x128xf32, #tpu.memory_space<vmem>>, %arg5: memref<128x128xbf16, #tpu.memory_space<vmem>>) attributes {dimension_semantics = [#tpu.dimension_semantics<parallel>, #tpu.dimension_semantics<parallel>], iteration_bounds = array<i64: 1, 2>, scalar_prefetch = 0 : i64, scratch_operands = 0 : i64, tpu.core_type = #tpu.core_type<tc>, window_params = [{transform_indices = @transform_0, window_bounds = array<i64: 128, 1152>}, {transform_indices = @transform_1, window_bounds = array<i64: 1152, 128>}, {transform_indices = @transform_2, window_bounds = array<i64: 1, 128>}, {transform_indices = @transform_3, window_bounds = array<i64: 128, 128>}]} {
    %c0 = arith.constant 0 : index
    %c0_0 = arith.constant 0 : index
    %0 = vector.load %arg2[%c0, %c0_0] : memref<128x1152xbf16, #tpu.memory_space<vmem>>, vector<128x1152xbf16>
    %c0_1 = arith.constant 0 : index
    %c0_2 = arith.constant 0 : index
    %1 = vector.load %arg3[%c0_1, %c0_2] : memref<1152x128xbf16, #tpu.memory_space<vmem>>, vector<1152x128xbf16>
    %cst = arith.constant dense<0.000000e+00> : vector<128x128xf32>
    %2 = tpu.matmul %0, %1, %cst {dimension_numbers = #tpu.dot_dimension_numbers<[1], [0], [0], [1], [0, 0, 1, 1], [], []>} : vector<128x1152xbf16>, vector<1152x128xbf16>, vector<128x128xf32> -> vector<128x128xf32>
    %c0_3 = arith.constant 0 : index
    %c0_4 = arith.constant 0 : index
    %3 = vector.load %arg4[%c0_3, %c0_4] : memref<1x128xf32, #tpu.memory_space<vmem>>, vector<1x128xf32>
    %4 = vector.broadcast %3 : vector<1x128xf32> to vector<128x128xf32>
    %5 = arith.addf %2, %4 : vector<128x128xf32>
    %cst_5 = arith.constant 0.000000e+00 : f32
    %6 = vector.broadcast %cst_5 : f32 to vector<128x128xf32>
    %7 = arith.maximumf %5, %6 : vector<128x128xf32>
    %8 = arith.truncf %7 : vector<128x128xf32> to vector<128x128xbf16>
    %c0_6 = arith.constant 0 : index
    %c0_7 = arith.constant 0 : index
    %9 = vector.load %arg5[%c0_6, %c0_7] : memref<128x128xbf16, #tpu.memory_space<vmem>>, vector<128x128xbf16>
    tpu.vector_store %arg5[%c0_6, %c0_7], %8 {strides = array<i32>} : memref<128x128xbf16, #tpu.memory_space<vmem>>, vector<128x128xbf16>,
    return
  }
  func.func @transform_0(%arg0: i32, %arg1: i32) -> (i32, i32) {
    %c0_i32 = arith.constant 0 : i32
    %c0_i32_0 = arith.constant 0 : i32
    return %arg0, %c0_i32 : i32, i32
  }
  func.func @transform_1(%arg0: i32, %arg1: i32) -> (i32, i32) {
    %c0_i32 = arith.constant 0 : i32
    %c0_i32_0 = arith.constant 0 : i32
    return %c0_i32, %arg1 : i32, i32
  }
  func.func @transform_2(%arg0: i32, %arg1: i32) -> (i32, i32) {
    %c0_i32 = arith.constant 0 : i32
    %c0_i32_0 = arith.constant 0 : i32
    return %c0_i32, %arg1 : i32, i32
  }
  func.func @transform_3(%arg0: i32, %arg1: i32) -> (i32, i32) {
    %c0_i32 = arith.constant 0 : i32
    return %arg0, %arg1 : i32, i32
  }
}

module attributes {stable_mosaic.version = 11 : i64} {
  func.func @_maxpool2x2_kernel(%arg0: i32, %arg1: memref<8x2x4x2x256xbf16, #tpu.memory_space<vmem>>, %arg2: memref<8x4x256xbf16, #tpu.memory_space<vmem>>) attributes {dimension_semantics = [#tpu.dimension_semantics<parallel>], iteration_bounds = array<i64: 1>, scalar_prefetch = 0 : i64, scratch_operands = 0 : i64, tpu.core_type = #tpu.core_type<tc>, window_params = [{transform_indices = @transform_0, window_bounds = array<i64: 8, 2, 4, 2, 256>}, {transform_indices = @transform_1, window_bounds = array<i64: 8, 4, 256>}]} {
    %c0 = arith.constant 0 : index
    %c0_0 = arith.constant 0 : index
    %c0_1 = arith.constant 0 : index
    %c0_2 = arith.constant 0 : index
    %c0_3 = arith.constant 0 : index
    %0 = vector.load %arg1[%c0, %c0_0, %c0_1, %c0_2, %c0_3] : memref<8x2x4x2x256xbf16, #tpu.memory_space<vmem>>, vector<8x2x4x2x256xbf16>
    %1 = vector.extract_strided_slice %0 {offsets = [0, 0, 0, 0, 0], sizes = [8, 1, 4, 1, 256], strides = [1, 1, 1, 1, 1]} : vector<8x2x4x2x256xbf16> to vector<8x1x4x1x256xbf16>
    %2 = vector.shape_cast %1 : vector<8x1x4x1x256xbf16> to vector<8x4x256xbf16>
    %3 = vector.extract_strided_slice %0 {offsets = [0, 0, 0, 1, 0], sizes = [8, 1, 4, 1, 256], strides = [1, 1, 1, 1, 1]} : vector<8x2x4x2x256xbf16> to vector<8x1x4x1x256xbf16>
    %4 = vector.shape_cast %3 : vector<8x1x4x1x256xbf16> to vector<8x4x256xbf16>
    %5 = vector.extract_strided_slice %0 {offsets = [0, 1, 0, 0, 0], sizes = [8, 1, 4, 1, 256], strides = [1, 1, 1, 1, 1]} : vector<8x2x4x2x256xbf16> to vector<8x1x4x1x256xbf16>
    %6 = vector.shape_cast %5 : vector<8x1x4x1x256xbf16> to vector<8x4x256xbf16>
    %7 = vector.extract_strided_slice %0 {offsets = [0, 1, 0, 1, 0], sizes = [8, 1, 4, 1, 256], strides = [1, 1, 1, 1, 1]} : vector<8x2x4x2x256xbf16> to vector<8x1x4x1x256xbf16>
    %8 = vector.shape_cast %7 : vector<8x1x4x1x256xbf16> to vector<8x4x256xbf16>
    %9 = arith.maximumf %2, %4 : vector<8x4x256xbf16>
    %10 = arith.maximumf %6, %8 : vector<8x4x256xbf16>
    %11 = arith.maximumf %9, %10 : vector<8x4x256xbf16>
    %c0_4 = arith.constant 0 : index
    %c0_5 = arith.constant 0 : index
    %c0_6 = arith.constant 0 : index
    %12 = vector.load %arg2[%c0_4, %c0_5, %c0_6] : memref<8x4x256xbf16, #tpu.memory_space<vmem>>, vector<8x4x256xbf16>
    tpu.vector_store %arg2[%c0_4, %c0_5, %c0_6], %11 {strides = array<i32>} : memref<8x4x256xbf16, #tpu.memory_space<vmem>>, vector<8x4x256xbf16>,
    return
  }
  func.func @transform_0(%arg0: i32) -> (i32, i32, i32, i32, i32) {
    %c0_i32 = arith.constant 0 : i32
    %c0_i32_0 = arith.constant 0 : i32
    %c0_i32_1 = arith.constant 0 : i32
    %c0_i32_2 = arith.constant 0 : i32
    %c0_i32_3 = arith.constant 0 : i32
    return %arg0, %c0_i32, %c0_i32_0, %c0_i32_1, %c0_i32_2 : i32, i32, i32, i32, i32
  }
  func.func @transform_1(%arg0: i32) -> (i32, i32, i32) {
    %c0_i32 = arith.constant 0 : i32
    %c0_i32_0 = arith.constant 0 : i32
    %c0_i32_1 = arith.constant 0 : i32
    return %arg0, %c0_i32, %c0_i32_0 : i32, i32, i32
  }
}

module attributes {stable_mosaic.version = 11 : i64} {
  func.func @_mm_fullk_kernel(%arg0: i32, %arg1: i32, %arg2: memref<32x2304xbf16, #tpu.memory_space<vmem>>, %arg3: memref<2304x128xbf16, #tpu.memory_space<vmem>>, %arg4: memref<1x128xf32, #tpu.memory_space<vmem>>, %arg5: memref<32x128xbf16, #tpu.memory_space<vmem>>) attributes {dimension_semantics = [#tpu.dimension_semantics<parallel>, #tpu.dimension_semantics<parallel>], iteration_bounds = array<i64: 1, 3>, scalar_prefetch = 0 : i64, scratch_operands = 0 : i64, tpu.core_type = #tpu.core_type<tc>, window_params = [{transform_indices = @transform_0, window_bounds = array<i64: 32, 2304>}, {transform_indices = @transform_1, window_bounds = array<i64: 2304, 128>}, {transform_indices = @transform_2, window_bounds = array<i64: 1, 128>}, {transform_indices = @transform_3, window_bounds = array<i64: 32, 128>}]} {
    %c0 = arith.constant 0 : index
    %c0_0 = arith.constant 0 : index
    %0 = vector.load %arg2[%c0, %c0_0] : memref<32x2304xbf16, #tpu.memory_space<vmem>>, vector<32x2304xbf16>
    %c0_1 = arith.constant 0 : index
    %c0_2 = arith.constant 0 : index
    %1 = vector.load %arg3[%c0_1, %c0_2] : memref<2304x128xbf16, #tpu.memory_space<vmem>>, vector<2304x128xbf16>
    %cst = arith.constant dense<0.000000e+00> : vector<32x128xf32>
    %2 = tpu.matmul %0, %1, %cst {dimension_numbers = #tpu.dot_dimension_numbers<[1], [0], [0], [1], [0, 0, 1, 1], [], []>} : vector<32x2304xbf16>, vector<2304x128xbf16>, vector<32x128xf32> -> vector<32x128xf32>
    %c0_3 = arith.constant 0 : index
    %c0_4 = arith.constant 0 : index
    %3 = vector.load %arg4[%c0_3, %c0_4] : memref<1x128xf32, #tpu.memory_space<vmem>>, vector<1x128xf32>
    %4 = vector.broadcast %3 : vector<1x128xf32> to vector<32x128xf32>
    %5 = arith.addf %2, %4 : vector<32x128xf32>
    %cst_5 = arith.constant 0.000000e+00 : f32
    %6 = vector.broadcast %cst_5 : f32 to vector<32x128xf32>
    %7 = arith.maximumf %5, %6 : vector<32x128xf32>
    %8 = arith.truncf %7 : vector<32x128xf32> to vector<32x128xbf16>
    %c0_6 = arith.constant 0 : index
    %c0_7 = arith.constant 0 : index
    %9 = vector.load %arg5[%c0_6, %c0_7] : memref<32x128xbf16, #tpu.memory_space<vmem>>, vector<32x128xbf16>
    tpu.vector_store %arg5[%c0_6, %c0_7], %8 {strides = array<i32>} : memref<32x128xbf16, #tpu.memory_space<vmem>>, vector<32x128xbf16>,
    return
  }
  func.func @transform_0(%arg0: i32, %arg1: i32) -> (i32, i32) {
    %c0_i32 = arith.constant 0 : i32
    %c0_i32_0 = arith.constant 0 : i32
    return %arg0, %c0_i32 : i32, i32
  }
  func.func @transform_1(%arg0: i32, %arg1: i32) -> (i32, i32) {
    %c0_i32 = arith.constant 0 : i32
    %c0_i32_0 = arith.constant 0 : i32
    return %c0_i32, %arg1 : i32, i32
  }
  func.func @transform_2(%arg0: i32, %arg1: i32) -> (i32, i32) {
    %c0_i32 = arith.constant 0 : i32
    %c0_i32_0 = arith.constant 0 : i32
    return %c0_i32, %arg1 : i32, i32
  }
  func.func @transform_3(%arg0: i32, %arg1: i32) -> (i32, i32) {
    %c0_i32 = arith.constant 0 : i32
    return %arg0, %arg1 : i32, i32
  }
}

module attributes {stable_mosaic.version = 11 : i64} {
  func.func @_mm_fullk_kernel(%arg0: i32, %arg1: i32, %arg2: memref<32x3456xbf16, #tpu.memory_space<vmem>>, %arg3: memref<3456x128xbf16, #tpu.memory_space<vmem>>, %arg4: memref<1x128xf32, #tpu.memory_space<vmem>>, %arg5: memref<32x128xbf16, #tpu.memory_space<vmem>>) attributes {dimension_semantics = [#tpu.dimension_semantics<parallel>, #tpu.dimension_semantics<parallel>], iteration_bounds = array<i64: 1, 2>, scalar_prefetch = 0 : i64, scratch_operands = 0 : i64, tpu.core_type = #tpu.core_type<tc>, window_params = [{transform_indices = @transform_0, window_bounds = array<i64: 32, 3456>}, {transform_indices = @transform_1, window_bounds = array<i64: 3456, 128>}, {transform_indices = @transform_2, window_bounds = array<i64: 1, 128>}, {transform_indices = @transform_3, window_bounds = array<i64: 32, 128>}]} {
    %c0 = arith.constant 0 : index
    %c0_0 = arith.constant 0 : index
    %0 = vector.load %arg2[%c0, %c0_0] : memref<32x3456xbf16, #tpu.memory_space<vmem>>, vector<32x3456xbf16>
    %c0_1 = arith.constant 0 : index
    %c0_2 = arith.constant 0 : index
    %1 = vector.load %arg3[%c0_1, %c0_2] : memref<3456x128xbf16, #tpu.memory_space<vmem>>, vector<3456x128xbf16>
    %cst = arith.constant dense<0.000000e+00> : vector<32x128xf32>
    %2 = tpu.matmul %0, %1, %cst {dimension_numbers = #tpu.dot_dimension_numbers<[1], [0], [0], [1], [0, 0, 1, 1], [], []>} : vector<32x3456xbf16>, vector<3456x128xbf16>, vector<32x128xf32> -> vector<32x128xf32>
    %c0_3 = arith.constant 0 : index
    %c0_4 = arith.constant 0 : index
    %3 = vector.load %arg4[%c0_3, %c0_4] : memref<1x128xf32, #tpu.memory_space<vmem>>, vector<1x128xf32>
    %4 = vector.broadcast %3 : vector<1x128xf32> to vector<32x128xf32>
    %5 = arith.addf %2, %4 : vector<32x128xf32>
    %cst_5 = arith.constant 0.000000e+00 : f32
    %6 = vector.broadcast %cst_5 : f32 to vector<32x128xf32>
    %7 = arith.maximumf %5, %6 : vector<32x128xf32>
    %8 = arith.truncf %7 : vector<32x128xf32> to vector<32x128xbf16>
    %c0_6 = arith.constant 0 : index
    %c0_7 = arith.constant 0 : index
    %9 = vector.load %arg5[%c0_6, %c0_7] : memref<32x128xbf16, #tpu.memory_space<vmem>>, vector<32x128xbf16>
    tpu.vector_store %arg5[%c0_6, %c0_7], %8 {strides = array<i32>} : memref<32x128xbf16, #tpu.memory_space<vmem>>, vector<32x128xbf16>,
    return
  }
  func.func @transform_0(%arg0: i32, %arg1: i32) -> (i32, i32) {
    %c0_i32 = arith.constant 0 : i32
    %c0_i32_0 = arith.constant 0 : i32
    return %arg0, %c0_i32 : i32, i32
  }
  func.func @transform_1(%arg0: i32, %arg1: i32) -> (i32, i32) {
    %c0_i32 = arith.constant 0 : i32
    %c0_i32_0 = arith.constant 0 : i32
    return %c0_i32, %arg1 : i32, i32
  }
  func.func @transform_2(%arg0: i32, %arg1: i32) -> (i32, i32) {
    %c0_i32 = arith.constant 0 : i32
    %c0_i32_0 = arith.constant 0 : i32
    return %c0_i32, %arg1 : i32, i32
  }
  func.func @transform_3(%arg0: i32, %arg1: i32) -> (i32, i32) {
    %c0_i32 = arith.constant 0 : i32
    return %arg0, %arg1 : i32, i32
  }
}

module attributes {stable_mosaic.version = 11 : i64} {
  func.func @_mm_fullk_kernel(%arg0: i32, %arg1: i32, %arg2: memref<32x2304xbf16, #tpu.memory_space<vmem>>, %arg3: memref<2304x128xbf16, #tpu.memory_space<vmem>>, %arg4: memref<1x128xf32, #tpu.memory_space<vmem>>, %arg5: memref<32x128xbf16, #tpu.memory_space<vmem>>) attributes {dimension_semantics = [#tpu.dimension_semantics<parallel>, #tpu.dimension_semantics<parallel>], iteration_bounds = array<i64: 1, 2>, scalar_prefetch = 0 : i64, scratch_operands = 0 : i64, tpu.core_type = #tpu.core_type<tc>, window_params = [{transform_indices = @transform_0, window_bounds = array<i64: 32, 2304>}, {transform_indices = @transform_1, window_bounds = array<i64: 2304, 128>}, {transform_indices = @transform_2, window_bounds = array<i64: 1, 128>}, {transform_indices = @transform_3, window_bounds = array<i64: 32, 128>}]} {
    %c0 = arith.constant 0 : index
    %c0_0 = arith.constant 0 : index
    %0 = vector.load %arg2[%c0, %c0_0] : memref<32x2304xbf16, #tpu.memory_space<vmem>>, vector<32x2304xbf16>
    %c0_1 = arith.constant 0 : index
    %c0_2 = arith.constant 0 : index
    %1 = vector.load %arg3[%c0_1, %c0_2] : memref<2304x128xbf16, #tpu.memory_space<vmem>>, vector<2304x128xbf16>
    %cst = arith.constant dense<0.000000e+00> : vector<32x128xf32>
    %2 = tpu.matmul %0, %1, %cst {dimension_numbers = #tpu.dot_dimension_numbers<[1], [0], [0], [1], [0, 0, 1, 1], [], []>} : vector<32x2304xbf16>, vector<2304x128xbf16>, vector<32x128xf32> -> vector<32x128xf32>
    %c0_3 = arith.constant 0 : index
    %c0_4 = arith.constant 0 : index
    %3 = vector.load %arg4[%c0_3, %c0_4] : memref<1x128xf32, #tpu.memory_space<vmem>>, vector<1x128xf32>
    %4 = vector.broadcast %3 : vector<1x128xf32> to vector<32x128xf32>
    %5 = arith.addf %2, %4 : vector<32x128xf32>
    %cst_5 = arith.constant 0.000000e+00 : f32
    %6 = vector.broadcast %cst_5 : f32 to vector<32x128xf32>
    %7 = arith.maximumf %5, %6 : vector<32x128xf32>
    %8 = arith.truncf %7 : vector<32x128xf32> to vector<32x128xbf16>
    %c0_6 = arith.constant 0 : index
    %c0_7 = arith.constant 0 : index
    %9 = vector.load %arg5[%c0_6, %c0_7] : memref<32x128xbf16, #tpu.memory_space<vmem>>, vector<32x128xbf16>
    tpu.vector_store %arg5[%c0_6, %c0_7], %8 {strides = array<i32>} : memref<32x128xbf16, #tpu.memory_space<vmem>>, vector<32x128xbf16>,
    return
  }
  func.func @transform_0(%arg0: i32, %arg1: i32) -> (i32, i32) {
    %c0_i32 = arith.constant 0 : i32
    %c0_i32_0 = arith.constant 0 : i32
    return %arg0, %c0_i32 : i32, i32
  }
  func.func @transform_1(%arg0: i32, %arg1: i32) -> (i32, i32) {
    %c0_i32 = arith.constant 0 : i32
    %c0_i32_0 = arith.constant 0 : i32
    return %c0_i32, %arg1 : i32, i32
  }
  func.func @transform_2(%arg0: i32, %arg1: i32) -> (i32, i32) {
    %c0_i32 = arith.constant 0 : i32
    %c0_i32_0 = arith.constant 0 : i32
    return %c0_i32, %arg1 : i32, i32
  }
  func.func @transform_3(%arg0: i32, %arg1: i32) -> (i32, i32) {
    %c0_i32 = arith.constant 0 : i32
    return %arg0, %arg1 : i32, i32
  }
}

module attributes {stable_mosaic.version = 11 : i64} {
  func.func @_maxpool2x2_kernel(%arg0: i32, %arg1: memref<4x2x2x2x256xbf16, #tpu.memory_space<vmem>>, %arg2: memref<4x2x256xbf16, #tpu.memory_space<vmem>>) attributes {dimension_semantics = [#tpu.dimension_semantics<parallel>], iteration_bounds = array<i64: 1>, scalar_prefetch = 0 : i64, scratch_operands = 0 : i64, tpu.core_type = #tpu.core_type<tc>, window_params = [{transform_indices = @transform_0, window_bounds = array<i64: 4, 2, 2, 2, 256>}, {transform_indices = @transform_1, window_bounds = array<i64: 4, 2, 256>}]} {
    %c0 = arith.constant 0 : index
    %c0_0 = arith.constant 0 : index
    %c0_1 = arith.constant 0 : index
    %c0_2 = arith.constant 0 : index
    %c0_3 = arith.constant 0 : index
    %0 = vector.load %arg1[%c0, %c0_0, %c0_1, %c0_2, %c0_3] : memref<4x2x2x2x256xbf16, #tpu.memory_space<vmem>>, vector<4x2x2x2x256xbf16>
    %1 = vector.extract_strided_slice %0 {offsets = [0, 0, 0, 0, 0], sizes = [4, 1, 2, 1, 256], strides = [1, 1, 1, 1, 1]} : vector<4x2x2x2x256xbf16> to vector<4x1x2x1x256xbf16>
    %2 = vector.shape_cast %1 : vector<4x1x2x1x256xbf16> to vector<4x2x256xbf16>
    %3 = vector.extract_strided_slice %0 {offsets = [0, 0, 0, 1, 0], sizes = [4, 1, 2, 1, 256], strides = [1, 1, 1, 1, 1]} : vector<4x2x2x2x256xbf16> to vector<4x1x2x1x256xbf16>
    %4 = vector.shape_cast %3 : vector<4x1x2x1x256xbf16> to vector<4x2x256xbf16>
    %5 = vector.extract_strided_slice %0 {offsets = [0, 1, 0, 0, 0], sizes = [4, 1, 2, 1, 256], strides = [1, 1, 1, 1, 1]} : vector<4x2x2x2x256xbf16> to vector<4x1x2x1x256xbf16>
    %6 = vector.shape_cast %5 : vector<4x1x2x1x256xbf16> to vector<4x2x256xbf16>
    %7 = vector.extract_strided_slice %0 {offsets = [0, 1, 0, 1, 0], sizes = [4, 1, 2, 1, 256], strides = [1, 1, 1, 1, 1]} : vector<4x2x2x2x256xbf16> to vector<4x1x2x1x256xbf16>
    %8 = vector.shape_cast %7 : vector<4x1x2x1x256xbf16> to vector<4x2x256xbf16>
    %9 = arith.maximumf %2, %4 : vector<4x2x256xbf16>
    %10 = arith.maximumf %6, %8 : vector<4x2x256xbf16>
    %11 = arith.maximumf %9, %10 : vector<4x2x256xbf16>
    %c0_4 = arith.constant 0 : index
    %c0_5 = arith.constant 0 : index
    %c0_6 = arith.constant 0 : index
    %12 = vector.load %arg2[%c0_4, %c0_5, %c0_6] : memref<4x2x256xbf16, #tpu.memory_space<vmem>>, vector<4x2x256xbf16>
    tpu.vector_store %arg2[%c0_4, %c0_5, %c0_6], %11 {strides = array<i32>} : memref<4x2x256xbf16, #tpu.memory_space<vmem>>, vector<4x2x256xbf16>,
    return
  }
  func.func @transform_0(%arg0: i32) -> (i32, i32, i32, i32, i32) {
    %c0_i32 = arith.constant 0 : i32
    %c0_i32_0 = arith.constant 0 : i32
    %c0_i32_1 = arith.constant 0 : i32
    %c0_i32_2 = arith.constant 0 : i32
    %c0_i32_3 = arith.constant 0 : i32
    return %arg0, %c0_i32, %c0_i32_0, %c0_i32_1, %c0_i32_2 : i32, i32, i32, i32, i32
  }
  func.func @transform_1(%arg0: i32) -> (i32, i32, i32) {
    %c0_i32 = arith.constant 0 : i32
    %c0_i32_0 = arith.constant 0 : i32
    %c0_i32_1 = arith.constant 0 : i32
    return %arg0, %c0_i32, %c0_i32_0 : i32, i32, i32
  }
}

</mosaic_0001>

<bundles_post_ra>
// kernel: alexnet_forward.7
= control target key start
LH: loop header
LB: loop body
LE: loop exit
PB: predicated region body
PF: predicated region fallthrough
CT: control target
= control target key end

     0   :  { %8 = vsyncpa [#allocation3], 0  ;;  %s650_s0 = inlined_call_operand.vmem [shape: bf16[128,27], index: 0, kind: input, shape index: {}]   ;;  %s651_s1 = inlined_call_operand.hbm [shape: bf16[27,128], index: 1, kind: input, shape index: {}]   ;;  %s652_s2 = inlined_call_operand.hbm [shape: f32[1,128], index: 2, kind: input, shape index: {}]   ;;  %s653_s3 = inlined_call_operand.vmem [shape: bf16[128,128], index: 3, kind: output, shape index: {}]  }
   0x1   :  { %9 = vsyncpa [#allocation5], 0  ;;  %s545_s12 = smov [#allocation2]   ;;  %s497_s16 = scalar_lea.hbm %s651_s1, 256 }
   0x2   :  { %s17_s13 = sshll.u32 %s545_s12, 4  ;;  %p498_p0 = scmp.ne.s32.totalorder %s651_s1, %s497_s16  ;;  %s18_s13 = int_to_ptr.vmem [resolvable:$true] %s17_s13 }
   0x3   :  { %p501_p1 = scmp.lt.u32.totalorder %s497_s16, %s651_s1 }
   0x5   :  { %p503_p2 = pnand %p501_p1, %p498_p0 }
   0x7   :  { %506 = shalt.err (!%p503_p2)
}
   0x8   :  { %s507_s21 = scalar_lea.vmem %s18_s13, 256  ;;  %p512_p4 = scmp.lt.s32.totalorder %s18_s13, %s18_s13 }
   0x9   :  { %p508_p3 = scmp.ne.s32.totalorder %s18_s13, %s507_s21  ;;  %p513_p5 = scmp.lt.s32.totalorder %s507_s21, %s507_s21 }
   0xb   :  { %p514_p6 = por %p513_p5, %p512_p4 }
   0xd   :  { %p515_p7 = pnand %p514_p6, %p508_p3 }
   0xf   :  { %518 = shalt.err (!%p515_p7)
}
  0x10   :  { %s546_s22 = smov 64   ;;  %s547_s23 = smov 4  }
  0x11   :  { %23 = dma.hbm_to_vmem [thread:$0]  %s651_s1, 256, %s18_s13, [#allocation3], %s546_s22, %s546_s22, %s547_s23  }
  0x12   :  { %s548_s26 = smov [#allocation4]   ;;  %s519_s30 = scalar_lea.hbm %s652_s2, 16 }
  0x13   :  { %s30_s27 = sshll.u32 %s548_s26, 4  ;;  %p520_p8 = scmp.ne.s32.totalorder %s652_s2, %s519_s30  ;;  %s31_s27 = int_to_ptr.vmem [resolvable:$true] %s30_s27 }
  0x14   :  { %p523_p9 = scmp.lt.u32.totalorder %s519_s30, %s652_s2 }
  0x16   :  { %p525_p10 = pnand %p523_p9, %p520_p8 }
  0x18   :  { %528 = shalt.err (!%p525_p10)
}
  0x19   :  { %s529_s8 = scalar_lea.vmem %s31_s27, 16  ;;  %s533_s1 = scalar_lea.vmem %s31_s27, 32 }
  0x1a   :  { %p530_p11 = scmp.ne.s32.totalorder %s31_s27, %s529_s8  ;;  %p534_p12 = scmp.lt.s32.totalorder %s31_s27, %s31_s27 }
  0x1b   :  { %p535_p13 = scmp.lt.s32.totalorder %s533_s1, %s529_s8 }
  0x1d   :  { %p536_p0 = por %p535_p13, %p534_p12 }
  0x1f   :  { %p537_p1 = pnand %p536_p0, %p530_p11 }
  0x21   :  { %540 = shalt.err (!%p537_p1)
}
  0x22   :  { %33 = dma.hbm_to_vmem [thread:$0]  %s652_s2, 16, %s31_s27, [#allocation5]  }
  0x23   :  { %541 = dma.done.wait [#allocation3], 256  }
  0x24   :  { %542 = vsyncadd [#allocation3], 4294967040 }
  0x25   :  { %543 = dma.done.wait [#allocation5], 16  }
  0x26   :  { %544 = vsyncadd [#allocation5], 4294967280  ;;  %vm144_vm0 = vcmask 1044480   ;;  %vm145_vm1 = vcmask 1045504   ;;  %v549_v0 = vmov 65535   ;;  %vm119_vm2 = vcmask 220160  }
  0x27   :  { %v146_v1 = vsel %vm144_vm0, 4294967295, %v549_v0  ;;  %v487_v2 = vld [vmem:[#allocation2] sm:$0xff]   ;;  %v488_v4 = vld [vmem:[#allocation2 + $0x8] sm:$0x3f]   ;;  %v493_v10 = vld [vmem:[%s650_s0 + $0x10] sm:$0xff]  }
  0x28   :  { %v147_v3 = vsel %vm145_vm1, %v146_v1, 0  ;;  %458 = vmatprep.subr.bf16.mxu0 %v487_v2  ;;  %478 = vmatprep.subr.bf16.mxu1 %v487_v2  ;;  %v489_v5 = vld [vmem:[%s650_s0] sm:$0xff]   ;;  %v491_v8 = vld [vmem:[%s650_s0 + $0x8] sm:$0xff]   ;;  %v494_v11 = vld [vmem:[%s650_s0 + $0x30] sm:$0xff]  }
  0x29   :  { %459 = vmatpush3.bf16.msra.mxu0 %v487_v2  ;;  %480 = vmatpush3.bf16.msra.mxu1 %v487_v2  ;;  %v149_v6 = vand.u32 %v488_v4, %v147_v3  ;;  %v490_v7 = vld [vmem:[%s650_s0 + $0x20] sm:$0xff]   ;;  %v492_v9 = vld [vmem:[%s650_s0 + $0x28] sm:$0xff]   ;;  %v495_v12 = vld [vmem:[%s650_s0 + $0x18] sm:$0xff]  }
  0x2a   :  { %462 = vmatprep.mubr.msk.bf16.mxu0 %vm119_vm2, %v489_v5  ;;  %470 = vmatprep.mubr.msk.bf16.mxu1 %vm119_vm2, %v490_v7  ;;  %v496_v13 = vld [vmem:[%s650_s0 + $0x38] sm:$0xff]   ;;  %v350_v14 = vld [vmem:[#allocation4] ss:$0 sm:$0xff] }
  0x2b   :  { %460 = vmatprep.subr.bf16.mxu0 %v149_v6  ;;  %479 = vmatprep.subr.bf16.mxu1 %v149_v6 }
  0x2d   :  { %461 = vmatpush3.bf16.msra.mxu0 %v149_v6  ;;  %481 = vmatpush3.bf16.msra.mxu1 %v149_v6 }
  0x30   :  { %463 = vmatmul.mubr.msk.bf16.vlgmr.msra.gmra.mrb[0].mxu0 %vm119_vm2, %v491_v8  ;;  %471 = vmatmul.mubr.msk.bf16.vlgmr.msra.gmra.mrb[0].mxu1 %vm119_vm2, %v492_v9 }
  0x31   :  { %466 = vmatprep.mubr.msk.bf16.mxu0 %vm119_vm2, %v493_v10  ;;  %474 = vmatprep.mubr.msk.bf16.mxu1 %vm119_vm2, %v494_v11 }
  0x38   :  { %467 = vmatmul.mubr.msk.bf16.gmra.mrb[4].mxu0 %vm119_vm2, %v495_v12  ;;  %475 = vmatmul.mubr.msk.bf16.gmra.mrb[4].mxu1 %vm119_vm2, %v496_v13 }
 0x103   :  { %v464_v15 = vpop.f32.mrb[0].mxu0  ;;  %v472_v16 = vpop.f32.mrb[0].mxu1 }
 0x104   :  { %v194_v17 = vadd.f32 %v464_v15, %v350_v14  ;;  %v226_v18 = vadd.f32 %v472_v16, %v350_v14  ;;  %v185_v19 = vpop.f32.mrb[1].mxu0  ;;  %v217_v20 = vpop.f32.mrb[1].mxu1 }
 0x105   :  { %v186_v21 = vadd.f32 %v350_v14, %v185_v19  ;;  %v218_v22 = vadd.f32 %v350_v14, %v217_v20  ;;  %v465_v23 = vpop.f32.mrb[2].mxu0  ;;  %v473_v24 = vpop.f32.mrb[2].mxu1 }
 0x106   :  { %v197_v25 = vadd.f32 %v465_v23, %v350_v14  ;;  %v229_v26 = vadd.f32 %v473_v24, %v350_v14  ;;  %v188_v27 = vpop.f32.mrb[3].mxu0  ;;  %v220_v28 = vpop.f32.mrb[3].mxu1  ;;  %v250_v31 = vmax.f32 %v194_v17, 0.0  ;;  %v258_v32 = vmax.f32 %v226_v18, 0.0 }
 0x107   :  { %v189_v29 = vadd.f32 %v350_v14, %v188_v27  ;;  %v221_v30 = vadd.f32 %v350_v14, %v220_v28  ;;  %v248_v35 = vmax.f32 %v186_v21, 0.0  ;;  %v256_v36 = vmax.f32 %v218_v22, 0.0 }
 0x108   :  { %v251_v33 = vmax.f32 %v197_v25, 0.0  ;;  %v259_v34 = vmax.f32 %v229_v26, 0.0 }
 0x109   :  { %v249_v37 = vmax.f32 %v189_v29, 0.0  ;;  %v257_v38 = vmax.f32 %v221_v30, 0.0 }
 0x10a   :  { %v409_v39 = vpack.c.bf16 %v251_v33, %v250_v31  ;;  %v429_v40 = vpack.c.bf16 %v259_v34, %v258_v32 }
 0x10b   :  { %v404_v41 = vpack.c.bf16 %v249_v37, %v248_v35  ;;  %v424_v42 = vpack.c.bf16 %v257_v38, %v256_v36  ;;  %v468_v43 = vpop.f32.mrb[4].mxu0  ;;  %v476_v44 = vpop.f32.mrb[4].mxu1 }
 0x10c   :  { %441 = vst [vmem:[%s653_s3 + $0x8] sm:$0xff] %v409_v39   ;;  %445 = vst [vmem:[%s653_s3 + $0x28] sm:$0xff] %v429_v40   ;;  %v210_v45 = vadd.f32 %v468_v43, %v350_v14  ;;  %v242_v46 = vadd.f32 %v476_v44, %v350_v14  ;;  %v201_v47 = vpop.f32.mrb[5].mxu0  ;;  %v233_v48 = vpop.f32.mrb[5].mxu1 }
 0x10d   :  { %405 = vst [vmem:[%s653_s3] sm:$0xff] %v404_v41   ;;  %444 = vst [vmem:[%s653_s3 + $0x20] sm:$0xff] %v424_v42   ;;  %v202_v49 = vadd.f32 %v350_v14, %v201_v47  ;;  %v234_v50 = vadd.f32 %v350_v14, %v233_v48  ;;  %v469_v51 = vpop.f32.mrb[6].mxu0  ;;  %v477_v52 = vpop.f32.mrb[6].mxu1 }
 0x10e   :  { %v213_v53 = vadd.f32 %v469_v51, %v350_v14  ;;  %v245_v54 = vadd.f32 %v477_v52, %v350_v14  ;;  %v204_v55 = vpop.f32.mrb[7].mxu0  ;;  %v236_v56 = vpop.f32.mrb[7].mxu1  ;;  %v254_v59 = vmax.f32 %v210_v45, 0.0  ;;  %v262_v60 = vmax.f32 %v242_v46, 0.0 }
 0x10f   :  { %v205_v57 = vadd.f32 %v350_v14, %v204_v55  ;;  %v237_v58 = vadd.f32 %v350_v14, %v236_v56  ;;  %v252_v63 = vmax.f32 %v202_v49, 0.0  ;;  %v260_v0 = vmax.f32 %v234_v50, 0.0 }
 0x110   :  { %v255_v61 = vmax.f32 %v213_v53, 0.0  ;;  %v263_v62 = vmax.f32 %v245_v54, 0.0 }
 0x111   :  { %v253_v1 = vmax.f32 %v205_v57, 0.0  ;;  %v261_v2 = vmax.f32 %v237_v58, 0.0 }
 0x112   :  { %v419_v3 = vpack.c.bf16 %v255_v61, %v254_v59  ;;  %v439_v4 = vpack.c.bf16 %v263_v62, %v262_v60 }
 0x113   :  { %v414_v5 = vpack.c.bf16 %v253_v1, %v252_v63  ;;  %v434_v6 = vpack.c.bf16 %v261_v2, %v260_v0 }
 0x114   :  { %443 = vst [vmem:[%s653_s3 + $0x18] sm:$0xff] %v419_v3   ;;  %447 = vst [vmem:[%s653_s3 + $0x38] sm:$0xff] %v439_v4  }
 0x115   :  { %442 = vst [vmem:[%s653_s3 + $0x10] sm:$0xff] %v414_v5   ;;  %446 = vst [vmem:[%s653_s3 + $0x30] sm:$0xff] %v434_v6  }
 0x116   :  { %348 = vsyncpa [#allocation3], 1 }
 0x117   :  { %349 = vsyncpa [#allocation5], 1 }

// kernel: alexnet_forward.9
= control target key start
LH: loop header
LB: loop body
LE: loop exit
PB: predicated region body
PF: predicated region fallthrough
CT: control target
= control target key end

     0   :  { %v1353_v3 = vmov 1935823168   ;;  %v1354_v5 = vmov 1983009808   ;;  %v587_v10 = vlaneseq  ;;  %vm1097_vm0 = vcmask 1041409   ;;  %s1697_s0 = inlined_call_operand.vmem [shape: bf16[8,2,4,2,256], index: 0, kind: input, shape index: {}]   ;;  %s1698_s1 = inlined_call_operand.vmem [shape: bf16[8,4,256], index: 1, kind: output, shape index: {}]  }
   0x1   :  { %v8_v0 = vld [vmem:[%s1697_s0] sm:$0x3]  ;;  %v9_v1 = vld [vmem:[%s1697_s0 + $0x2] sm:$0x3]  ;;  %v10_v2 = vld [vmem:[%s1697_s0 + $0x4] sm:$0x3]  ;;  %v585_v4 = vunpack.c.l.s4 %v1353_v3  ;;  %v809_v6 = vunpack.c.l.s4 %v1354_v5 }
   0x2   :  { %v11_v7 = vld [vmem:[%s1697_s0 + $0x6] sm:$0x3]  ;;  %v12_v8 = vld [vmem:[%s1697_s0 + $0x8] sm:$0x3]  ;;  %v13_v9 = vld [vmem:[%s1697_s0 + $0xa] sm:$0x3] }
   0x3   :  { %v14_v11 = vld [vmem:[%s1697_s0 + $0xc] sm:$0x3]  ;;  %v15_v12 = vld [vmem:[%s1697_s0 + $0xe] sm:$0x3]  ;;  %v73_v13 = vshrl.u32 %v8_v0, 16  ;;  %v78_v14 = vshrl.u32 %v9_v1, 16  ;;  %v586_v15 = vunpack.c.0.s8 %v585_v4  ;;  %v810_v16 = vunpack.c.0.s8 %v809_v6 }
   0x4   :  { %v83_v17 = vshrl.u32 %v10_v2, 16  ;;  %v88_v18 = vshrl.u32 %v11_v7, 16  ;;  %v297_v19 = vshrl.u32 %v12_v8, 16  ;;  %v302_v20 = vshrl.u32 %v13_v9, 16  ;;  %v16_v25 = vld [vmem:[%s1697_s0 + $0x10] sm:$0x3] }
   0x5   :  { %v264_v21 = vmax.bf16 %v73_v13, %v8_v0  ;;  %v265_v22 = vmax.bf16 %v78_v14, %v9_v1  ;;  %v307_v23 = vshrl.u32 %v14_v11, 16  ;;  %v312_v24 = vshrl.u32 %v15_v12, 16  ;;  %v17_v30 = vld [vmem:[%s1697_s0 + $0x12] sm:$0x3]  ;;  %v18_v34 = vld [vmem:[%s1697_s0 + $0x14] sm:$0x3] }
   0x6   :  { %v266_v26 = vmax.bf16 %v83_v17, %v10_v2  ;;  %v267_v27 = vmax.bf16 %v88_v18, %v11_v7  ;;  %v488_v28 = vmax.bf16 %v297_v19, %v12_v8  ;;  %v489_v29 = vmax.bf16 %v302_v20, %v13_v9  ;;  %v19_v35 = vld [vmem:[%s1697_s0 + $0x16] sm:$0x3]  ;;  %v20_v43 = vld [vmem:[%s1697_s0 + $0x18] sm:$0x3]  ;;  %v21_v52 = vld [vmem:[%s1697_s0 + $0x1a] sm:$0x3] }
   0x7   :  { %v490_v31 = vmax.bf16 %v307_v23, %v14_v11  ;;  %v491_v32 = vmax.bf16 %v312_v24, %v15_v12  ;;  %v588_v33 = vshrl.u32 %v587_v10, 7  ;;  %v93_v38 = vshrl.u32 %v16_v25, 16  ;;  %v22_v53 = vld [vmem:[%s1697_s0 + $0x1c] sm:$0x3]  ;;  %v23_v54 = vld [vmem:[%s1697_s0 + $0x1e] sm:$0x3] }
   0x8   :  { %v520_v36 = vmax.bf16 %v488_v28, %v264_v21  ;;  %v521_v37 = vmax.bf16 %v489_v29, %v265_v22  ;;  %vm1100_vm1 = vcmask 1042434   ;;  %vm1103_vm2 = vcmask 1043459   ;;  %v24_v23 = vld [vmem:[%s1697_s0 + $0x20] sm:$0x3]  ;;  %v25_v28 = vld [vmem:[%s1697_s0 + $0x22] sm:$0x3] }
   0x9   :  { %v522_v39 = vmax.bf16 %v490_v31, %v266_v26  ;;  %v523_v40 = vmax.bf16 %v491_v32, %v267_v27  ;;  %v1401_v41 = vsub.s32 %v586_v15, %v588_v33  ;;  %v1403_v42 = vsub.s32 %v810_v16, %v588_v33  ;;  %v26_v29 = vld [vmem:[%s1697_s0 + $0x24] sm:$0x3] }
   0xa   :  { %v98_v44 = vshrl.u32 %v17_v30, 16  ;;  %v103_v45 = vshrl.u32 %v18_v34, 16  ;;  %v108_v46 = vshrl.u32 %v19_v35, 16  ;;  %v268_v47 = vmax.bf16 %v93_v38, %v16_v25 }
   0xb   :  { %v590_v48 = vrot.slane %v520_v36, %v1401_v41  ;;  %v597_v49 = vrot.slane %v521_v37, %v1401_v41  ;;  %v604_v50 = vrot.slane %v522_v39, %v1401_v41  ;;  %v611_v51 = vrot.slane %v523_v40, %v1401_v41 }
   0xc   :  { %v269_v55 = vmax.bf16 %v98_v44, %v17_v30  ;;  %v270_v56 = vmax.bf16 %v103_v45, %v18_v34  ;;  %v271_v57 = vmax.bf16 %v108_v46, %v19_v35  ;;  %v317_v58 = vshrl.u32 %v20_v43, 16  ;;  %v27_v34 = vld [vmem:[%s1697_s0 + $0x26] sm:$0x3] }
   0xd   :  { %v814_v59 = vrot.slane %v590_v48, %v1403_v42  ;;  %v821_v60 = vrot.slane %v597_v49, %v1403_v42  ;;  %v828_v61 = vrot.slane %v604_v50, %v1403_v42  ;;  %v835_v62 = vrot.slane %v611_v51, %v1403_v42 }
   0xe   :  { %v322_v63 = vshrl.u32 %v21_v52, 16  ;;  %v327_v0 = vshrl.u32 %v22_v53, 16  ;;  %v332_v1 = vshrl.u32 %v23_v54, 16  ;;  %v492_v2 = vmax.bf16 %v317_v58, %v20_v43  ;;  %v29_v58 = vld [vmem:[%s1697_s0 + $0x2a] sm:$0x3] }
   0xf   :  { %v1032_v3 = vunpack.c.l.b16 %v814_v59  ;;  %v1033_v4 = vunpack.c.h.b16 %v814_v59  ;;  %v1034_v5 = vunpack.c.l.b16 %v821_v60  ;;  %v1035_v6 = vunpack.c.h.b16 %v821_v60 }
  0x10   :  { %v1036_v7 = vunpack.c.l.b16 %v828_v61  ;;  %v1037_v8 = vunpack.c.h.b16 %v828_v61  ;;  %v1038_v9 = vunpack.c.l.b16 %v835_v62  ;;  %v1039_v10 = vunpack.c.h.b16 %v835_v62  ;;  %v30_v61 = vld [vmem:[%s1697_s0 + $0x2c] sm:$0x3]  ;;  %v31_v62 = vld [vmem:[%s1697_s0 + $0x2e] sm:$0x3] }
  0x11   :  { %v1096_v11 = vrot.slane %v1034_v5, 7  ;;  %v1105_v12 = vrot.slane %v1035_v6, 7  ;;  %v493_v13 = vmax.bf16 %v322_v63, %v21_v52  ;;  %v494_v14 = vmax.bf16 %v327_v0, %v22_v53 }
  0x12   :  { %v1099_v15 = vrot.slane %v1036_v7, 6  ;;  %v1102_v16 = vrot.slane %v1038_v9, 5  ;;  %v1107_v17 = vrot.slane %v1037_v8, 6  ;;  %v1109_v18 = vrot.slane %v1039_v10, 5 }
  0x13   :  { %v1098_v19 = vsel %vm1097_vm0, %v1096_v11, %v1032_v3  ;;  %v1106_v20 = vsel %vm1097_vm0, %v1105_v12, %v1033_v4  ;;  %v495_v21 = vmax.bf16 %v332_v1, %v23_v54  ;;  %v524_v22 = vmax.bf16 %v492_v2, %v268_v47 }
  0x14   :  { %v1101_v24 = vsel %vm1100_vm1, %v1099_v15, %v1098_v19  ;;  %v1108_v25 = vsel %vm1100_vm1, %v1107_v17, %v1106_v20  ;;  %v525_v26 = vmax.bf16 %v493_v13, %v269_v55  ;;  %v526_v27 = vmax.bf16 %v494_v14, %v270_v56  ;;  %v32_v13 = vld [vmem:[%s1697_s0 + $0x30] sm:$0x3]  ;;  %v34_v19 = vld [vmem:[%s1697_s0 + $0x34] sm:$0x3] }
  0x15   :  { %v1104_v30 = vsel %vm1103_vm2, %v1102_v16, %v1101_v24  ;;  %v1110_v31 = vsel %vm1103_vm2, %v1109_v18, %v1108_v25  ;;  %v527_v32 = vmax.bf16 %v495_v21, %v271_v57  ;;  %v618_v33 = vrot.slane %v524_v22, %v1401_v41  ;;  %v28_v57 = vld [vmem:[%s1697_s0 + $0x28] sm:$0x3]  ;;  %v33_v18 = vld [vmem:[%s1697_s0 + $0x32] sm:$0x3]  ;;  %v35_v24 = vld [vmem:[%s1697_s0 + $0x36] sm:$0x3] }
  0x16   :  { %v1195_v35 = vpack.c.b16 %v1110_v31, %v1104_v30  ;;  %v625_v36 = vrot.slane %v525_v26, %v1401_v41  ;;  %v632_v37 = vrot.slane %v526_v27, %v1401_v41  ;;  %v113_v38 = vshrl.u32 %v24_v23, 16  ;;  %v36_v31 = vld [vmem:[%s1697_s0 + $0x38] sm:$0x3] }
  0x17   :  { %v639_v39 = vrot.slane %v527_v32, %v1401_v41  ;;  %v842_v40 = vrot.slane %v618_v33, %v1403_v42  ;;  %v118_v43 = vshrl.u32 %v25_v28, 16  ;;  %v123_v44 = vshrl.u32 %v26_v29, 16 }
  0x18   :  { %1343 = vst.sshfl [vmem:[%s1698_s1] sm:$0x33 pattern:$0x76325410] %v1195_v35  ;;  %v849_v45 = vrot.slane %v625_v36, %v1403_v42  ;;  %v856_v46 = vrot.slane %v632_v37, %v1403_v42  ;;  %v128_v47 = vshrl.u32 %v27_v34, 16  ;;  %v272_v48 = vmax.bf16 %v113_v38, %v24_v23  ;;  %v37_v36 = vld [vmem:[%s1697_s0 + $0x3a] sm:$0x3] }
  0x19   :  { %v863_v49 = vrot.slane %v639_v39, %v1403_v42  ;;  %v1040_v50 = vunpack.c.l.b16 %v842_v40  ;;  %v1041_v51 = vunpack.c.h.b16 %v842_v40  ;;  %v273_v52 = vmax.bf16 %v118_v43, %v25_v28  ;;  %v38_v37 = vld [vmem:[%s1697_s0 + $0x3c] sm:$0x3] }
  0x1a   :  { %v1042_v53 = vunpack.c.l.b16 %v849_v45  ;;  %v1043_v54 = vunpack.c.h.b16 %v849_v45  ;;  %v1044_v55 = vunpack.c.l.b16 %v856_v46  ;;  %v1045_v56 = vunpack.c.h.b16 %v856_v46 }
  0x1b   :  { %v1046_v59 = vunpack.c.l.b16 %v863_v49  ;;  %v1047_v60 = vunpack.c.h.b16 %v863_v49  ;;  %v274_v63 = vmax.bf16 %v123_v44, %v26_v29  ;;  %v275_v0 = vmax.bf16 %v128_v47, %v27_v34 }
  0x1c   :  { %v1111_v1 = vrot.slane %v1042_v53, 7  ;;  %v1113_v2 = vrot.slane %v1044_v55, 6  ;;  %v1117_v3 = vrot.slane %v1043_v54, 7  ;;  %v1119_v4 = vrot.slane %v1045_v56, 6 }
  0x1d   :  { %v1115_v5 = vrot.slane %v1046_v59, 5  ;;  %v1121_v6 = vrot.slane %v1047_v60, 5  ;;  %v337_v7 = vshrl.u32 %v28_v57, 16  ;;  %v342_v8 = vshrl.u32 %v29_v58, 16 }
  0x1e   :  { %v1112_v9 = vsel %vm1097_vm0, %v1111_v1, %v1040_v50  ;;  %v1118_v10 = vsel %vm1097_vm0, %v1117_v3, %v1041_v51  ;;  %v347_v11 = vshrl.u32 %v30_v61, 16  ;;  %v352_v12 = vshrl.u32 %v31_v62, 16 }
  0x1f   :  { %v1114_v14 = vsel %vm1100_vm1, %v1113_v2, %v1112_v9  ;;  %v1120_v15 = vsel %vm1100_vm1, %v1119_v4, %v1118_v10  ;;  %v496_v16 = vmax.bf16 %v337_v7, %v28_v57  ;;  %v497_v17 = vmax.bf16 %v342_v8, %v29_v58 }
  0x20   :  { %v1116_v20 = vsel %vm1103_vm2, %v1115_v5, %v1114_v14  ;;  %v1122_v21 = vsel %vm1103_vm2, %v1121_v6, %v1120_v15  ;;  %v498_v22 = vmax.bf16 %v347_v11, %v30_v61  ;;  %v499_v23 = vmax.bf16 %v352_v12, %v31_v62  ;;  %v40_v11 = vld [vmem:[%s1697_s0 + $0x40] sm:$0x3] }
  0x21   :  { %v1196_v25 = vpack.c.b16 %v1122_v21, %v1116_v20  ;;  %v528_v26 = vmax.bf16 %v496_v16, %v272_v48  ;;  %v529_v27 = vmax.bf16 %v497_v17, %v273_v52  ;;  %v133_v28 = vshrl.u32 %v32_v13, 16  ;;  %v39_v52 = vld [vmem:[%s1697_s0 + $0x3e] sm:$0x3]  ;;  %v41_v16 = vld [vmem:[%s1697_s0 + $0x42] sm:$0x3] }
  0x22   :  { %v530_v29 = vmax.bf16 %v498_v22, %v274_v63  ;;  %v531_v30 = vmax.bf16 %v499_v23, %v275_v0  ;;  %v138_v32 = vshrl.u32 %v33_v18, 16  ;;  %v143_v33 = vshrl.u32 %v34_v19, 16  ;;  %v42_v17 = vld [vmem:[%s1697_s0 + $0x44] sm:$0x3]  ;;  %v43_v22 = vld [vmem:[%s1697_s0 + $0x46] sm:$0x3] }
  0x23   :  { %1344 = vst.sshfl [vmem:[%s1698_s1 + $0x4] sm:$0x33 pattern:$0x76325410] %v1196_v25  ;;  %v646_v34 = vrot.slane %v528_v26, %v1401_v41  ;;  %v653_v35 = vrot.slane %v529_v27, %v1401_v41  ;;  %v148_v38 = vshrl.u32 %v35_v24, 16  ;;  %v276_v39 = vmax.bf16 %v133_v28, %v32_v13 }
  0x24   :  { %v660_v40 = vrot.slane %v530_v29, %v1401_v41  ;;  %v667_v43 = vrot.slane %v531_v30, %v1401_v41  ;;  %v277_v44 = vmax.bf16 %v138_v32, %v33_v18  ;;  %v278_v45 = vmax.bf16 %v143_v33, %v34_v19 }
  0x25   :  { %v870_v46 = vrot.slane %v646_v34, %v1403_v42  ;;  %v877_v47 = vrot.slane %v653_v35, %v1403_v42  ;;  %v279_v48 = vmax.bf16 %v148_v38, %v35_v24  ;;  %v357_v49 = vshrl.u32 %v36_v31, 16  ;;  %v45_v38 = vld [vmem:[%s1697_s0 + $0x4a] sm:$0x3] }
  0x26   :  { %v884_v50 = vrot.slane %v660_v40, %v1403_v42  ;;  %v891_v51 = vrot.slane %v667_v43, %v1403_v42  ;;  %v362_v53 = vshrl.u32 %v37_v36, 16  ;;  %v367_v54 = vshrl.u32 %v38_v37, 16 }
  0x27   :  { %v1048_v55 = vunpack.c.l.b16 %v870_v46  ;;  %v1049_v56 = vunpack.c.h.b16 %v870_v46  ;;  %v1050_v57 = vunpack.c.l.b16 %v877_v47  ;;  %v1051_v58 = vunpack.c.h.b16 %v877_v47 }
  0x28   :  { %v1052_v59 = vunpack.c.l.b16 %v884_v50  ;;  %v1053_v60 = vunpack.c.h.b16 %v884_v50  ;;  %v1054_v61 = vunpack.c.l.b16 %v891_v51  ;;  %v1055_v62 = vunpack.c.h.b16 %v891_v51  ;;  %v46_v51 = vld [vmem:[%s1697_s0 + $0x4c] sm:$0x3] }
  0x29   :  { %v1123_v63 = vrot.slane %v1050_v57, 7  ;;  %v1129_v0 = vrot.slane %v1051_v58, 7  ;;  %v372_v1 = vshrl.u32 %v39_v52, 16  ;;  %v500_v2 = vmax.bf16 %v357_v49, %v36_v31 }
  0x2a   :  { %v1125_v3 = vrot.slane %v1052_v59, 6  ;;  %v1127_v4 = vrot.slane %v1054_v61, 5  ;;  %v1131_v5 = vrot.slane %v1053_v60, 6  ;;  %v1133_v6 = vrot.slane %v1055_v62, 5 }
  0x2b   :  { %v1124_v7 = vsel %vm1097_vm0, %v1123_v63, %v1048_v55  ;;  %v1130_v8 = vsel %vm1097_vm0, %v1129_v0, %v1049_v56  ;;  %v501_v9 = vmax.bf16 %v362_v53, %v37_v36  ;;  %v502_v10 = vmax.bf16 %v367_v54, %v38_v37  ;;  %v44_v37 = vld [vmem:[%s1697_s0 + $0x48] sm:$0x3] }
  0x2c   :  { %v1126_v12 = vsel %vm1100_vm1, %v1125_v3, %v1124_v7  ;;  %v1132_v13 = vsel %vm1100_vm1, %v1131_v5, %v1130_v8  ;;  %v503_v14 = vmax.bf16 %v372_v1, %v39_v52  ;;  %v532_v15 = vmax.bf16 %v500_v2, %v276_v39  ;;  %v47_v52 = vld [vmem:[%s1697_s0 + $0x4e] sm:$0x3]  ;;  %v48_v5 = vld [vmem:[%s1697_s0 + $0x50] sm:$0x3] }
  0x2d   :  { %v1128_v18 = vsel %vm1103_vm2, %v1127_v4, %v1126_v12  ;;  %v1134_v19 = vsel %vm1103_vm2, %v1133_v6, %v1132_v13  ;;  %v533_v20 = vmax.bf16 %v501_v9, %v277_v44  ;;  %v534_v21 = vmax.bf16 %v502_v10, %v278_v45  ;;  %v49_v10 = vld [vmem:[%s1697_s0 + $0x52] sm:$0x3] }
  0x2e   :  { %v1197_v23 = vpack.c.b16 %v1134_v19, %v1128_v18  ;;  %v535_v24 = vmax.bf16 %v503_v14, %v279_v48  ;;  %v674_v25 = vrot.slane %v532_v15, %v1401_v41  ;;  %v153_v26 = vshrl.u32 %v40_v11, 16 }
  0x2f   :  { %v681_v27 = vrot.slane %v533_v20, %v1401_v41  ;;  %v688_v28 = vrot.slane %v534_v21, %v1401_v41  ;;  %v158_v29 = vshrl.u32 %v41_v16, 16  ;;  %v163_v30 = vshrl.u32 %v42_v17, 16 }
  0x30   :  { %1345 = vst.sshfl [vmem:[%s1698_s1 + $0x8] sm:$0x33 pattern:$0x76325410] %v1197_v23  ;;  %v695_v31 = vrot.slane %v535_v24, %v1401_v41  ;;  %v898_v32 = vrot.slane %v674_v25, %v1403_v42  ;;  %v168_v33 = vshrl.u32 %v43_v22, 16  ;;  %v280_v34 = vmax.bf16 %v153_v26, %v40_v11 }
  0x31   :  { %v905_v35 = vrot.slane %v681_v27, %v1403_v42  ;;  %v912_v36 = vrot.slane %v688_v28, %v1403_v42  ;;  %v281_v39 = vmax.bf16 %v158_v29, %v41_v16  ;;  %v282_v40 = vmax.bf16 %v163_v30, %v42_v17  ;;  %v50_v11 = vld [vmem:[%s1697_s0 + $0x54] sm:$0x3]  ;;  %v51_v16 = vld [vmem:[%s1697_s0 + $0x56] sm:$0x3]  ;;  %v52_v23 = vld [vmem:[%s1697_s0 + $0x58] sm:$0x3] }
  0x32   :  { %v919_v43 = vrot.slane %v695_v31, %v1403_v42  ;;  %v1056_v44 = vunpack.c.l.b16 %v898_v32  ;;  %v1057_v45 = vunpack.c.h.b16 %v898_v32  ;;  %v283_v46 = vmax.bf16 %v168_v33, %v43_v22 }
  0x33   :  { %v1058_v47 = vunpack.c.l.b16 %v905_v35  ;;  %v1059_v48 = vunpack.c.h.b16 %v905_v35  ;;  %v1060_v49 = vunpack.c.l.b16 %v912_v36  ;;  %v1061_v50 = vunpack.c.h.b16 %v912_v36  ;;  %v53_v36 = vld [vmem:[%s1697_s0 + $0x5a] sm:$0x3] }
  0x34   :  { %v1062_v53 = vunpack.c.l.b16 %v919_v43  ;;  %v1063_v54 = vunpack.c.h.b16 %v919_v43  ;;  %v377_v55 = vshrl.u32 %v44_v37, 16  ;;  %v382_v56 = vshrl.u32 %v45_v38, 16 }
  0x35   :  { %v1135_v57 = vrot.slane %v1058_v47, 7  ;;  %v1137_v58 = vrot.slane %v1060_v49, 6  ;;  %v1141_v59 = vrot.slane %v1059_v48, 7  ;;  %v1143_v60 = vrot.slane %v1061_v50, 6  ;;  %v55_v50 = vld [vmem:[%s1697_s0 + $0x5e] sm:$0x3] }
  0x36   :  { %v1139_v61 = vrot.slane %v1062_v53, 5  ;;  %v1145_v62 = vrot.slane %v1063_v54, 5  ;;  %v387_v63 = vshrl.u32 %v46_v51, 16  ;;  %v392_v0 = vshrl.u32 %v47_v52, 16 }
  0x37   :  { %v1136_v1 = vsel %vm1097_vm0, %v1135_v57, %v1056_v44  ;;  %v1142_v2 = vsel %vm1097_vm0, %v1141_v59, %v1057_v45  ;;  %v504_v3 = vmax.bf16 %v377_v55, %v44_v37  ;;  %v505_v4 = vmax.bf16 %v382_v56, %v45_v38  ;;  %v54_v37 = vld [vmem:[%s1697_s0 + $0x5c] sm:$0x3] }
  0x38   :  { %v1138_v6 = vsel %vm1100_vm1, %v1137_v58, %v1136_v1  ;;  %v1144_v7 = vsel %vm1100_vm1, %v1143_v60, %v1142_v2  ;;  %v506_v8 = vmax.bf16 %v387_v63, %v46_v51  ;;  %v507_v9 = vmax.bf16 %v392_v0, %v47_v52  ;;  %v56_v63 = vld [vmem:[%s1697_s0 + $0x60] sm:$0x3] }
  0x39   :  { %v1140_v12 = vsel %vm1103_vm2, %v1139_v61, %v1138_v6  ;;  %v1146_v13 = vsel %vm1103_vm2, %v1145_v62, %v1144_v7  ;;  %v536_v14 = vmax.bf16 %v504_v3, %v280_v34  ;;  %v537_v15 = vmax.bf16 %v505_v4, %v281_v39  ;;  %v57_v4 = vld [vmem:[%s1697_s0 + $0x62] sm:$0x3] }
  0x3a   :  { %v1198_v17 = vpack.c.b16 %v1146_v13, %v1140_v12  ;;  %v538_v18 = vmax.bf16 %v506_v8, %v282_v40  ;;  %v539_v19 = vmax.bf16 %v507_v9, %v283_v46  ;;  %v173_v20 = vshrl.u32 %v48_v5, 16 }
  0x3b   :  { %v702_v21 = vrot.slane %v536_v14, %v1401_v41  ;;  %v709_v22 = vrot.slane %v537_v15, %v1401_v41  ;;  %v178_v24 = vshrl.u32 %v49_v10, 16  ;;  %v183_v25 = vshrl.u32 %v50_v11, 16 }
  0x3c   :  { %1346 = vst.sshfl [vmem:[%s1698_s1 + $0xc] sm:$0x33 pattern:$0x76325410] %v1198_v17  ;;  %v716_v26 = vrot.slane %v538_v18, %v1401_v41  ;;  %v723_v27 = vrot.slane %v539_v19, %v1401_v41  ;;  %v188_v28 = vshrl.u32 %v51_v16, 16  ;;  %v284_v29 = vmax.bf16 %v173_v20, %v48_v5 }
  0x3d   :  { %v926_v30 = vrot.slane %v702_v21, %v1403_v42  ;;  %v933_v31 = vrot.slane %v709_v22, %v1403_v42  ;;  %v285_v32 = vmax.bf16 %v178_v24, %v49_v10  ;;  %v286_v33 = vmax.bf16 %v183_v25, %v50_v11  ;;  %v58_v5 = vld [vmem:[%s1697_s0 + $0x64] sm:$0x3]  ;;  %v59_v10 = vld [vmem:[%s1697_s0 + $0x66] sm:$0x3]  ;;  %v60_v17 = vld [vmem:[%s1697_s0 + $0x68] sm:$0x3] }
  0x3e   :  { %v940_v34 = vrot.slane %v716_v26, %v1403_v42  ;;  %v947_v35 = vrot.slane %v723_v27, %v1403_v42  ;;  %v287_v38 = vmax.bf16 %v188_v28, %v51_v16  ;;  %v397_v39 = vshrl.u32 %v52_v23, 16  ;;  %v61_v22 = vld [vmem:[%s1697_s0 + $0x6a] sm:$0x3] }
  0x3f   :  { %v1064_v40 = vunpack.c.l.b16 %v926_v30  ;;  %v1065_v43 = vunpack.c.h.b16 %v926_v30  ;;  %v1066_v44 = vunpack.c.l.b16 %v933_v31  ;;  %v1067_v45 = vunpack.c.h.b16 %v933_v31  ;;  %v62_v31 = vld [vmem:[%s1697_s0 + $0x6c] sm:$0x3] }
  0x40   :  { %v1068_v46 = vunpack.c.l.b16 %v940_v34  ;;  %v1069_v47 = vunpack.c.h.b16 %v940_v34  ;;  %v1070_v48 = vunpack.c.l.b16 %v947_v35  ;;  %v1071_v49 = vunpack.c.h.b16 %v947_v35 }
  0x41   :  { %v1147_v51 = vrot.slane %v1066_v44, 7  ;;  %v1153_v52 = vrot.slane %v1067_v45, 7  ;;  %v402_v53 = vshrl.u32 %v53_v36, 16  ;;  %v407_v54 = vshrl.u32 %v54_v37, 16 }
  0x42   :  { %v1149_v55 = vrot.slane %v1068_v46, 6  ;;  %v1151_v56 = vrot.slane %v1070_v48, 5  ;;  %v1155_v57 = vrot.slane %v1069_v47, 6  ;;  %v1157_v58 = vrot.slane %v1071_v49, 5 }
  0x43   :  { %v1148_v59 = vsel %vm1097_vm0, %v1147_v51, %v1064_v40  ;;  %v1154_v60 = vsel %vm1097_vm0, %v1153_v52, %v1065_v43  ;;  %v412_v61 = vshrl.u32 %v55_v50, 16  ;;  %v508_v62 = vmax.bf16 %v397_v39, %v52_v23 }
  0x44   :  { %v1150_v0 = vsel %vm1100_vm1, %v1149_v55, %v1148_v59  ;;  %v1156_v1 = vsel %vm1100_vm1, %v1155_v57, %v1154_v60  ;;  %v509_v2 = vmax.bf16 %v402_v53, %v53_v36  ;;  %v510_v3 = vmax.bf16 %v407_v54, %v54_v37 }
  0x45   :  { %v1152_v6 = vsel %vm1103_vm2, %v1151_v56, %v1150_v0  ;;  %v1158_v7 = vsel %vm1103_vm2, %v1157_v58, %v1156_v1  ;;  %v511_v8 = vmax.bf16 %v412_v61, %v55_v50  ;;  %v540_v9 = vmax.bf16 %v508_v62, %v284_v29  ;;  %v64_v61 = vld [vmem:[%s1697_s0 + $0x70] sm:$0x3] }
  0x46   :  { %v1199_v11 = vpack.c.b16 %v1158_v7, %v1152_v6  ;;  %v541_v12 = vmax.bf16 %v509_v2, %v285_v32  ;;  %v542_v13 = vmax.bf16 %v510_v3, %v286_v33  ;;  %v193_v14 = vshrl.u32 %v56_v63, 16  ;;  %v63_v32 = vld [vmem:[%s1697_s0 + $0x6e] sm:$0x3]  ;;  %v65_v2 = vld [vmem:[%s1697_s0 + $0x72] sm:$0x3] }
  0x47   :  { %v543_v15 = vmax.bf16 %v511_v8, %v287_v38  ;;  %v730_v16 = vrot.slane %v540_v9, %v1401_v41  ;;  %v198_v18 = vshrl.u32 %v57_v4, 16  ;;  %v203_v19 = vshrl.u32 %v58_v5, 16  ;;  %v66_v3 = vld [vmem:[%s1697_s0 + $0x74] sm:$0x3]  ;;  %v67_v8 = vld [vmem:[%s1697_s0 + $0x76] sm:$0x3] }
  0x48   :  { %1347 = vst.sshfl [vmem:[%s1698_s1 + $0x10] sm:$0x33 pattern:$0x76325410] %v1199_v11  ;;  %v737_v20 = vrot.slane %v541_v12, %v1401_v41  ;;  %v744_v21 = vrot.slane %v542_v13, %v1401_v41  ;;  %v208_v23 = vshrl.u32 %v59_v10, 16  ;;  %v288_v24 = vmax.bf16 %v193_v14, %v56_v63 }
  0x49   :  { %v751_v25 = vrot.slane %v543_v15, %v1401_v41  ;;  %v954_v26 = vrot.slane %v730_v16, %v1403_v42  ;;  %v289_v27 = vmax.bf16 %v198_v18, %v57_v4  ;;  %v290_v28 = vmax.bf16 %v203_v19, %v58_v5 }
  0x4a   :  { %v961_v29 = vrot.slane %v737_v20, %v1403_v42  ;;  %v968_v30 = vrot.slane %v744_v21, %v1403_v42  ;;  %v291_v33 = vmax.bf16 %v208_v23, %v59_v10  ;;  %v417_v34 = vshrl.u32 %v60_v17, 16  ;;  %v68_v23 = vld [vmem:[%s1697_s0 + $0x78] sm:$0x3] }
  0x4b   :  { %v975_v35 = vrot.slane %v751_v25, %v1403_v42  ;;  %v1072_v36 = vunpack.c.l.b16 %v954_v26  ;;  %v1073_v37 = vunpack.c.h.b16 %v954_v26  ;;  %v422_v38 = vshrl.u32 %v61_v22, 16 }
  0x4c   :  { %v1074_v39 = vunpack.c.l.b16 %v961_v29  ;;  %v1075_v40 = vunpack.c.h.b16 %v961_v29  ;;  %v1076_v43 = vunpack.c.l.b16 %v968_v30  ;;  %v1077_v44 = vunpack.c.h.b16 %v968_v30 }
  0x4d   :  { %v1078_v45 = vunpack.c.l.b16 %v975_v35  ;;  %v1079_v46 = vunpack.c.h.b16 %v975_v35  ;;  %v427_v47 = vshrl.u32 %v62_v31, 16  ;;  %v432_v48 = vshrl.u32 %v63_v32, 16  ;;  %v70_v35 = vld [vmem:[%s1697_s0 + $0x7c] sm:$0x3] }
  0x4e   :  { %v1159_v49 = vrot.slane %v1074_v39, 7  ;;  %v1161_v50 = vrot.slane %v1076_v43, 6  ;;  %v1165_v51 = vrot.slane %v1075_v40, 7  ;;  %v1167_v52 = vrot.slane %v1077_v44, 6 }
  0x4f   :  { %v1163_v53 = vrot.slane %v1078_v45, 5  ;;  %v1169_v54 = vrot.slane %v1079_v46, 5  ;;  %v512_v55 = vmax.bf16 %v417_v34, %v60_v17  ;;  %v513_v56 = vmax.bf16 %v422_v38, %v61_v22  ;;  %v69_v34 = vld [vmem:[%s1697_s0 + $0x7a] sm:$0x3]  ;;  %v71_v38 = vld [vmem:[%s1697_s0 + $0x7e] sm:$0x3] }
  0x50   :  { %v1160_v57 = vsel %vm1097_vm0, %v1159_v49, %v1072_v36  ;;  %v1166_v58 = vsel %vm1097_vm0, %v1165_v51, %v1073_v37  ;;  %v514_v59 = vmax.bf16 %v427_v47, %v62_v31  ;;  %v515_v60 = vmax.bf16 %v432_v48, %v63_v32 }
  0x51   :  { %v1162_v62 = vsel %vm1100_vm1, %v1161_v50, %v1160_v57  ;;  %v1168_v63 = vsel %vm1100_vm1, %v1167_v52, %v1166_v58  ;;  %v544_v0 = vmax.bf16 %v512_v55, %v288_v24  ;;  %v545_v1 = vmax.bf16 %v513_v56, %v289_v27 }
  0x52   :  { %v1164_v4 = vsel %vm1103_vm2, %v1163_v53, %v1162_v62  ;;  %v1170_v5 = vsel %vm1103_vm2, %v1169_v54, %v1168_v63  ;;  %v546_v6 = vmax.bf16 %v514_v59, %v290_v28  ;;  %v547_v7 = vmax.bf16 %v515_v60, %v291_v33 }
  0x53   :  { %v1200_v9 = vpack.c.b16 %v1170_v5, %v1164_v4  ;;  %v758_v10 = vrot.slane %v544_v0, %v1401_v41  ;;  %v765_v11 = vrot.slane %v545_v1, %v1401_v41  ;;  %v213_v12 = vshrl.u32 %v64_v61, 16 }
  0x54   :  { %v772_v13 = vrot.slane %v546_v6, %v1401_v41  ;;  %v779_v14 = vrot.slane %v547_v7, %v1401_v41  ;;  %v218_v15 = vshrl.u32 %v65_v2, 16  ;;  %v223_v16 = vshrl.u32 %v66_v3, 16 }
  0x55   :  { %1348 = vst.sshfl [vmem:[%s1698_s1 + $0x14] sm:$0x33 pattern:$0x76325410] %v1200_v9  ;;  %v982_v17 = vrot.slane %v758_v10, %v1403_v42  ;;  %v989_v18 = vrot.slane %v765_v11, %v1403_v42  ;;  %v228_v19 = vshrl.u32 %v67_v8, 16  ;;  %v292_v20 = vmax.bf16 %v213_v12, %v64_v61 }
  0x56   :  { %v996_v21 = vrot.slane %v772_v13, %v1403_v42  ;;  %v1003_v22 = vrot.slane %v779_v14, %v1403_v42  ;;  %v293_v24 = vmax.bf16 %v218_v15, %v65_v2  ;;  %v294_v25 = vmax.bf16 %v223_v16, %v66_v3 }
  0x57   :  { %v1080_v26 = vunpack.c.l.b16 %v982_v17  ;;  %v1081_v27 = vunpack.c.h.b16 %v982_v17  ;;  %v1082_v28 = vunpack.c.l.b16 %v989_v18  ;;  %v1083_v29 = vunpack.c.h.b16 %v989_v18 }
  0x58   :  { %v1084_v30 = vunpack.c.l.b16 %v996_v21  ;;  %v1085_v31 = vunpack.c.h.b16 %v996_v21  ;;  %v1086_v32 = vunpack.c.l.b16 %v1003_v22  ;;  %v1087_v33 = vunpack.c.h.b16 %v1003_v22 }
  0x59   :  { %v1171_v36 = vrot.slane %v1082_v28, 7  ;;  %v1177_v37 = vrot.slane %v1083_v29, 7  ;;  %v295_v39 = vmax.bf16 %v228_v19, %v67_v8  ;;  %v437_v40 = vshrl.u32 %v68_v23, 16 }
  0x5a   :  { %v1173_v43 = vrot.slane %v1084_v30, 6  ;;  %v1175_v44 = vrot.slane %v1086_v32, 5  ;;  %v1179_v45 = vrot.slane %v1085_v31, 6  ;;  %v1181_v46 = vrot.slane %v1087_v33, 5 }
  0x5b   :  { %v1172_v47 = vsel %vm1097_vm0, %v1171_v36, %v1080_v26  ;;  %v1178_v48 = vsel %vm1097_vm0, %v1177_v37, %v1081_v27  ;;  %v442_v49 = vshrl.u32 %v69_v34, 16  ;;  %v447_v50 = vshrl.u32 %v70_v35, 16 }
  0x5c   :  { %v1174_v51 = vsel %vm1100_vm1, %v1173_v43, %v1172_v47  ;;  %v1180_v52 = vsel %vm1100_vm1, %v1179_v45, %v1178_v48  ;;  %v452_v53 = vshrl.u32 %v71_v38, 16  ;;  %v516_v54 = vmax.bf16 %v437_v40, %v68_v23 }
  0x5d   :  { %v1176_v55 = vsel %vm1103_vm2, %v1175_v44, %v1174_v51  ;;  %v1182_v56 = vsel %vm1103_vm2, %v1181_v46, %v1180_v52  ;;  %v517_v57 = vmax.bf16 %v442_v49, %v69_v34  ;;  %v518_v58 = vmax.bf16 %v447_v50, %v70_v35 }
  0x5e   :  { %v1201_v59 = vpack.c.b16 %v1182_v56, %v1176_v55  ;;  %v519_v60 = vmax.bf16 %v452_v53, %v71_v38  ;;  %v548_v61 = vmax.bf16 %v516_v54, %v292_v20 }
  0x5f   :  { %v549_v62 = vmax.bf16 %v517_v57, %v293_v24  ;;  %v550_v63 = vmax.bf16 %v518_v58, %v294_v25 }
  0x60   :  { %1349 = vst.sshfl [vmem:[%s1698_s1 + $0x18] sm:$0x33 pattern:$0x76325410] %v1201_v59  ;;  %v551_v0 = vmax.bf16 %v519_v60, %v295_v39  ;;  %v786_v1 = vrot.slane %v548_v61, %v1401_v41 }
  0x61   :  { %v793_v2 = vrot.slane %v549_v62, %v1401_v41  ;;  %v800_v3 = vrot.slane %v550_v63, %v1401_v41 }
  0x62   :  { %v807_v4 = vrot.slane %v551_v0, %v1401_v41  ;;  %v1010_v5 = vrot.slane %v786_v1, %v1403_v42 }
  0x63   :  { %v1017_v6 = vrot.slane %v793_v2, %v1403_v42  ;;  %v1024_v7 = vrot.slane %v800_v3, %v1403_v42 }
  0x64   :  { %v1031_v8 = vrot.slane %v807_v4, %v1403_v42  ;;  %v1088_v9 = vunpack.c.l.b16 %v1010_v5  ;;  %v1089_v10 = vunpack.c.h.b16 %v1010_v5 }
  0x65   :  { %v1090_v11 = vunpack.c.l.b16 %v1017_v6  ;;  %v1091_v12 = vunpack.c.h.b16 %v1017_v6  ;;  %v1092_v13 = vunpack.c.l.b16 %v1024_v7  ;;  %v1093_v14 = vunpack.c.h.b16 %v1024_v7 }
  0x66   :  { %v1094_v15 = vunpack.c.l.b16 %v1031_v8  ;;  %v1095_v16 = vunpack.c.h.b16 %v1031_v8 }
  0x67   :  { %v1183_v17 = vrot.slane %v1090_v11, 7  ;;  %v1185_v18 = vrot.slane %v1092_v13, 6  ;;  %v1189_v19 = vrot.slane %v1091_v12, 7  ;;  %v1191_v41 = vrot.slane %v1093_v14, 6 }
  0x68   :  { %v1187_v20 = vrot.slane %v1094_v15, 5  ;;  %v1193_v21 = vrot.slane %v1095_v16, 5 }
  0x69   :  { %v1184_v22 = vsel %vm1097_vm0, %v1183_v17, %v1088_v9  ;;  %v1190_v23 = vsel %vm1097_vm0, %v1189_v19, %v1089_v10 }
  0x6a   :  { %v1186_v42 = vsel %vm1100_vm1, %v1185_v18, %v1184_v22  ;;  %v1192_v24 = vsel %vm1100_vm1, %v1191_v41, %v1190_v23 }
  0x6b   :  { %v1188_v25 = vsel %vm1103_vm2, %v1187_v20, %v1186_v42  ;;  %v1194_v26 = vsel %vm1103_vm2, %v1193_v21, %v1192_v24 }
  0x6c   :  { %v1202_v27 = vpack.c.b16 %v1194_v26, %v1188_v25 }
  0x6e   :  { %1350 = vst.sshfl [vmem:[%s1698_s1 + $0x1c] sm:$0x33 pattern:$0x76325410] %v1202_v27 }

// kernel: alexnet_forward.8
= control target key start
LH: loop header
LB: loop body
LE: loop exit
PB: predicated region body
PF: predicated region fallthrough
CT: control target
= control target key end

     0   :  { %8 = vsyncpa [#allocation4], 0  ;;  %s4393_s0 = inlined_call_operand.vmem [shape: bf16[128,1152], index: 0, kind: input, shape index: {}]   ;;  %s4394_s1 = inlined_call_operand.vmem [shape: bf16[1152,256], index: 1, kind: input, shape index: {}]   ;;  %s4395_s2 = inlined_call_operand.hbm [shape: f32[1,256], index: 2, kind: input, shape index: {}]   ;;  %s4396_s3 = inlined_call_operand.vmem [shape: bf16[128,256], index: 3, kind: output, shape index: {}]  }
   0x1   :  { %10 = vsyncpa [#allocation4 + $0x1], 0  ;;  %s3564_s12 = smov 0   ;;  %s3566_s13 = smov 0  }
   0x2   :  { %s3568_s14 = smov 0   ;;  %s3570_s15 = smov 0  }
   0x3   :  { %s3572_s16 = smov 0   ;;  %s3574_s17 = smov 0  }
   0x4 LB: > { %s2678_s18 = sadd.s32 4294967295, %s3541_s17   ;;  %s25_s19 = sadd.s32 1, %s3537_s16  ;;  %s3541_s17 = sphi %s3574_s17, %s16_s17   ;;  %s3537_s16 = sphi %s3572_s16, %s4407_s16   ;;  %s3533_s15 = sphi %s3570_s15, %s4406_s15   ;;  %s3529_s14 = sphi %s3568_s14, %s4405_s14   ;;  %s3525_s13 = sphi %s3566_s13, %s4404_s13   ;;  %s3521_s12 = sphi %s3564_s12, %s4403_s12  }
   0x5   : > { %p26_p0 = scmp.ge.s32.totalorder %s25_s19, 2  ;;  %s61_s20 = sadd.s32 1, %s3529_s14 }
   0x6   : > { %p68_p1 = scmp.ne.s32.totalorder %s3529_s14, %s3525_s13  ;;  %p69_p2 = scmp.eq.s32.totalorder %s3541_s17, 0 }
   0x7   : > { %s4409_s19 = smov (%p26_p0, %s25_s19), 0  ;;  %p100_p4 = scmp.ne.s32.totalorder %s3525_s13, %s3521_s12 }
   0x8   : > { %p3600_p3 = por %p69_p2, %p68_p1  ;;  %s58_s22 = ssub.s32 %s3537_s16, %s4409_s19 }
   0x9   : > { %p101_p5 = scmp.eq.s32.totalorder %s2678_s18, 0  ;;  %p59_p6 = scmp.eq.s32.totalorder %s58_s22, 0 }
   0xa   : > { %p126_p7 = scmp.eq.s32.totalorder %s2678_s18, 1  ;;  %p2682_p10 = scmp.ge.s32.totalorder %s3541_s17, 2 }
   0xb   : > { %p3607_p8 = por %p101_p5, %p100_p4 }
   0xc   : > { %s3612_s24 = scalar_select %p59_p6, %s3529_s14, %s61_s20  }
   0xd   : > { %s4399_s23 = scalar_select %p3607_p8, 1, 0 }
   0xe   : > { %p3614_p9 = por %p126_p7, %p68_p1  ;;  %158 = sbr.rel (%p2682_p10) target bundleno = 146 (0x92), region = 20 }
  0x10   : > { %s4400_s25 = scalar_select %p3614_p9, 1, 0 }
  0x15   : > { %161 = sbr.rel (!%p3600_p3) target bundleno = 121 (0x79), region = 24  ;;  %s163_s26 = sand.u32 (%p3600_p3), 1, %s3529_s14  }
  0x16   : > { %s2683_s27 = sshll.u32 (%p3600_p3), %s3537_s16, 2  ;;  %s3235_s28 = smul.u32 (%p3600_p3), 576, %s163_s26 }
  0x17   : > { %s3626_s4 = scalar_lea.vmem (%p3600_p3), %s4394_s1, %s2683_s27 }
  0x18   : > { %v183_v0 = vld [vmem:[%s3626_s4] sm:$0xf] (%p3600_p3)  ;;  %v185_v1 = vld [vmem:[%s3626_s4 + $0x8] sm:$0xf] (%p3600_p3)  ;;  %v187_v2 = vld [vmem:[%s3626_s4 + $0x10] sm:$0xf] (%p3600_p3) }
  0x19   : > { %v189_v3 = vld [vmem:[%s3626_s4 + $0x18] sm:$0xf] (%p3600_p3)  ;;  %v191_v4 = vld [vmem:[%s3626_s4 + $0x20] sm:$0xf] (%p3600_p3)  ;;  %s3633_s5 = scalar_lea.vmem (%p3600_p3), [#allocation2], %s3235_s28 }
  0x1a   : > { %184 = vst [vmem:[%s3633_s5] sm:$0xf] (%p3600_p3), %v183_v0  ;;  %186 = vst [vmem:[%s3633_s5 + $0x4] sm:$0xf] (%p3600_p3), %v185_v1  ;;  %v193_v5 = vld [vmem:[%s3626_s4 + $0x28] sm:$0xf] (%p3600_p3) }
  0x1b   : > { %188 = vst [vmem:[%s3633_s5 + $0x8] sm:$0xf] (%p3600_p3), %v187_v2  ;;  %190 = vst [vmem:[%s3633_s5 + $0xc] sm:$0xf] (%p3600_p3), %v189_v3  ;;  %v195_v6 = vld [vmem:[%s3626_s4 + $0x30] sm:$0xf] (%p3600_p3) }
  0x1c   : > { %192 = vst [vmem:[%s3633_s5 + $0x10] sm:$0xf] %v191_v4  ;;  %v197_v7 = vld [vmem:[%s3626_s4 + $0x38] sm:$0xf]  ;;  %194 = vst [vmem:[%s3633_s5 + $0x14] sm:$0xf] %v193_v5 }
  0x1d   : > { %196 = vst [vmem:[%s3633_s5 + $0x18] sm:$0xf] %v195_v6  ;;  %198 = vst [vmem:[%s3633_s5 + $0x1c] sm:$0xf] %v197_v7  ;;  %v199_v8 = vld [vmem:[%s3626_s4 + $0x40] sm:$0xf] }
  0x1e   : > { %v201_v9 = vld [vmem:[%s3626_s4 + $0x48] sm:$0xf]  ;;  %v203_v10 = vld [vmem:[%s3626_s4 + $0x50] sm:$0xf]  ;;  %200 = vst [vmem:[%s3633_s5 + $0x20] sm:$0xf] %v199_v8 }
  0x1f   : > { %202 = vst [vmem:[%s3633_s5 + $0x24] sm:$0xf] %v201_v9  ;;  %204 = vst [vmem:[%s3633_s5 + $0x28] sm:$0xf] %v203_v10  ;;  %v205_v11 = vld [vmem:[%s3626_s4 + $0x58] sm:$0xf] }
  0x20   : > { %v207_v12 = vld [vmem:[%s3626_s4 + $0x60] sm:$0xf]  ;;  %v209_v13 = vld [vmem:[%s3626_s4 + $0x68] sm:$0xf]  ;;  %206 = vst [vmem:[%s3633_s5 + $0x2c] sm:$0xf] %v205_v11 }
  0x21   : > { %208 = vst [vmem:[%s3633_s5 + $0x30] sm:$0xf] %v207_v12  ;;  %210 = vst [vmem:[%s3633_s5 + $0x34] sm:$0xf] %v209_v13  ;;  %v211_v14 = vld [vmem:[%s3626_s4 + $0x70] sm:$0xf] }
  0x22   : > { %v213_v15 = vld [vmem:[%s3626_s4 + $0x78] sm:$0xf]  ;;  %v215_v16 = vld [vmem:[%s3626_s4 + $0x80] sm:$0xf]  ;;  %212 = vst [vmem:[%s3633_s5 + $0x38] sm:$0xf] %v211_v14 }
  0x23   : > { %214 = vst [vmem:[%s3633_s5 + $0x3c] sm:$0xf] %v213_v15  ;;  %216 = vst [vmem:[%s3633_s5 + $0x40] sm:$0xf] %v215_v16  ;;  %v217_v17 = vld [vmem:[%s3626_s4 + $0x88] sm:$0xf] }
  0x24   : > { %v219_v18 = vld [vmem:[%s3626_s4 + $0x90] sm:$0xf]  ;;  %v221_v19 = vld [vmem:[%s3626_s4 + $0x98] sm:$0xf]  ;;  %218 = vst [vmem:[%s3633_s5 + $0x44] sm:$0xf] %v217_v17 }
  0x25   : > { %220 = vst [vmem:[%s3633_s5 + $0x48] sm:$0xf] %v219_v18  ;;  %222 = vst [vmem:[%s3633_s5 + $0x4c] sm:$0xf] %v221_v19  ;;  %v223_v20 = vld [vmem:[%s3626_s4 + $0xa0] sm:$0xf] }
  0x26   : > { %v225_v21 = vld [vmem:[%s3626_s4 + $0xa8] sm:$0xf]  ;;  %v227_v22 = vld [vmem:[%s3626_s4 + $0xb0] sm:$0xf]  ;;  %224 = vst [vmem:[%s3633_s5 + $0x50] sm:$0xf] %v223_v20 }
  0x27   : > { %226 = vst [vmem:[%s3633_s5 + $0x54] sm:$0xf] %v225_v21  ;;  %228 = vst [vmem:[%s3633_s5 + $0x58] sm:$0xf] %v227_v22  ;;  %v229_v23 = vld [vmem:[%s3626_s4 + $0xb8] sm:$0xf] }
  0x28   : > { %v231_v24 = vld [vmem:[%s3626_s4 + $0xc0] sm:$0xf]  ;;  %v233_v25 = vld [vmem:[%s3626_s4 + $0xc8] sm:$0xf]  ;;  %230 = vst [vmem:[%s3633_s5 + $0x5c] sm:$0xf] %v229_v23 }
  0x29   : > { %232 = vst [vmem:[%s3633_s5 + $0x60] sm:$0xf] %v231_v24  ;;  %234 = vst [vmem:[%s3633_s5 + $0x64] sm:$0xf] %v233_v25  ;;  %v235_v26 = vld [vmem:[%s3626_s4 + $0xd0] sm:$0xf] }
  0x2a   : > { %v237_v27 = vld [vmem:[%s3626_s4 + $0xd8] sm:$0xf]  ;;  %v239_v28 = vld [vmem:[%s3626_s4 + $0xe0] sm:$0xf]  ;;  %236 = vst [vmem:[%s3633_s5 + $0x68] sm:$0xf] %v235_v26 }
  0x2b   : > { %238 = vst [vmem:[%s3633_s5 + $0x6c] sm:$0xf] %v237_v27  ;;  %240 = vst [vmem:[%s3633_s5 + $0x70] sm:$0xf] %v239_v28  ;;  %v241_v29 = vld [vmem:[%s3626_s4 + $0xe8] sm:$0xf] }
  0x2c   : > { %v243_v30 = vld [vmem:[%s3626_s4 + $0xf0] sm:$0xf]  ;;  %v245_v31 = vld [vmem:[%s3626_s4 + $0xf8] sm:$0xf]  ;;  %242 = vst [vmem:[%s3633_s5 + $0x74] sm:$0xf] %v241_v29 }
  0x2d   : > { %244 = vst [vmem:[%s3633_s5 + $0x78] sm:$0xf] %v243_v30  ;;  %246 = vst [vmem:[%s3633_s5 + $0x7c] sm:$0xf] %v245_v31  ;;  %v247_v32 = vld [vmem:[%s3626_s4 + $0x100] sm:$0xf] }
  0x2e   : > { %v249_v33 = vld [vmem:[%s3626_s4 + $0x108] sm:$0xf]  ;;  %v251_v34 = vld [vmem:[%s3626_s4 + $0x110] sm:$0xf]  ;;  %248 = vst [vmem:[%s3633_s5 + $0x80] sm:$0xf] %v247_v32 }
  0x2f   : > { %250 = vst [vmem:[%s3633_s5 + $0x84] sm:$0xf] %v249_v33  ;;  %252 = vst [vmem:[%s3633_s5 + $0x88] sm:$0xf] %v251_v34  ;;  %v253_v35 = vld [vmem:[%s3626_s4 + $0x118] sm:$0xf] }
  0x30   : > { %v255_v36 = vld [vmem:[%s3626_s4 + $0x120] sm:$0xf]  ;;  %v257_v37 = vld [vmem:[%s3626_s4 + $0x128] sm:$0xf]  ;;  %254 = vst [vmem:[%s3633_s5 + $0x8c] sm:$0xf] %v253_v35 }
  0x31   : > { %256 = vst [vmem:[%s3633_s5 + $0x90] sm:$0xf] %v255_v36  ;;  %258 = vst [vmem:[%s3633_s5 + $0x94] sm:$0xf] %v257_v37  ;;  %v259_v38 = vld [vmem:[%s3626_s4 + $0x130] sm:$0xf] }
  0x32   : > { %v261_v39 = vld [vmem:[%s3626_s4 + $0x138] sm:$0xf]  ;;  %v263_v40 = vld [vmem:[%s3626_s4 + $0x140] sm:$0xf]  ;;  %260 = vst [vmem:[%s3633_s5 + $0x98] sm:$0xf] %v259_v38 }
  0x33   : > { %262 = vst [vmem:[%s3633_s5 + $0x9c] sm:$0xf] %v261_v39  ;;  %264 = vst [vmem:[%s3633_s5 + $0xa0] sm:$0xf] %v263_v40  ;;  %v265_v41 = vld [vmem:[%s3626_s4 + $0x148] sm:$0xf] }
  0x34   : > { %v267_v42 = vld [vmem:[%s3626_s4 + $0x150] sm:$0xf]  ;;  %v269_v43 = vld [vmem:[%s3626_s4 + $0x158] sm:$0xf]  ;;  %266 = vst [vmem:[%s3633_s5 + $0xa4] sm:$0xf] %v265_v41 }
  0x35   : > { %268 = vst [vmem:[%s3633_s5 + $0xa8] sm:$0xf] %v267_v42  ;;  %270 = vst [vmem:[%s3633_s5 + $0xac] sm:$0xf] %v269_v43  ;;  %v271_v44 = vld [vmem:[%s3626_s4 + $0x160] sm:$0xf] }
  0x36   : > { %v273_v45 = vld [vmem:[%s3626_s4 + $0x168] sm:$0xf]  ;;  %v275_v46 = vld [vmem:[%s3626_s4 + $0x170] sm:$0xf]  ;;  %272 = vst [vmem:[%s3633_s5 + $0xb0] sm:$0xf] %v271_v44 }
  0x37   : > { %274 = vst [vmem:[%s3633_s5 + $0xb4] sm:$0xf] %v273_v45  ;;  %276 = vst [vmem:[%s3633_s5 + $0xb8] sm:$0xf] %v275_v46  ;;  %v277_v47 = vld [vmem:[%s3626_s4 + $0x178] sm:$0xf] }
  0x38   : > { %v279_v48 = vld [vmem:[%s3626_s4 + $0x180] sm:$0xf]  ;;  %v281_v49 = vld [vmem:[%s3626_s4 + $0x188] sm:$0xf]  ;;  %278 = vst [vmem:[%s3633_s5 + $0xbc] sm:$0xf] %v277_v47 }
  0x39   : > { %280 = vst [vmem:[%s3633_s5 + $0xc0] sm:$0xf] %v279_v48  ;;  %282 = vst [vmem:[%s3633_s5 + $0xc4] sm:$0xf] %v281_v49  ;;  %v283_v50 = vld [vmem:[%s3626_s4 + $0x190] sm:$0xf] }
  0x3a   : > { %v285_v51 = vld [vmem:[%s3626_s4 + $0x198] sm:$0xf]  ;;  %v287_v52 = vld [vmem:[%s3626_s4 + $0x1a0] sm:$0xf]  ;;  %284 = vst [vmem:[%s3633_s5 + $0xc8] sm:$0xf] %v283_v50 }
  0x3b   : > { %286 = vst [vmem:[%s3633_s5 + $0xcc] sm:$0xf] %v285_v51  ;;  %288 = vst [vmem:[%s3633_s5 + $0xd0] sm:$0xf] %v287_v52  ;;  %v289_v53 = vld [vmem:[%s3626_s4 + $0x1a8] sm:$0xf] }
  0x3c   : > { %v291_v54 = vld [vmem:[%s3626_s4 + $0x1b0] sm:$0xf]  ;;  %v293_v55 = vld [vmem:[%s3626_s4 + $0x1b8] sm:$0xf]  ;;  %290 = vst [vmem:[%s3633_s5 + $0xd4] sm:$0xf] %v289_v53 }
  0x3d   : > { %292 = vst [vmem:[%s3633_s5 + $0xd8] sm:$0xf] %v291_v54  ;;  %294 = vst [vmem:[%s3633_s5 + $0xdc] sm:$0xf] %v293_v55  ;;  %v295_v56 = vld [vmem:[%s3626_s4 + $0x1c0] sm:$0xf] }
  0x3e   : > { %v297_v57 = vld [vmem:[%s3626_s4 + $0x1c8] sm:$0xf]  ;;  %v299_v58 = vld [vmem:[%s3626_s4 + $0x1d0] sm:$0xf]  ;;  %296 = vst [vmem:[%s3633_s5 + $0xe0] sm:$0xf] %v295_v56 }
  0x3f   : > { %298 = vst [vmem:[%s3633_s5 + $0xe4] sm:$0xf] %v297_v57  ;;  %300 = vst [vmem:[%s3633_s5 + $0xe8] sm:$0xf] %v299_v58  ;;  %v301_v59 = vld [vmem:[%s3626_s4 + $0x1d8] sm:$0xf] }
  0x40   : > { %v303_v60 = vld [vmem:[%s3626_s4 + $0x1e0] sm:$0xf]  ;;  %v305_v61 = vld [vmem:[%s3626_s4 + $0x1e8] sm:$0xf]  ;;  %302 = vst [vmem:[%s3633_s5 + $0xec] sm:$0xf] %v301_v59 }
  0x41   : > { %304 = vst [vmem:[%s3633_s5 + $0xf0] sm:$0xf] %v303_v60  ;;  %306 = vst [vmem:[%s3633_s5 + $0xf4] sm:$0xf] %v305_v61  ;;  %v307_v62 = vld [vmem:[%s3626_s4 + $0x1f0] sm:$0xf] }
  0x42   : > { %v309_v63 = vld [vmem:[%s3626_s4 + $0x1f8] sm:$0xf]  ;;  %v311_v0 = vld [vmem:[%s3626_s4 + $0x200] sm:$0xf]  ;;  %308 = vst [vmem:[%s3633_s5 + $0xf8] sm:$0xf] %v307_v62 }
  0x43   : > { %310 = vst [vmem:[%s3633_s5 + $0xfc] sm:$0xf] %v309_v63  ;;  %312 = vst [vmem:[%s3633_s5 + $0x100] sm:$0xf] %v311_v0  ;;  %v313_v1 = vld [vmem:[%s3626_s4 + $0x208] sm:$0xf] }
  0x44   : > { %v315_v2 = vld [vmem:[%s3626_s4 + $0x210] sm:$0xf]  ;;  %v317_v3 = vld [vmem:[%s3626_s4 + $0x218] sm:$0xf]  ;;  %314 = vst [vmem:[%s3633_s5 + $0x104] sm:$0xf] %v313_v1 }
  0x45   : > { %316 = vst [vmem:[%s3633_s5 + $0x108] sm:$0xf] %v315_v2  ;;  %318 = vst [vmem:[%s3633_s5 + $0x10c] sm:$0xf] %v317_v3  ;;  %v319_v4 = vld [vmem:[%s3626_s4 + $0x220] sm:$0xf] }
  0x46   : > { %v321_v5 = vld [vmem:[%s3626_s4 + $0x228] sm:$0xf]  ;;  %v323_v6 = vld [vmem:[%s3626_s4 + $0x230] sm:$0xf]  ;;  %320 = vst [vmem:[%s3633_s5 + $0x110] sm:$0xf] %v319_v4 }
  0x47   : > { %322 = vst [vmem:[%s3633_s5 + $0x114] sm:$0xf] %v321_v5  ;;  %324 = vst [vmem:[%s3633_s5 + $0x118] sm:$0xf] %v323_v6  ;;  %v325_v7 = vld [vmem:[%s3626_s4 + $0x238] sm:$0xf] }
  0x48   : > { %v327_v8 = vld [vmem:[%s3626_s4 + $0x240] sm:$0xf]  ;;  %v329_v9 = vld [vmem:[%s3626_s4 + $0x248] sm:$0xf]  ;;  %326 = vst [vmem:[%s3633_s5 + $0x11c] sm:$0xf] %v325_v7 }
  0x49   : > { %328 = vst [vmem:[%s3633_s5 + $0x120] sm:$0xf] %v327_v8  ;;  %330 = vst [vmem:[%s3633_s5 + $0x124] sm:$0xf] %v329_v9  ;;  %v331_v10 = vld [vmem:[%s3626_s4 + $0x250] sm:$0xf] }
  0x4a   : > { %v333_v11 = vld [vmem:[%s3626_s4 + $0x258] sm:$0xf]  ;;  %v335_v12 = vld [vmem:[%s3626_s4 + $0x260] sm:$0xf]  ;;  %332 = vst [vmem:[%s3633_s5 + $0x128] sm:$0xf] %v331_v10 }
  0x4b   : > { %334 = vst [vmem:[%s3633_s5 + $0x12c] sm:$0xf] %v333_v11  ;;  %336 = vst [vmem:[%s3633_s5 + $0x130] sm:$0xf] %v335_v12  ;;  %v337_v13 = vld [vmem:[%s3626_s4 + $0x268] sm:$0xf] }
  0x4c   : > { %v339_v14 = vld [vmem:[%s3626_s4 + $0x270] sm:$0xf]  ;;  %v341_v15 = vld [vmem:[%s3626_s4 + $0x278] sm:$0xf]  ;;  %338 = vst [vmem:[%s3633_s5 + $0x134] sm:$0xf] %v337_v13 }
  0x4d   : > { %340 = vst [vmem:[%s3633_s5 + $0x138] sm:$0xf] %v339_v14  ;;  %342 = vst [vmem:[%s3633_s5 + $0x13c] sm:$0xf] %v341_v15  ;;  %v343_v16 = vld [vmem:[%s3626_s4 + $0x280] sm:$0xf] }
  0x4e   : > { %v345_v17 = vld [vmem:[%s3626_s4 + $0x288] sm:$0xf]  ;;  %v347_v18 = vld [vmem:[%s3626_s4 + $0x290] sm:$0xf]  ;;  %344 = vst [vmem:[%s3633_s5 + $0x140] sm:$0xf] %v343_v16 }
  0x4f   : > { %346 = vst [vmem:[%s3633_s5 + $0x144] sm:$0xf] %v345_v17  ;;  %348 = vst [vmem:[%s3633_s5 + $0x148] sm:$0xf] %v347_v18  ;;  %v349_v19 = vld [vmem:[%s3626_s4 + $0x298] sm:$0xf] }
  0x50   : > { %v351_v20 = vld [vmem:[%s3626_s4 + $0x2a0] sm:$0xf]  ;;  %v353_v21 = vld [vmem:[%s3626_s4 + $0x2a8] sm:$0xf]  ;;  %350 = vst [vmem:[%s3633_s5 + $0x14c] sm:$0xf] %v349_v19 }
  0x51   : > { %352 = vst [vmem:[%s3633_s5 + $0x150] sm:$0xf] %v351_v20  ;;  %354 = vst [vmem:[%s3633_s5 + $0x154] sm:$0xf] %v353_v21  ;;  %v355_v22 = vld [vmem:[%s3626_s4 + $0x2b0] sm:$0xf] }
  0x52   : > { %v357_v23 = vld [vmem:[%s3626_s4 + $0x2b8] sm:$0xf]  ;;  %v359_v24 = vld [vmem:[%s3626_s4 + $0x2c0] sm:$0xf]  ;;  %356 = vst [vmem:[%s3633_s5 + $0x158] sm:$0xf] %v355_v22 }
  0x53   : > { %358 = vst [vmem:[%s3633_s5 + $0x15c] sm:$0xf] %v357_v23  ;;  %360 = vst [vmem:[%s3633_s5 + $0x160] sm:$0xf] %v359_v24  ;;  %v361_v25 = vld [vmem:[%s3626_s4 + $0x2c8] sm:$0xf] }
  0x54   : > { %v363_v26 = vld [vmem:[%s3626_s4 + $0x2d0] sm:$0xf]  ;;  %v365_v27 = vld [vmem:[%s3626_s4 + $0x2d8] sm:$0xf]  ;;  %362 = vst [vmem:[%s3633_s5 + $0x164] sm:$0xf] %v361_v25 }
  0x55   : > { %364 = vst [vmem:[%s3633_s5 + $0x168] sm:$0xf] %v363_v26  ;;  %366 = vst [vmem:[%s3633_s5 + $0x16c] sm:$0xf] %v365_v27  ;;  %v367_v28 = vld [vmem:[%s3626_s4 + $0x2e0] sm:$0xf] }
  0x56   : > { %v369_v29 = vld [vmem:[%s3626_s4 + $0x2e8] sm:$0xf]  ;;  %v371_v30 = vld [vmem:[%s3626_s4 + $0x2f0] sm:$0xf]  ;;  %368 = vst [vmem:[%s3633_s5 + $0x170] sm:$0xf] %v367_v28 }
  0x57   : > { %370 = vst [vmem:[%s3633_s5 + $0x174] sm:$0xf] %v369_v29  ;;  %372 = vst [vmem:[%s3633_s5 + $0x178] sm:$0xf] %v371_v30  ;;  %v373_v31 = vld [vmem:[%s3626_s4 + $0x2f8] sm:$0xf] }
  0x58   : > { %v375_v32 = vld [vmem:[%s3626_s4 + $0x300] sm:$0xf]  ;;  %v377_v33 = vld [vmem:[%s3626_s4 + $0x308] sm:$0xf]  ;;  %374 = vst [vmem:[%s3633_s5 + $0x17c] sm:$0xf] %v373_v31 }
  0x59   : > { %376 = vst [vmem:[%s3633_s5 + $0x180] sm:$0xf] %v375_v32  ;;  %378 = vst [vmem:[%s3633_s5 + $0x184] sm:$0xf] %v377_v33  ;;  %v379_v34 = vld [vmem:[%s3626_s4 + $0x310] sm:$0xf] }
  0x5a   : > { %v381_v35 = vld [vmem:[%s3626_s4 + $0x318] sm:$0xf]  ;;  %v383_v36 = vld [vmem:[%s3626_s4 + $0x320] sm:$0xf]  ;;  %380 = vst [vmem:[%s3633_s5 + $0x188] sm:$0xf] %v379_v34 }
  0x5b   : > { %382 = vst [vmem:[%s3633_s5 + $0x18c] sm:$0xf] %v381_v35  ;;  %384 = vst [vmem:[%s3633_s5 + $0x190] sm:$0xf] %v383_v36  ;;  %v385_v37 = vld [vmem:[%s3626_s4 + $0x328] sm:$0xf] }
  0x5c   : > { %v387_v38 = vld [vmem:[%s3626_s4 + $0x330] sm:$0xf]  ;;  %v389_v39 = vld [vmem:[%s3626_s4 + $0x338] sm:$0xf]  ;;  %386 = vst [vmem:[%s3633_s5 + $0x194] sm:$0xf] %v385_v37 }
  0x5d   : > { %388 = vst [vmem:[%s3633_s5 + $0x198] sm:$0xf] %v387_v38  ;;  %390 = vst [vmem:[%s3633_s5 + $0x19c] sm:$0xf] %v389_v39  ;;  %v391_v40 = vld [vmem:[%s3626_s4 + $0x340] sm:$0xf] }
  0x5e   : > { %v393_v41 = vld [vmem:[%s3626_s4 + $0x348] sm:$0xf]  ;;  %v395_v42 = vld [vmem:[%s3626_s4 + $0x350] sm:$0xf]  ;;  %392 = vst [vmem:[%s3633_s5 + $0x1a0] sm:$0xf] %v391_v40 }
  0x5f   : > { %394 = vst [vmem:[%s3633_s5 + $0x1a4] sm:$0xf] %v393_v41  ;;  %396 = vst [vmem:[%s3633_s5 + $0x1a8] sm:$0xf] %v395_v42  ;;  %v397_v43 = vld [vmem:[%s3626_s4 + $0x358] sm:$0xf] }
  0x60   : > { %v399_v44 = vld [vmem:[%s3626_s4 + $0x360] sm:$0xf]  ;;  %v401_v45 = vld [vmem:[%s3626_s4 + $0x368] sm:$0xf]  ;;  %398 = vst [vmem:[%s3633_s5 + $0x1ac] sm:$0xf] %v397_v43 }
  0x61   : > { %400 = vst [vmem:[%s3633_s5 + $0x1b0] sm:$0xf] %v399_v44  ;;  %402 = vst [vmem:[%s3633_s5 + $0x1b4] sm:$0xf] %v401_v45  ;;  %v403_v46 = vld [vmem:[%s3626_s4 + $0x370] sm:$0xf] }
  0x62   : > { %v405_v47 = vld [vmem:[%s3626_s4 + $0x378] sm:$0xf]  ;;  %v407_v48 = vld [vmem:[%s3626_s4 + $0x380] sm:$0xf]  ;;  %404 = vst [vmem:[%s3633_s5 + $0x1b8] sm:$0xf] %v403_v46 }
  0x63   : > { %406 = vst [vmem:[%s3633_s5 + $0x1bc] sm:$0xf] %v405_v47  ;;  %408 = vst [vmem:[%s3633_s5 + $0x1c0] sm:$0xf] %v407_v48  ;;  %v409_v49 = vld [vmem:[%s3626_s4 + $0x388] sm:$0xf] }
  0x64   : > { %v411_v50 = vld [vmem:[%s3626_s4 + $0x390] sm:$0xf]  ;;  %v413_v51 = vld [vmem:[%s3626_s4 + $0x398] sm:$0xf]  ;;  %410 = vst [vmem:[%s3633_s5 + $0x1c4] sm:$0xf] %v409_v49 }
  0x65   : > { %412 = vst [vmem:[%s3633_s5 + $0x1c8] sm:$0xf] %v411_v50  ;;  %414 = vst [vmem:[%s3633_s5 + $0x1cc] sm:$0xf] %v413_v51  ;;  %v415_v52 = vld [vmem:[%s3626_s4 + $0x3a0] sm:$0xf] }
  0x66   : > { %v417_v53 = vld [vmem:[%s3626_s4 + $0x3a8] sm:$0xf]  ;;  %v419_v54 = vld [vmem:[%s3626_s4 + $0x3b0] sm:$0xf]  ;;  %416 = vst [vmem:[%s3633_s5 + $0x1d0] sm:$0xf] %v415_v52 }
  0x67   : > { %418 = vst [vmem:[%s3633_s5 + $0x1d4] sm:$0xf] %v417_v53  ;;  %420 = vst [vmem:[%s3633_s5 + $0x1d8] sm:$0xf] %v419_v54  ;;  %v421_v55 = vld [vmem:[%s3626_s4 + $0x3b8] sm:$0xf] }
  0x68   : > { %v423_v56 = vld [vmem:[%s3626_s4 + $0x3c0] sm:$0xf]  ;;  %v425_v57 = vld [vmem:[%s3626_s4 + $0x3c8] sm:$0xf]  ;;  %422 = vst [vmem:[%s3633_s5 + $0x1dc] sm:$0xf] %v421_v55 }
  0x69   : > { %424 = vst [vmem:[%s3633_s5 + $0x1e0] sm:$0xf] %v423_v56  ;;  %426 = vst [vmem:[%s3633_s5 + $0x1e4] sm:$0xf] %v425_v57  ;;  %v427_v58 = vld [vmem:[%s3626_s4 + $0x3d0] sm:$0xf] }
  0x6a   : > { %v429_v59 = vld [vmem:[%s3626_s4 + $0x3d8] sm:$0xf]  ;;  %v431_v60 = vld [vmem:[%s3626_s4 + $0x3e0] sm:$0xf]  ;;  %428 = vst [vmem:[%s3633_s5 + $0x1e8] sm:$0xf] %v427_v58 }
  0x6b   : > { %430 = vst [vmem:[%s3633_s5 + $0x1ec] sm:$0xf] %v429_v59  ;;  %432 = vst [vmem:[%s3633_s5 + $0x1f0] sm:$0xf] %v431_v60  ;;  %v433_v61 = vld [vmem:[%s3626_s4 + $0x3e8] sm:$0xf] }
  0x6c   : > { %v435_v62 = vld [vmem:[%s3626_s4 + $0x3f0] sm:$0xf]  ;;  %v437_v63 = vld [vmem:[%s3626_s4 + $0x3f8] sm:$0xf]  ;;  %434 = vst [vmem:[%s3633_s5 + $0x1f4] sm:$0xf] %v433_v61 }
  0x6d   : > { %436 = vst [vmem:[%s3633_s5 + $0x1f8] sm:$0xf] %v435_v62  ;;  %438 = vst [vmem:[%s3633_s5 + $0x1fc] sm:$0xf] %v437_v63  ;;  %v439_v0 = vld [vmem:[%s3626_s4 + $0x400] sm:$0xf] }
  0x6e   : > { %v441_v1 = vld [vmem:[%s3626_s4 + $0x408] sm:$0xf]  ;;  %v443_v2 = vld [vmem:[%s3626_s4 + $0x410] sm:$0xf]  ;;  %440 = vst [vmem:[%s3633_s5 + $0x200] sm:$0xf] %v439_v0 }
  0x6f   : > { %442 = vst [vmem:[%s3633_s5 + $0x204] sm:$0xf] %v441_v1  ;;  %444 = vst [vmem:[%s3633_s5 + $0x208] sm:$0xf] %v443_v2  ;;  %v445_v3 = vld [vmem:[%s3626_s4 + $0x418] sm:$0xf] }
  0x70   : > { %v447_v4 = vld [vmem:[%s3626_s4 + $0x420] sm:$0xf]  ;;  %v449_v5 = vld [vmem:[%s3626_s4 + $0x428] sm:$0xf]  ;;  %446 = vst [vmem:[%s3633_s5 + $0x20c] sm:$0xf] %v445_v3 }
  0x71   : > { %448 = vst [vmem:[%s3633_s5 + $0x210] sm:$0xf] %v447_v4  ;;  %450 = vst [vmem:[%s3633_s5 + $0x214] sm:$0xf] %v449_v5  ;;  %v451_v6 = vld [vmem:[%s3626_s4 + $0x430] sm:$0xf] }
  0x72   : > { %v453_v7 = vld [vmem:[%s3626_s4 + $0x438] sm:$0xf]  ;;  %v455_v8 = vld [vmem:[%s3626_s4 + $0x440] sm:$0xf]  ;;  %452 = vst [vmem:[%s3633_s5 + $0x218] sm:$0xf] %v451_v6 }
  0x73   : > { %454 = vst [vmem:[%s3633_s5 + $0x21c] sm:$0xf] %v453_v7  ;;  %456 = vst [vmem:[%s3633_s5 + $0x220] sm:$0xf] %v455_v8  ;;  %v457_v9 = vld [vmem:[%s3626_s4 + $0x448] sm:$0xf] }
  0x74   : > { %v459_v10 = vld [vmem:[%s3626_s4 + $0x450] sm:$0xf]  ;;  %v461_v11 = vld [vmem:[%s3626_s4 + $0x458] sm:$0xf]  ;;  %458 = vst [vmem:[%s3633_s5 + $0x224] sm:$0xf] %v457_v9 }
  0x75   : > { %460 = vst [vmem:[%s3633_s5 + $0x228] sm:$0xf] %v459_v10  ;;  %462 = vst [vmem:[%s3633_s5 + $0x22c] sm:$0xf] %v461_v11  ;;  %v463_v12 = vld [vmem:[%s3626_s4 + $0x460] sm:$0xf] }
  0x76   : > { %v465_v13 = vld [vmem:[%s3626_s4 + $0x468] sm:$0xf]  ;;  %v467_v14 = vld [vmem:[%s3626_s4 + $0x470] sm:$0xf]  ;;  %464 = vst [vmem:[%s3633_s5 + $0x230] sm:$0xf] %v463_v12 }
  0x77   : > { %466 = vst [vmem:[%s3633_s5 + $0x234] sm:$0xf] %v465_v13  ;;  %468 = vst [vmem:[%s3633_s5 + $0x238] sm:$0xf] %v467_v14  ;;  %v469_v15 = vld [vmem:[%s3626_s4 + $0x478] sm:$0xf] }
  0x78   : > { %470 = vst [vmem:[%s3633_s5 + $0x23c] sm:$0xf] %v469_v15 }
  0x79 PF: > { %s782_s6 = sand.u32 1, %s3529_s14   ;;  %s2684_s7 = sshll.u32 %s3537_s16, 4 }
  0x7a   : > { %s3923_s10 = scalar_lea.hbm %s4395_s2, %s2684_s7  ;;  %s785_s11 = scalar_lea.vmem [#allocation3], %s782_s6 }
  0x7b   : > { %s792_s12 = sshll.u32 %s785_s11, 4  ;;  %s783_s18 = scalar_lea.sflag [#allocation4], %s782_s6  ;;  %s793_s12 = int_to_ptr.vmem [resolvable:$true] %s792_s12 }
  0x7c   : > { %s3463_s20 = scalar_lea.hbm %s3923_s10, 16  ;;  %s3467_s27 = scalar_lea.hbm %s4395_s2, 32 }
  0x7d   : > { %p3464_p11 = scmp.ne.s32.totalorder %s3923_s10, %s3463_s20  ;;  %p3468_p0 = scmp.lt.u32.totalorder %s3923_s10, %s4395_s2 }
  0x7e   : > { %p3469_p1 = scmp.lt.u32.totalorder %s3467_s27, %s3463_s20  ;;  %p3471_p4 = scmp.lt.u32.totalorder %s3463_s20, %s3923_s10 }
  0x7f   : > { %p3465_p12 = pnand %p3464_p11, %p3600_p3 }
  0x80   : > { %p3470_p2 = por %p3469_p1, %p3468_p0 }
  0x81   : > { %p3466_p13 = pneg %p3465_p12 }
  0x82   : > { %p3472_p5 = por %p3471_p4, %p3470_p2 }
  0x84   : > { %p3473_p6 = pnand %p3472_p5, %p3466_p13 }
  0x86   : > { %3476 = shalt.err (!%p3473_p6)
}
  0x87   : > { %s3477_s30 = scalar_lea.vmem %s793_s12, 16  ;;  %s3543_s4 = smov [#allocation3]  }
  0x88   : > { %p3478_p7 = scmp.ne.s32.totalorder %s793_s12, %s3477_s30  ;;  %s3481_s5 = sshll.u32 %s3543_s4, 4  ;;  %s3482_s5 = int_to_ptr.vmem [resolvable:$false] %s3481_s5 }
  0x89   : > { %s3483_s6 = scalar_lea.vmem %s3482_s5, 32  ;;  %p3484_p12 = scmp.lt.s32.totalorder %s793_s12, %s3482_s5 }
  0x8a   : > { %p3479_p10 = pnand %p3478_p7, %p3600_p3  ;;  %p3485_p9 = scmp.lt.s32.totalorder %s3483_s6, %s3477_s30 }
  0x8c   : > { %p3480_p11 = pneg %p3479_p10  ;;  %p3486_p8 = por %p3485_p9, %p3484_p12 }
  0x8e   : > { %p3487_p0 = pnand %p3486_p8, %p3480_p11 }
  0x90   : > { %3490 = shalt.err (!%p3487_p0)
}
  0x91   : > { %3237 = dma.hbm_to_vmem [thread:$0]  (%p3600_p3), %s3923_s10, 16, %s793_s12, %s783_s18  }
  0x92 PF: > { %p2685_p13 = scmp.ge.s32.totalorder %s3541_s17, 1  ;;  %p797_p1 = scmp.lt.s32.totalorder %s3541_s17, 3 }
  0x94   : > { %p798_p2 = pnand %p2685_p13, %p797_p1 }
  0x95   : > { %s3945_s7 = sand.u32 (!%p798_p2), 1, %s3525_s13   ;;  %p4401_p3 = scmp.ne.s32.totalorder (!%p798_p2), %s4399_s23, 0 }
  0x96   : > { %801 = sbr.rel (%p798_p2) target bundleno = 561 (0x231), region = 69  ;;  %s811_s21 = scalar_lea.sflag (!%p798_p2), [#allocation4], %s3945_s7 }
  0x97   : > { %s3236_s8 = smul.u32 (!%p798_p2), 576, %s3945_s7  ;;  %s813_s11 = scalar_lea.vmem (!%p798_p2), [#allocation3], %s3945_s7 }
  0x99   : > { %s3948_s9 = scalar_lea.vmem (!%p798_p2), [#allocation2], %s3236_s8 }
  0x9d   : > { %3516 = dma.done.wait (%p4401_p3), %s811_s21, 16  }
  0x9e   : > { %3518 = vsyncadd (%p4401_p3), %s811_s21, 4294967280  ;;  %v3287_v16 = vld [vmem:[%s3948_s9 + $0x40] sm:$0xff]   ;;  %v3291_v20 = vld [vmem:[%s3948_s9 + $0x48] sm:$0xff]   ;;  %p4402_p8 = scmp.ne.s32.totalorder %s4400_s25, 0 }
  0x9f   : > { %v3288_v17 = vld [vmem:[%s3948_s9 + $0xc0] sm:$0xff]   ;;  %2915 = vmatprep.subr.bf16.mxu0 %v3287_v16  ;;  %v3292_v21 = vld [vmem:[%s3948_s9 + $0xc8] sm:$0xff]   ;;  %v3295_v24 = vld [vmem:[%s3948_s9 + $0x50] sm:$0xff]   ;;  %s2849_s6 = sshll.u32 (%p4402_p8), %s3533_s15, 2 }
  0xa0   : > { %v3289_v18 = vld [vmem:[%s3948_s9] sm:$0xff]   ;;  %2979 = vmatprep.subr.bf16.mxu1 %v3288_v17  ;;  %v3293_v22 = vld [vmem:[%s3948_s9 + $0x8] sm:$0xff]   ;;  %v3296_v25 = vld [vmem:[%s3948_s9 + $0xd0] sm:$0xff]   ;;  %s2476_s23 = scalar_lea.vmem (%p4402_p8), %s4396_s3, %s2849_s6 }
  0xa1   : > { %v3290_v19 = vld [vmem:[%s3948_s9 + $0x80] sm:$0xff]   ;;  %2916 = vmatpush3.bf16.msra.mxu0 %v3289_v18  ;;  %v3294_v23 = vld [vmem:[%s3948_s9 + $0x88] sm:$0xff]   ;;  %v3297_v26 = vld [vmem:[%s3948_s9 + $0x10] sm:$0xff]  }
  0xa2   : > { %2980 = vmatpush3.bf16.msra.mxu1 %v3290_v19  ;;  %2917 = vmatprep.subr.bf16.mxu0 %v3291_v20  ;;  %v3298_v27 = vld [vmem:[%s3948_s9 + $0x90] sm:$0xff]   ;;  %v3299_v28 = vld [vmem:[%s3948_s9 + $0x58] sm:$0xff]   ;;  %v3303_v32 = vld [vmem:[%s3948_s9 + $0x60] sm:$0xff]  }
  0xa3   : > { %2981 = vmatprep.subr.bf16.mxu1 %v3292_v21  ;;  %v3300_v29 = vld [vmem:[%s3948_s9 + $0xd8] sm:$0xff]   ;;  %v3304_v33 = vld [vmem:[%s3948_s9 + $0xe0] sm:$0xff]   ;;  %v3307_v36 = vld [vmem:[%s3948_s9 + $0x68] sm:$0xff]  }
  0xa4   : > { %v3301_v30 = vld [vmem:[%s3948_s9 + $0x18] sm:$0xff]   ;;  %v3305_v34 = vld [vmem:[%s3948_s9 + $0x20] sm:$0xff]   ;;  %v3308_v37 = vld [vmem:[%s3948_s9 + $0xe8] sm:$0xff]  }
  0xa5   : > { %2918 = vmatpush3.bf16.msra.mxu0 %v3293_v22  ;;  %v3302_v31 = vld [vmem:[%s3948_s9 + $0x98] sm:$0xff]   ;;  %v3306_v35 = vld [vmem:[%s3948_s9 + $0xa0] sm:$0xff]   ;;  %v3309_v38 = vld [vmem:[%s3948_s9 + $0x28] sm:$0xff]  }
  0xa6   : > { %2982 = vmatpush3.bf16.msra.mxu1 %v3294_v23  ;;  %2919 = vmatprep.subr.bf16.mxu0 %v3295_v24  ;;  %v3310_v39 = vld [vmem:[%s3948_s9 + $0xa8] sm:$0xff]   ;;  %v3311_v40 = vld [vmem:[%s3948_s9 + $0x70] sm:$0xff]   ;;  %v3315_v44 = vld [vmem:[%s3948_s9 + $0x78] sm:$0xff]  }
  0xa7   : > { %2983 = vmatprep.subr.bf16.mxu1 %v3296_v25  ;;  %v3312_v41 = vld [vmem:[%s3948_s9 + $0xf0] sm:$0xff]   ;;  %v3316_v45 = vld [vmem:[%s3948_s9 + $0xf8] sm:$0xff]   ;;  %v3319_v48 = vld [vmem:[%s4393_s0] ss:$36 sps:$4 sm:$0xff]  }
  0xa8   : > { %v3313_v42 = vld [vmem:[%s3948_s9 + $0x30] sm:$0xff]   ;;  %v3317_v46 = vld [vmem:[%s3948_s9 + $0x38] sm:$0xff]   ;;  %v3321_v49 = vld [vmem:[%s4393_s0 + $0x4] ss:$36 sps:$4 sm:$0xff]  }
  0xa9   : > { %2920 = vmatpush3.bf16.msra.mxu0 %v3297_v26  ;;  %v3314_v43 = vld [vmem:[%s3948_s9 + $0xb0] sm:$0xff]   ;;  %v3318_v47 = vld [vmem:[%s3948_s9 + $0xb8] sm:$0xff]   ;;  %v3322_v50 = vld [vmem:[%s4393_s0 + $0x8] ss:$36 sps:$4 sm:$0xff]   ;;  %1916 = vmatprep.mubr.bf16.mxu0 %v3321_v49 }
  0xaa   : > { %2984 = vmatpush3.bf16.msra.mxu1 %v3298_v27  ;;  %2921 = vmatprep.subr.bf16.mxu0 %v3299_v28  ;;  %v3324_v51 = vld [vmem:[%s4393_s0 + $0xc] ss:$36 sps:$4 sm:$0xff]   ;;  %v3325_v52 = vld [vmem:[%s3948_s9 + $0x140] sm:$0xff]   ;;  %v3331_v57 = vld [vmem:[%s4393_s0 + $0x54] ss:$36 sps:$4 sm:$0xff]  }
  0xab   : > { %2985 = vmatprep.subr.bf16.mxu1 %v3300_v29  ;;  %2013 = vmatprep.mubr.bf16.mxu1 %v3324_v51  ;;  %v3326_v53 = vld [vmem:[%s3948_s9 + $0x1c0] sm:$0xff]   ;;  %v3329_v56 = vld [vmem:[%s4393_s0 + $0x4c] ss:$36 sps:$4 sm:$0xff]   ;;  %v3339_v0 = vld [vmem:[%s4393_s0 + $0x94] ss:$36 sps:$4 sm:$0xff]  }
  0xac   : > { %v3327_v54 = vld [vmem:[%s3948_s9 + $0x100] sm:$0xff]   ;;  %v3333_v58 = vld [vmem:[%s4393_s0 + $0x48] ss:$36 sps:$4 sm:$0xff]   ;;  %v3334_v59 = vld [vmem:[%s4393_s0 + $0x50] ss:$36 sps:$4 sm:$0xff]  }
  0xad   : > { %2922 = vmatpush3.bf16.msra.mxu0 %v3301_v30  ;;  %v3328_v55 = vld [vmem:[%s3948_s9 + $0x180] sm:$0xff]   ;;  %v3335_v60 = vld [vmem:[%s3948_s9 + $0x148] sm:$0xff]   ;;  %v3343_v2 = vld [vmem:[%s4393_s0 + $0x90] ss:$36 sps:$4 sm:$0xff]  }
  0xae   : > { %2986 = vmatpush3.bf16.msra.mxu1 %v3302_v31  ;;  %2923 = vmatprep.subr.bf16.mxu0 %v3303_v32  ;;  %v3336_v61 = vld [vmem:[%s3948_s9 + $0x1c8] sm:$0xff]   ;;  %v3341_v1 = vld [vmem:[%s4393_s0 + $0x9c] ss:$36 sps:$4 sm:$0xff]   ;;  %v3345_v4 = vld [vmem:[%s3948_s9 + $0x150] sm:$0xff]  }
  0xaf   : > { %2987 = vmatprep.subr.bf16.mxu1 %v3304_v33  ;;  %v3337_v62 = vld [vmem:[%s3948_s9 + $0x108] sm:$0xff]   ;;  %v3344_v3 = vld [vmem:[%s4393_s0 + $0x98] ss:$36 sps:$4 sm:$0xff]   ;;  %v3346_v5 = vld [vmem:[%s3948_s9 + $0x1d0] sm:$0xff]  }
  0xb0   : > { %v3338_v63 = vld [vmem:[%s3948_s9 + $0x188] sm:$0xff]   ;;  %v3347_v6 = vld [vmem:[%s3948_s9 + $0x110] sm:$0xff]   ;;  %v3349_v8 = vld [vmem:[%s4393_s0 + $0xdc] ss:$36 sps:$4 sm:$0xff]  }
  0xb1   : > { %2924 = vmatpush3.bf16.msra.mxu0 %v3305_v34  ;;  %v3348_v7 = vld [vmem:[%s3948_s9 + $0x190] sm:$0xff]   ;;  %v3351_v9 = vld [vmem:[%s4393_s0 + $0xe4] ss:$36 sps:$4 sm:$0xff]   ;;  %v3353_v10 = vld [vmem:[%s4393_s0 + $0xd8] ss:$36 sps:$4 sm:$0xff]  }
  0xb2   : > { %2988 = vmatpush3.bf16.msra.mxu1 %v3306_v35  ;;  %2925 = vmatprep.subr.bf16.mxu0 %v3307_v36  ;;  %v3354_v11 = vld [vmem:[%s4393_s0 + $0xe0] ss:$36 sps:$4 sm:$0xff]   ;;  %v3355_v12 = vld [vmem:[%s3948_s9 + $0x158] sm:$0xff]   ;;  %v3361_v17 = vld [vmem:[%s4393_s0 + $0x12c] ss:$36 sps:$4 sm:$0xff]  }
  0xb3   : > { %2989 = vmatprep.subr.bf16.mxu1 %v3308_v37  ;;  %v3356_v13 = vld [vmem:[%s3948_s9 + $0x1d8] sm:$0xff]   ;;  %v3359_v16 = vld [vmem:[%s4393_s0 + $0x124] ss:$36 sps:$4 sm:$0xff]   ;;  %v3369_v24 = vld [vmem:[%s4393_s0 + $0x16c] ss:$36 sps:$4 sm:$0xff]  }
  0xb4   : > { %v3357_v14 = vld [vmem:[%s3948_s9 + $0x118] sm:$0xff]   ;;  %v3363_v18 = vld [vmem:[%s4393_s0 + $0x120] ss:$36 sps:$4 sm:$0xff]   ;;  %v3364_v20 = vld [vmem:[%s4393_s0 + $0x128] ss:$36 sps:$4 sm:$0xff]  }
  0xb5   : > { %2926 = vmatpush3.bf16.msra.mxu0 %v3309_v38  ;;  %v3358_v15 = vld [vmem:[%s3948_s9 + $0x198] sm:$0xff]   ;;  %v3365_v19 = vld [vmem:[%s3948_s9 + $0x160] sm:$0xff]   ;;  %v3375_v26 = vld [vmem:[%s3948_s9 + $0x168] sm:$0xff]  }
  0xb6   : > { %2990 = vmatpush3.bf16.msra.mxu1 %v3310_v39  ;;  %2927 = vmatprep.subr.bf16.mxu0 %v3311_v40  ;;  %v3366_v21 = vld [vmem:[%s3948_s9 + $0x1e0] sm:$0xff]   ;;  %v3371_v25 = vld [vmem:[%s4393_s0 + $0x174] ss:$36 sps:$4 sm:$0xff]   ;;  %v3376_v27 = vld [vmem:[%s3948_s9 + $0x1e8] sm:$0xff]  }
  0xb7   : > { %2991 = vmatprep.subr.bf16.mxu1 %v3312_v41  ;;  %v3367_v22 = vld [vmem:[%s3948_s9 + $0x120] sm:$0xff]   ;;  %v3373_v28 = vld [vmem:[%s4393_s0 + $0x168] ss:$36 sps:$4 sm:$0xff]   ;;  %v3374_v31 = vld [vmem:[%s4393_s0 + $0x170] ss:$36 sps:$4 sm:$0xff]  }
  0xb8   : > { %v3368_v23 = vld [vmem:[%s3948_s9 + $0x1a0] sm:$0xff]   ;;  %v3377_v29 = vld [vmem:[%s3948_s9 + $0x128] sm:$0xff]   ;;  %v3379_v32 = vld [vmem:[%s4393_s0 + $0x1b4] ss:$36 sps:$4 sm:$0xff]  }
  0xb9   : > { %2928 = vmatpush3.bf16.msra.mxu0 %v3313_v42  ;;  %v3378_v30 = vld [vmem:[%s3948_s9 + $0x1a8] sm:$0xff]   ;;  %v3381_v33 = vld [vmem:[%s4393_s0 + $0x1bc] ss:$36 sps:$4 sm:$0xff]   ;;  %v3385_v34 = vld [vmem:[%s3948_s9 + $0x170] sm:$0xff]  }
  0xba   : > { %2992 = vmatpush3.bf16.msra.mxu1 %v3314_v43  ;;  %2929 = vmatprep.subr.bf16.mxu0 %v3315_v44  ;;  %v3386_v35 = vld [vmem:[%s3948_s9 + $0x1f0] sm:$0xff]   ;;  %v3384_v39 = vld [vmem:[%s4393_s0 + $0x1b8] ss:$36 sps:$4 sm:$0xff]   ;;  %v3391_v41 = vld [vmem:[%s4393_s0 + $0x204] ss:$36 sps:$4 sm:$0xff]  }
  0xbb   : > { %2993 = vmatprep.subr.bf16.mxu1 %v3316_v45  ;;  %v3387_v36 = vld [vmem:[%s3948_s9 + $0x130] sm:$0xff]   ;;  %v3389_v40 = vld [vmem:[%s4393_s0 + $0x1fc] ss:$36 sps:$4 sm:$0xff]  }
  0xbc   : > { %v3388_v37 = vld [vmem:[%s3948_s9 + $0x1b0] sm:$0xff]   ;;  %v3395_v42 = vld [vmem:[%s3948_s9 + $0x178] sm:$0xff]  }
  0xbd   : > { %2930 = vmatpush3.bf16.msra.mxu0 %v3317_v46  ;;  %v3383_v38 = vld [vmem:[%s4393_s0 + $0x1b0] ss:$36 sps:$4 sm:$0xff]   ;;  %v3396_v43 = vld [vmem:[%s3948_s9 + $0x1f8] sm:$0xff]  }
  0xbe   : > { %2994 = vmatpush3.bf16.msra.mxu1 %v3318_v47  ;;  %3043 = vmatprep.subr.bf16.mxu0 %v3325_v52  ;;  %v3397_v44 = vld [vmem:[%s3948_s9 + $0x138] sm:$0xff]   ;;  %v3394_v47 = vld [vmem:[%s4393_s0 + $0x200] ss:$36 sps:$4 sm:$0xff]   ;;  %v3399_v51 = vld [vmem:[%s4393_s0 + $0x10] ss:$36 sps:$4 sm:$0xff]  }
  0xbf   : > { %3107 = vmatprep.subr.bf16.mxu1 %v3326_v53  ;;  %v3398_v45 = vld [vmem:[%s3948_s9 + $0x1b8] sm:$0xff]  }
  0xc0   : > { %1917 = vmatmul.mubr.bf16.vlgmr.msra.gmra.mrb[0].mxu0 %v3319_v48  ;;  %v3393_v46 = vld [vmem:[%s4393_s0 + $0x1f8] ss:$36 sps:$4 sm:$0xff]   ;;  %v3405_v48 = vld [vmem:[%s3948_s9 + $0x200] sm:$0xff]  }
  0xc1   : > { %2014 = vmatmul.mubr.bf16.vlgmr.msra.gmra.mrb[0].mxu1 %v3322_v50  ;;  %3044 = vmatpush3.bf16.msra.mxu0 %v3327_v54  ;;  %v3401_v49 = vld [vmem:[%s4393_s0 + $0x14] ss:$36 sps:$4 sm:$0xff]   ;;  %v3404_v50 = vld [vmem:[%s4393_s0 + $0x1c] ss:$36 sps:$4 sm:$0xff]   ;;  %v3408_v54 = vld [vmem:[%s4393_s0 + $0x64] ss:$36 sps:$4 sm:$0xff]  }
  0xc2   : > { %3108 = vmatpush3.bf16.msra.mxu1 %v3328_v55  ;;  %1924 = vmatprep.mubr.bf16.mxu0 %v3329_v56  ;;  %v3402_v52 = vld [vmem:[%s4393_s0 + $0x18] ss:$36 sps:$4 sm:$0xff]   ;;  %v3412_v55 = vld [vmem:[%s3948_s9 + $0x208] sm:$0xff]   ;;  %v3419_v56 = vld [vmem:[%s3948_s9 + $0x210] sm:$0xff]  }
  0xc3   : > { %2021 = vmatprep.mubr.bf16.mxu1 %v3331_v57  ;;  %3045 = vmatprep.subr.bf16.mxu0 %v3335_v60  ;;  %v3406_v53 = vld [vmem:[%s4393_s0 + $0x5c] ss:$36 sps:$4 sm:$0xff]   ;;  %v3415_v60 = vld [vmem:[%s4393_s0 + $0xac] ss:$36 sps:$4 sm:$0xff]  }
  0xc4   : > { %3109 = vmatprep.subr.bf16.mxu1 %v3336_v61  ;;  %v3410_v57 = vld [vmem:[%s4393_s0 + $0x58] ss:$36 sps:$4 sm:$0xff]  }
  0xc5   : > { %3046 = vmatpush3.bf16.msra.mxu0 %v3337_v62  ;;  %v3426_v61 = vld [vmem:[%s3948_s9 + $0x218] sm:$0xff]   ;;  %v3433_v62 = vld [vmem:[%s3948_s9 + $0x220] sm:$0xff]  }
  0xc6   : > { %3110 = vmatpush3.bf16.msra.mxu1 %v3338_v63  ;;  %3047 = vmatprep.subr.bf16.mxu0 %v3345_v4  ;;  %v3417_v63 = vld [vmem:[%s4393_s0 + $0xa0] ss:$36 sps:$4 sm:$0xff]   ;;  %v3424_v4 = vld [vmem:[%s4393_s0 + $0xe8] ss:$36 sps:$4 sm:$0xff]  }
  0xc7   : > { %3111 = vmatprep.subr.bf16.mxu1 %v3346_v5  ;;  %v3447_v5 = vld [vmem:[%s3948_s9 + $0x230] sm:$0xff]  }
  0xc8   : > { %1925 = vmatmul.mubr.bf16.gmra.mrb[4].mxu0 %v3333_v58  ;;  %v3411_v58 = vld [vmem:[%s4393_s0 + $0x60] ss:$36 sps:$4 sm:$0xff]  }
  0xc9   : > { %2022 = vmatmul.mubr.bf16.gmra.mrb[4].mxu1 %v3334_v59  ;;  %1932 = vmatprep.mubr.bf16.mxu0 %v3339_v0  ;;  %v3413_v59 = vld [vmem:[%s4393_s0 + $0xa4] ss:$36 sps:$4 sm:$0xff]  }
  0xca   : > { %2029 = vmatprep.mubr.bf16.mxu1 %v3341_v1  ;;  %3048 = vmatpush3.bf16.msra.mxu0 %v3347_v6  ;;  %v3418_v0 = vld [vmem:[%s4393_s0 + $0xa8] ss:$36 sps:$4 sm:$0xff]   ;;  %v3425_v6 = vld [vmem:[%s4393_s0 + $0xf0] ss:$36 sps:$4 sm:$0xff]  }
  0xcb   : > { %3112 = vmatpush3.bf16.msra.mxu1 %v3348_v7  ;;  %3049 = vmatprep.subr.bf16.mxu0 %v3355_v12  ;;  %v3420_v1 = vld [vmem:[%s4393_s0 + $0xec] ss:$36 sps:$4 sm:$0xff]   ;;  %v3427_v7 = vld [vmem:[%s4393_s0 + $0x134] ss:$36 sps:$4 sm:$0xff]   ;;  %v3434_v12 = vld [vmem:[%s4393_s0 + $0x17c] ss:$36 sps:$4 sm:$0xff]  }
  0xcc   : > { %3113 = vmatprep.subr.bf16.mxu1 %v3356_v13  ;;  %v3436_v13 = vld [vmem:[%s4393_s0 + $0x184] ss:$36 sps:$4 sm:$0xff]  }
  0xce   : > { %3050 = vmatpush3.bf16.msra.mxu0 %v3357_v14  ;;  %v3438_v14 = vld [vmem:[%s4393_s0 + $0x178] ss:$36 sps:$4 sm:$0xff]  }
  0xcf   : > { %3114 = vmatpush3.bf16.msra.mxu1 %v3358_v15  ;;  %3051 = vmatprep.subr.bf16.mxu0 %v3365_v19  ;;  %v3439_v15 = vld [vmem:[%s4393_s0 + $0x180] ss:$36 sps:$4 sm:$0xff]   ;;  %v3446_v19 = vld [vmem:[%s4393_s0 + $0x1c8] ss:$36 sps:$4 sm:$0xff]  }
  0xd0   : > { %1933 = vmatmul.mubr.bf16.gmra.mrb[8].mxu0 %v3343_v2  ;;  %3115 = vmatprep.subr.bf16.mxu1 %v3366_v21  ;;  %v3422_v2 = vld [vmem:[%s4393_s0 + $0xf4] ss:$36 sps:$4 sm:$0xff]  }
  0xd1   : > { %2030 = vmatmul.mubr.bf16.gmra.mrb[8].mxu1 %v3344_v3  ;;  %1940 = vmatprep.mubr.bf16.mxu0 %v3349_v8  ;;  %v3440_v3 = vld [vmem:[%s3948_s9 + $0x228] sm:$0xff]   ;;  %v3429_v8 = vld [vmem:[%s4393_s0 + $0x13c] ss:$36 sps:$4 sm:$0xff]   ;;  %v3450_v21 = vld [vmem:[%s4393_s0 + $0x214] ss:$36 sps:$4 sm:$0xff]  }
  0xd2   : > { %2037 = vmatprep.mubr.bf16.mxu1 %v3351_v9  ;;  %3052 = vmatpush3.bf16.msra.mxu0 %v3367_v22  ;;  %v3454_v9 = vld [vmem:[%s3948_s9 + $0x238] sm:$0xff]   ;;  %v3452_v22 = vld [vmem:[%s4393_s0 + $0x208] ss:$36 sps:$4 sm:$0xff]  }
  0xd3   : > { %3116 = vmatpush3.bf16.msra.mxu1 %v3368_v23  ;;  %3053 = vmatprep.subr.bf16.mxu0 %v3375_v26  ;;  %v3453_v23 = vld [vmem:[%s4393_s0 + $0x210] ss:$36 sps:$4 sm:$0xff]   ;;  %v3457_v26 = vld [vmem:[%s4393_s0 + $0x68] ss:$36 sps:$4 sm:$0xff]  }
  0xd4   : > { %3117 = vmatprep.subr.bf16.mxu1 %v3376_v27  ;;  %v3458_v27 = vld [vmem:[%s4393_s0 + $0x188] ss:$36 sps:$4 sm:$0xff]  }
  0xd6   : > { %3054 = vmatpush3.bf16.msra.mxu0 %v3377_v29  ;;  %v3460_v29 = vld [vmem:[%s4393_s0 + $0x1d0] ss:$36 sps:$4 sm:$0xff]  }
  0xd7   : > { %3118 = vmatpush3.bf16.msra.mxu1 %v3378_v30  ;;  %3055 = vmatprep.subr.bf16.mxu0 %v3385_v34  ;;  %v3461_v30 = vld [vmem:[%s4393_s0 + $0xf8] ss:$36 sps:$4 sm:$0xff]   ;;  %v4246_v34 = vld [vmem:[%s813_s11] ss:$0 sm:$0xff]  ;;  %s2686_s11 = sshll.u32 %s3945_s7, 6 }
  0xd8   : > { %1941 = vmatmul.mubr.bf16.gmra.mrb[12].mxu0 %v3353_v10  ;;  %3119 = vmatprep.subr.bf16.mxu1 %v3386_v35  ;;  %v3431_v10 = vld [vmem:[%s4393_s0 + $0x130] ss:$36 sps:$4 sm:$0xff]   ;;  %s4338_s7 = scalar_lea.vmem [#allocation5], %s2686_s11 }
  0xd9   : > { %2038 = vmatmul.mubr.bf16.gmra.mrb[12].mxu1 %v3354_v11  ;;  %1948 = vmatprep.mubr.bf16.mxu0 %v3359_v16  ;;  %v3432_v11 = vld [vmem:[%s4393_s0 + $0x138] ss:$36 sps:$4 sm:$0xff]   ;;  %v3441_v16 = vld [vmem:[%s4393_s0 + $0x1c4] ss:$36 sps:$4 sm:$0xff]  }
  0xda   : > { %2045 = vmatprep.mubr.bf16.mxu1 %v3361_v17  ;;  %3056 = vmatpush3.bf16.msra.mxu0 %v3387_v36  ;;  %v3443_v17 = vld [vmem:[%s4393_s0 + $0x1cc] ss:$36 sps:$4 sm:$0xff]  }
  0xdb   : > { %3120 = vmatpush3.bf16.msra.mxu1 %v3388_v37  ;;  %3057 = vmatprep.subr.bf16.mxu0 %v3395_v42 }
  0xdc   : > { %3121 = vmatprep.subr.bf16.mxu1 %v3396_v43 }
  0xde   : > { %3058 = vmatpush3.bf16.msra.mxu0 %v3397_v44 }
  0xdf   : > { %3122 = vmatpush3.bf16.msra.mxu1 %v3398_v45  ;;  %3187 = vmatprep.subr.bf16.mxu0 %v3405_v48 }
  0xe0   : > { %1949 = vmatmul.mubr.bf16.gmra.mrb[16].mxu0 %v3363_v18  ;;  %3219 = vmatprep.subr.bf16.mxu1 %v3405_v48  ;;  %v3445_v18 = vld [vmem:[%s4393_s0 + $0x1c0] ss:$36 sps:$4 sm:$0xff]  }
  0xe1   : > { %2046 = vmatmul.mubr.bf16.gmra.mrb[16].mxu1 %v3364_v20  ;;  %1956 = vmatprep.mubr.bf16.mxu0 %v3369_v24  ;;  %v3448_v20 = vld [vmem:[%s4393_s0 + $0x20c] ss:$36 sps:$4 sm:$0xff]   ;;  %v3455_v24 = vld [vmem:[%s4393_s0 + $0x20] ss:$36 sps:$4 sm:$0xff]  }
  0xe2   : > { %2053 = vmatprep.mubr.bf16.mxu1 %v3371_v25  ;;  %v3456_v25 = vld [vmem:[%s4393_s0 + $0x140] ss:$36 sps:$4 sm:$0xff]  }
  0xe8   : > { %1957 = vmatmul.mubr.bf16.gmra.mrb[20].mxu0 %v3373_v28  ;;  %v3459_v28 = vld [vmem:[%s4393_s0 + $0xb0] ss:$36 sps:$4 sm:$0xff]  }
  0xe9   : > { %2054 = vmatmul.mubr.bf16.gmra.mrb[20].mxu1 %v3374_v31  ;;  %1964 = vmatprep.mubr.bf16.mxu0 %v3379_v32  ;;  %v3462_v31 = vld [vmem:[%s4393_s0 + $0x218] ss:$36 sps:$4 sm:$0xff]  }
  0xea   : > { %2061 = vmatprep.mubr.bf16.mxu1 %v3381_v33 }
  0xf0   : > { %1965 = vmatmul.mubr.bf16.gmra.mrb[24].mxu0 %v3383_v38 }
  0xf1   : > { %2062 = vmatmul.mubr.bf16.gmra.mrb[24].mxu1 %v3384_v39  ;;  %1972 = vmatprep.mubr.bf16.mxu0 %v3389_v40 }
  0xf2   : > { %2069 = vmatprep.mubr.bf16.mxu1 %v3391_v41 }
  0xf8   : > { %1973 = vmatmul.mubr.bf16.gmra.mrb[28].mxu0 %v3393_v46 }
  0xf9   : > { %2070 = vmatmul.mubr.bf16.gmra.mrb[28].mxu1 %v3394_v47  ;;  %2110 = vmatprep.mubr.bf16.mxu0 %v3401_v49 }
  0xfa   : > { %2207 = vmatprep.mubr.bf16.mxu1 %v3404_v50 }
 0x100   : > { %2111 = vmatmul.mubr.bf16.vlgmr.msra.gmra.mrb[32].mxu0 %v3399_v51 }
 0x101   : > { %2208 = vmatmul.mubr.bf16.vlgmr.msra.gmra.mrb[32].mxu1 %v3402_v52  ;;  %3188 = vmatpush3.bf16.msra.mxu0 %v3405_v48 }
 0x102   : > { %3227 = vmatpush3.bf16.msra.mxu1 %v3405_v48  ;;  %2118 = vmatprep.mubr.bf16.mxu0 %v3406_v53 }
 0x103   : > { %2215 = vmatprep.mubr.bf16.mxu1 %v3408_v54  ;;  %3189 = vmatprep.subr.bf16.mxu0 %v3412_v55 }
 0x104   : > { %3220 = vmatprep.subr.bf16.mxu1 %v3412_v55 }
 0x105   : > { %3190 = vmatpush3.bf16.msra.mxu0 %v3412_v55 }
 0x106   : > { %3228 = vmatpush3.bf16.msra.mxu1 %v3412_v55  ;;  %3191 = vmatprep.subr.bf16.mxu0 %v3419_v56 }
 0x107   : > { %3221 = vmatprep.subr.bf16.mxu1 %v3419_v56 }
 0x108   : > { %2119 = vmatmul.mubr.bf16.gmra.mrb[36].mxu0 %v3410_v57 }
 0x109   : > { %2216 = vmatmul.mubr.bf16.gmra.mrb[36].mxu1 %v3411_v58  ;;  %2126 = vmatprep.mubr.bf16.mxu0 %v3413_v59 }
 0x10a   : > { %2223 = vmatprep.mubr.bf16.mxu1 %v3415_v60  ;;  %3192 = vmatpush3.bf16.msra.mxu0 %v3419_v56 }
 0x10b   : > { %3229 = vmatpush3.bf16.msra.mxu1 %v3419_v56  ;;  %3193 = vmatprep.subr.bf16.mxu0 %v3426_v61 }
 0x10c   : > { %3222 = vmatprep.subr.bf16.mxu1 %v3426_v61 }
 0x10e   : > { %3194 = vmatpush3.bf16.msra.mxu0 %v3426_v61 }
 0x10f   : > { %3230 = vmatpush3.bf16.msra.mxu1 %v3426_v61  ;;  %3195 = vmatprep.subr.bf16.mxu0 %v3433_v62 }
 0x110   : > { %2127 = vmatmul.mubr.bf16.gmra.mrb[40].mxu0 %v3417_v63  ;;  %3223 = vmatprep.subr.bf16.mxu1 %v3433_v62 }
 0x111   : > { %2224 = vmatmul.mubr.bf16.gmra.mrb[40].mxu1 %v3418_v0  ;;  %2134 = vmatprep.mubr.bf16.mxu0 %v3420_v1 }
 0x112   : > { %2231 = vmatprep.mubr.bf16.mxu1 %v3422_v2  ;;  %3196 = vmatpush3.bf16.msra.mxu0 %v3433_v62 }
 0x113   : > { %3231 = vmatpush3.bf16.msra.mxu1 %v3433_v62  ;;  %3197 = vmatprep.subr.bf16.mxu0 %v3440_v3 }
 0x114   : > { %3224 = vmatprep.subr.bf16.mxu1 %v3440_v3 }
 0x116   : > { %3198 = vmatpush3.bf16.msra.mxu0 %v3440_v3 }
 0x117   : > { %3232 = vmatpush3.bf16.msra.mxu1 %v3440_v3  ;;  %3199 = vmatprep.subr.bf16.mxu0 %v3447_v5 }
 0x118   : > { %2135 = vmatmul.mubr.bf16.gmra.mrb[44].mxu0 %v3424_v4  ;;  %3225 = vmatprep.subr.bf16.mxu1 %v3447_v5 }
 0x119   : > { %2232 = vmatmul.mubr.bf16.gmra.mrb[44].mxu1 %v3425_v6  ;;  %2142 = vmatprep.mubr.bf16.mxu0 %v3427_v7 }
 0x11a   : > { %2239 = vmatprep.mubr.bf16.mxu1 %v3429_v8  ;;  %3200 = vmatpush3.bf16.msra.mxu0 %v3447_v5 }
 0x11b   : > { %3233 = vmatpush3.bf16.msra.mxu1 %v3447_v5  ;;  %3201 = vmatprep.subr.bf16.mxu0 %v3454_v9 }
 0x11c   : > { %3226 = vmatprep.subr.bf16.mxu1 %v3454_v9 }
 0x11e   : > { %3202 = vmatpush3.bf16.msra.mxu0 %v3454_v9 }
 0x11f   : > { %3234 = vmatpush3.bf16.msra.mxu1 %v3454_v9 }
 0x120   : > { %2143 = vmatmul.mubr.bf16.gmra.mrb[48].mxu0 %v3431_v10 }
 0x121   : > { %2240 = vmatmul.mubr.bf16.gmra.mrb[48].mxu1 %v3432_v11  ;;  %2150 = vmatprep.mubr.bf16.mxu0 %v3434_v12 }
 0x122   : > { %2247 = vmatprep.mubr.bf16.mxu1 %v3436_v13 }
 0x128   : > { %2151 = vmatmul.mubr.bf16.gmra.mrb[52].mxu0 %v3438_v14 }
 0x129   : > { %2248 = vmatmul.mubr.bf16.gmra.mrb[52].mxu1 %v3439_v15  ;;  %2158 = vmatprep.mubr.bf16.mxu0 %v3441_v16 }
 0x12a   : > { %2255 = vmatprep.mubr.bf16.mxu1 %v3443_v17 }
 0x130   : > { %2159 = vmatmul.mubr.bf16.gmra.mrb[56].mxu0 %v3445_v18 }
 0x131   : > { %2256 = vmatmul.mubr.bf16.gmra.mrb[56].mxu1 %v3446_v19  ;;  %2166 = vmatprep.mubr.bf16.mxu0 %v3448_v20 }
 0x132   : > { %2263 = vmatprep.mubr.bf16.mxu1 %v3450_v21 }
 0x138   : > { %2167 = vmatmul.mubr.bf16.gmra.mrb[60].mxu0 %v3452_v22 }
 0x139   : > { %2264 = vmatmul.mubr.bf16.gmra.mrb[60].mxu1 %v3453_v23  ;;  %3203 = vmatprep.mubr.bf16.mxu0 %v3455_v24 }
 0x13a   : > { %3211 = vmatprep.mubr.bf16.mxu1 %v3456_v25 }
 0x140   : > { %3204 = vmatmul.mubr.bf16.vlgmr.msra.gmra.mrb[64].mxu0 %v3457_v26 }
 0x141   : > { %3212 = vmatmul.mubr.bf16.vlgmr.msra.gmra.mrb[64].mxu1 %v3458_v27  ;;  %3207 = vmatprep.mubr.bf16.mxu0 %v3459_v28 }
 0x142   : > { %3215 = vmatprep.mubr.bf16.mxu1 %v3460_v29 }
 0x148   : > { %3208 = vmatmul.mubr.bf16.gmra.mrb[68].mxu0 %v3461_v30 }
 0x149   : > { %3216 = vmatmul.mubr.bf16.gmra.mrb[68].mxu1 %v3462_v31 }
 0x193   : > { %v2931_v32 = vpop.f32.mrb[0].mxu0 }
 0x194   : > { %v2995_v33 = vpop.f32.mrb[0].mxu1  ;;  %v2932_v35 = vpop.f32.mrb[1].mxu0 }
 0x195   : > { %v2933_v36 = vadd.f32 %v2932_v35, %v2931_v32  ;;  %v2996_v37 = vpop.f32.mrb[1].mxu1  ;;  %v2934_v38 = vpop.f32.mrb[2].mxu0 }
 0x196   : > { %v2997_v39 = vadd.f32 %v2996_v37, %v2995_v33  ;;  %v2998_v40 = vpop.f32.mrb[2].mxu1  ;;  %v2935_v41 = vpop.f32.mrb[3].mxu0 }
 0x197   : > { %v1919_v42 = vadd.f32 %v2933_v36, %v4246_v34  ;;  %v2936_v43 = vadd.f32 %v2935_v41, %v2934_v38  ;;  %v2999_v44 = vpop.f32.mrb[3].mxu1 }
 0x198   : > { %v3000_v45 = vadd.f32 %v2999_v44, %v2998_v40 }
 0x199   : > { %v4249_v46 = vadd.f32 %v2997_v39, %v1919_v42  ;;  %v1922_v47 = vadd.f32 %v2936_v43, %v4246_v34 }
 0x19b   : > { %v4252_v48 = vadd.f32 %v3000_v45, %v1922_v47  ;;  %v2937_v49 = vpop.f32.mrb[4].mxu0 }
 0x19c   : > { %v3001_v50 = vpop.f32.mrb[4].mxu1  ;;  %v2938_v51 = vpop.f32.mrb[5].mxu0 }
 0x19d   : > { %v2939_v52 = vadd.f32 %v2938_v51, %v2937_v49  ;;  %v3002_v53 = vpop.f32.mrb[5].mxu1  ;;  %v2940_v54 = vpop.f32.mrb[6].mxu0 }
 0x19e   : > { %v3003_v55 = vadd.f32 %v3002_v53, %v3001_v50  ;;  %v3004_v56 = vpop.f32.mrb[6].mxu1  ;;  %v2941_v57 = vpop.f32.mrb[7].mxu0 }
 0x19f   : > { %v1927_v58 = vadd.f32 %v2939_v52, %v4246_v34  ;;  %v2942_v59 = vadd.f32 %v2941_v57, %v2940_v54  ;;  %v3005_v60 = vpop.f32.mrb[7].mxu1 }
 0x1a0   : > { %v3006_v61 = vadd.f32 %v3005_v60, %v3004_v56 }
 0x1a1   : > { %v4255_v62 = vadd.f32 %v3003_v55, %v1927_v58  ;;  %v1930_v63 = vadd.f32 %v2942_v59, %v4246_v34 }
 0x1a3   : > { %v4258_v0 = vadd.f32 %v3006_v61, %v1930_v63  ;;  %v2943_v1 = vpop.f32.mrb[8].mxu0 }
 0x1a4   : > { %v3007_v2 = vpop.f32.mrb[8].mxu1  ;;  %v2944_v3 = vpop.f32.mrb[9].mxu0 }
 0x1a5   : > { %v2945_v4 = vadd.f32 %v2944_v3, %v2943_v1  ;;  %v3008_v5 = vpop.f32.mrb[9].mxu1  ;;  %v2946_v6 = vpop.f32.mrb[10].mxu0 }
 0x1a6   : > { %v3009_v7 = vadd.f32 %v3008_v5, %v3007_v2  ;;  %v3010_v8 = vpop.f32.mrb[10].mxu1  ;;  %v2947_v9 = vpop.f32.mrb[11].mxu0 }
 0x1a7   : > { %v1935_v10 = vadd.f32 %v2945_v4, %v4246_v34  ;;  %v2948_v11 = vadd.f32 %v2947_v9, %v2946_v6  ;;  %v3011_v12 = vpop.f32.mrb[11].mxu1 }
 0x1a8   : > { %v3012_v13 = vadd.f32 %v3011_v12, %v3010_v8 }
 0x1a9   : > { %v4261_v14 = vadd.f32 %v3009_v7, %v1935_v10  ;;  %v1938_v15 = vadd.f32 %v2948_v11, %v4246_v34 }
 0x1ab   : > { %v4264_v16 = vadd.f32 %v3012_v13, %v1938_v15  ;;  %v2949_v17 = vpop.f32.mrb[12].mxu0 }
 0x1ac   : > { %v3013_v18 = vpop.f32.mrb[12].mxu1  ;;  %v2950_v19 = vpop.f32.mrb[13].mxu0 }
 0x1ad   : > { %v2951_v20 = vadd.f32 %v2950_v19, %v2949_v17  ;;  %v3014_v21 = vpop.f32.mrb[13].mxu1  ;;  %v2952_v22 = vpop.f32.mrb[14].mxu0 }
 0x1ae   : > { %v3015_v23 = vadd.f32 %v3014_v21, %v3013_v18  ;;  %v3016_v24 = vpop.f32.mrb[14].mxu1  ;;  %v2953_v25 = vpop.f32.mrb[15].mxu0 }
 0x1af   : > { %v1943_v26 = vadd.f32 %v2951_v20, %v4246_v34  ;;  %v2954_v27 = vadd.f32 %v2953_v25, %v2952_v22  ;;  %v3017_v28 = vpop.f32.mrb[15].mxu1 }
 0x1b0   : > { %v3018_v29 = vadd.f32 %v3017_v28, %v3016_v24 }
 0x1b1   : > { %v4267_v30 = vadd.f32 %v3015_v23, %v1943_v26  ;;  %v1946_v31 = vadd.f32 %v2954_v27, %v4246_v34 }
 0x1b3   : > { %v4270_v32 = vadd.f32 %v3018_v29, %v1946_v31  ;;  %v2955_v33 = vpop.f32.mrb[16].mxu0 }
 0x1b4   : > { %v3019_v35 = vpop.f32.mrb[16].mxu1  ;;  %v2956_v36 = vpop.f32.mrb[17].mxu0 }
 0x1b5   : > { %v2957_v37 = vadd.f32 %v2956_v36, %v2955_v33  ;;  %v3020_v38 = vpop.f32.mrb[17].mxu1  ;;  %v2958_v39 = vpop.f32.mrb[18].mxu0 }
 0x1b6   : > { %v3021_v40 = vadd.f32 %v3020_v38, %v3019_v35  ;;  %v3022_v41 = vpop.f32.mrb[18].mxu1  ;;  %v2959_v42 = vpop.f32.mrb[19].mxu0 }
 0x1b7   : > { %v1951_v43 = vadd.f32 %v2957_v37, %v4246_v34  ;;  %v2960_v44 = vadd.f32 %v2959_v42, %v2958_v39  ;;  %v3023_v45 = vpop.f32.mrb[19].mxu1 }
 0x1b8   : > { %v3024_v47 = vadd.f32 %v3023_v45, %v3022_v41 }
 0x1b9   : > { %v4273_v49 = vadd.f32 %v3021_v40, %v1951_v43  ;;  %v1954_v50 = vadd.f32 %v2960_v44, %v4246_v34 }
 0x1bb   : > { %v4276_v51 = vadd.f32 %v3024_v47, %v1954_v50  ;;  %v2961_v52 = vpop.f32.mrb[20].mxu0 }
 0x1bc   : > { %v3025_v53 = vpop.f32.mrb[20].mxu1  ;;  %v2962_v54 = vpop.f32.mrb[21].mxu0 }
 0x1bd   : > { %v2963_v55 = vadd.f32 %v2962_v54, %v2961_v52  ;;  %v3026_v56 = vpop.f32.mrb[21].mxu1  ;;  %v2964_v57 = vpop.f32.mrb[22].mxu0 }
 0x1be   : > { %v3027_v58 = vadd.f32 %v3026_v56, %v3025_v53  ;;  %v3028_v59 = vpop.f32.mrb[22].mxu1  ;;  %v2965_v60 = vpop.f32.mrb[23].mxu0 }
 0x1bf   : > { %v1959_v61 = vadd.f32 %v2963_v55, %v4246_v34  ;;  %v2966_v63 = vadd.f32 %v2965_v60, %v2964_v57  ;;  %v3029_v1 = vpop.f32.mrb[23].mxu1 }
 0x1c0   : > { %v3030_v2 = vadd.f32 %v3029_v1, %v3028_v59 }
 0x1c1   : > { %v4279_v3 = vadd.f32 %v3027_v58, %v1959_v61  ;;  %v1962_v4 = vadd.f32 %v2966_v63, %v4246_v34 }
 0x1c3   : > { %v4282_v5 = vadd.f32 %v3030_v2, %v1962_v4  ;;  %v2967_v6 = vpop.f32.mrb[24].mxu0 }
 0x1c4   : > { %v3031_v7 = vpop.f32.mrb[24].mxu1  ;;  %v2968_v8 = vpop.f32.mrb[25].mxu0 }
 0x1c5   : > { %v2969_v9 = vadd.f32 %v2968_v8, %v2967_v6  ;;  %v3032_v10 = vpop.f32.mrb[25].mxu1  ;;  %v2970_v11 = vpop.f32.mrb[26].mxu0 }
 0x1c6   : > { %v3033_v12 = vadd.f32 %v3032_v10, %v3031_v7  ;;  %v3034_v13 = vpop.f32.mrb[26].mxu1  ;;  %v2971_v15 = vpop.f32.mrb[27].mxu0 }
 0x1c7   : > { %v1967_v17 = vadd.f32 %v2969_v9, %v4246_v34  ;;  %v2972_v18 = vadd.f32 %v2971_v15, %v2970_v11  ;;  %v3035_v19 = vpop.f32.mrb[27].mxu1 }
 0x1c8   : > { %v3036_v20 = vadd.f32 %v3035_v19, %v3034_v13 }
 0x1c9   : > { %v4285_v21 = vadd.f32 %v3033_v12, %v1967_v17  ;;  %v1970_v22 = vadd.f32 %v2972_v18, %v4246_v34 }
 0x1cb   : > { %v4288_v23 = vadd.f32 %v3036_v20, %v1970_v22  ;;  %v2973_v24 = vpop.f32.mrb[28].mxu0 }
 0x1cc   : > { %v3037_v25 = vpop.f32.mrb[28].mxu1  ;;  %v2974_v26 = vpop.f32.mrb[29].mxu0 }
 0x1cd   : > { %v2975_v27 = vadd.f32 %v2974_v26, %v2973_v24  ;;  %v3038_v28 = vpop.f32.mrb[29].mxu1  ;;  %v2976_v29 = vpop.f32.mrb[30].mxu0 }
 0x1ce   : > { %v3039_v31 = vadd.f32 %v3038_v28, %v3037_v25  ;;  %v3040_v33 = vpop.f32.mrb[30].mxu1  ;;  %v2977_v35 = vpop.f32.mrb[31].mxu0 }
 0x1cf   : > { %v1975_v36 = vadd.f32 %v2975_v27, %v4246_v34  ;;  %v2978_v37 = vadd.f32 %v2977_v35, %v2976_v29  ;;  %v3041_v38 = vpop.f32.mrb[31].mxu1 }
 0x1d0   : > { %v3042_v39 = vadd.f32 %v3041_v38, %v3040_v33 }
 0x1d1   : > { %v4291_v40 = vadd.f32 %v3039_v31, %v1975_v36  ;;  %v1978_v41 = vadd.f32 %v2978_v37, %v4246_v34 }
 0x1d3   : > { %v4294_v42 = vadd.f32 %v3042_v39, %v1978_v41  ;;  %v3059_v43 = vpop.f32.mrb[32].mxu0 }
 0x1d4   : > { %v3123_v44 = vpop.f32.mrb[32].mxu1  ;;  %v3060_v45 = vpop.f32.mrb[33].mxu0 }
 0x1d5   : > { %v3061_v47 = vadd.f32 %v3060_v45, %v3059_v43  ;;  %v3124_v50 = vpop.f32.mrb[33].mxu1  ;;  %v3062_v52 = vpop.f32.mrb[34].mxu0 }
 0x1d6   : > { %v3125_v53 = vadd.f32 %v3124_v50, %v3123_v44  ;;  %v3126_v54 = vpop.f32.mrb[34].mxu1  ;;  %v3063_v55 = vpop.f32.mrb[35].mxu0 }
 0x1d7   : > { %v2113_v56 = vadd.f32 %v3061_v47, %v4249_v46  ;;  %v3064_v57 = vadd.f32 %v3063_v55, %v3062_v52  ;;  %v3127_v58 = vpop.f32.mrb[35].mxu1 }
 0x1d8   : > { %v3128_v59 = vadd.f32 %v3127_v58, %v3126_v54 }
 0x1d9   : > { %v2116_v60 = vadd.f32 %v3064_v57, %v4252_v48  ;;  %v4298_v61 = vadd.f32 %v3125_v53, %v2113_v56 }
 0x1db   : > { %v3065_v34 = vpop.f32.mrb[36].mxu0  ;;  %v4300_v63 = vadd.f32 %v3128_v59, %v2116_v60 }
 0x1dc   : > { %v3129_v1 = vpop.f32.mrb[36].mxu1  ;;  %v3066_v2 = vpop.f32.mrb[37].mxu0 }
 0x1dd   : > { %v3067_v4 = vadd.f32 %v3066_v2, %v3065_v34  ;;  %v3130_v6 = vpop.f32.mrb[37].mxu1  ;;  %v3068_v7 = vpop.f32.mrb[38].mxu0 }
 0x1de   : > { %v3131_v8 = vadd.f32 %v3130_v6, %v3129_v1  ;;  %v3132_v9 = vpop.f32.mrb[38].mxu1  ;;  %v3069_v10 = vpop.f32.mrb[39].mxu0 }
 0x1df   : > { %v2121_v46 = vadd.f32 %v3067_v4, %v4255_v62  ;;  %v3070_v11 = vadd.f32 %v3069_v10, %v3068_v7  ;;  %v3133_v12 = vpop.f32.mrb[39].mxu1 }
 0x1e0   : > { %v3134_v13 = vadd.f32 %v3133_v12, %v3132_v9 }
 0x1e1   : > { %v2124_v48 = vadd.f32 %v3070_v11, %v4258_v0  ;;  %v4304_v15 = vadd.f32 %v3131_v8, %v2121_v46 }
 0x1e3   : > { %v3071_v17 = vpop.f32.mrb[40].mxu0  ;;  %v4306_v18 = vadd.f32 %v3134_v13, %v2124_v48 }
 0x1e4   : > { %v3135_v19 = vpop.f32.mrb[40].mxu1  ;;  %v3072_v20 = vpop.f32.mrb[41].mxu0 }
 0x1e5   : > { %v3073_v22 = vadd.f32 %v3072_v20, %v3071_v17  ;;  %v3136_v24 = vpop.f32.mrb[41].mxu1  ;;  %v3074_v25 = vpop.f32.mrb[42].mxu0 }
 0x1e6   : > { %v3137_v26 = vadd.f32 %v3136_v24, %v3135_v19  ;;  %v3138_v27 = vpop.f32.mrb[42].mxu1  ;;  %v3075_v28 = vpop.f32.mrb[43].mxu0 }
 0x1e7   : > { %v2129_v62 = vadd.f32 %v3073_v22, %v4261_v14  ;;  %v3076_v29 = vadd.f32 %v3075_v28, %v3074_v25  ;;  %v3139_v31 = vpop.f32.mrb[43].mxu1 }
 0x1e8   : > { %v3140_v33 = vadd.f32 %v3139_v31, %v3138_v27 }
 0x1e9   : > { %v2132_v0 = vadd.f32 %v3076_v29, %v4264_v16  ;;  %v4310_v35 = vadd.f32 %v3137_v26, %v2129_v62 }
 0x1eb   : > { %v3077_v36 = vpop.f32.mrb[44].mxu0  ;;  %v4312_v37 = vadd.f32 %v3140_v33, %v2132_v0 }
 0x1ec   : > { %v3141_v38 = vpop.f32.mrb[44].mxu1  ;;  %v3078_v39 = vpop.f32.mrb[45].mxu0 }
 0x1ed   : > { %v3079_v41 = vadd.f32 %v3078_v39, %v3077_v36  ;;  %v3142_v43 = vpop.f32.mrb[45].mxu1  ;;  %v3080_v44 = vpop.f32.mrb[46].mxu0 }
 0x1ee   : > { %v3143_v45 = vadd.f32 %v3142_v43, %v3141_v38  ;;  %v3144_v47 = vpop.f32.mrb[46].mxu1  ;;  %v3081_v50 = vpop.f32.mrb[47].mxu0 }
 0x1ef   : > { %v2137_v14 = vadd.f32 %v3079_v41, %v4267_v30  ;;  %v3082_v52 = vadd.f32 %v3081_v50, %v3080_v44  ;;  %v3145_v53 = vpop.f32.mrb[47].mxu1 }
 0x1f0   : > { %v3146_v54 = vadd.f32 %v3145_v53, %v3144_v47 }
 0x1f1   : > { %v2140_v16 = vadd.f32 %v3082_v52, %v4270_v32  ;;  %v4316_v55 = vadd.f32 %v3143_v45, %v2137_v14 }
 0x1f3   : > { %v3083_v56 = vpop.f32.mrb[48].mxu0  ;;  %v4318_v57 = vadd.f32 %v3146_v54, %v2140_v16 }
 0x1f4   : > { %v3147_v58 = vpop.f32.mrb[48].mxu1  ;;  %v3084_v59 = vpop.f32.mrb[49].mxu0 }
 0x1f5   : > { %v3085_v60 = vadd.f32 %v3084_v59, %v3083_v56  ;;  %v3148_v34 = vpop.f32.mrb[49].mxu1  ;;  %v3086_v1 = vpop.f32.mrb[50].mxu0 }
 0x1f6   : > { %v3149_v2 = vadd.f32 %v3148_v34, %v3147_v58  ;;  %v3150_v4 = vpop.f32.mrb[50].mxu1  ;;  %v3087_v6 = vpop.f32.mrb[51].mxu0 }
 0x1f7   : > { %v2145_v30 = vadd.f32 %v3085_v60, %v4273_v49  ;;  %v3088_v7 = vadd.f32 %v3087_v6, %v3086_v1  ;;  %v3151_v8 = vpop.f32.mrb[51].mxu1 }
 0x1f8   : > { %v3152_v9 = vadd.f32 %v3151_v8, %v3150_v4 }
 0x1f9   : > { %v2148_v32 = vadd.f32 %v3088_v7, %v4276_v51  ;;  %v2242_v10 = vadd.f32 %v3149_v2, %v2145_v30 }
 0x1fb   : > { %v3089_v46 = vpop.f32.mrb[52].mxu0  ;;  %v4322_v11 = vadd.f32 %v3152_v9, %v2148_v32 }
 0x1fc   : > { %v3153_v12 = vpop.f32.mrb[52].mxu1  ;;  %v3090_v13 = vpop.f32.mrb[53].mxu0 }
 0x1fd   : > { %v3091_v48 = vadd.f32 %v3090_v13, %v3089_v46  ;;  %v3154_v17 = vpop.f32.mrb[53].mxu1  ;;  %v3092_v19 = vpop.f32.mrb[54].mxu0 }
 0x1fe   : > { %v3155_v20 = vadd.f32 %v3154_v17, %v3153_v12  ;;  %v3156_v22 = vpop.f32.mrb[54].mxu1  ;;  %v3093_v24 = vpop.f32.mrb[55].mxu0 }
 0x1ff   : > { %v2153_v25 = vadd.f32 %v3091_v48, %v4279_v3  ;;  %v3094_v49 = vadd.f32 %v3093_v24, %v3092_v19  ;;  %v3157_v26 = vpop.f32.mrb[55].mxu1 }
 0x200   : > { %v3158_v27 = vadd.f32 %v3157_v26, %v3156_v22 }
 0x201   : > { %v2156_v28 = vadd.f32 %v3094_v49, %v4282_v5  ;;  %v2250_v51 = vadd.f32 %v3155_v20, %v2153_v25 }
 0x203   : > { %v3095_v62 = vpop.f32.mrb[56].mxu0  ;;  %v2253_v29 = vadd.f32 %v3158_v27, %v2156_v28 }
 0x204   : > { %v3159_v31 = vpop.f32.mrb[56].mxu1  ;;  %v3096_v33 = vpop.f32.mrb[57].mxu0 }
 0x205   : > { %v3097_v0 = vadd.f32 %v3096_v33, %v3095_v62  ;;  %v3160_v36 = vpop.f32.mrb[57].mxu1  ;;  %v3098_v38 = vpop.f32.mrb[58].mxu0 }
 0x206   : > { %v3161_v39 = vadd.f32 %v3160_v36, %v3159_v31  ;;  %v3162_v41 = vpop.f32.mrb[58].mxu1  ;;  %v3099_v43 = vpop.f32.mrb[59].mxu0 }
 0x207   : > { %v2161_v44 = vadd.f32 %v3097_v0, %v4285_v21  ;;  %v3100_v45 = vadd.f32 %v3099_v43, %v3098_v38  ;;  %v3163_v3 = vpop.f32.mrb[59].mxu1 }
 0x208   : > { %v3164_v47 = vadd.f32 %v3163_v3, %v3162_v41 }
 0x209   : > { %v2164_v50 = vadd.f32 %v3100_v45, %v4288_v23  ;;  %v2258_v14 = vadd.f32 %v3161_v39, %v2161_v44 }
 0x20b   : > { %v3101_v5 = vpop.f32.mrb[60].mxu0  ;;  %v4328_v52 = vadd.f32 %v3164_v47, %v2164_v50 }
 0x20c   : > { %v3165_v53 = vpop.f32.mrb[60].mxu1  ;;  %v3102_v54 = vpop.f32.mrb[61].mxu0 }
 0x20d   : > { %v3103_v16 = vadd.f32 %v3102_v54, %v3101_v5  ;;  %v3166_v56 = vpop.f32.mrb[61].mxu1  ;;  %v3104_v58 = vpop.f32.mrb[62].mxu0 }
 0x20e   : > { %v3167_v59 = vadd.f32 %v3166_v56, %v3165_v53  ;;  %v3168_v60 = vpop.f32.mrb[62].mxu1  ;;  %v3105_v34 = vpop.f32.mrb[63].mxu0 }
 0x20f   : > { %v2169_v1 = vadd.f32 %v3103_v16, %v4291_v40  ;;  %v3106_v21 = vadd.f32 %v3105_v34, %v3104_v58  ;;  %v3169_v2 = vpop.f32.mrb[63].mxu1 }
 0x210   : > { %v3170_v4 = vadd.f32 %v3169_v2, %v3168_v60 }
 0x211   : > { %v2172_v23 = vadd.f32 %v3106_v21, %v4294_v42  ;;  %v2266_v6 = vadd.f32 %v3167_v59, %v2169_v1 }
 0x213   : > { %v3205_v30 = vpop.f32.mrb[64].mxu0  ;;  %v2269_v7 = vadd.f32 %v3170_v4, %v2172_v23 }
 0x214   : > { %v2315_v8 = vadd.f32 %v3205_v30, %v4304_v15  ;;  %v3213_v9 = vpop.f32.mrb[64].mxu1  ;;  %v2306_v32 = vpop.f32.mrb[65].mxu0 }
 0x215   : > { %v2347_v46 = vadd.f32 %v3213_v9, %v2250_v51  ;;  %v2307_v12 = vadd.f32 %v2306_v32, %v4298_v61  ;;  %v2338_v13 = vpop.f32.mrb[65].mxu1  ;;  %v3206_v48 = vpop.f32.mrb[66].mxu0 }
 0x216   : > { %v2339_v17 = vadd.f32 %v2338_v13, %v2242_v10  ;;  %v2318_v40 = vadd.f32 %v3206_v48, %v4306_v18  ;;  %v3214_v19 = vpop.f32.mrb[66].mxu1  ;;  %v2309_v20 = vpop.f32.mrb[67].mxu0  ;;  %v2371_v25 = vmax.f32 %v2315_v8, 0.0 }
 0x217   : > { %v2350_v22 = vadd.f32 %v3214_v19, %v2253_v29  ;;  %v2310_v42 = vadd.f32 %v2309_v20, %v4300_v63  ;;  %v2341_v24 = vpop.f32.mrb[67].mxu1  ;;  %v2379_v26 = vmax.f32 %v2347_v46, 0.0  ;;  %v2369_v27 = vmax.f32 %v2307_v12, 0.0 }
 0x218   : > { %v2372_v49 = vmax.f32 %v2318_v40, 0.0  ;;  %v2342_v15 = vadd.f32 %v2341_v24, %v4322_v11  ;;  %v2377_v51 = vmax.f32 %v2339_v17, 0.0 }
 0x219   : > { %v2380_v28 = vmax.f32 %v2350_v22, 0.0  ;;  %v2370_v61 = vmax.f32 %v2310_v42, 0.0 }
 0x21a   : > { %v2876_v62 = vpack.c.bf16 %v2372_v49, %v2371_v25  ;;  %v2378_v10 = vmax.f32 %v2342_v15, 0.0 }
 0x21b   : > { %v2896_v31 = vpack.c.bf16 %v2380_v28, %v2379_v26  ;;  %v2871_v33 = vpack.c.bf16 %v2370_v61, %v2369_v27  ;;  %v3209_v18 = vpop.f32.mrb[68].mxu0 }
 0x21c   : > { %2908 = vst [vmem:[%s4338_s7 + $0x8] sm:$0xff] %v2876_v62   ;;  %v2891_v63 = vpack.c.bf16 %v2378_v10, %v2377_v51  ;;  %v2331_v11 = vadd.f32 %v3209_v18, %v4316_v55  ;;  %v3217_v29 = vpop.f32.mrb[68].mxu1  ;;  %v2322_v0 = vpop.f32.mrb[69].mxu0 }
 0x21d   : > { %2912 = vst [vmem:[%s4338_s7 + $0x28] sm:$0xff] %v2896_v31   ;;  %2872 = vst [vmem:[%s4338_s7] sm:$0xff] %v2871_v33   ;;  %v2363_v36 = vadd.f32 %v3217_v29, %v2266_v6  ;;  %v2323_v38 = vadd.f32 %v2322_v0, %v4310_v35  ;;  %v2354_v39 = vpop.f32.mrb[69].mxu1  ;;  %v3210_v41 = vpop.f32.mrb[70].mxu0 }
 0x21e   : > { %2911 = vst [vmem:[%s4338_s7 + $0x20] sm:$0xff] %v2891_v63   ;;  %v2355_v43 = vadd.f32 %v2354_v39, %v2258_v14  ;;  %v2334_v44 = vadd.f32 %v3210_v41, %v4318_v57  ;;  %v3218_v45 = vpop.f32.mrb[70].mxu1  ;;  %v2325_v3 = vpop.f32.mrb[71].mxu0  ;;  %v2375_v5 = vmax.f32 %v2331_v11, 0.0 }
 0x21f   : > { %v2366_v47 = vadd.f32 %v3218_v45, %v2269_v7  ;;  %v2326_v50 = vadd.f32 %v2325_v3, %v4312_v37  ;;  %v2357_v55 = vpop.f32.mrb[71].mxu1  ;;  %v2383_v54 = vmax.f32 %v2363_v36, 0.0  ;;  %v2373_v16 = vmax.f32 %v2323_v38, 0.0 }
 0x220   : > { %v2376_v53 = vmax.f32 %v2334_v44, 0.0  ;;  %v2358_v35 = vadd.f32 %v2357_v55, %v4328_v52  ;;  %v2381_v58 = vmax.f32 %v2355_v43, 0.0  ;;  %2471 = sbr.rel (!%p4402_p8) target bundleno = 561 (0x231), region = 81 }
 0x221   : > { %v2384_v56 = vmax.f32 %v2366_v47, 0.0  ;;  %v2374_v14 = vmax.f32 %v2326_v50, 0.0 }
 0x222   : > { %v2886_v57 = vpack.c.bf16 %v2376_v53, %v2375_v5  ;;  %v2382_v59 = vmax.f32 %v2358_v35, 0.0 }
 0x223   : > { %v2906_v60 = vpack.c.bf16 %v2384_v56, %v2383_v54  ;;  %v2881_v34 = vpack.c.bf16 %v2374_v14, %v2373_v16  ;;  %v2496_v21 = vld [vmem:[%s4338_s7 + $0x8] sm:$0xf] (%p4402_p8)  ;;  %v2498_v2 = vld [vmem:[%s4338_s7 + $0xc] sm:$0xf] (%p4402_p8) }
 0x224   : > { %2910 = vst [vmem:[%s4338_s7 + $0x18] sm:$0xff] %v2886_v57   ;;  %v2901_v1 = vpack.c.bf16 %v2382_v59, %v2381_v58  ;;  %v2492_v37 = vld [vmem:[%s4338_s7] sm:$0xf] (%p4402_p8)  ;;  %v2494_v52 = vld [vmem:[%s4338_s7 + $0x4] sm:$0xf] (%p4402_p8) }
 0x225   : > { %2914 = vst [vmem:[%s4338_s7 + $0x38] sm:$0xff] %v2906_v60   ;;  %2909 = vst [vmem:[%s4338_s7 + $0x10] sm:$0xff] %v2881_v34   ;;  %v2508_v7 = vld [vmem:[%s4338_s7 + $0x20] sm:$0xf] (%p4402_p8)  ;;  %v2510_v8 = vld [vmem:[%s4338_s7 + $0x24] sm:$0xf] (%p4402_p8) }
 0x226   : > { %2913 = vst [vmem:[%s4338_s7 + $0x30] sm:$0xff] %v2901_v1   ;;  %2493 = vst [vmem:[%s2476_s23] sm:$0xf] (%p4402_p8), %v2492_v37  ;;  %v2512_v9 = vld [vmem:[%s4338_s7 + $0x28] sm:$0xf] (%p4402_p8)  ;;  %v2514_v32 = vld [vmem:[%s4338_s7 + $0x2c] sm:$0xf] (%p4402_p8) }
 0x227   : > { %2495 = vst [vmem:[%s2476_s23 + $0x8] sm:$0xf] %v2494_v52  ;;  %2497 = vst [vmem:[%s2476_s23 + $0x10] sm:$0xf] %v2496_v21 }
 0x228   : > { %2499 = vst [vmem:[%s2476_s23 + $0x18] sm:$0xf] %v2498_v2  ;;  %2509 = vst [vmem:[%s2476_s23 + $0x40] sm:$0xf] %v2508_v7 }
 0x229   : > { %2511 = vst [vmem:[%s2476_s23 + $0x48] sm:$0xf] %v2510_v8  ;;  %2513 = vst [vmem:[%s2476_s23 + $0x50] sm:$0xf] %v2512_v9 }
 0x22a   : > { %2515 = vst [vmem:[%s2476_s23 + $0x58] sm:$0xf] %v2514_v32 }
 0x22b   : > { %v2504_v6 = vld [vmem:[%s4338_s7 + $0x18] sm:$0xf]  ;;  %v2506_v30 = vld [vmem:[%s4338_s7 + $0x1c] sm:$0xf] }
 0x22c   : > { %v2500_v4 = vld [vmem:[%s4338_s7 + $0x10] sm:$0xf]  ;;  %v2502_v23 = vld [vmem:[%s4338_s7 + $0x14] sm:$0xf]  ;;  %2505 = vst [vmem:[%s2476_s23 + $0x30] sm:$0xf] %v2504_v6 }
 0x22d   : > { %2501 = vst [vmem:[%s2476_s23 + $0x20] sm:$0xf] %v2500_v4  ;;  %2503 = vst [vmem:[%s2476_s23 + $0x28] sm:$0xf] %v2502_v23  ;;  %v2516_v46 = vld [vmem:[%s4338_s7 + $0x30] sm:$0xf] }
 0x22e   : > { %2507 = vst [vmem:[%s2476_s23 + $0x38] sm:$0xf] %v2506_v30  ;;  %v2518_v12 = vld [vmem:[%s4338_s7 + $0x34] sm:$0xf]  ;;  %2517 = vst [vmem:[%s2476_s23 + $0x60] sm:$0xf] %v2516_v46 }
 0x22f   : > { %2519 = vst [vmem:[%s2476_s23 + $0x68] sm:$0xf] %v2518_v12  ;;  %v2520_v13 = vld [vmem:[%s4338_s7 + $0x38] sm:$0xf]  ;;  %v2522_v48 = vld [vmem:[%s4338_s7 + $0x3c] sm:$0xf] }
 0x230   : > { %2521 = vst [vmem:[%s2476_s23 + $0x70] sm:$0xf] %v2520_v13  ;;  %2523 = vst [vmem:[%s2476_s23 + $0x78] sm:$0xf] %v2522_v48 }
 0x231 PF: > { %s16_s17 = sadd.s32 1, %s3541_s17   ;;  %s4403_s12 = smov %s3525_s13 }
 0x232   : > { %p13_p9 = scmp.ge.s32.totalorder %s16_s17, 4   ;;  %s4404_s13 = smov %s3529_s14 }
 0x233   : > { %s4405_s14 = smov %s3612_s24  ;;  %s4406_s15 = smov %s3537_s16 }
 0x234   : > { %s4407_s16 = smov %s4409_s19  ;;  %15 = sbr.rel (!%p13_p9) target bundleno = 4 (0x4), region = 165 }
 0x23b   :  { %2588 = vsyncpa [#allocation4], 1 }
 0x23c   :  { %2590 = vsyncpa [#allocation4 + $0x1], 1 }

// kernel: alexnet_forward.10
= control target key start
LH: loop header
LB: loop body
LE: loop exit
PB: predicated region body
PF: predicated region fallthrough
CT: control target
= control target key end

     0   :  { %s4183_s12 = smov 0   ;;  %s4185_s13 = smov 0   ;;  %s5098_s0 = inlined_call_operand.vmem [shape: bf16[32,2304], index: 0, kind: input, shape index: {}]   ;;  %s5099_s1 = inlined_call_operand.vmem [shape: bf16[2304,384], index: 1, kind: input, shape index: {}]   ;;  %s5100_s2 = inlined_call_operand.vmem [shape: f32[1,384], index: 2, kind: input, shape index: {}]   ;;  %s5101_s3 = inlined_call_operand.vmem [shape: bf16[32,384], index: 3, kind: output, shape index: {}]  }
   0x1   :  { %s4187_s14 = smov 0   ;;  %s4189_s15 = smov 0  }
   0x2   :  { %s4191_s16 = smov 0  }
   0x3 LB: > { %s22_s17 = sadd.s32 1, %s4157_s15  ;;  %s3403_s18 = sadd.s32 4294967295, %s4161_s16   ;;  %s4161_s16 = sphi %s4191_s16, %s13_s16   ;;  %s4157_s15 = sphi %s4189_s15, %s5106_s15   ;;  %s4153_s14 = sphi %s4187_s14, %s5105_s14   ;;  %s4149_s13 = sphi %s4185_s13, %s5104_s13   ;;  %s4145_s12 = sphi %s4183_s12, %s5103_s12  }
   0x4   : > { %p23_p0 = scmp.ge.s32.totalorder %s22_s17, 3  ;;  %p65_p1 = scmp.ne.s32.totalorder %s4149_s13, %s4145_s12 }
   0x5   : > { %p66_p2 = scmp.eq.s32.totalorder %s4161_s16, 0  ;;  %p123_p4 = scmp.eq.s32.totalorder %s3403_s18, 2 }
   0x6   : > { %s5108_s17 = smov (%p23_p0, %s22_s17), 0  ;;  %s58_s20 = sadd.s32 1, %s4149_s13 }
   0x7   : > { %p67_p3 = por %p66_p2, %p65_p1  ;;  %s55_s19 = ssub.s32 %s4157_s15, %s5108_s17 }
   0x8   : > { %p56_p5 = scmp.eq.s32.totalorder %s55_s19, 0  ;;  %p4218_p6 = por %p123_p4, %p65_p1 }
   0x9   : > { %p3407_p7 = scmp.ge.s32.totalorder %s4161_s16, 3 }
   0xa   : > { %s4223_s22 = scalar_select %p56_p5, %s4149_s13, %s58_s20  }
   0xb   : > { %155 = sbr.rel (%p3407_p7) target bundleno = 214 (0xd6), region = 20 }
  0x12   : > { %158 = sbr.rel (!%p67_p3) target bundleno = 214 (0xd6), region = 24  ;;  %s160_s23 = sand.u32 (%p67_p3), 1, %s4149_s13  }
  0x13   : > { %s3408_s24 = sshll.u32 (%p67_p3), %s4157_s15, 2  ;;  %s3883_s25 = smul.u32 (%p67_p3), 1152, %s160_s23 }
  0x14   : > { %s4231_s28 = scalar_lea.vmem (%p67_p3), %s5099_s1, %s3408_s24 }
  0x15   : > { %v180_v0 = vld [vmem:[%s4231_s28] sm:$0xf] (%p67_p3)  ;;  %v182_v1 = vld [vmem:[%s4231_s28 + $0xc] sm:$0xf] (%p67_p3)  ;;  %v184_v2 = vld [vmem:[%s4231_s28 + $0x18] sm:$0xf] (%p67_p3) }
  0x16   : > { %v186_v3 = vld [vmem:[%s4231_s28 + $0x24] sm:$0xf] (%p67_p3)  ;;  %v188_v4 = vld [vmem:[%s4231_s28 + $0x30] sm:$0xf] (%p67_p3)  ;;  %s4238_s29 = scalar_lea.vmem (%p67_p3), [#allocation2], %s3883_s25 }
  0x17   : > { %181 = vst [vmem:[%s4238_s29] sm:$0xf] (%p67_p3), %v180_v0  ;;  %183 = vst [vmem:[%s4238_s29 + $0x4] sm:$0xf] (%p67_p3), %v182_v1  ;;  %v190_v5 = vld [vmem:[%s4231_s28 + $0x3c] sm:$0xf] (%p67_p3) }
  0x18   : > { %185 = vst [vmem:[%s4238_s29 + $0x8] sm:$0xf] (%p67_p3), %v184_v2  ;;  %187 = vst [vmem:[%s4238_s29 + $0xc] sm:$0xf] (%p67_p3), %v186_v3  ;;  %v192_v6 = vld [vmem:[%s4231_s28 + $0x48] sm:$0xf] (%p67_p3) }
  0x19   : > { %189 = vst [vmem:[%s4238_s29 + $0x10] sm:$0xf] %v188_v4  ;;  %v194_v7 = vld [vmem:[%s4231_s28 + $0x54] sm:$0xf]  ;;  %191 = vst [vmem:[%s4238_s29 + $0x14] sm:$0xf] %v190_v5 }
  0x1a   : > { %193 = vst [vmem:[%s4238_s29 + $0x18] sm:$0xf] %v192_v6  ;;  %195 = vst [vmem:[%s4238_s29 + $0x1c] sm:$0xf] %v194_v7  ;;  %v196_v8 = vld [vmem:[%s4231_s28 + $0x60] sm:$0xf] }
  0x1b   : > { %v198_v9 = vld [vmem:[%s4231_s28 + $0x6c] sm:$0xf]  ;;  %v200_v10 = vld [vmem:[%s4231_s28 + $0x78] sm:$0xf]  ;;  %197 = vst [vmem:[%s4238_s29 + $0x20] sm:$0xf] %v196_v8 }
  0x1c   : > { %199 = vst [vmem:[%s4238_s29 + $0x24] sm:$0xf] %v198_v9  ;;  %201 = vst [vmem:[%s4238_s29 + $0x28] sm:$0xf] %v200_v10  ;;  %v202_v11 = vld [vmem:[%s4231_s28 + $0x84] sm:$0xf] }
  0x1d   : > { %v204_v12 = vld [vmem:[%s4231_s28 + $0x90] sm:$0xf]  ;;  %v206_v13 = vld [vmem:[%s4231_s28 + $0x9c] sm:$0xf]  ;;  %203 = vst [vmem:[%s4238_s29 + $0x2c] sm:$0xf] %v202_v11 }
  0x1e   : > { %205 = vst [vmem:[%s4238_s29 + $0x30] sm:$0xf] %v204_v12  ;;  %207 = vst [vmem:[%s4238_s29 + $0x34] sm:$0xf] %v206_v13  ;;  %v208_v14 = vld [vmem:[%s4231_s28 + $0xa8] sm:$0xf] }
  0x1f   : > { %v210_v15 = vld [vmem:[%s4231_s28 + $0xb4] sm:$0xf]  ;;  %v212_v16 = vld [vmem:[%s4231_s28 + $0xc0] sm:$0xf]  ;;  %209 = vst [vmem:[%s4238_s29 + $0x38] sm:$0xf] %v208_v14 }
  0x20   : > { %211 = vst [vmem:[%s4238_s29 + $0x3c] sm:$0xf] %v210_v15  ;;  %213 = vst [vmem:[%s4238_s29 + $0x40] sm:$0xf] %v212_v16  ;;  %v214_v17 = vld [vmem:[%s4231_s28 + $0xcc] sm:$0xf] }
  0x21   : > { %v216_v18 = vld [vmem:[%s4231_s28 + $0xd8] sm:$0xf]  ;;  %v218_v19 = vld [vmem:[%s4231_s28 + $0xe4] sm:$0xf]  ;;  %215 = vst [vmem:[%s4238_s29 + $0x44] sm:$0xf] %v214_v17 }
  0x22   : > { %217 = vst [vmem:[%s4238_s29 + $0x48] sm:$0xf] %v216_v18  ;;  %219 = vst [vmem:[%s4238_s29 + $0x4c] sm:$0xf] %v218_v19  ;;  %v220_v20 = vld [vmem:[%s4231_s28 + $0xf0] sm:$0xf] }
  0x23   : > { %v222_v21 = vld [vmem:[%s4231_s28 + $0xfc] sm:$0xf]  ;;  %v224_v22 = vld [vmem:[%s4231_s28 + $0x108] sm:$0xf]  ;;  %221 = vst [vmem:[%s4238_s29 + $0x50] sm:$0xf] %v220_v20 }
  0x24   : > { %223 = vst [vmem:[%s4238_s29 + $0x54] sm:$0xf] %v222_v21  ;;  %225 = vst [vmem:[%s4238_s29 + $0x58] sm:$0xf] %v224_v22  ;;  %v226_v23 = vld [vmem:[%s4231_s28 + $0x114] sm:$0xf] }
  0x25   : > { %v228_v24 = vld [vmem:[%s4231_s28 + $0x120] sm:$0xf]  ;;  %v230_v25 = vld [vmem:[%s4231_s28 + $0x12c] sm:$0xf]  ;;  %227 = vst [vmem:[%s4238_s29 + $0x5c] sm:$0xf] %v226_v23 }
  0x26   : > { %229 = vst [vmem:[%s4238_s29 + $0x60] sm:$0xf] %v228_v24  ;;  %231 = vst [vmem:[%s4238_s29 + $0x64] sm:$0xf] %v230_v25  ;;  %v232_v26 = vld [vmem:[%s4231_s28 + $0x138] sm:$0xf] }
  0x27   : > { %v234_v27 = vld [vmem:[%s4231_s28 + $0x144] sm:$0xf]  ;;  %v236_v28 = vld [vmem:[%s4231_s28 + $0x150] sm:$0xf]  ;;  %233 = vst [vmem:[%s4238_s29 + $0x68] sm:$0xf] %v232_v26 }
  0x28   : > { %235 = vst [vmem:[%s4238_s29 + $0x6c] sm:$0xf] %v234_v27  ;;  %237 = vst [vmem:[%s4238_s29 + $0x70] sm:$0xf] %v236_v28  ;;  %v238_v29 = vld [vmem:[%s4231_s28 + $0x15c] sm:$0xf] }
  0x29   : > { %v240_v30 = vld [vmem:[%s4231_s28 + $0x168] sm:$0xf]  ;;  %v242_v31 = vld [vmem:[%s4231_s28 + $0x174] sm:$0xf]  ;;  %239 = vst [vmem:[%s4238_s29 + $0x74] sm:$0xf] %v238_v29 }
  0x2a   : > { %241 = vst [vmem:[%s4238_s29 + $0x78] sm:$0xf] %v240_v30  ;;  %243 = vst [vmem:[%s4238_s29 + $0x7c] sm:$0xf] %v242_v31  ;;  %v244_v32 = vld [vmem:[%s4231_s28 + $0x180] sm:$0xf] }
  0x2b   : > { %v246_v33 = vld [vmem:[%s4231_s28 + $0x18c] sm:$0xf]  ;;  %v248_v34 = vld [vmem:[%s4231_s28 + $0x198] sm:$0xf]  ;;  %245 = vst [vmem:[%s4238_s29 + $0x80] sm:$0xf] %v244_v32 }
  0x2c   : > { %247 = vst [vmem:[%s4238_s29 + $0x84] sm:$0xf] %v246_v33  ;;  %249 = vst [vmem:[%s4238_s29 + $0x88] sm:$0xf] %v248_v34  ;;  %v250_v35 = vld [vmem:[%s4231_s28 + $0x1a4] sm:$0xf] }
  0x2d   : > { %v252_v36 = vld [vmem:[%s4231_s28 + $0x1b0] sm:$0xf]  ;;  %v254_v37 = vld [vmem:[%s4231_s28 + $0x1bc] sm:$0xf]  ;;  %251 = vst [vmem:[%s4238_s29 + $0x8c] sm:$0xf] %v250_v35 }
  0x2e   : > { %253 = vst [vmem:[%s4238_s29 + $0x90] sm:$0xf] %v252_v36  ;;  %255 = vst [vmem:[%s4238_s29 + $0x94] sm:$0xf] %v254_v37  ;;  %v256_v38 = vld [vmem:[%s4231_s28 + $0x1c8] sm:$0xf] }
  0x2f   : > { %v258_v39 = vld [vmem:[%s4231_s28 + $0x1d4] sm:$0xf]  ;;  %v260_v40 = vld [vmem:[%s4231_s28 + $0x1e0] sm:$0xf]  ;;  %257 = vst [vmem:[%s4238_s29 + $0x98] sm:$0xf] %v256_v38 }
  0x30   : > { %259 = vst [vmem:[%s4238_s29 + $0x9c] sm:$0xf] %v258_v39  ;;  %261 = vst [vmem:[%s4238_s29 + $0xa0] sm:$0xf] %v260_v40  ;;  %v262_v41 = vld [vmem:[%s4231_s28 + $0x1ec] sm:$0xf] }
  0x31   : > { %v264_v42 = vld [vmem:[%s4231_s28 + $0x1f8] sm:$0xf]  ;;  %v266_v43 = vld [vmem:[%s4231_s28 + $0x204] sm:$0xf]  ;;  %263 = vst [vmem:[%s4238_s29 + $0xa4] sm:$0xf] %v262_v41 }
  0x32   : > { %265 = vst [vmem:[%s4238_s29 + $0xa8] sm:$0xf] %v264_v42  ;;  %267 = vst [vmem:[%s4238_s29 + $0xac] sm:$0xf] %v266_v43  ;;  %v268_v44 = vld [vmem:[%s4231_s28 + $0x210] sm:$0xf] }
  0x33   : > { %v270_v45 = vld [vmem:[%s4231_s28 + $0x21c] sm:$0xf]  ;;  %v272_v46 = vld [vmem:[%s4231_s28 + $0x228] sm:$0xf]  ;;  %269 = vst [vmem:[%s4238_s29 + $0xb0] sm:$0xf] %v268_v44 }
  0x34   : > { %271 = vst [vmem:[%s4238_s29 + $0xb4] sm:$0xf] %v270_v45  ;;  %273 = vst [vmem:[%s4238_s29 + $0xb8] sm:$0xf] %v272_v46  ;;  %v274_v47 = vld [vmem:[%s4231_s28 + $0x234] sm:$0xf] }
  0x35   : > { %v276_v48 = vld [vmem:[%s4231_s28 + $0x240] sm:$0xf]  ;;  %v278_v49 = vld [vmem:[%s4231_s28 + $0x24c] sm:$0xf]  ;;  %275 = vst [vmem:[%s4238_s29 + $0xbc] sm:$0xf] %v274_v47 }
  0x36   : > { %277 = vst [vmem:[%s4238_s29 + $0xc0] sm:$0xf] %v276_v48  ;;  %279 = vst [vmem:[%s4238_s29 + $0xc4] sm:$0xf] %v278_v49  ;;  %v280_v50 = vld [vmem:[%s4231_s28 + $0x258] sm:$0xf] }
  0x37   : > { %v282_v51 = vld [vmem:[%s4231_s28 + $0x264] sm:$0xf]  ;;  %v284_v52 = vld [vmem:[%s4231_s28 + $0x270] sm:$0xf]  ;;  %281 = vst [vmem:[%s4238_s29 + $0xc8] sm:$0xf] %v280_v50 }
  0x38   : > { %283 = vst [vmem:[%s4238_s29 + $0xcc] sm:$0xf] %v282_v51  ;;  %285 = vst [vmem:[%s4238_s29 + $0xd0] sm:$0xf] %v284_v52  ;;  %v286_v53 = vld [vmem:[%s4231_s28 + $0x27c] sm:$0xf] }
  0x39   : > { %v288_v54 = vld [vmem:[%s4231_s28 + $0x288] sm:$0xf]  ;;  %v290_v55 = vld [vmem:[%s4231_s28 + $0x294] sm:$0xf]  ;;  %287 = vst [vmem:[%s4238_s29 + $0xd4] sm:$0xf] %v286_v53 }
  0x3a   : > { %289 = vst [vmem:[%s4238_s29 + $0xd8] sm:$0xf] %v288_v54  ;;  %291 = vst [vmem:[%s4238_s29 + $0xdc] sm:$0xf] %v290_v55  ;;  %v292_v56 = vld [vmem:[%s4231_s28 + $0x2a0] sm:$0xf] }
  0x3b   : > { %v294_v57 = vld [vmem:[%s4231_s28 + $0x2ac] sm:$0xf]  ;;  %v296_v58 = vld [vmem:[%s4231_s28 + $0x2b8] sm:$0xf]  ;;  %293 = vst [vmem:[%s4238_s29 + $0xe0] sm:$0xf] %v292_v56 }
  0x3c   : > { %295 = vst [vmem:[%s4238_s29 + $0xe4] sm:$0xf] %v294_v57  ;;  %297 = vst [vmem:[%s4238_s29 + $0xe8] sm:$0xf] %v296_v58  ;;  %v298_v59 = vld [vmem:[%s4231_s28 + $0x2c4] sm:$0xf] }
  0x3d   : > { %v300_v60 = vld [vmem:[%s4231_s28 + $0x2d0] sm:$0xf]  ;;  %v302_v61 = vld [vmem:[%s4231_s28 + $0x2dc] sm:$0xf]  ;;  %299 = vst [vmem:[%s4238_s29 + $0xec] sm:$0xf] %v298_v59 }
  0x3e   : > { %301 = vst [vmem:[%s4238_s29 + $0xf0] sm:$0xf] %v300_v60  ;;  %303 = vst [vmem:[%s4238_s29 + $0xf4] sm:$0xf] %v302_v61  ;;  %v304_v62 = vld [vmem:[%s4231_s28 + $0x2e8] sm:$0xf] }
  0x3f   : > { %v306_v63 = vld [vmem:[%s4231_s28 + $0x2f4] sm:$0xf]  ;;  %v308_v0 = vld [vmem:[%s4231_s28 + $0x300] sm:$0xf]  ;;  %305 = vst [vmem:[%s4238_s29 + $0xf8] sm:$0xf] %v304_v62 }
  0x40   : > { %307 = vst [vmem:[%s4238_s29 + $0xfc] sm:$0xf] %v306_v63  ;;  %309 = vst [vmem:[%s4238_s29 + $0x100] sm:$0xf] %v308_v0  ;;  %v310_v1 = vld [vmem:[%s4231_s28 + $0x30c] sm:$0xf] }
  0x41   : > { %v312_v2 = vld [vmem:[%s4231_s28 + $0x318] sm:$0xf]  ;;  %v314_v3 = vld [vmem:[%s4231_s28 + $0x324] sm:$0xf]  ;;  %311 = vst [vmem:[%s4238_s29 + $0x104] sm:$0xf] %v310_v1 }
  0x42   : > { %313 = vst [vmem:[%s4238_s29 + $0x108] sm:$0xf] %v312_v2  ;;  %315 = vst [vmem:[%s4238_s29 + $0x10c] sm:$0xf] %v314_v3  ;;  %v316_v4 = vld [vmem:[%s4231_s28 + $0x330] sm:$0xf] }
  0x43   : > { %v318_v5 = vld [vmem:[%s4231_s28 + $0x33c] sm:$0xf]  ;;  %v320_v6 = vld [vmem:[%s4231_s28 + $0x348] sm:$0xf]  ;;  %317 = vst [vmem:[%s4238_s29 + $0x110] sm:$0xf] %v316_v4 }
  0x44   : > { %319 = vst [vmem:[%s4238_s29 + $0x114] sm:$0xf] %v318_v5  ;;  %321 = vst [vmem:[%s4238_s29 + $0x118] sm:$0xf] %v320_v6  ;;  %v322_v7 = vld [vmem:[%s4231_s28 + $0x354] sm:$0xf] }
  0x45   : > { %v324_v8 = vld [vmem:[%s4231_s28 + $0x360] sm:$0xf]  ;;  %v326_v9 = vld [vmem:[%s4231_s28 + $0x36c] sm:$0xf]  ;;  %323 = vst [vmem:[%s4238_s29 + $0x11c] sm:$0xf] %v322_v7 }
  0x46   : > { %325 = vst [vmem:[%s4238_s29 + $0x120] sm:$0xf] %v324_v8  ;;  %327 = vst [vmem:[%s4238_s29 + $0x124] sm:$0xf] %v326_v9  ;;  %v328_v10 = vld [vmem:[%s4231_s28 + $0x378] sm:$0xf] }
  0x47   : > { %v330_v11 = vld [vmem:[%s4231_s28 + $0x384] sm:$0xf]  ;;  %v332_v12 = vld [vmem:[%s4231_s28 + $0x390] sm:$0xf]  ;;  %329 = vst [vmem:[%s4238_s29 + $0x128] sm:$0xf] %v328_v10 }
  0x48   : > { %331 = vst [vmem:[%s4238_s29 + $0x12c] sm:$0xf] %v330_v11  ;;  %333 = vst [vmem:[%s4238_s29 + $0x130] sm:$0xf] %v332_v12  ;;  %v334_v13 = vld [vmem:[%s4231_s28 + $0x39c] sm:$0xf] }
  0x49   : > { %v336_v14 = vld [vmem:[%s4231_s28 + $0x3a8] sm:$0xf]  ;;  %v338_v15 = vld [vmem:[%s4231_s28 + $0x3b4] sm:$0xf]  ;;  %335 = vst [vmem:[%s4238_s29 + $0x134] sm:$0xf] %v334_v13 }
  0x4a   : > { %337 = vst [vmem:[%s4238_s29 + $0x138] sm:$0xf] %v336_v14  ;;  %339 = vst [vmem:[%s4238_s29 + $0x13c] sm:$0xf] %v338_v15  ;;  %v340_v16 = vld [vmem:[%s4231_s28 + $0x3c0] sm:$0xf] }
  0x4b   : > { %v342_v17 = vld [vmem:[%s4231_s28 + $0x3cc] sm:$0xf]  ;;  %v344_v18 = vld [vmem:[%s4231_s28 + $0x3d8] sm:$0xf]  ;;  %341 = vst [vmem:[%s4238_s29 + $0x140] sm:$0xf] %v340_v16 }
  0x4c   : > { %343 = vst [vmem:[%s4238_s29 + $0x144] sm:$0xf] %v342_v17  ;;  %345 = vst [vmem:[%s4238_s29 + $0x148] sm:$0xf] %v344_v18  ;;  %v346_v19 = vld [vmem:[%s4231_s28 + $0x3e4] sm:$0xf] }
  0x4d   : > { %v348_v20 = vld [vmem:[%s4231_s28 + $0x3f0] sm:$0xf]  ;;  %v350_v21 = vld [vmem:[%s4231_s28 + $0x3fc] sm:$0xf]  ;;  %347 = vst [vmem:[%s4238_s29 + $0x14c] sm:$0xf] %v346_v19 }
  0x4e   : > { %349 = vst [vmem:[%s4238_s29 + $0x150] sm:$0xf] %v348_v20  ;;  %351 = vst [vmem:[%s4238_s29 + $0x154] sm:$0xf] %v350_v21  ;;  %v352_v22 = vld [vmem:[%s4231_s28 + $0x408] sm:$0xf] }
  0x4f   : > { %v354_v23 = vld [vmem:[%s4231_s28 + $0x414] sm:$0xf]  ;;  %v356_v24 = vld [vmem:[%s4231_s28 + $0x420] sm:$0xf]  ;;  %353 = vst [vmem:[%s4238_s29 + $0x158] sm:$0xf] %v352_v22 }
  0x50   : > { %355 = vst [vmem:[%s4238_s29 + $0x15c] sm:$0xf] %v354_v23  ;;  %357 = vst [vmem:[%s4238_s29 + $0x160] sm:$0xf] %v356_v24  ;;  %v358_v25 = vld [vmem:[%s4231_s28 + $0x42c] sm:$0xf] }
  0x51   : > { %v360_v26 = vld [vmem:[%s4231_s28 + $0x438] sm:$0xf]  ;;  %v362_v27 = vld [vmem:[%s4231_s28 + $0x444] sm:$0xf]  ;;  %359 = vst [vmem:[%s4238_s29 + $0x164] sm:$0xf] %v358_v25 }
  0x52   : > { %361 = vst [vmem:[%s4238_s29 + $0x168] sm:$0xf] %v360_v26  ;;  %363 = vst [vmem:[%s4238_s29 + $0x16c] sm:$0xf] %v362_v27  ;;  %v364_v28 = vld [vmem:[%s4231_s28 + $0x450] sm:$0xf] }
  0x53   : > { %v366_v29 = vld [vmem:[%s4231_s28 + $0x45c] sm:$0xf]  ;;  %v368_v30 = vld [vmem:[%s4231_s28 + $0x468] sm:$0xf]  ;;  %365 = vst [vmem:[%s4238_s29 + $0x170] sm:$0xf] %v364_v28 }
  0x54   : > { %367 = vst [vmem:[%s4238_s29 + $0x174] sm:$0xf] %v366_v29  ;;  %369 = vst [vmem:[%s4238_s29 + $0x178] sm:$0xf] %v368_v30  ;;  %v370_v31 = vld [vmem:[%s4231_s28 + $0x474] sm:$0xf] }
  0x55   : > { %v372_v32 = vld [vmem:[%s4231_s28 + $0x480] sm:$0xf]  ;;  %v374_v33 = vld [vmem:[%s4231_s28 + $0x48c] sm:$0xf]  ;;  %371 = vst [vmem:[%s4238_s29 + $0x17c] sm:$0xf] %v370_v31 }
  0x56   : > { %373 = vst [vmem:[%s4238_s29 + $0x180] sm:$0xf] %v372_v32  ;;  %375 = vst [vmem:[%s4238_s29 + $0x184] sm:$0xf] %v374_v33  ;;  %v376_v34 = vld [vmem:[%s4231_s28 + $0x498] sm:$0xf] }
  0x57   : > { %v378_v35 = vld [vmem:[%s4231_s28 + $0x4a4] sm:$0xf]  ;;  %v380_v36 = vld [vmem:[%s4231_s28 + $0x4b0] sm:$0xf]  ;;  %377 = vst [vmem:[%s4238_s29 + $0x188] sm:$0xf] %v376_v34 }
  0x58   : > { %379 = vst [vmem:[%s4238_s29 + $0x18c] sm:$0xf] %v378_v35  ;;  %381 = vst [vmem:[%s4238_s29 + $0x190] sm:$0xf] %v380_v36  ;;  %v382_v37 = vld [vmem:[%s4231_s28 + $0x4bc] sm:$0xf] }
  0x59   : > { %v384_v38 = vld [vmem:[%s4231_s28 + $0x4c8] sm:$0xf]  ;;  %v386_v39 = vld [vmem:[%s4231_s28 + $0x4d4] sm:$0xf]  ;;  %383 = vst [vmem:[%s4238_s29 + $0x194] sm:$0xf] %v382_v37 }
  0x5a   : > { %385 = vst [vmem:[%s4238_s29 + $0x198] sm:$0xf] %v384_v38  ;;  %387 = vst [vmem:[%s4238_s29 + $0x19c] sm:$0xf] %v386_v39  ;;  %v388_v40 = vld [vmem:[%s4231_s28 + $0x4e0] sm:$0xf] }
  0x5b   : > { %v390_v41 = vld [vmem:[%s4231_s28 + $0x4ec] sm:$0xf]  ;;  %v392_v42 = vld [vmem:[%s4231_s28 + $0x4f8] sm:$0xf]  ;;  %389 = vst [vmem:[%s4238_s29 + $0x1a0] sm:$0xf] %v388_v40 }
  0x5c   : > { %391 = vst [vmem:[%s4238_s29 + $0x1a4] sm:$0xf] %v390_v41  ;;  %393 = vst [vmem:[%s4238_s29 + $0x1a8] sm:$0xf] %v392_v42  ;;  %v394_v43 = vld [vmem:[%s4231_s28 + $0x504] sm:$0xf] }
  0x5d   : > { %v396_v44 = vld [vmem:[%s4231_s28 + $0x510] sm:$0xf]  ;;  %v398_v45 = vld [vmem:[%s4231_s28 + $0x51c] sm:$0xf]  ;;  %395 = vst [vmem:[%s4238_s29 + $0x1ac] sm:$0xf] %v394_v43 }
  0x5e   : > { %397 = vst [vmem:[%s4238_s29 + $0x1b0] sm:$0xf] %v396_v44  ;;  %399 = vst [vmem:[%s4238_s29 + $0x1b4] sm:$0xf] %v398_v45  ;;  %v400_v46 = vld [vmem:[%s4231_s28 + $0x528] sm:$0xf] }
  0x5f   : > { %v402_v47 = vld [vmem:[%s4231_s28 + $0x534] sm:$0xf]  ;;  %v404_v48 = vld [vmem:[%s4231_s28 + $0x540] sm:$0xf]  ;;  %401 = vst [vmem:[%s4238_s29 + $0x1b8] sm:$0xf] %v400_v46 }
  0x60   : > { %403 = vst [vmem:[%s4238_s29 + $0x1bc] sm:$0xf] %v402_v47  ;;  %405 = vst [vmem:[%s4238_s29 + $0x1c0] sm:$0xf] %v404_v48  ;;  %v406_v49 = vld [vmem:[%s4231_s28 + $0x54c] sm:$0xf] }
  0x61   : > { %v408_v50 = vld [vmem:[%s4231_s28 + $0x558] sm:$0xf]  ;;  %v410_v51 = vld [vmem:[%s4231_s28 + $0x564] sm:$0xf]  ;;  %407 = vst [vmem:[%s4238_s29 + $0x1c4] sm:$0xf] %v406_v49 }
  0x62   : > { %409 = vst [vmem:[%s4238_s29 + $0x1c8] sm:$0xf] %v408_v50  ;;  %411 = vst [vmem:[%s4238_s29 + $0x1cc] sm:$0xf] %v410_v51  ;;  %v412_v52 = vld [vmem:[%s4231_s28 + $0x570] sm:$0xf] }
  0x63   : > { %v414_v53 = vld [vmem:[%s4231_s28 + $0x57c] sm:$0xf]  ;;  %v416_v54 = vld [vmem:[%s4231_s28 + $0x588] sm:$0xf]  ;;  %413 = vst [vmem:[%s4238_s29 + $0x1d0] sm:$0xf] %v412_v52 }
  0x64   : > { %415 = vst [vmem:[%s4238_s29 + $0x1d4] sm:$0xf] %v414_v53  ;;  %417 = vst [vmem:[%s4238_s29 + $0x1d8] sm:$0xf] %v416_v54  ;;  %v418_v55 = vld [vmem:[%s4231_s28 + $0x594] sm:$0xf] }
  0x65   : > { %v420_v56 = vld [vmem:[%s4231_s28 + $0x5a0] sm:$0xf]  ;;  %v422_v57 = vld [vmem:[%s4231_s28 + $0x5ac] sm:$0xf]  ;;  %419 = vst [vmem:[%s4238_s29 + $0x1dc] sm:$0xf] %v418_v55 }
  0x66   : > { %421 = vst [vmem:[%s4238_s29 + $0x1e0] sm:$0xf] %v420_v56  ;;  %423 = vst [vmem:[%s4238_s29 + $0x1e4] sm:$0xf] %v422_v57  ;;  %v424_v58 = vld [vmem:[%s4231_s28 + $0x5b8] sm:$0xf] }
  0x67   : > { %v426_v59 = vld [vmem:[%s4231_s28 + $0x5c4] sm:$0xf]  ;;  %v428_v60 = vld [vmem:[%s4231_s28 + $0x5d0] sm:$0xf]  ;;  %425 = vst [vmem:[%s4238_s29 + $0x1e8] sm:$0xf] %v424_v58 }
  0x68   : > { %427 = vst [vmem:[%s4238_s29 + $0x1ec] sm:$0xf] %v426_v59  ;;  %429 = vst [vmem:[%s4238_s29 + $0x1f0] sm:$0xf] %v428_v60  ;;  %v430_v61 = vld [vmem:[%s4231_s28 + $0x5dc] sm:$0xf] }
  0x69   : > { %v432_v62 = vld [vmem:[%s4231_s28 + $0x5e8] sm:$0xf]  ;;  %v434_v63 = vld [vmem:[%s4231_s28 + $0x5f4] sm:$0xf]  ;;  %431 = vst [vmem:[%s4238_s29 + $0x1f4] sm:$0xf] %v430_v61 }
  0x6a   : > { %433 = vst [vmem:[%s4238_s29 + $0x1f8] sm:$0xf] %v432_v62  ;;  %435 = vst [vmem:[%s4238_s29 + $0x1fc] sm:$0xf] %v434_v63  ;;  %v436_v0 = vld [vmem:[%s4231_s28 + $0x600] sm:$0xf] }
  0x6b   : > { %v438_v1 = vld [vmem:[%s4231_s28 + $0x60c] sm:$0xf]  ;;  %v440_v2 = vld [vmem:[%s4231_s28 + $0x618] sm:$0xf]  ;;  %437 = vst [vmem:[%s4238_s29 + $0x200] sm:$0xf] %v436_v0 }
  0x6c   : > { %439 = vst [vmem:[%s4238_s29 + $0x204] sm:$0xf] %v438_v1  ;;  %441 = vst [vmem:[%s4238_s29 + $0x208] sm:$0xf] %v440_v2  ;;  %v442_v3 = vld [vmem:[%s4231_s28 + $0x624] sm:$0xf] }
  0x6d   : > { %v444_v4 = vld [vmem:[%s4231_s28 + $0x630] sm:$0xf]  ;;  %v446_v5 = vld [vmem:[%s4231_s28 + $0x63c] sm:$0xf]  ;;  %443 = vst [vmem:[%s4238_s29 + $0x20c] sm:$0xf] %v442_v3 }
  0x6e   : > { %445 = vst [vmem:[%s4238_s29 + $0x210] sm:$0xf] %v444_v4  ;;  %447 = vst [vmem:[%s4238_s29 + $0x214] sm:$0xf] %v446_v5  ;;  %v448_v6 = vld [vmem:[%s4231_s28 + $0x648] sm:$0xf] }
  0x6f   : > { %v450_v7 = vld [vmem:[%s4231_s28 + $0x654] sm:$0xf]  ;;  %v452_v8 = vld [vmem:[%s4231_s28 + $0x660] sm:$0xf]  ;;  %449 = vst [vmem:[%s4238_s29 + $0x218] sm:$0xf] %v448_v6 }
  0x70   : > { %451 = vst [vmem:[%s4238_s29 + $0x21c] sm:$0xf] %v450_v7  ;;  %453 = vst [vmem:[%s4238_s29 + $0x220] sm:$0xf] %v452_v8  ;;  %v454_v9 = vld [vmem:[%s4231_s28 + $0x66c] sm:$0xf] }
  0x71   : > { %v456_v10 = vld [vmem:[%s4231_s28 + $0x678] sm:$0xf]  ;;  %v458_v11 = vld [vmem:[%s4231_s28 + $0x684] sm:$0xf]  ;;  %455 = vst [vmem:[%s4238_s29 + $0x224] sm:$0xf] %v454_v9 }
  0x72   : > { %457 = vst [vmem:[%s4238_s29 + $0x228] sm:$0xf] %v456_v10  ;;  %459 = vst [vmem:[%s4238_s29 + $0x22c] sm:$0xf] %v458_v11  ;;  %v460_v12 = vld [vmem:[%s4231_s28 + $0x690] sm:$0xf] }
  0x73   : > { %v462_v13 = vld [vmem:[%s4231_s28 + $0x69c] sm:$0xf]  ;;  %v464_v14 = vld [vmem:[%s4231_s28 + $0x6a8] sm:$0xf]  ;;  %461 = vst [vmem:[%s4238_s29 + $0x230] sm:$0xf] %v460_v12 }
  0x74   : > { %463 = vst [vmem:[%s4238_s29 + $0x234] sm:$0xf] %v462_v13  ;;  %465 = vst [vmem:[%s4238_s29 + $0x238] sm:$0xf] %v464_v14  ;;  %v466_v15 = vld [vmem:[%s4231_s28 + $0x6b4] sm:$0xf] }
  0x75   : > { %v468_v16 = vld [vmem:[%s4231_s28 + $0x6c0] sm:$0xf]  ;;  %v470_v17 = vld [vmem:[%s4231_s28 + $0x6cc] sm:$0xf]  ;;  %467 = vst [vmem:[%s4238_s29 + $0x23c] sm:$0xf] %v466_v15 }
  0x76   : > { %469 = vst [vmem:[%s4238_s29 + $0x240] sm:$0xf] %v468_v16  ;;  %471 = vst [vmem:[%s4238_s29 + $0x244] sm:$0xf] %v470_v17  ;;  %v472_v18 = vld [vmem:[%s4231_s28 + $0x6d8] sm:$0xf] }
  0x77   : > { %v474_v19 = vld [vmem:[%s4231_s28 + $0x6e4] sm:$0xf]  ;;  %v476_v20 = vld [vmem:[%s4231_s28 + $0x6f0] sm:$0xf]  ;;  %473 = vst [vmem:[%s4238_s29 + $0x248] sm:$0xf] %v472_v18 }
  0x78   : > { %475 = vst [vmem:[%s4238_s29 + $0x24c] sm:$0xf] %v474_v19  ;;  %477 = vst [vmem:[%s4238_s29 + $0x250] sm:$0xf] %v476_v20  ;;  %v478_v21 = vld [vmem:[%s4231_s28 + $0x6fc] sm:$0xf] }
  0x79   : > { %v480_v22 = vld [vmem:[%s4231_s28 + $0x708] sm:$0xf]  ;;  %v482_v23 = vld [vmem:[%s4231_s28 + $0x714] sm:$0xf]  ;;  %479 = vst [vmem:[%s4238_s29 + $0x254] sm:$0xf] %v478_v21 }
  0x7a   : > { %481 = vst [vmem:[%s4238_s29 + $0x258] sm:$0xf] %v480_v22  ;;  %483 = vst [vmem:[%s4238_s29 + $0x25c] sm:$0xf] %v482_v23  ;;  %v484_v24 = vld [vmem:[%s4231_s28 + $0x720] sm:$0xf] }
  0x7b   : > { %v486_v25 = vld [vmem:[%s4231_s28 + $0x72c] sm:$0xf]  ;;  %v488_v26 = vld [vmem:[%s4231_s28 + $0x738] sm:$0xf]  ;;  %485 = vst [vmem:[%s4238_s29 + $0x260] sm:$0xf] %v484_v24 }
  0x7c   : > { %487 = vst [vmem:[%s4238_s29 + $0x264] sm:$0xf] %v486_v25  ;;  %489 = vst [vmem:[%s4238_s29 + $0x268] sm:$0xf] %v488_v26  ;;  %v490_v27 = vld [vmem:[%s4231_s28 + $0x744] sm:$0xf] }
  0x7d   : > { %v492_v28 = vld [vmem:[%s4231_s28 + $0x750] sm:$0xf]  ;;  %v494_v29 = vld [vmem:[%s4231_s28 + $0x75c] sm:$0xf]  ;;  %491 = vst [vmem:[%s4238_s29 + $0x26c] sm:$0xf] %v490_v27 }
  0x7e   : > { %493 = vst [vmem:[%s4238_s29 + $0x270] sm:$0xf] %v492_v28  ;;  %495 = vst [vmem:[%s4238_s29 + $0x274] sm:$0xf] %v494_v29  ;;  %v496_v30 = vld [vmem:[%s4231_s28 + $0x768] sm:$0xf] }
  0x7f   : > { %v498_v31 = vld [vmem:[%s4231_s28 + $0x774] sm:$0xf]  ;;  %v500_v32 = vld [vmem:[%s4231_s28 + $0x780] sm:$0xf]  ;;  %497 = vst [vmem:[%s4238_s29 + $0x278] sm:$0xf] %v496_v30 }
  0x80   : > { %499 = vst [vmem:[%s4238_s29 + $0x27c] sm:$0xf] %v498_v31  ;;  %501 = vst [vmem:[%s4238_s29 + $0x280] sm:$0xf] %v500_v32  ;;  %v502_v33 = vld [vmem:[%s4231_s28 + $0x78c] sm:$0xf] }
  0x81   : > { %v504_v34 = vld [vmem:[%s4231_s28 + $0x798] sm:$0xf]  ;;  %v506_v35 = vld [vmem:[%s4231_s28 + $0x7a4] sm:$0xf]  ;;  %503 = vst [vmem:[%s4238_s29 + $0x284] sm:$0xf] %v502_v33 }
  0x82   : > { %505 = vst [vmem:[%s4238_s29 + $0x288] sm:$0xf] %v504_v34  ;;  %507 = vst [vmem:[%s4238_s29 + $0x28c] sm:$0xf] %v506_v35  ;;  %v508_v36 = vld [vmem:[%s4231_s28 + $0x7b0] sm:$0xf] }
  0x83   : > { %v510_v37 = vld [vmem:[%s4231_s28 + $0x7bc] sm:$0xf]  ;;  %v512_v38 = vld [vmem:[%s4231_s28 + $0x7c8] sm:$0xf]  ;;  %509 = vst [vmem:[%s4238_s29 + $0x290] sm:$0xf] %v508_v36 }
  0x84   : > { %511 = vst [vmem:[%s4238_s29 + $0x294] sm:$0xf] %v510_v37  ;;  %513 = vst [vmem:[%s4238_s29 + $0x298] sm:$0xf] %v512_v38  ;;  %v514_v39 = vld [vmem:[%s4231_s28 + $0x7d4] sm:$0xf] }
  0x85   : > { %v516_v40 = vld [vmem:[%s4231_s28 + $0x7e0] sm:$0xf]  ;;  %v518_v41 = vld [vmem:[%s4231_s28 + $0x7ec] sm:$0xf]  ;;  %515 = vst [vmem:[%s4238_s29 + $0x29c] sm:$0xf] %v514_v39 }
  0x86   : > { %517 = vst [vmem:[%s4238_s29 + $0x2a0] sm:$0xf] %v516_v40  ;;  %519 = vst [vmem:[%s4238_s29 + $0x2a4] sm:$0xf] %v518_v41  ;;  %v520_v42 = vld [vmem:[%s4231_s28 + $0x7f8] sm:$0xf] }
  0x87   : > { %v522_v43 = vld [vmem:[%s4231_s28 + $0x804] sm:$0xf]  ;;  %v524_v44 = vld [vmem:[%s4231_s28 + $0x810] sm:$0xf]  ;;  %521 = vst [vmem:[%s4238_s29 + $0x2a8] sm:$0xf] %v520_v42 }
  0x88   : > { %523 = vst [vmem:[%s4238_s29 + $0x2ac] sm:$0xf] %v522_v43  ;;  %525 = vst [vmem:[%s4238_s29 + $0x2b0] sm:$0xf] %v524_v44  ;;  %v526_v45 = vld [vmem:[%s4231_s28 + $0x81c] sm:$0xf] }
  0x89   : > { %v528_v46 = vld [vmem:[%s4231_s28 + $0x828] sm:$0xf]  ;;  %v530_v47 = vld [vmem:[%s4231_s28 + $0x834] sm:$0xf]  ;;  %527 = vst [vmem:[%s4238_s29 + $0x2b4] sm:$0xf] %v526_v45 }
  0x8a   : > { %529 = vst [vmem:[%s4238_s29 + $0x2b8] sm:$0xf] %v528_v46  ;;  %531 = vst [vmem:[%s4238_s29 + $0x2bc] sm:$0xf] %v530_v47  ;;  %v532_v48 = vld [vmem:[%s4231_s28 + $0x840] sm:$0xf] }
  0x8b   : > { %v534_v49 = vld [vmem:[%s4231_s28 + $0x84c] sm:$0xf]  ;;  %v536_v50 = vld [vmem:[%s4231_s28 + $0x858] sm:$0xf]  ;;  %533 = vst [vmem:[%s4238_s29 + $0x2c0] sm:$0xf] %v532_v48 }
  0x8c   : > { %535 = vst [vmem:[%s4238_s29 + $0x2c4] sm:$0xf] %v534_v49  ;;  %537 = vst [vmem:[%s4238_s29 + $0x2c8] sm:$0xf] %v536_v50  ;;  %v538_v51 = vld [vmem:[%s4231_s28 + $0x864] sm:$0xf] }
  0x8d   : > { %v540_v52 = vld [vmem:[%s4231_s28 + $0x870] sm:$0xf]  ;;  %v542_v53 = vld [vmem:[%s4231_s28 + $0x87c] sm:$0xf]  ;;  %539 = vst [vmem:[%s4238_s29 + $0x2cc] sm:$0xf] %v538_v51 }
  0x8e   : > { %541 = vst [vmem:[%s4238_s29 + $0x2d0] sm:$0xf] %v540_v52  ;;  %543 = vst [vmem:[%s4238_s29 + $0x2d4] sm:$0xf] %v542_v53  ;;  %v544_v54 = vld [vmem:[%s4231_s28 + $0x888] sm:$0xf] }
  0x8f   : > { %v546_v55 = vld [vmem:[%s4231_s28 + $0x894] sm:$0xf]  ;;  %v548_v56 = vld [vmem:[%s4231_s28 + $0x8a0] sm:$0xf]  ;;  %545 = vst [vmem:[%s4238_s29 + $0x2d8] sm:$0xf] %v544_v54 }
  0x90   : > { %547 = vst [vmem:[%s4238_s29 + $0x2dc] sm:$0xf] %v546_v55  ;;  %549 = vst [vmem:[%s4238_s29 + $0x2e0] sm:$0xf] %v548_v56  ;;  %v550_v57 = vld [vmem:[%s4231_s28 + $0x8ac] sm:$0xf] }
  0x91   : > { %v552_v58 = vld [vmem:[%s4231_s28 + $0x8b8] sm:$0xf]  ;;  %v554_v59 = vld [vmem:[%s4231_s28 + $0x8c4] sm:$0xf]  ;;  %551 = vst [vmem:[%s4238_s29 + $0x2e4] sm:$0xf] %v550_v57 }
  0x92   : > { %553 = vst [vmem:[%s4238_s29 + $0x2e8] sm:$0xf] %v552_v58  ;;  %555 = vst [vmem:[%s4238_s29 + $0x2ec] sm:$0xf] %v554_v59  ;;  %v556_v60 = vld [vmem:[%s4231_s28 + $0x8d0] sm:$0xf] }
  0x93   : > { %v558_v61 = vld [vmem:[%s4231_s28 + $0x8dc] sm:$0xf]  ;;  %v560_v62 = vld [vmem:[%s4231_s28 + $0x8e8] sm:$0xf]  ;;  %557 = vst [vmem:[%s4238_s29 + $0x2f0] sm:$0xf] %v556_v60 }
  0x94   : > { %559 = vst [vmem:[%s4238_s29 + $0x2f4] sm:$0xf] %v558_v61  ;;  %561 = vst [vmem:[%s4238_s29 + $0x2f8] sm:$0xf] %v560_v62  ;;  %v562_v63 = vld [vmem:[%s4231_s28 + $0x8f4] sm:$0xf] }
  0x95   : > { %v564_v0 = vld [vmem:[%s4231_s28 + $0x900] sm:$0xf]  ;;  %v566_v1 = vld [vmem:[%s4231_s28 + $0x90c] sm:$0xf]  ;;  %563 = vst [vmem:[%s4238_s29 + $0x2fc] sm:$0xf] %v562_v63 }
  0x96   : > { %565 = vst [vmem:[%s4238_s29 + $0x300] sm:$0xf] %v564_v0  ;;  %567 = vst [vmem:[%s4238_s29 + $0x304] sm:$0xf] %v566_v1  ;;  %v568_v2 = vld [vmem:[%s4231_s28 + $0x918] sm:$0xf] }
  0x97   : > { %v570_v3 = vld [vmem:[%s4231_s28 + $0x924] sm:$0xf]  ;;  %v572_v4 = vld [vmem:[%s4231_s28 + $0x930] sm:$0xf]  ;;  %569 = vst [vmem:[%s4238_s29 + $0x308] sm:$0xf] %v568_v2 }
  0x98   : > { %571 = vst [vmem:[%s4238_s29 + $0x30c] sm:$0xf] %v570_v3  ;;  %573 = vst [vmem:[%s4238_s29 + $0x310] sm:$0xf] %v572_v4  ;;  %v574_v5 = vld [vmem:[%s4231_s28 + $0x93c] sm:$0xf] }
  0x99   : > { %v576_v6 = vld [vmem:[%s4231_s28 + $0x948] sm:$0xf]  ;;  %v578_v7 = vld [vmem:[%s4231_s28 + $0x954] sm:$0xf]  ;;  %575 = vst [vmem:[%s4238_s29 + $0x314] sm:$0xf] %v574_v5 }
  0x9a   : > { %577 = vst [vmem:[%s4238_s29 + $0x318] sm:$0xf] %v576_v6  ;;  %579 = vst [vmem:[%s4238_s29 + $0x31c] sm:$0xf] %v578_v7  ;;  %v580_v8 = vld [vmem:[%s4231_s28 + $0x960] sm:$0xf] }
  0x9b   : > { %v582_v9 = vld [vmem:[%s4231_s28 + $0x96c] sm:$0xf]  ;;  %v584_v10 = vld [vmem:[%s4231_s28 + $0x978] sm:$0xf]  ;;  %581 = vst [vmem:[%s4238_s29 + $0x320] sm:$0xf] %v580_v8 }
  0x9c   : > { %583 = vst [vmem:[%s4238_s29 + $0x324] sm:$0xf] %v582_v9  ;;  %585 = vst [vmem:[%s4238_s29 + $0x328] sm:$0xf] %v584_v10  ;;  %v586_v11 = vld [vmem:[%s4231_s28 + $0x984] sm:$0xf] }
  0x9d   : > { %v588_v12 = vld [vmem:[%s4231_s28 + $0x990] sm:$0xf]  ;;  %v590_v13 = vld [vmem:[%s4231_s28 + $0x99c] sm:$0xf]  ;;  %587 = vst [vmem:[%s4238_s29 + $0x32c] sm:$0xf] %v586_v11 }
  0x9e   : > { %589 = vst [vmem:[%s4238_s29 + $0x330] sm:$0xf] %v588_v12  ;;  %591 = vst [vmem:[%s4238_s29 + $0x334] sm:$0xf] %v590_v13  ;;  %v592_v14 = vld [vmem:[%s4231_s28 + $0x9a8] sm:$0xf] }
  0x9f   : > { %v594_v15 = vld [vmem:[%s4231_s28 + $0x9b4] sm:$0xf]  ;;  %v596_v16 = vld [vmem:[%s4231_s28 + $0x9c0] sm:$0xf]  ;;  %593 = vst [vmem:[%s4238_s29 + $0x338] sm:$0xf] %v592_v14 }
  0xa0   : > { %595 = vst [vmem:[%s4238_s29 + $0x33c] sm:$0xf] %v594_v15  ;;  %597 = vst [vmem:[%s4238_s29 + $0x340] sm:$0xf] %v596_v16  ;;  %v598_v17 = vld [vmem:[%s4231_s28 + $0x9cc] sm:$0xf] }
  0xa1   : > { %v600_v18 = vld [vmem:[%s4231_s28 + $0x9d8] sm:$0xf]  ;;  %v602_v19 = vld [vmem:[%s4231_s28 + $0x9e4] sm:$0xf]  ;;  %599 = vst [vmem:[%s4238_s29 + $0x344] sm:$0xf] %v598_v17 }
  0xa2   : > { %601 = vst [vmem:[%s4238_s29 + $0x348] sm:$0xf] %v600_v18  ;;  %603 = vst [vmem:[%s4238_s29 + $0x34c] sm:$0xf] %v602_v19  ;;  %v604_v20 = vld [vmem:[%s4231_s28 + $0x9f0] sm:$0xf] }
  0xa3   : > { %v606_v21 = vld [vmem:[%s4231_s28 + $0x9fc] sm:$0xf]  ;;  %v608_v22 = vld [vmem:[%s4231_s28 + $0xa08] sm:$0xf]  ;;  %605 = vst [vmem:[%s4238_s29 + $0x350] sm:$0xf] %v604_v20 }
  0xa4   : > { %607 = vst [vmem:[%s4238_s29 + $0x354] sm:$0xf] %v606_v21  ;;  %609 = vst [vmem:[%s4238_s29 + $0x358] sm:$0xf] %v608_v22  ;;  %v610_v23 = vld [vmem:[%s4231_s28 + $0xa14] sm:$0xf] }
  0xa5   : > { %v612_v24 = vld [vmem:[%s4231_s28 + $0xa20] sm:$0xf]  ;;  %v614_v25 = vld [vmem:[%s4231_s28 + $0xa2c] sm:$0xf]  ;;  %611 = vst [vmem:[%s4238_s29 + $0x35c] sm:$0xf] %v610_v23 }
  0xa6   : > { %613 = vst [vmem:[%s4238_s29 + $0x360] sm:$0xf] %v612_v24  ;;  %615 = vst [vmem:[%s4238_s29 + $0x364] sm:$0xf] %v614_v25  ;;  %v616_v26 = vld [vmem:[%s4231_s28 + $0xa38] sm:$0xf] }
  0xa7   : > { %v618_v27 = vld [vmem:[%s4231_s28 + $0xa44] sm:$0xf]  ;;  %v620_v28 = vld [vmem:[%s4231_s28 + $0xa50] sm:$0xf]  ;;  %617 = vst [vmem:[%s4238_s29 + $0x368] sm:$0xf] %v616_v26 }
  0xa8   : > { %619 = vst [vmem:[%s4238_s29 + $0x36c] sm:$0xf] %v618_v27  ;;  %621 = vst [vmem:[%s4238_s29 + $0x370] sm:$0xf] %v620_v28  ;;  %v622_v29 = vld [vmem:[%s4231_s28 + $0xa5c] sm:$0xf] }
  0xa9   : > { %v624_v30 = vld [vmem:[%s4231_s28 + $0xa68] sm:$0xf]  ;;  %v626_v31 = vld [vmem:[%s4231_s28 + $0xa74] sm:$0xf]  ;;  %623 = vst [vmem:[%s4238_s29 + $0x374] sm:$0xf] %v622_v29 }
  0xaa   : > { %625 = vst [vmem:[%s4238_s29 + $0x378] sm:$0xf] %v624_v30  ;;  %627 = vst [vmem:[%s4238_s29 + $0x37c] sm:$0xf] %v626_v31  ;;  %v628_v32 = vld [vmem:[%s4231_s28 + $0xa80] sm:$0xf] }
  0xab   : > { %v630_v33 = vld [vmem:[%s4231_s28 + $0xa8c] sm:$0xf]  ;;  %v632_v34 = vld [vmem:[%s4231_s28 + $0xa98] sm:$0xf]  ;;  %629 = vst [vmem:[%s4238_s29 + $0x380] sm:$0xf] %v628_v32 }
  0xac   : > { %631 = vst [vmem:[%s4238_s29 + $0x384] sm:$0xf] %v630_v33  ;;  %633 = vst [vmem:[%s4238_s29 + $0x388] sm:$0xf] %v632_v34  ;;  %v634_v35 = vld [vmem:[%s4231_s28 + $0xaa4] sm:$0xf] }
  0xad   : > { %v636_v36 = vld [vmem:[%s4231_s28 + $0xab0] sm:$0xf]  ;;  %v638_v37 = vld [vmem:[%s4231_s28 + $0xabc] sm:$0xf]  ;;  %635 = vst [vmem:[%s4238_s29 + $0x38c] sm:$0xf] %v634_v35 }
  0xae   : > { %637 = vst [vmem:[%s4238_s29 + $0x390] sm:$0xf] %v636_v36  ;;  %639 = vst [vmem:[%s4238_s29 + $0x394] sm:$0xf] %v638_v37  ;;  %v640_v38 = vld [vmem:[%s4231_s28 + $0xac8] sm:$0xf] }
  0xaf   : > { %v642_v39 = vld [vmem:[%s4231_s28 + $0xad4] sm:$0xf]  ;;  %v644_v40 = vld [vmem:[%s4231_s28 + $0xae0] sm:$0xf]  ;;  %641 = vst [vmem:[%s4238_s29 + $0x398] sm:$0xf] %v640_v38 }
  0xb0   : > { %643 = vst [vmem:[%s4238_s29 + $0x39c] sm:$0xf] %v642_v39  ;;  %645 = vst [vmem:[%s4238_s29 + $0x3a0] sm:$0xf] %v644_v40  ;;  %v646_v41 = vld [vmem:[%s4231_s28 + $0xaec] sm:$0xf] }
  0xb1   : > { %v648_v42 = vld [vmem:[%s4231_s28 + $0xaf8] sm:$0xf]  ;;  %v650_v43 = vld [vmem:[%s4231_s28 + $0xb04] sm:$0xf]  ;;  %647 = vst [vmem:[%s4238_s29 + $0x3a4] sm:$0xf] %v646_v41 }
  0xb2   : > { %649 = vst [vmem:[%s4238_s29 + $0x3a8] sm:$0xf] %v648_v42  ;;  %651 = vst [vmem:[%s4238_s29 + $0x3ac] sm:$0xf] %v650_v43  ;;  %v652_v44 = vld [vmem:[%s4231_s28 + $0xb10] sm:$0xf] }
  0xb3   : > { %v654_v45 = vld [vmem:[%s4231_s28 + $0xb1c] sm:$0xf]  ;;  %v656_v46 = vld [vmem:[%s4231_s28 + $0xb28] sm:$0xf]  ;;  %653 = vst [vmem:[%s4238_s29 + $0x3b0] sm:$0xf] %v652_v44 }
  0xb4   : > { %655 = vst [vmem:[%s4238_s29 + $0x3b4] sm:$0xf] %v654_v45  ;;  %657 = vst [vmem:[%s4238_s29 + $0x3b8] sm:$0xf] %v656_v46  ;;  %v658_v47 = vld [vmem:[%s4231_s28 + $0xb34] sm:$0xf] }
  0xb5   : > { %v660_v48 = vld [vmem:[%s4231_s28 + $0xb40] sm:$0xf]  ;;  %v662_v49 = vld [vmem:[%s4231_s28 + $0xb4c] sm:$0xf]  ;;  %659 = vst [vmem:[%s4238_s29 + $0x3bc] sm:$0xf] %v658_v47 }
  0xb6   : > { %661 = vst [vmem:[%s4238_s29 + $0x3c0] sm:$0xf] %v660_v48  ;;  %663 = vst [vmem:[%s4238_s29 + $0x3c4] sm:$0xf] %v662_v49  ;;  %v664_v50 = vld [vmem:[%s4231_s28 + $0xb58] sm:$0xf] }
  0xb7   : > { %v666_v51 = vld [vmem:[%s4231_s28 + $0xb64] sm:$0xf]  ;;  %v668_v52 = vld [vmem:[%s4231_s28 + $0xb70] sm:$0xf]  ;;  %665 = vst [vmem:[%s4238_s29 + $0x3c8] sm:$0xf] %v664_v50 }
  0xb8   : > { %667 = vst [vmem:[%s4238_s29 + $0x3cc] sm:$0xf] %v666_v51  ;;  %669 = vst [vmem:[%s4238_s29 + $0x3d0] sm:$0xf] %v668_v52  ;;  %v670_v53 = vld [vmem:[%s4231_s28 + $0xb7c] sm:$0xf] }
  0xb9   : > { %v672_v54 = vld [vmem:[%s4231_s28 + $0xb88] sm:$0xf]  ;;  %v674_v55 = vld [vmem:[%s4231_s28 + $0xb94] sm:$0xf]  ;;  %671 = vst [vmem:[%s4238_s29 + $0x3d4] sm:$0xf] %v670_v53 }
  0xba   : > { %673 = vst [vmem:[%s4238_s29 + $0x3d8] sm:$0xf] %v672_v54  ;;  %675 = vst [vmem:[%s4238_s29 + $0x3dc] sm:$0xf] %v674_v55  ;;  %v676_v56 = vld [vmem:[%s4231_s28 + $0xba0] sm:$0xf] }
  0xbb   : > { %v678_v57 = vld [vmem:[%s4231_s28 + $0xbac] sm:$0xf]  ;;  %v680_v58 = vld [vmem:[%s4231_s28 + $0xbb8] sm:$0xf]  ;;  %677 = vst [vmem:[%s4238_s29 + $0x3e0] sm:$0xf] %v676_v56 }
  0xbc   : > { %679 = vst [vmem:[%s4238_s29 + $0x3e4] sm:$0xf] %v678_v57  ;;  %681 = vst [vmem:[%s4238_s29 + $0x3e8] sm:$0xf] %v680_v58  ;;  %v682_v59 = vld [vmem:[%s4231_s28 + $0xbc4] sm:$0xf] }
  0xbd   : > { %v684_v60 = vld [vmem:[%s4231_s28 + $0xbd0] sm:$0xf]  ;;  %v686_v61 = vld [vmem:[%s4231_s28 + $0xbdc] sm:$0xf]  ;;  %683 = vst [vmem:[%s4238_s29 + $0x3ec] sm:$0xf] %v682_v59 }
  0xbe   : > { %685 = vst [vmem:[%s4238_s29 + $0x3f0] sm:$0xf] %v684_v60  ;;  %687 = vst [vmem:[%s4238_s29 + $0x3f4] sm:$0xf] %v686_v61  ;;  %v688_v62 = vld [vmem:[%s4231_s28 + $0xbe8] sm:$0xf] }
  0xbf   : > { %v690_v63 = vld [vmem:[%s4231_s28 + $0xbf4] sm:$0xf]  ;;  %v692_v0 = vld [vmem:[%s4231_s28 + $0xc00] sm:$0xf]  ;;  %689 = vst [vmem:[%s4238_s29 + $0x3f8] sm:$0xf] %v688_v62 }
  0xc0   : > { %691 = vst [vmem:[%s4238_s29 + $0x3fc] sm:$0xf] %v690_v63  ;;  %693 = vst [vmem:[%s4238_s29 + $0x400] sm:$0xf] %v692_v0  ;;  %v694_v1 = vld [vmem:[%s4231_s28 + $0xc0c] sm:$0xf] }
  0xc1   : > { %v696_v2 = vld [vmem:[%s4231_s28 + $0xc18] sm:$0xf]  ;;  %v698_v3 = vld [vmem:[%s4231_s28 + $0xc24] sm:$0xf]  ;;  %695 = vst [vmem:[%s4238_s29 + $0x404] sm:$0xf] %v694_v1 }
  0xc2   : > { %697 = vst [vmem:[%s4238_s29 + $0x408] sm:$0xf] %v696_v2  ;;  %699 = vst [vmem:[%s4238_s29 + $0x40c] sm:$0xf] %v698_v3  ;;  %v700_v4 = vld [vmem:[%s4231_s28 + $0xc30] sm:$0xf] }
  0xc3   : > { %v702_v5 = vld [vmem:[%s4231_s28 + $0xc3c] sm:$0xf]  ;;  %v704_v6 = vld [vmem:[%s4231_s28 + $0xc48] sm:$0xf]  ;;  %701 = vst [vmem:[%s4238_s29 + $0x410] sm:$0xf] %v700_v4 }
  0xc4   : > { %703 = vst [vmem:[%s4238_s29 + $0x414] sm:$0xf] %v702_v5  ;;  %705 = vst [vmem:[%s4238_s29 + $0x418] sm:$0xf] %v704_v6  ;;  %v706_v7 = vld [vmem:[%s4231_s28 + $0xc54] sm:$0xf] }
  0xc5   : > { %v708_v8 = vld [vmem:[%s4231_s28 + $0xc60] sm:$0xf]  ;;  %v710_v9 = vld [vmem:[%s4231_s28 + $0xc6c] sm:$0xf]  ;;  %707 = vst [vmem:[%s4238_s29 + $0x41c] sm:$0xf] %v706_v7 }
  0xc6   : > { %709 = vst [vmem:[%s4238_s29 + $0x420] sm:$0xf] %v708_v8  ;;  %711 = vst [vmem:[%s4238_s29 + $0x424] sm:$0xf] %v710_v9  ;;  %v712_v10 = vld [vmem:[%s4231_s28 + $0xc78] sm:$0xf] }
  0xc7   : > { %v714_v11 = vld [vmem:[%s4231_s28 + $0xc84] sm:$0xf]  ;;  %v716_v12 = vld [vmem:[%s4231_s28 + $0xc90] sm:$0xf]  ;;  %713 = vst [vmem:[%s4238_s29 + $0x428] sm:$0xf] %v712_v10 }
  0xc8   : > { %715 = vst [vmem:[%s4238_s29 + $0x42c] sm:$0xf] %v714_v11  ;;  %717 = vst [vmem:[%s4238_s29 + $0x430] sm:$0xf] %v716_v12  ;;  %v718_v13 = vld [vmem:[%s4231_s28 + $0xc9c] sm:$0xf] }
  0xc9   : > { %v720_v14 = vld [vmem:[%s4231_s28 + $0xca8] sm:$0xf]  ;;  %v722_v15 = vld [vmem:[%s4231_s28 + $0xcb4] sm:$0xf]  ;;  %719 = vst [vmem:[%s4238_s29 + $0x434] sm:$0xf] %v718_v13 }
  0xca   : > { %721 = vst [vmem:[%s4238_s29 + $0x438] sm:$0xf] %v720_v14  ;;  %723 = vst [vmem:[%s4238_s29 + $0x43c] sm:$0xf] %v722_v15  ;;  %v724_v16 = vld [vmem:[%s4231_s28 + $0xcc0] sm:$0xf] }
  0xcb   : > { %v726_v17 = vld [vmem:[%s4231_s28 + $0xccc] sm:$0xf]  ;;  %v728_v18 = vld [vmem:[%s4231_s28 + $0xcd8] sm:$0xf]  ;;  %725 = vst [vmem:[%s4238_s29 + $0x440] sm:$0xf] %v724_v16 }
  0xcc   : > { %727 = vst [vmem:[%s4238_s29 + $0x444] sm:$0xf] %v726_v17  ;;  %729 = vst [vmem:[%s4238_s29 + $0x448] sm:$0xf] %v728_v18  ;;  %v730_v19 = vld [vmem:[%s4231_s28 + $0xce4] sm:$0xf] }
  0xcd   : > { %v732_v20 = vld [vmem:[%s4231_s28 + $0xcf0] sm:$0xf]  ;;  %v734_v21 = vld [vmem:[%s4231_s28 + $0xcfc] sm:$0xf]  ;;  %731 = vst [vmem:[%s4238_s29 + $0x44c] sm:$0xf] %v730_v19 }
  0xce   : > { %733 = vst [vmem:[%s4238_s29 + $0x450] sm:$0xf] %v732_v20  ;;  %735 = vst [vmem:[%s4238_s29 + $0x454] sm:$0xf] %v734_v21  ;;  %v736_v22 = vld [vmem:[%s4231_s28 + $0xd08] sm:$0xf] }
  0xcf   : > { %v738_v23 = vld [vmem:[%s4231_s28 + $0xd14] sm:$0xf]  ;;  %v740_v24 = vld [vmem:[%s4231_s28 + $0xd20] sm:$0xf]  ;;  %737 = vst [vmem:[%s4238_s29 + $0x458] sm:$0xf] %v736_v22 }
  0xd0   : > { %739 = vst [vmem:[%s4238_s29 + $0x45c] sm:$0xf] %v738_v23  ;;  %741 = vst [vmem:[%s4238_s29 + $0x460] sm:$0xf] %v740_v24  ;;  %v742_v25 = vld [vmem:[%s4231_s28 + $0xd2c] sm:$0xf] }
  0xd1   : > { %v744_v26 = vld [vmem:[%s4231_s28 + $0xd38] sm:$0xf]  ;;  %v746_v27 = vld [vmem:[%s4231_s28 + $0xd44] sm:$0xf]  ;;  %743 = vst [vmem:[%s4238_s29 + $0x464] sm:$0xf] %v742_v25 }
  0xd2   : > { %745 = vst [vmem:[%s4238_s29 + $0x468] sm:$0xf] %v744_v26  ;;  %747 = vst [vmem:[%s4238_s29 + $0x46c] sm:$0xf] %v746_v27  ;;  %v748_v28 = vld [vmem:[%s4231_s28 + $0xd50] sm:$0xf] }
  0xd3   : > { %v750_v29 = vld [vmem:[%s4231_s28 + $0xd5c] sm:$0xf]  ;;  %v752_v30 = vld [vmem:[%s4231_s28 + $0xd68] sm:$0xf]  ;;  %749 = vst [vmem:[%s4238_s29 + $0x470] sm:$0xf] %v748_v28 }
  0xd4   : > { %751 = vst [vmem:[%s4238_s29 + $0x474] sm:$0xf] %v750_v29  ;;  %753 = vst [vmem:[%s4238_s29 + $0x478] sm:$0xf] %v752_v30  ;;  %v754_v31 = vld [vmem:[%s4231_s28 + $0xd74] sm:$0xf] }
  0xd5   : > { %755 = vst [vmem:[%s4238_s29 + $0x47c] sm:$0xf] %v754_v31 }
  0xd6 PF: > { %p3409_p8 = scmp.ge.s32.totalorder %s4161_s16, 1  ;;  %p1359_p9 = scmp.lt.s32.totalorder %s4161_s16, 4 }
  0xd8   : > { %p1360_p10 = pnand %p3409_p8, %p1359_p9 }
  0xd9   : > { %s1366_s30 = sand.u32 (!%p1360_p10), 1, %s4145_s12   ;;  %v3959_v32 = vld [vmem:[%s5098_s0 + $0x4] ss:$72 sps:$4 sm:$0xff] (!%p1360_p10)   ;;  %v3957_v0 = vld [vmem:[%s5098_s0] ss:$72 sps:$4 sm:$0xff] (!%p1360_p10)   ;;  %p1404_p11 = scmp.lt.s32.totalorder (!%p1360_p10), %s4153_s14, 2 }
  0xda   : > { %1363 = sbr.rel (%p1360_p10) target bundleno = 618 (0x26a), region = 69  ;;  %v3962_v33 = vld [vmem:[%s5098_s0 + $0xc] ss:$72 sps:$4 sm:$0xff] (!%p1360_p10)   ;;  %2816 = vmatprep.mubr.bf16.mxu0 (!%p1360_p10), %v3959_v32  ;;  %v3960_v2 = vld [vmem:[%s5098_s0 + $0x8] ss:$72 sps:$4 sm:$0xff] (!%p1360_p10)   ;;  %s3410_s19 = sshll.u32 (!%p1360_p10), %s1366_s30, 4 }
  0xdb   : > { %s3884_s4 = smul.u32 (!%p1360_p10), 1152, %s1366_s30  ;;  %2865 = vmatprep.mubr.bf16.mxu1 (!%p1360_p10), %v3962_v33  ;;  %v3983_v4 = vld [vmem:[%s5098_s0 + $0x94] ss:$72 sps:$4 sm:$0xff] (!%p1360_p10)   ;;  %v3985_v11 = vld [vmem:[%s5098_s0 + $0x90] ss:$72 sps:$4 sm:$0xff] (!%p1360_p10)   ;;  %s1396_s20 = scalar_lea.vmem (!%p1360_p10), [#allocation3], %s3410_s19 }
  0xdc   : > { %v3988_v28 = vld [vmem:[%s5098_s0 + $0x9c] ss:$72 sps:$4 sm:$0xff] (!%p1360_p10)   ;;  %v3992_v31 = vld [vmem:[%s5098_s0 + $0x98] ss:$72 sps:$4 sm:$0xff] (!%p1360_p10)  }
  0xdd   : > { %s4822_s9 = scalar_lea.vmem (!%p1360_p10), [#allocation2], %s3884_s4 }
  0xde   : > { %v3925_v34 = vld [vmem:[%s4822_s9 + $0x40] sm:$0xff] (!%p1360_p10)   ;;  %v3929_v38 = vld [vmem:[%s4822_s9 + $0x48] sm:$0xff] (!%p1360_p10)   ;;  %v3933_v42 = vld [vmem:[%s4822_s9 + $0x50] sm:$0xff] (!%p1360_p10)  }
  0xdf   : > { %v3926_v35 = vld [vmem:[%s4822_s9 + $0xc0] sm:$0xff] (!%p1360_p10)   ;;  %3615 = vmatprep.subr.bf16.mxu0 (!%p1360_p10), %v3925_v34  ;;  %v3930_v39 = vld [vmem:[%s4822_s9 + $0xc8] sm:$0xff] (!%p1360_p10)   ;;  %v3934_v43 = vld [vmem:[%s4822_s9 + $0xd0] sm:$0xff] (!%p1360_p10)  }
  0xe0   : > { %v3927_v36 = vld [vmem:[%s4822_s9] sm:$0xff] (!%p1360_p10)   ;;  %3643 = vmatprep.subr.bf16.mxu1 (!%p1360_p10), %v3926_v35  ;;  %v3931_v40 = vld [vmem:[%s4822_s9 + $0x8] sm:$0xff] (!%p1360_p10)   ;;  %v3935_v44 = vld [vmem:[%s4822_s9 + $0x10] sm:$0xff] (!%p1360_p10)  }
  0xe1   : > { %v3928_v37 = vld [vmem:[%s4822_s9 + $0x80] sm:$0xff]   ;;  %3616 = vmatpush3.bf16.msra.mxu0 %v3927_v36  ;;  %v3932_v41 = vld [vmem:[%s4822_s9 + $0x88] sm:$0xff]   ;;  %v3936_v45 = vld [vmem:[%s4822_s9 + $0x90] sm:$0xff]   ;;  %s1405_s10 = scalar_select %p1404_p11, %s4153_s14, 2 }
  0xe2   : > { %3644 = vmatpush3.bf16.msra.mxu1 %v3928_v37  ;;  %3617 = vmatprep.subr.bf16.mxu0 %v3929_v38  ;;  %v3937_v46 = vld [vmem:[%s4822_s9 + $0x58] sm:$0xff]   ;;  %v3941_v50 = vld [vmem:[%s4822_s9 + $0x60] sm:$0xff]   ;;  %v3945_v54 = vld [vmem:[%s4822_s9 + $0x68] sm:$0xff]   ;;  %s3597_s23 = sshll.u32 (%p4218_p6), %s4153_s14, 2 }
  0xe3   : > { %3645 = vmatprep.subr.bf16.mxu1 %v3930_v39  ;;  %v3938_v47 = vld [vmem:[%s4822_s9 + $0xd8] sm:$0xff]   ;;  %v3942_v51 = vld [vmem:[%s4822_s9 + $0xe0] sm:$0xff]   ;;  %v3946_v55 = vld [vmem:[%s4822_s9 + $0xe8] sm:$0xff]   ;;  %s3260_s24 = scalar_lea.vmem (%p4218_p6), %s5101_s3, %s3597_s23 }
  0xe4   : > { %v3939_v48 = vld [vmem:[%s4822_s9 + $0x18] sm:$0xff]   ;;  %v3943_v52 = vld [vmem:[%s4822_s9 + $0x20] sm:$0xff]   ;;  %v3947_v56 = vld [vmem:[%s4822_s9 + $0x28] sm:$0xff]  }
  0xe5   : > { %3618 = vmatpush3.bf16.msra.mxu0 %v3931_v40  ;;  %v3940_v49 = vld [vmem:[%s4822_s9 + $0x98] sm:$0xff]   ;;  %v3944_v53 = vld [vmem:[%s4822_s9 + $0xa0] sm:$0xff]   ;;  %v3948_v57 = vld [vmem:[%s4822_s9 + $0xa8] sm:$0xff]  }
  0xe6   : > { %3646 = vmatpush3.bf16.msra.mxu1 %v3932_v41  ;;  %3619 = vmatprep.subr.bf16.mxu0 %v3933_v42  ;;  %v3949_v58 = vld [vmem:[%s4822_s9 + $0x70] sm:$0xff]   ;;  %v3953_v62 = vld [vmem:[%s4822_s9 + $0x78] sm:$0xff]   ;;  %v3963_v5 = vld [vmem:[%s4822_s9 + $0x140] sm:$0xff]  }
  0xe7   : > { %3647 = vmatprep.subr.bf16.mxu1 %v3934_v43  ;;  %v3950_v59 = vld [vmem:[%s4822_s9 + $0xf0] sm:$0xff]   ;;  %v3954_v63 = vld [vmem:[%s4822_s9 + $0xf8] sm:$0xff]   ;;  %v3964_v6 = vld [vmem:[%s4822_s9 + $0x1c0] sm:$0xff]  }
  0xe8   : > { %v3951_v60 = vld [vmem:[%s4822_s9 + $0x30] sm:$0xff]   ;;  %v3955_v1 = vld [vmem:[%s4822_s9 + $0x38] sm:$0xff]   ;;  %v3965_v7 = vld [vmem:[%s4822_s9 + $0x100] sm:$0xff]  }
  0xe9   : > { %3620 = vmatpush3.bf16.msra.mxu0 %v3935_v44  ;;  %v3952_v61 = vld [vmem:[%s4822_s9 + $0xb0] sm:$0xff]   ;;  %v3956_v3 = vld [vmem:[%s4822_s9 + $0xb8] sm:$0xff]   ;;  %v3966_v8 = vld [vmem:[%s4822_s9 + $0x180] sm:$0xff]  }
  0xea   : > { %3648 = vmatpush3.bf16.msra.mxu1 %v3936_v45  ;;  %3621 = vmatprep.subr.bf16.mxu0 %v3937_v46  ;;  %v3967_v9 = vld [vmem:[%s4822_s9 + $0x148] sm:$0xff]   ;;  %v3971_v14 = vld [vmem:[%s4822_s9 + $0x150] sm:$0xff]   ;;  %v3975_v18 = vld [vmem:[%s4822_s9 + $0x158] sm:$0xff]  }
  0xeb   : > { %3649 = vmatprep.subr.bf16.mxu1 %v3938_v47  ;;  %v3968_v10 = vld [vmem:[%s4822_s9 + $0x1c8] sm:$0xff]   ;;  %v3972_v15 = vld [vmem:[%s4822_s9 + $0x1d0] sm:$0xff]   ;;  %v3976_v19 = vld [vmem:[%s4822_s9 + $0x1d8] sm:$0xff]  }
  0xec   : > { %v3969_v12 = vld [vmem:[%s4822_s9 + $0x108] sm:$0xff]   ;;  %v3973_v16 = vld [vmem:[%s4822_s9 + $0x110] sm:$0xff]   ;;  %v3977_v20 = vld [vmem:[%s4822_s9 + $0x118] sm:$0xff]  }
  0xed   : > { %3622 = vmatpush3.bf16.msra.mxu0 %v3939_v48  ;;  %v3970_v13 = vld [vmem:[%s4822_s9 + $0x188] sm:$0xff]   ;;  %v3974_v17 = vld [vmem:[%s4822_s9 + $0x190] sm:$0xff]   ;;  %v3978_v21 = vld [vmem:[%s4822_s9 + $0x198] sm:$0xff]  }
  0xee   : > { %3650 = vmatpush3.bf16.msra.mxu1 %v3940_v49  ;;  %3623 = vmatprep.subr.bf16.mxu0 %v3941_v50  ;;  %v3979_v22 = vld [vmem:[%s4822_s9 + $0x160] sm:$0xff]   ;;  %v3986_v26 = vld [vmem:[%s4822_s9 + $0x168] sm:$0xff]   ;;  %v3993_v32 = vld [vmem:[%s4822_s9 + $0x170] sm:$0xff]  }
  0xef   : > { %3651 = vmatprep.subr.bf16.mxu1 %v3942_v51  ;;  %v3980_v23 = vld [vmem:[%s4822_s9 + $0x1e0] sm:$0xff]   ;;  %v3987_v27 = vld [vmem:[%s4822_s9 + $0x1e8] sm:$0xff]   ;;  %v3994_v33 = vld [vmem:[%s4822_s9 + $0x1f0] sm:$0xff]  }
  0xf0   : > { %v3981_v24 = vld [vmem:[%s4822_s9 + $0x120] sm:$0xff]   ;;  %v3990_v29 = vld [vmem:[%s4822_s9 + $0x128] sm:$0xff]   ;;  %v3995_v34 = vld [vmem:[%s4822_s9 + $0x130] sm:$0xff]  }
  0xf1   : > { %3624 = vmatpush3.bf16.msra.mxu0 %v3943_v52  ;;  %v3982_v25 = vld [vmem:[%s4822_s9 + $0x1a0] sm:$0xff]   ;;  %v3991_v30 = vld [vmem:[%s4822_s9 + $0x1a8] sm:$0xff]   ;;  %v3996_v35 = vld [vmem:[%s4822_s9 + $0x1b0] sm:$0xff]  }
  0xf2   : > { %3652 = vmatpush3.bf16.msra.mxu1 %v3944_v53  ;;  %3625 = vmatprep.subr.bf16.mxu0 %v3945_v54  ;;  %v3997_v36 = vld [vmem:[%s4822_s9 + $0x178] sm:$0xff]   ;;  %v4007_v44 = vld [vmem:[%s4822_s9 + $0x240] sm:$0xff]   ;;  %v4011_v48 = vld [vmem:[%s4822_s9 + $0x248] sm:$0xff]  }
  0xf3   : > { %3653 = vmatprep.subr.bf16.mxu1 %v3946_v55  ;;  %v3998_v37 = vld [vmem:[%s4822_s9 + $0x1f8] sm:$0xff]   ;;  %v4008_v45 = vld [vmem:[%s4822_s9 + $0x2c0] sm:$0xff]   ;;  %v4012_v49 = vld [vmem:[%s4822_s9 + $0x2c8] sm:$0xff]  }
  0xf4   : > { %v3999_v38 = vld [vmem:[%s4822_s9 + $0x138] sm:$0xff]   ;;  %v4009_v46 = vld [vmem:[%s4822_s9 + $0x200] sm:$0xff]   ;;  %v4013_v50 = vld [vmem:[%s4822_s9 + $0x208] sm:$0xff]  }
  0xf5   : > { %3626 = vmatpush3.bf16.msra.mxu0 %v3947_v56  ;;  %v4000_v39 = vld [vmem:[%s4822_s9 + $0x1b8] sm:$0xff]   ;;  %v4010_v47 = vld [vmem:[%s4822_s9 + $0x280] sm:$0xff]   ;;  %v4014_v51 = vld [vmem:[%s4822_s9 + $0x288] sm:$0xff]  }
  0xf6   : > { %3654 = vmatpush3.bf16.msra.mxu1 %v3948_v57  ;;  %3627 = vmatprep.subr.bf16.mxu0 %v3949_v58  ;;  %v4001_v40 = vld [vmem:[%s5098_s0 + $0x10] ss:$72 sps:$4 sm:$0xff]   ;;  %v4003_v41 = vld [vmem:[%s5098_s0 + $0x14] ss:$72 sps:$4 sm:$0xff]   ;;  %v4015_v52 = vld [vmem:[%s5098_s0 + $0xa4] ss:$72 sps:$4 sm:$0xff]  }
  0xf7   : > { %3655 = vmatprep.subr.bf16.mxu1 %v3950_v59  ;;  %v4004_v42 = vld [vmem:[%s5098_s0 + $0x18] ss:$72 sps:$4 sm:$0xff]   ;;  %v4006_v43 = vld [vmem:[%s5098_s0 + $0x1c] ss:$72 sps:$4 sm:$0xff]   ;;  %v4018_v54 = vld [vmem:[%s4822_s9 + $0x250] sm:$0xff]  }
  0xf8   : > { %v4017_v53 = vld [vmem:[%s5098_s0 + $0xa0] ss:$72 sps:$4 sm:$0xff]   ;;  %v4019_v55 = vld [vmem:[%s4822_s9 + $0x2d0] sm:$0xff]  }
  0xf9   : > { %3628 = vmatpush3.bf16.msra.mxu0 %v3951_v60  ;;  %v4020_v56 = vld [vmem:[%s5098_s0 + $0xac] ss:$72 sps:$4 sm:$0xff]   ;;  %v4024_v59 = vld [vmem:[%s5098_s0 + $0xa8] ss:$72 sps:$4 sm:$0xff]   ;;  %v4025_v60 = vld [vmem:[%s4822_s9 + $0x258] sm:$0xff]  }
  0xfa   : > { %3656 = vmatpush3.bf16.msra.mxu1 %v3952_v61  ;;  %3629 = vmatprep.subr.bf16.mxu0 %v3953_v62  ;;  %v4022_v57 = vld [vmem:[%s4822_s9 + $0x210] sm:$0xff]   ;;  %v4026_v61 = vld [vmem:[%s4822_s9 + $0x2d8] sm:$0xff]  }
  0xfb   : > { %3657 = vmatprep.subr.bf16.mxu1 %v3954_v63  ;;  %v4023_v58 = vld [vmem:[%s4822_s9 + $0x290] sm:$0xff]   ;;  %v4027_v62 = vld [vmem:[%s4822_s9 + $0x218] sm:$0xff]  }
  0xfc   : > { %v4028_v63 = vld [vmem:[%s4822_s9 + $0x298] sm:$0xff]  }
  0xfd   : > { %3630 = vmatpush3.bf16.msra.mxu0 %v3955_v1  ;;  %v4030_v1 = vld [vmem:[%s4822_s9 + $0x2e0] sm:$0xff]  }
  0xfe   : > { %3658 = vmatpush3.bf16.msra.mxu1 %v3956_v3  ;;  %3671 = vmatprep.subr.bf16.mxu0 %v3963_v5  ;;  %v4032_v3 = vld [vmem:[%s4822_s9 + $0x2a0] sm:$0xff]   ;;  %v4034_v5 = vld [vmem:[%s4822_s9 + $0x2e8] sm:$0xff]  }
  0xff   : > { %3699 = vmatprep.subr.bf16.mxu1 %v3964_v6  ;;  %v4035_v6 = vld [vmem:[%s4822_s9 + $0x228] sm:$0xff]  }
 0x100   : > { %2817 = vmatmul.mubr.bf16.vlgmr.msra.gmra.mrb[0].mxu0 %v3957_v0  ;;  %v4029_v0 = vld [vmem:[%s4822_s9 + $0x260] sm:$0xff]  }
 0x101   : > { %2866 = vmatmul.mubr.bf16.vlgmr.msra.gmra.mrb[0].mxu1 %v3960_v2  ;;  %3672 = vmatpush3.bf16.msra.mxu0 %v3965_v7  ;;  %v4031_v2 = vld [vmem:[%s4822_s9 + $0x220] sm:$0xff]   ;;  %v4036_v7 = vld [vmem:[%s4822_s9 + $0x2a8] sm:$0xff]  }
 0x102   : > { %3700 = vmatpush3.bf16.msra.mxu1 %v3966_v8  ;;  %2824 = vmatprep.mubr.bf16.mxu0 %v3983_v4  ;;  %v4033_v4 = vld [vmem:[%s4822_s9 + $0x268] sm:$0xff]   ;;  %v4037_v8 = vld [vmem:[%s4822_s9 + $0x270] sm:$0xff]  }
 0x103   : > { %3673 = vmatprep.subr.bf16.mxu0 %v3967_v9  ;;  %3701 = vmatprep.subr.bf16.mxu1 %v3968_v10  ;;  %v4038_v9 = vld [vmem:[%s4822_s9 + $0x2f0] sm:$0xff]  }
 0x104   : > { %2873 = vmatprep.mubr.bf16.mxu1 %v3988_v28  ;;  %v4039_v10 = vld [vmem:[%s4822_s9 + $0x230] sm:$0xff]  }
 0x105   : > { %3674 = vmatpush3.bf16.msra.mxu0 %v3969_v12  ;;  %v4041_v12 = vld [vmem:[%s4822_s9 + $0x278] sm:$0xff]  }
 0x106   : > { %3702 = vmatpush3.bf16.msra.mxu1 %v3970_v13  ;;  %3675 = vmatprep.subr.bf16.mxu0 %v3971_v14  ;;  %v4042_v13 = vld [vmem:[%s4822_s9 + $0x2f8] sm:$0xff]  }
 0x107   : > { %3703 = vmatprep.subr.bf16.mxu1 %v3972_v15  ;;  %v4043_v14 = vld [vmem:[%s4822_s9 + $0x238] sm:$0xff]  }
 0x108   : > { %2825 = vmatmul.mubr.bf16.gmra.mrb[4].mxu0 %v3985_v11  ;;  %v4040_v11 = vld [vmem:[%s4822_s9 + $0x2b0] sm:$0xff]   ;;  %v4044_v15 = vld [vmem:[%s4822_s9 + $0x2b8] sm:$0xff]  }
 0x109   : > { %3676 = vmatpush3.bf16.msra.mxu0 %v3973_v16  ;;  %2874 = vmatmul.mubr.bf16.gmra.mrb[4].mxu1 %v3992_v31  ;;  %v4045_v16 = vld [vmem:[%s5098_s0 + $0x20] ss:$72 sps:$4 sm:$0xff]   ;;  %v4059_v28 = vld [vmem:[%s5098_s0 + $0xb4] ss:$72 sps:$4 sm:$0xff]  }
 0x10a   : > { %3704 = vmatpush3.bf16.msra.mxu1 %v3974_v17  ;;  %3677 = vmatprep.subr.bf16.mxu0 %v3975_v18  ;;  %v4047_v17 = vld [vmem:[%s5098_s0 + $0x24] ss:$72 sps:$4 sm:$0xff]   ;;  %v4048_v18 = vld [vmem:[%s5098_s0 + $0x28] ss:$72 sps:$4 sm:$0xff]  }
 0x10b   : > { %3705 = vmatprep.subr.bf16.mxu1 %v3976_v19  ;;  %2914 = vmatprep.mubr.bf16.mxu0 %v4003_v41  ;;  %v4050_v19 = vld [vmem:[%s5098_s0 + $0x2c] ss:$72 sps:$4 sm:$0xff]   ;;  %v4074_v41 = vld [vmem:[%s4822_s9 + $0x3e0] sm:$0xff]  }
 0x10c   : > { %2963 = vmatprep.mubr.bf16.mxu1 %v4006_v43  ;;  %v4063_v31 = vld [vmem:[%s4822_s9 + $0x3d0] sm:$0xff]   ;;  %v4076_v43 = vld [vmem:[%s4822_s9 + $0x3a0] sm:$0xff]  }
 0x10d   : > { %3678 = vmatpush3.bf16.msra.mxu0 %v3977_v20  ;;  %v4051_v20 = vld [vmem:[%s4822_s9 + $0x340] sm:$0xff]  }
 0x10e   : > { %3706 = vmatpush3.bf16.msra.mxu1 %v3978_v21  ;;  %3679 = vmatprep.subr.bf16.mxu0 %v3979_v22  ;;  %v4052_v21 = vld [vmem:[%s4822_s9 + $0x3c0] sm:$0xff]  }
 0x10f   : > { %3707 = vmatprep.subr.bf16.mxu1 %v3980_v23  ;;  %v4053_v22 = vld [vmem:[%s4822_s9 + $0x300] sm:$0xff]  }
 0x110   : > { %v4054_v23 = vld [vmem:[%s4822_s9 + $0x380] sm:$0xff]  }
 0x111   : > { %3680 = vmatpush3.bf16.msra.mxu0 %v3981_v24  ;;  %v4055_v24 = vld [vmem:[%s4822_s9 + $0x348] sm:$0xff]  }
 0x112   : > { %3708 = vmatpush3.bf16.msra.mxu1 %v3982_v25  ;;  %3681 = vmatprep.subr.bf16.mxu0 %v3986_v26  ;;  %v4056_v25 = vld [vmem:[%s4822_s9 + $0x3c8] sm:$0xff]  }
 0x113   : > { %3709 = vmatprep.subr.bf16.mxu1 %v3987_v27  ;;  %v4057_v26 = vld [vmem:[%s4822_s9 + $0x308] sm:$0xff]  }
 0x114   : > { %v4058_v27 = vld [vmem:[%s4822_s9 + $0x388] sm:$0xff]  }
 0x115   : > { %3682 = vmatpush3.bf16.msra.mxu0 %v3990_v29  ;;  %v4061_v29 = vld [vmem:[%s5098_s0 + $0xb0] ss:$72 sps:$4 sm:$0xff]  }
 0x116   : > { %3710 = vmatpush3.bf16.msra.mxu1 %v3991_v30  ;;  %3683 = vmatprep.subr.bf16.mxu0 %v3993_v32  ;;  %v4062_v30 = vld [vmem:[%s4822_s9 + $0x350] sm:$0xff]   ;;  %v4064_v32 = vld [vmem:[%s5098_s0 + $0xbc] ss:$72 sps:$4 sm:$0xff]  }
 0x117   : > { %3711 = vmatprep.subr.bf16.mxu1 %v3994_v33  ;;  %v4066_v33 = vld [vmem:[%s4822_s9 + $0x310] sm:$0xff]  }
 0x119   : > { %3684 = vmatpush3.bf16.msra.mxu0 %v3995_v34  ;;  %v4067_v34 = vld [vmem:[%s4822_s9 + $0x390] sm:$0xff]  }
 0x11a   : > { %3712 = vmatpush3.bf16.msra.mxu1 %v3996_v35  ;;  %3685 = vmatprep.subr.bf16.mxu0 %v3997_v36  ;;  %v4068_v35 = vld [vmem:[%s5098_s0 + $0xb8] ss:$72 sps:$4 sm:$0xff]  }
 0x11b   : > { %3713 = vmatprep.subr.bf16.mxu1 %v3998_v37  ;;  %v4069_v36 = vld [vmem:[%s4822_s9 + $0x358] sm:$0xff]  }
 0x11c   : > { %v4070_v37 = vld [vmem:[%s4822_s9 + $0x3d8] sm:$0xff]  }
 0x11d   : > { %3686 = vmatpush3.bf16.msra.mxu0 %v3999_v38  ;;  %v4071_v38 = vld [vmem:[%s4822_s9 + $0x318] sm:$0xff]  }
 0x11e   : > { %3714 = vmatpush3.bf16.msra.mxu1 %v4000_v39  ;;  %3727 = vmatprep.subr.bf16.mxu0 %v4007_v44  ;;  %v4072_v39 = vld [vmem:[%s4822_s9 + $0x398] sm:$0xff]   ;;  %v4077_v44 = vld [vmem:[%s4822_s9 + $0x368] sm:$0xff]  }
 0x11f   : > { %3755 = vmatprep.subr.bf16.mxu1 %v4008_v45  ;;  %v4078_v45 = vld [vmem:[%s4822_s9 + $0x3e8] sm:$0xff]  }
 0x120   : > { %2915 = vmatmul.mubr.bf16.vlgmr.msra.gmra.mrb[8].mxu0 %v4001_v40  ;;  %v4073_v40 = vld [vmem:[%s4822_s9 + $0x360] sm:$0xff]  }
 0x121   : > { %2964 = vmatmul.mubr.bf16.vlgmr.msra.gmra.mrb[8].mxu1 %v4004_v42  ;;  %3728 = vmatpush3.bf16.msra.mxu0 %v4009_v46  ;;  %v4075_v42 = vld [vmem:[%s4822_s9 + $0x320] sm:$0xff]   ;;  %v4079_v46 = vld [vmem:[%s4822_s9 + $0x328] sm:$0xff]  }
 0x122   : > { %3756 = vmatpush3.bf16.msra.mxu1 %v4010_v47  ;;  %3729 = vmatprep.subr.bf16.mxu0 %v4011_v48  ;;  %v4080_v47 = vld [vmem:[%s4822_s9 + $0x3a8] sm:$0xff]   ;;  %v4081_v48 = vld [vmem:[%s4822_s9 + $0x370] sm:$0xff]  }
 0x123   : > { %3757 = vmatprep.subr.bf16.mxu1 %v4012_v49  ;;  %2922 = vmatprep.mubr.bf16.mxu0 %v4015_v52  ;;  %v4082_v49 = vld [vmem:[%s4822_s9 + $0x3f0] sm:$0xff]   ;;  %v4085_v52 = vld [vmem:[%s4822_s9 + $0x378] sm:$0xff]  }
 0x124   : > { %2971 = vmatprep.mubr.bf16.mxu1 %v4020_v56  ;;  %v4089_v56 = vld [vmem:[%s5098_s0 + $0x30] ss:$72 sps:$4 sm:$0xff]  }
 0x125   : > { %3730 = vmatpush3.bf16.msra.mxu0 %v4013_v50  ;;  %v4083_v50 = vld [vmem:[%s4822_s9 + $0x330] sm:$0xff]  }
 0x126   : > { %3758 = vmatpush3.bf16.msra.mxu1 %v4014_v51  ;;  %3731 = vmatprep.subr.bf16.mxu0 %v4018_v54  ;;  %v4084_v51 = vld [vmem:[%s4822_s9 + $0x3b0] sm:$0xff]   ;;  %v4087_v54 = vld [vmem:[%s4822_s9 + $0x338] sm:$0xff]  }
 0x127   : > { %3759 = vmatprep.subr.bf16.mxu1 %v4019_v55  ;;  %v4088_v55 = vld [vmem:[%s4822_s9 + $0x3b8] sm:$0xff]  }
 0x128   : > { %2923 = vmatmul.mubr.bf16.gmra.mrb[12].mxu0 %v4017_v53  ;;  %v4086_v53 = vld [vmem:[%s4822_s9 + $0x3f8] sm:$0xff]  }
 0x129   : > { %3732 = vmatpush3.bf16.msra.mxu0 %v4022_v57  ;;  %2972 = vmatmul.mubr.bf16.gmra.mrb[12].mxu1 %v4024_v59  ;;  %v4091_v57 = vld [vmem:[%s5098_s0 + $0x34] ss:$72 sps:$4 sm:$0xff]  }
 0x12a   : > { %3760 = vmatpush3.bf16.msra.mxu1 %v4023_v58  ;;  %3733 = vmatprep.subr.bf16.mxu0 %v4025_v60  ;;  %v4092_v58 = vld [vmem:[%s5098_s0 + $0x38] ss:$72 sps:$4 sm:$0xff]   ;;  %v4094_v59 = vld [vmem:[%s5098_s0 + $0x3c] ss:$72 sps:$4 sm:$0xff]  }
 0x12b   : > { %3761 = vmatprep.subr.bf16.mxu1 %v4026_v61  ;;  %3012 = vmatprep.mubr.bf16.mxu0 %v4047_v17  ;;  %v4095_v60 = vld [vmem:[%s4822_s9 + $0x440] sm:$0xff]   ;;  %v4116_v17 = vld [vmem:[%s4822_s9 + $0x438] sm:$0xff]  }
 0x12c   : > { %3061 = vmatprep.mubr.bf16.mxu1 %v4050_v19  ;;  %v4096_v61 = vld [vmem:[%s4822_s9 + $0x400] sm:$0xff]   ;;  %v4120_v19 = vld [vmem:[%s5098_s0 + $0xd0] ss:$72 sps:$4 sm:$0xff]  }
 0x12d   : > { %3734 = vmatpush3.bf16.msra.mxu0 %v4027_v62  ;;  %v4097_v62 = vld [vmem:[%s4822_s9 + $0x448] sm:$0xff]  }
 0x12e   : > { %3762 = vmatpush3.bf16.msra.mxu1 %v4028_v63  ;;  %3735 = vmatprep.subr.bf16.mxu0 %v4029_v0  ;;  %v4098_v63 = vld [vmem:[%s4822_s9 + $0x408] sm:$0xff]  }
 0x12f   : > { %3763 = vmatprep.subr.bf16.mxu1 %v4030_v1  ;;  %v4099_v0 = vld [vmem:[%s5098_s0 + $0xc4] ss:$72 sps:$4 sm:$0xff]   ;;  %v4101_v1 = vld [vmem:[%s5098_s0 + $0xc0] ss:$72 sps:$4 sm:$0xff]  }
 0x131   : > { %3736 = vmatpush3.bf16.msra.mxu0 %v4031_v2  ;;  %v4102_v2 = vld [vmem:[%s4822_s9 + $0x450] sm:$0xff]  }
 0x132   : > { %3764 = vmatpush3.bf16.msra.mxu1 %v4032_v3  ;;  %3737 = vmatprep.subr.bf16.mxu0 %v4033_v4  ;;  %v4103_v3 = vld [vmem:[%s5098_s0 + $0xcc] ss:$72 sps:$4 sm:$0xff]  }
 0x133   : > { %3765 = vmatprep.subr.bf16.mxu1 %v4034_v5  ;;  %v4105_v4 = vld [vmem:[%s4822_s9 + $0x410] sm:$0xff]  }
 0x134   : > { %v4106_v5 = vld [vmem:[%s5098_s0 + $0xc8] ss:$72 sps:$4 sm:$0xff]  }
 0x135   : > { %3738 = vmatpush3.bf16.msra.mxu0 %v4035_v6  ;;  %v4107_v6 = vld [vmem:[%s4822_s9 + $0x458] sm:$0xff]  }
 0x136   : > { %3766 = vmatpush3.bf16.msra.mxu1 %v4036_v7  ;;  %3739 = vmatprep.subr.bf16.mxu0 %v4037_v8  ;;  %v4108_v7 = vld [vmem:[%s4822_s9 + $0x418] sm:$0xff]   ;;  %v4109_v8 = vld [vmem:[%s4822_s9 + $0x460] sm:$0xff]  }
 0x137   : > { %3767 = vmatprep.subr.bf16.mxu1 %v4038_v9  ;;  %v4110_v9 = vld [vmem:[%s4822_s9 + $0x420] sm:$0xff]  }
 0x139   : > { %3740 = vmatpush3.bf16.msra.mxu0 %v4039_v10  ;;  %v4111_v10 = vld [vmem:[%s4822_s9 + $0x468] sm:$0xff]  }
 0x13a   : > { %3768 = vmatpush3.bf16.msra.mxu1 %v4040_v11  ;;  %3741 = vmatprep.subr.bf16.mxu0 %v4041_v12  ;;  %v4112_v11 = vld [vmem:[%s4822_s9 + $0x428] sm:$0xff]  }
 0x13b   : > { %3769 = vmatprep.subr.bf16.mxu1 %v4042_v13  ;;  %v4119_v12 = vld [vmem:[%s5098_s0 + $0x44] ss:$72 sps:$4 sm:$0xff]   ;;  %v4113_v13 = vld [vmem:[%s4822_s9 + $0x470] sm:$0xff]  }
 0x13d   : > { %3742 = vmatpush3.bf16.msra.mxu0 %v4043_v14  ;;  %v4122_v14 = vld [vmem:[%s5098_s0 + $0xd4] ss:$72 sps:$4 sm:$0xff]  }
 0x13e   : > { %3770 = vmatpush3.bf16.msra.mxu1 %v4044_v15  ;;  %3783 = vmatprep.subr.bf16.mxu0 %v4051_v20  ;;  %v4114_v15 = vld [vmem:[%s4822_s9 + $0x430] sm:$0xff]  }
 0x13f   : > { %3811 = vmatprep.subr.bf16.mxu1 %v4052_v21 }
 0x140   : > { %3013 = vmatmul.mubr.bf16.vlgmr.msra.gmra.mrb[16].mxu0 %v4045_v16  ;;  %v4115_v16 = vld [vmem:[%s4822_s9 + $0x478] sm:$0xff]   ;;  %s1406_s9 = scalar_lea.vmem %s5100_s2, %s1405_s10 }
 0x141   : > { %3062 = vmatmul.mubr.bf16.vlgmr.msra.gmra.mrb[16].mxu1 %v4048_v18  ;;  %3784 = vmatpush3.bf16.msra.mxu0 %v4053_v22  ;;  %v4117_v18 = vld [vmem:[%s5098_s0 + $0x40] ss:$72 sps:$4 sm:$0xff]  }
 0x142   : > { %3812 = vmatpush3.bf16.msra.mxu1 %v4054_v23  ;;  %3785 = vmatprep.subr.bf16.mxu0 %v4055_v24  ;;  %v3411_v22 = vld [vmem:[%s1406_s9] ss:$0 sm:$0xff] }
 0x143   : > { %3813 = vmatprep.subr.bf16.mxu1 %v4056_v25  ;;  %3020 = vmatprep.mubr.bf16.mxu0 %v4059_v28 }
 0x144   : > { %3069 = vmatprep.mubr.bf16.mxu1 %v4064_v32 }
 0x145   : > { %3786 = vmatpush3.bf16.msra.mxu0 %v4057_v26 }
 0x146   : > { %3814 = vmatpush3.bf16.msra.mxu1 %v4058_v27  ;;  %3787 = vmatprep.subr.bf16.mxu0 %v4062_v30 }
 0x147   : > { %3815 = vmatprep.subr.bf16.mxu1 %v4063_v31 }
 0x148   : > { %3021 = vmatmul.mubr.bf16.gmra.mrb[20].mxu0 %v4061_v29 }
 0x149   : > { %3788 = vmatpush3.bf16.msra.mxu0 %v4066_v33  ;;  %3070 = vmatmul.mubr.bf16.gmra.mrb[20].mxu1 %v4068_v35 }
 0x14a   : > { %3816 = vmatpush3.bf16.msra.mxu1 %v4067_v34  ;;  %3789 = vmatprep.subr.bf16.mxu0 %v4069_v36 }
 0x14b   : > { %3817 = vmatprep.subr.bf16.mxu1 %v4070_v37  ;;  %3110 = vmatprep.mubr.bf16.mxu0 %v4091_v57 }
 0x14c   : > { %3159 = vmatprep.mubr.bf16.mxu1 %v4094_v59 }
 0x14d   : > { %3790 = vmatpush3.bf16.msra.mxu0 %v4071_v38 }
 0x14e   : > { %3818 = vmatpush3.bf16.msra.mxu1 %v4072_v39  ;;  %3791 = vmatprep.subr.bf16.mxu0 %v4073_v40 }
 0x14f   : > { %3819 = vmatprep.subr.bf16.mxu1 %v4074_v41 }
 0x151   : > { %3792 = vmatpush3.bf16.msra.mxu0 %v4075_v42 }
 0x152   : > { %3820 = vmatpush3.bf16.msra.mxu1 %v4076_v43  ;;  %3793 = vmatprep.subr.bf16.mxu0 %v4077_v44 }
 0x153   : > { %3821 = vmatprep.subr.bf16.mxu1 %v4078_v45 }
 0x155   : > { %3794 = vmatpush3.bf16.msra.mxu0 %v4079_v46 }
 0x156   : > { %3822 = vmatpush3.bf16.msra.mxu1 %v4080_v47  ;;  %3795 = vmatprep.subr.bf16.mxu0 %v4081_v48 }
 0x157   : > { %3823 = vmatprep.subr.bf16.mxu1 %v4082_v49 }
 0x159   : > { %3796 = vmatpush3.bf16.msra.mxu0 %v4083_v50 }
 0x15a   : > { %3824 = vmatpush3.bf16.msra.mxu1 %v4084_v51  ;;  %3797 = vmatprep.subr.bf16.mxu0 %v4085_v52 }
 0x15b   : > { %3825 = vmatprep.subr.bf16.mxu1 %v4086_v53 }
 0x15d   : > { %3798 = vmatpush3.bf16.msra.mxu0 %v4087_v54 }
 0x15e   : > { %3826 = vmatpush3.bf16.msra.mxu1 %v4088_v55  ;;  %3839 = vmatprep.subr.bf16.mxu0 %v4095_v60 }
 0x15f   : > { %3867 = vmatprep.subr.bf16.mxu1 %v4095_v60 }
 0x160   : > { %3111 = vmatmul.mubr.bf16.vlgmr.msra.gmra.mrb[24].mxu0 %v4089_v56 }
 0x161   : > { %3160 = vmatmul.mubr.bf16.vlgmr.msra.gmra.mrb[24].mxu1 %v4092_v58  ;;  %3840 = vmatpush3.bf16.msra.mxu0 %v4096_v61 }
 0x162   : > { %3875 = vmatpush3.bf16.msra.mxu1 %v4096_v61  ;;  %3841 = vmatprep.subr.bf16.mxu0 %v4097_v62 }
 0x163   : > { %3868 = vmatprep.subr.bf16.mxu1 %v4097_v62  ;;  %3118 = vmatprep.mubr.bf16.mxu0 %v4099_v0 }
 0x164   : > { %3167 = vmatprep.mubr.bf16.mxu1 %v4103_v3 }
 0x165   : > { %3842 = vmatpush3.bf16.msra.mxu0 %v4098_v63 }
 0x166   : > { %3876 = vmatpush3.bf16.msra.mxu1 %v4098_v63  ;;  %3843 = vmatprep.subr.bf16.mxu0 %v4102_v2 }
 0x167   : > { %3869 = vmatprep.subr.bf16.mxu1 %v4102_v2 }
 0x168   : > { %3119 = vmatmul.mubr.bf16.gmra.mrb[28].mxu0 %v4101_v1 }
 0x169   : > { %3844 = vmatpush3.bf16.msra.mxu0 %v4105_v4  ;;  %3168 = vmatmul.mubr.bf16.gmra.mrb[28].mxu1 %v4106_v5 }
 0x16a   : > { %3877 = vmatpush3.bf16.msra.mxu1 %v4105_v4  ;;  %3845 = vmatprep.subr.bf16.mxu0 %v4107_v6 }
 0x16b   : > { %3870 = vmatprep.subr.bf16.mxu1 %v4107_v6  ;;  %3208 = vmatprep.mubr.bf16.mxu0 %v4119_v12 }
 0x16c   : > { %3216 = vmatprep.mubr.bf16.mxu1 %v4122_v14 }
 0x16d   : > { %3846 = vmatpush3.bf16.msra.mxu0 %v4108_v7 }
 0x16e   : > { %3878 = vmatpush3.bf16.msra.mxu1 %v4108_v7  ;;  %3847 = vmatprep.subr.bf16.mxu0 %v4109_v8 }
 0x16f   : > { %3871 = vmatprep.subr.bf16.mxu1 %v4109_v8 }
 0x171   : > { %3848 = vmatpush3.bf16.msra.mxu0 %v4110_v9 }
 0x172   : > { %3879 = vmatpush3.bf16.msra.mxu1 %v4110_v9  ;;  %3849 = vmatprep.subr.bf16.mxu0 %v4111_v10 }
 0x173   : > { %3872 = vmatprep.subr.bf16.mxu1 %v4111_v10 }
 0x175   : > { %3850 = vmatpush3.bf16.msra.mxu0 %v4112_v11 }
 0x176   : > { %3880 = vmatpush3.bf16.msra.mxu1 %v4112_v11  ;;  %3851 = vmatprep.subr.bf16.mxu0 %v4113_v13 }
 0x177   : > { %3873 = vmatprep.subr.bf16.mxu1 %v4113_v13 }
 0x179   : > { %3852 = vmatpush3.bf16.msra.mxu0 %v4114_v15 }
 0x17a   : > { %3881 = vmatpush3.bf16.msra.mxu1 %v4114_v15  ;;  %3853 = vmatprep.subr.bf16.mxu0 %v4115_v16 }
 0x17b   : > { %3874 = vmatprep.subr.bf16.mxu1 %v4115_v16 }
 0x17d   : > { %3854 = vmatpush3.bf16.msra.mxu0 %v4116_v17 }
 0x17e   : > { %3882 = vmatpush3.bf16.msra.mxu1 %v4116_v17 }
 0x180   : > { %3209 = vmatmul.mubr.bf16.vlgmr.msra.gmra.mrb[32].mxu0 %v4117_v18 }
 0x181   : > { %3217 = vmatmul.mubr.bf16.vlgmr.msra.gmra.mrb[32].mxu1 %v4120_v19 }
 0x1d3   : > { %v3631_v20 = vpop.f32.mrb[0].mxu0 }
 0x1d4   : > { %v3659_v21 = vpop.f32.mrb[0].mxu1  ;;  %v3632_v23 = vpop.f32.mrb[1].mxu0 }
 0x1d5   : > { %v3633_v24 = vadd.f32 %v3632_v23, %v3631_v20  ;;  %v3660_v25 = vpop.f32.mrb[1].mxu1  ;;  %v3634_v26 = vpop.f32.mrb[2].mxu0 }
 0x1d6   : > { %v3661_v27 = vadd.f32 %v3660_v25, %v3659_v21  ;;  %v3662_v28 = vpop.f32.mrb[2].mxu1  ;;  %v3635_v29 = vpop.f32.mrb[3].mxu0 }
 0x1d7   : > { %v2819_v30 = vadd.f32 %v3633_v24, %v3411_v22  ;;  %v3636_v31 = vadd.f32 %v3635_v29, %v3634_v26  ;;  %v3663_v32 = vpop.f32.mrb[3].mxu1 }
 0x1d8   : > { %v3664_v33 = vadd.f32 %v3663_v32, %v3662_v28 }
 0x1d9   : > { %v2868_v34 = vadd.f32 %v3661_v27, %v2819_v30  ;;  %v2822_v35 = vadd.f32 %v3636_v31, %v3411_v22 }
 0x1db   : > { %v2871_v36 = vadd.f32 %v3664_v33, %v2822_v35  ;;  %v3637_v37 = vpop.f32.mrb[4].mxu0 }
 0x1dc   : > { %v3638_v38 = vpop.f32.mrb[5].mxu0  ;;  %v3665_v44 = vpop.f32.mrb[4].mxu1 }
 0x1dd   : > { %v3639_v39 = vadd.f32 %v3638_v38, %v3637_v37  ;;  %v3640_v40 = vpop.f32.mrb[6].mxu0  ;;  %v3666_v45 = vpop.f32.mrb[5].mxu1 }
 0x1de   : > { %v3641_v41 = vpop.f32.mrb[7].mxu0  ;;  %v3667_v47 = vadd.f32 %v3666_v45, %v3665_v44  ;;  %v3668_v48 = vpop.f32.mrb[6].mxu1 }
 0x1df   : > { %v3642_v42 = vadd.f32 %v3641_v41, %v3640_v40  ;;  %v2827_v43 = vadd.f32 %v3639_v39, %v3411_v22  ;;  %v3669_v49 = vpop.f32.mrb[7].mxu1 }
 0x1e0   : > { %v3670_v51 = vadd.f32 %v3669_v49, %v3668_v48 }
 0x1e1   : > { %v2830_v46 = vadd.f32 %v3642_v42, %v3411_v22  ;;  %v2876_v50 = vadd.f32 %v3667_v47, %v2827_v43 }
 0x1e3   : > { %v2879_v52 = vadd.f32 %v3670_v51, %v2830_v46 }
 0x1f3   : > { %v3687_v53 = vpop.f32.mrb[8].mxu0 }
 0x1f4   : > { %v3715_v54 = vpop.f32.mrb[8].mxu1  ;;  %v3688_v55 = vpop.f32.mrb[9].mxu0 }
 0x1f5   : > { %v3689_v56 = vadd.f32 %v3688_v55, %v3687_v53  ;;  %v3716_v57 = vpop.f32.mrb[9].mxu1  ;;  %v3690_v58 = vpop.f32.mrb[10].mxu0 }
 0x1f6   : > { %v3717_v59 = vadd.f32 %v3716_v57, %v3715_v54  ;;  %v3718_v60 = vpop.f32.mrb[10].mxu1  ;;  %v3691_v61 = vpop.f32.mrb[11].mxu0 }
 0x1f7   : > { %v2917_v62 = vadd.f32 %v3689_v56, %v2868_v34  ;;  %v3692_v63 = vadd.f32 %v3691_v61, %v3690_v58  ;;  %v3719_v0 = vpop.f32.mrb[11].mxu1 }
 0x1f8   : > { %v3720_v1 = vadd.f32 %v3719_v0, %v3718_v60 }
 0x1f9   : > { %v2966_v2 = vadd.f32 %v3717_v59, %v2917_v62  ;;  %v2920_v3 = vadd.f32 %v3692_v63, %v2871_v36 }
 0x1fb   : > { %v2969_v4 = vadd.f32 %v3720_v1, %v2920_v3  ;;  %v3693_v5 = vpop.f32.mrb[12].mxu0 }
 0x1fc   : > { %v3694_v6 = vpop.f32.mrb[13].mxu0  ;;  %v3721_v12 = vpop.f32.mrb[12].mxu1 }
 0x1fd   : > { %v3695_v7 = vadd.f32 %v3694_v6, %v3693_v5  ;;  %v3696_v8 = vpop.f32.mrb[14].mxu0  ;;  %v3722_v14 = vpop.f32.mrb[13].mxu1 }
 0x1fe   : > { %v3697_v9 = vpop.f32.mrb[15].mxu0  ;;  %v3723_v15 = vadd.f32 %v3722_v14, %v3721_v12  ;;  %v3724_v16 = vpop.f32.mrb[14].mxu1 }
 0x1ff   : > { %v2925_v10 = vadd.f32 %v3695_v7, %v2876_v50  ;;  %v3698_v11 = vadd.f32 %v3697_v9, %v3696_v8  ;;  %v3725_v17 = vpop.f32.mrb[15].mxu1 }
 0x200   : > { %v3726_v19 = vadd.f32 %v3725_v17, %v3724_v16 }
 0x201   : > { %v2928_v13 = vadd.f32 %v3698_v11, %v2879_v52  ;;  %v2974_v18 = vadd.f32 %v3723_v15, %v2925_v10 }
 0x203   : > { %v2977_v20 = vadd.f32 %v3726_v19, %v2928_v13 }
 0x213   : > { %v3743_v21 = vpop.f32.mrb[16].mxu0 }
 0x214   : > { %v3744_v22 = vpop.f32.mrb[17].mxu0  ;;  %v3771_v23 = vpop.f32.mrb[16].mxu1 }
 0x215   : > { %v3745_v24 = vadd.f32 %v3744_v22, %v3743_v21  ;;  %v3746_v25 = vpop.f32.mrb[18].mxu0  ;;  %v3772_v26 = vpop.f32.mrb[17].mxu1 }
 0x216   : > { %v3747_v27 = vpop.f32.mrb[19].mxu0  ;;  %v3773_v29 = vadd.f32 %v3772_v26, %v3771_v23  ;;  %v3774_v30 = vpop.f32.mrb[18].mxu1 }
 0x217   : > { %v3015_v28 = vadd.f32 %v3745_v24, %v2966_v2  ;;  %v3748_v31 = vadd.f32 %v3747_v27, %v3746_v25  ;;  %v3775_v32 = vpop.f32.mrb[19].mxu1 }
 0x218   : > { %v3776_v35 = vadd.f32 %v3775_v32, %v3774_v30 }
 0x219   : > { %v3064_v33 = vadd.f32 %v3773_v29, %v3015_v28  ;;  %v3018_v34 = vadd.f32 %v3748_v31, %v2969_v4 }
 0x21b   : > { %v3067_v36 = vadd.f32 %v3776_v35, %v3018_v34  ;;  %v3749_v37 = vpop.f32.mrb[20].mxu0 }
 0x21c   : > { %v3750_v38 = vpop.f32.mrb[21].mxu0  ;;  %v3777_v44 = vpop.f32.mrb[20].mxu1 }
 0x21d   : > { %v3751_v39 = vadd.f32 %v3750_v38, %v3749_v37  ;;  %v3752_v40 = vpop.f32.mrb[22].mxu0  ;;  %v3778_v46 = vpop.f32.mrb[21].mxu1 }
 0x21e   : > { %v3753_v41 = vpop.f32.mrb[23].mxu0  ;;  %v3779_v47 = vadd.f32 %v3778_v46, %v3777_v44  ;;  %v3780_v48 = vpop.f32.mrb[22].mxu1 }
 0x21f   : > { %v3023_v42 = vadd.f32 %v3751_v39, %v2974_v18  ;;  %v3754_v43 = vadd.f32 %v3753_v41, %v3752_v40  ;;  %v3781_v49 = vpop.f32.mrb[23].mxu1 }
 0x220   : > { %v3782_v51 = vadd.f32 %v3781_v49, %v3780_v48 }
 0x221   : > { %v3026_v45 = vadd.f32 %v3754_v43, %v2977_v20  ;;  %v3072_v50 = vadd.f32 %v3779_v47, %v3023_v42 }
 0x223   : > { %v3075_v52 = vadd.f32 %v3782_v51, %v3026_v45 }
 0x233   : > { %v3799_v53 = vpop.f32.mrb[24].mxu0 }
 0x234   : > { %v3827_v54 = vpop.f32.mrb[24].mxu1  ;;  %v3800_v55 = vpop.f32.mrb[25].mxu0 }
 0x235   : > { %v3801_v56 = vadd.f32 %v3800_v55, %v3799_v53  ;;  %v3828_v57 = vpop.f32.mrb[25].mxu1  ;;  %v3802_v58 = vpop.f32.mrb[26].mxu0 }
 0x236   : > { %v3829_v59 = vadd.f32 %v3828_v57, %v3827_v54  ;;  %v3830_v60 = vpop.f32.mrb[26].mxu1  ;;  %v3803_v61 = vpop.f32.mrb[27].mxu0 }
 0x237   : > { %v3113_v62 = vadd.f32 %v3801_v56, %v3064_v33  ;;  %v3804_v63 = vadd.f32 %v3803_v61, %v3802_v58  ;;  %v3831_v0 = vpop.f32.mrb[27].mxu1 }
 0x238   : > { %v3832_v1 = vadd.f32 %v3831_v0, %v3830_v60 }
 0x239   : > { %v3162_v2 = vadd.f32 %v3829_v59, %v3113_v62  ;;  %v3116_v3 = vadd.f32 %v3804_v63, %v3067_v36 }
 0x23b   : > { %v3165_v4 = vadd.f32 %v3832_v1, %v3116_v3  ;;  %v3805_v5 = vpop.f32.mrb[28].mxu0 }
 0x23c   : > { %v3806_v6 = vpop.f32.mrb[29].mxu0  ;;  %v3833_v9 = vpop.f32.mrb[28].mxu1 }
 0x23d   : > { %v3807_v7 = vadd.f32 %v3806_v6, %v3805_v5  ;;  %v3808_v8 = vpop.f32.mrb[30].mxu0  ;;  %v3834_v11 = vpop.f32.mrb[29].mxu1 }
 0x23e   : > { %v3809_v10 = vpop.f32.mrb[31].mxu0  ;;  %v3835_v14 = vadd.f32 %v3834_v11, %v3833_v9  ;;  %v3836_v15 = vpop.f32.mrb[30].mxu1 }
 0x23f   : > { %v3121_v12 = vadd.f32 %v3807_v7, %v3072_v50  ;;  %v3810_v13 = vadd.f32 %v3809_v10, %v3808_v8  ;;  %v3837_v16 = vpop.f32.mrb[31].mxu1 }
 0x240   : > { %v3838_v19 = vadd.f32 %v3837_v16, %v3836_v15 }
 0x241   : > { %v3124_v17 = vadd.f32 %v3810_v13, %v3075_v52  ;;  %v3170_v18 = vadd.f32 %v3835_v14, %v3121_v12 }
 0x243   : > { %v3173_v20 = vadd.f32 %v3838_v19, %v3124_v17 }
 0x253   : > { %v3855_v21 = vpop.f32.mrb[32].mxu0 }
 0x254   : > { %v3861_v22 = vpop.f32.mrb[32].mxu1  ;;  %v3856_v23 = vpop.f32.mrb[33].mxu0 }
 0x255   : > { %v3857_v24 = vadd.f32 %v3856_v23, %v3855_v21  ;;  %v3862_v25 = vpop.f32.mrb[33].mxu1  ;;  %v3858_v26 = vpop.f32.mrb[34].mxu0 }
 0x256   : > { %v3863_v27 = vadd.f32 %v3862_v25, %v3861_v22  ;;  %v3864_v28 = vpop.f32.mrb[34].mxu1  ;;  %v3859_v29 = vpop.f32.mrb[35].mxu0 }
 0x257   : > { %v3211_v30 = vadd.f32 %v3857_v24, %v3162_v2  ;;  %v3860_v31 = vadd.f32 %v3859_v29, %v3858_v26  ;;  %v3865_v32 = vpop.f32.mrb[35].mxu1 }
 0x258   : > { %v3219_v33 = vadd.f32 %v3863_v27, %v3170_v18  ;;  %v3866_v34 = vadd.f32 %v3865_v32, %v3864_v28 }
 0x259   : > { %v3214_v35 = vadd.f32 %v3860_v31, %v3165_v4  ;;  %v3225_v37 = vmax.f32 %v3211_v30, 0.0 }
 0x25a   : > { %v3222_v36 = vadd.f32 %v3866_v34, %v3173_v20  ;;  %v3227_v39 = vmax.f32 %v3219_v33, 0.0  ;;  %3255 = sbr.rel (!%p4218_p6) target bundleno = 618 (0x26a), region = 77 }
 0x25b   : > { %v3226_v38 = vmax.f32 %v3214_v35, 0.0 }
 0x25c   : > { %v3228_v40 = vmax.f32 %v3222_v36, 0.0 }
 0x25d   : > { %v3607_v41 = vpack.c.bf16 %v3226_v38, %v3225_v37 }
 0x25e   : > { %v3612_v42 = vpack.c.bf16 %v3228_v40, %v3227_v39 }
 0x25f   : > { %3608 = vst [vmem:[%s1396_s20] sm:$0xff] %v3607_v41  }
 0x260   : > { %3614 = vst [vmem:[%s1396_s20 + $0x8] sm:$0xff] %v3612_v42  }
 0x266   : > { %v3276_v43 = vld [vmem:[%s1396_s20] sm:$0xf]  ;;  %v3278_v44 = vld [vmem:[%s1396_s20 + $0x4] sm:$0xf] }
 0x267   : > { %v3280_v45 = vld [vmem:[%s1396_s20 + $0x8] sm:$0xf]  ;;  %v3282_v46 = vld [vmem:[%s1396_s20 + $0xc] sm:$0xf]  ;;  %3277 = vst [vmem:[%s3260_s24] sm:$0xf] %v3276_v43 }
 0x268   : > { %3279 = vst [vmem:[%s3260_s24 + $0xc] sm:$0xf] %v3278_v44  ;;  %3281 = vst [vmem:[%s3260_s24 + $0x18] sm:$0xf] %v3280_v45 }
 0x269   : > { %3283 = vst [vmem:[%s3260_s24 + $0x24] sm:$0xf] %v3282_v46 }
 0x26a PF: > { %s13_s16 = sadd.s32 1, %s4161_s16   ;;  %s5103_s12 = smov %s4149_s13 }
 0x26b   : > { %p10_p12 = scmp.ge.s32.totalorder %s13_s16, 5   ;;  %s5104_s13 = smov %s4223_s22 }
 0x26c   : > { %s5105_s14 = smov %s4157_s15  ;;  %s5106_s15 = smov %s5108_s17 }
 0x26d   :  { %12 = sbr.rel (!%p10_p12) target bundleno = 3 (0x3), region = 155 }

// kernel: alexnet_forward.12
= control target key start
LH: loop header
LB: loop body
LE: loop exit
PB: predicated region body
PF: predicated region fallthrough
CT: control target
= control target key end

     0   :  { %s4183_s12 = smov 0   ;;  %s4185_s13 = smov 0   ;;  %s5098_s0 = inlined_call_operand.vmem [shape: bf16[32,2304], index: 0, kind: input, shape index: {}]   ;;  %s5099_s1 = inlined_call_operand.vmem [shape: bf16[2304,256], index: 1, kind: input, shape index: {}]   ;;  %s5100_s2 = inlined_call_operand.vmem [shape: f32[1,256], index: 2, kind: input, shape index: {}]   ;;  %s5101_s3 = inlined_call_operand.vmem [shape: bf16[32,256], index: 3, kind: output, shape index: {}]  }
   0x1   :  { %s4187_s14 = smov 0   ;;  %s4189_s15 = smov 0  }
   0x2   :  { %s4191_s16 = smov 0  }
   0x3 LB: > { %s22_s17 = sadd.s32 1, %s4157_s15  ;;  %s3403_s18 = sadd.s32 4294967295, %s4161_s16   ;;  %s4161_s16 = sphi %s4191_s16, %s13_s16   ;;  %s4157_s15 = sphi %s4189_s15, %s5106_s15   ;;  %s4153_s14 = sphi %s4187_s14, %s5105_s14   ;;  %s4149_s13 = sphi %s4185_s13, %s5104_s13   ;;  %s4145_s12 = sphi %s4183_s12, %s5103_s12  }
   0x4   : > { %p23_p0 = scmp.ge.s32.totalorder %s22_s17, 2  ;;  %p65_p1 = scmp.ne.s32.totalorder %s4149_s13, %s4145_s12 }
   0x5   : > { %p66_p2 = scmp.eq.s32.totalorder %s4161_s16, 0  ;;  %p123_p4 = scmp.eq.s32.totalorder %s3403_s18, 1 }
   0x6   : > { %s5108_s17 = smov (%p23_p0, %s22_s17), 0  ;;  %s58_s20 = sadd.s32 1, %s4149_s13 }
   0x7   : > { %p67_p3 = por %p66_p2, %p65_p1  ;;  %s55_s19 = ssub.s32 %s4157_s15, %s5108_s17 }
   0x8   : > { %p56_p5 = scmp.eq.s32.totalorder %s55_s19, 0  ;;  %p4218_p6 = por %p123_p4, %p65_p1 }
   0x9   : > { %p3407_p7 = scmp.ge.s32.totalorder %s4161_s16, 2 }
   0xa   : > { %s4223_s22 = scalar_select %p56_p5, %s4149_s13, %s58_s20  }
   0xb   : > { %155 = sbr.rel (%p3407_p7) target bundleno = 214 (0xd6), region = 20 }
  0x12   : > { %158 = sbr.rel (!%p67_p3) target bundleno = 214 (0xd6), region = 24  ;;  %s160_s23 = sand.u32 (%p67_p3), 1, %s4149_s13  }
  0x13   : > { %s3408_s24 = sshll.u32 (%p67_p3), %s4157_s15, 2  ;;  %s3883_s25 = smul.u32 (%p67_p3), 1152, %s160_s23 }
  0x14   : > { %s4231_s28 = scalar_lea.vmem (%p67_p3), %s5099_s1, %s3408_s24 }
  0x15   : > { %v180_v0 = vld [vmem:[%s4231_s28] sm:$0xf] (%p67_p3)  ;;  %v182_v1 = vld [vmem:[%s4231_s28 + $0x8] sm:$0xf] (%p67_p3)  ;;  %v184_v2 = vld [vmem:[%s4231_s28 + $0x10] sm:$0xf] (%p67_p3) }
  0x16   : > { %v186_v3 = vld [vmem:[%s4231_s28 + $0x18] sm:$0xf] (%p67_p3)  ;;  %v188_v4 = vld [vmem:[%s4231_s28 + $0x20] sm:$0xf] (%p67_p3)  ;;  %s4238_s29 = scalar_lea.vmem (%p67_p3), [#allocation2], %s3883_s25 }
  0x17   : > { %181 = vst [vmem:[%s4238_s29] sm:$0xf] (%p67_p3), %v180_v0  ;;  %183 = vst [vmem:[%s4238_s29 + $0x4] sm:$0xf] (%p67_p3), %v182_v1  ;;  %v190_v5 = vld [vmem:[%s4231_s28 + $0x28] sm:$0xf] (%p67_p3) }
  0x18   : > { %185 = vst [vmem:[%s4238_s29 + $0x8] sm:$0xf] (%p67_p3), %v184_v2  ;;  %187 = vst [vmem:[%s4238_s29 + $0xc] sm:$0xf] (%p67_p3), %v186_v3  ;;  %v192_v6 = vld [vmem:[%s4231_s28 + $0x30] sm:$0xf] (%p67_p3) }
  0x19   : > { %189 = vst [vmem:[%s4238_s29 + $0x10] sm:$0xf] %v188_v4  ;;  %v194_v7 = vld [vmem:[%s4231_s28 + $0x38] sm:$0xf]  ;;  %191 = vst [vmem:[%s4238_s29 + $0x14] sm:$0xf] %v190_v5 }
  0x1a   : > { %193 = vst [vmem:[%s4238_s29 + $0x18] sm:$0xf] %v192_v6  ;;  %195 = vst [vmem:[%s4238_s29 + $0x1c] sm:$0xf] %v194_v7  ;;  %v196_v8 = vld [vmem:[%s4231_s28 + $0x40] sm:$0xf] }
  0x1b   : > { %v198_v9 = vld [vmem:[%s4231_s28 + $0x48] sm:$0xf]  ;;  %v200_v10 = vld [vmem:[%s4231_s28 + $0x50] sm:$0xf]  ;;  %197 = vst [vmem:[%s4238_s29 + $0x20] sm:$0xf] %v196_v8 }
  0x1c   : > { %199 = vst [vmem:[%s4238_s29 + $0x24] sm:$0xf] %v198_v9  ;;  %201 = vst [vmem:[%s4238_s29 + $0x28] sm:$0xf] %v200_v10  ;;  %v202_v11 = vld [vmem:[%s4231_s28 + $0x58] sm:$0xf] }
  0x1d   : > { %v204_v12 = vld [vmem:[%s4231_s28 + $0x60] sm:$0xf]  ;;  %v206_v13 = vld [vmem:[%s4231_s28 + $0x68] sm:$0xf]  ;;  %203 = vst [vmem:[%s4238_s29 + $0x2c] sm:$0xf] %v202_v11 }
  0x1e   : > { %205 = vst [vmem:[%s4238_s29 + $0x30] sm:$0xf] %v204_v12  ;;  %207 = vst [vmem:[%s4238_s29 + $0x34] sm:$0xf] %v206_v13  ;;  %v208_v14 = vld [vmem:[%s4231_s28 + $0x70] sm:$0xf] }
  0x1f   : > { %v210_v15 = vld [vmem:[%s4231_s28 + $0x78] sm:$0xf]  ;;  %v212_v16 = vld [vmem:[%s4231_s28 + $0x80] sm:$0xf]  ;;  %209 = vst [vmem:[%s4238_s29 + $0x38] sm:$0xf] %v208_v14 }
  0x20   : > { %211 = vst [vmem:[%s4238_s29 + $0x3c] sm:$0xf] %v210_v15  ;;  %213 = vst [vmem:[%s4238_s29 + $0x40] sm:$0xf] %v212_v16  ;;  %v214_v17 = vld [vmem:[%s4231_s28 + $0x88] sm:$0xf] }
  0x21   : > { %v216_v18 = vld [vmem:[%s4231_s28 + $0x90] sm:$0xf]  ;;  %v218_v19 = vld [vmem:[%s4231_s28 + $0x98] sm:$0xf]  ;;  %215 = vst [vmem:[%s4238_s29 + $0x44] sm:$0xf] %v214_v17 }
  0x22   : > { %217 = vst [vmem:[%s4238_s29 + $0x48] sm:$0xf] %v216_v18  ;;  %219 = vst [vmem:[%s4238_s29 + $0x4c] sm:$0xf] %v218_v19  ;;  %v220_v20 = vld [vmem:[%s4231_s28 + $0xa0] sm:$0xf] }
  0x23   : > { %v222_v21 = vld [vmem:[%s4231_s28 + $0xa8] sm:$0xf]  ;;  %v224_v22 = vld [vmem:[%s4231_s28 + $0xb0] sm:$0xf]  ;;  %221 = vst [vmem:[%s4238_s29 + $0x50] sm:$0xf] %v220_v20 }
  0x24   : > { %223 = vst [vmem:[%s4238_s29 + $0x54] sm:$0xf] %v222_v21  ;;  %225 = vst [vmem:[%s4238_s29 + $0x58] sm:$0xf] %v224_v22  ;;  %v226_v23 = vld [vmem:[%s4231_s28 + $0xb8] sm:$0xf] }
  0x25   : > { %v228_v24 = vld [vmem:[%s4231_s28 + $0xc0] sm:$0xf]  ;;  %v230_v25 = vld [vmem:[%s4231_s28 + $0xc8] sm:$0xf]  ;;  %227 = vst [vmem:[%s4238_s29 + $0x5c] sm:$0xf] %v226_v23 }
  0x26   : > { %229 = vst [vmem:[%s4238_s29 + $0x60] sm:$0xf] %v228_v24  ;;  %231 = vst [vmem:[%s4238_s29 + $0x64] sm:$0xf] %v230_v25  ;;  %v232_v26 = vld [vmem:[%s4231_s28 + $0xd0] sm:$0xf] }
  0x27   : > { %v234_v27 = vld [vmem:[%s4231_s28 + $0xd8] sm:$0xf]  ;;  %v236_v28 = vld [vmem:[%s4231_s28 + $0xe0] sm:$0xf]  ;;  %233 = vst [vmem:[%s4238_s29 + $0x68] sm:$0xf] %v232_v26 }
  0x28   : > { %235 = vst [vmem:[%s4238_s29 + $0x6c] sm:$0xf] %v234_v27  ;;  %237 = vst [vmem:[%s4238_s29 + $0x70] sm:$0xf] %v236_v28  ;;  %v238_v29 = vld [vmem:[%s4231_s28 + $0xe8] sm:$0xf] }
  0x29   : > { %v240_v30 = vld [vmem:[%s4231_s28 + $0xf0] sm:$0xf]  ;;  %v242_v31 = vld [vmem:[%s4231_s28 + $0xf8] sm:$0xf]  ;;  %239 = vst [vmem:[%s4238_s29 + $0x74] sm:$0xf] %v238_v29 }
  0x2a   : > { %241 = vst [vmem:[%s4238_s29 + $0x78] sm:$0xf] %v240_v30  ;;  %243 = vst [vmem:[%s4238_s29 + $0x7c] sm:$0xf] %v242_v31  ;;  %v244_v32 = vld [vmem:[%s4231_s28 + $0x100] sm:$0xf] }
  0x2b   : > { %v246_v33 = vld [vmem:[%s4231_s28 + $0x108] sm:$0xf]  ;;  %v248_v34 = vld [vmem:[%s4231_s28 + $0x110] sm:$0xf]  ;;  %245 = vst [vmem:[%s4238_s29 + $0x80] sm:$0xf] %v244_v32 }
  0x2c   : > { %247 = vst [vmem:[%s4238_s29 + $0x84] sm:$0xf] %v246_v33  ;;  %249 = vst [vmem:[%s4238_s29 + $0x88] sm:$0xf] %v248_v34  ;;  %v250_v35 = vld [vmem:[%s4231_s28 + $0x118] sm:$0xf] }
  0x2d   : > { %v252_v36 = vld [vmem:[%s4231_s28 + $0x120] sm:$0xf]  ;;  %v254_v37 = vld [vmem:[%s4231_s28 + $0x128] sm:$0xf]  ;;  %251 = vst [vmem:[%s4238_s29 + $0x8c] sm:$0xf] %v250_v35 }
  0x2e   : > { %253 = vst [vmem:[%s4238_s29 + $0x90] sm:$0xf] %v252_v36  ;;  %255 = vst [vmem:[%s4238_s29 + $0x94] sm:$0xf] %v254_v37  ;;  %v256_v38 = vld [vmem:[%s4231_s28 + $0x130] sm:$0xf] }
  0x2f   : > { %v258_v39 = vld [vmem:[%s4231_s28 + $0x138] sm:$0xf]  ;;  %v260_v40 = vld [vmem:[%s4231_s28 + $0x140] sm:$0xf]  ;;  %257 = vst [vmem:[%s4238_s29 + $0x98] sm:$0xf] %v256_v38 }
  0x30   : > { %259 = vst [vmem:[%s4238_s29 + $0x9c] sm:$0xf] %v258_v39  ;;  %261 = vst [vmem:[%s4238_s29 + $0xa0] sm:$0xf] %v260_v40  ;;  %v262_v41 = vld [vmem:[%s4231_s28 + $0x148] sm:$0xf] }
  0x31   : > { %v264_v42 = vld [vmem:[%s4231_s28 + $0x150] sm:$0xf]  ;;  %v266_v43 = vld [vmem:[%s4231_s28 + $0x158] sm:$0xf]  ;;  %263 = vst [vmem:[%s4238_s29 + $0xa4] sm:$0xf] %v262_v41 }
  0x32   : > { %265 = vst [vmem:[%s4238_s29 + $0xa8] sm:$0xf] %v264_v42  ;;  %267 = vst [vmem:[%s4238_s29 + $0xac] sm:$0xf] %v266_v43  ;;  %v268_v44 = vld [vmem:[%s4231_s28 + $0x160] sm:$0xf] }
  0x33   : > { %v270_v45 = vld [vmem:[%s4231_s28 + $0x168] sm:$0xf]  ;;  %v272_v46 = vld [vmem:[%s4231_s28 + $0x170] sm:$0xf]  ;;  %269 = vst [vmem:[%s4238_s29 + $0xb0] sm:$0xf] %v268_v44 }
  0x34   : > { %271 = vst [vmem:[%s4238_s29 + $0xb4] sm:$0xf] %v270_v45  ;;  %273 = vst [vmem:[%s4238_s29 + $0xb8] sm:$0xf] %v272_v46  ;;  %v274_v47 = vld [vmem:[%s4231_s28 + $0x178] sm:$0xf] }
  0x35   : > { %v276_v48 = vld [vmem:[%s4231_s28 + $0x180] sm:$0xf]  ;;  %v278_v49 = vld [vmem:[%s4231_s28 + $0x188] sm:$0xf]  ;;  %275 = vst [vmem:[%s4238_s29 + $0xbc] sm:$0xf] %v274_v47 }
  0x36   : > { %277 = vst [vmem:[%s4238_s29 + $0xc0] sm:$0xf] %v276_v48  ;;  %279 = vst [vmem:[%s4238_s29 + $0xc4] sm:$0xf] %v278_v49  ;;  %v280_v50 = vld [vmem:[%s4231_s28 + $0x190] sm:$0xf] }
  0x37   : > { %v282_v51 = vld [vmem:[%s4231_s28 + $0x198] sm:$0xf]  ;;  %v284_v52 = vld [vmem:[%s4231_s28 + $0x1a0] sm:$0xf]  ;;  %281 = vst [vmem:[%s4238_s29 + $0xc8] sm:$0xf] %v280_v50 }
  0x38   : > { %283 = vst [vmem:[%s4238_s29 + $0xcc] sm:$0xf] %v282_v51  ;;  %285 = vst [vmem:[%s4238_s29 + $0xd0] sm:$0xf] %v284_v52  ;;  %v286_v53 = vld [vmem:[%s4231_s28 + $0x1a8] sm:$0xf] }
  0x39   : > { %v288_v54 = vld [vmem:[%s4231_s28 + $0x1b0] sm:$0xf]  ;;  %v290_v55 = vld [vmem:[%s4231_s28 + $0x1b8] sm:$0xf]  ;;  %287 = vst [vmem:[%s4238_s29 + $0xd4] sm:$0xf] %v286_v53 }
  0x3a   : > { %289 = vst [vmem:[%s4238_s29 + $0xd8] sm:$0xf] %v288_v54  ;;  %291 = vst [vmem:[%s4238_s29 + $0xdc] sm:$0xf] %v290_v55  ;;  %v292_v56 = vld [vmem:[%s4231_s28 + $0x1c0] sm:$0xf] }
  0x3b   : > { %v294_v57 = vld [vmem:[%s4231_s28 + $0x1c8] sm:$0xf]  ;;  %v296_v58 = vld [vmem:[%s4231_s28 + $0x1d0] sm:$0xf]  ;;  %293 = vst [vmem:[%s4238_s29 + $0xe0] sm:$0xf] %v292_v56 }
  0x3c   : > { %295 = vst [vmem:[%s4238_s29 + $0xe4] sm:$0xf] %v294_v57  ;;  %297 = vst [vmem:[%s4238_s29 + $0xe8] sm:$0xf] %v296_v58  ;;  %v298_v59 = vld [vmem:[%s4231_s28 + $0x1d8] sm:$0xf] }
  0x3d   : > { %v300_v60 = vld [vmem:[%s4231_s28 + $0x1e0] sm:$0xf]  ;;  %v302_v61 = vld [vmem:[%s4231_s28 + $0x1e8] sm:$0xf]  ;;  %299 = vst [vmem:[%s4238_s29 + $0xec] sm:$0xf] %v298_v59 }
  0x3e   : > { %301 = vst [vmem:[%s4238_s29 + $0xf0] sm:$0xf] %v300_v60  ;;  %303 = vst [vmem:[%s4238_s29 + $0xf4] sm:$0xf] %v302_v61  ;;  %v304_v62 = vld [vmem:[%s4231_s28 + $0x1f0] sm:$0xf] }
  0x3f   : > { %v306_v63 = vld [vmem:[%s4231_s28 + $0x1f8] sm:$0xf]  ;;  %v308_v0 = vld [vmem:[%s4231_s28 + $0x200] sm:$0xf]  ;;  %305 = vst [vmem:[%s4238_s29 + $0xf8] sm:$0xf] %v304_v62 }
  0x40   : > { %307 = vst [vmem:[%s4238_s29 + $0xfc] sm:$0xf] %v306_v63  ;;  %309 = vst [vmem:[%s4238_s29 + $0x100] sm:$0xf] %v308_v0  ;;  %v310_v1 = vld [vmem:[%s4231_s28 + $0x208] sm:$0xf] }
  0x41   : > { %v312_v2 = vld [vmem:[%s4231_s28 + $0x210] sm:$0xf]  ;;  %v314_v3 = vld [vmem:[%s4231_s28 + $0x218] sm:$0xf]  ;;  %311 = vst [vmem:[%s4238_s29 + $0x104] sm:$0xf] %v310_v1 }
  0x42   : > { %313 = vst [vmem:[%s4238_s29 + $0x108] sm:$0xf] %v312_v2  ;;  %315 = vst [vmem:[%s4238_s29 + $0x10c] sm:$0xf] %v314_v3  ;;  %v316_v4 = vld [vmem:[%s4231_s28 + $0x220] sm:$0xf] }
  0x43   : > { %v318_v5 = vld [vmem:[%s4231_s28 + $0x228] sm:$0xf]  ;;  %v320_v6 = vld [vmem:[%s4231_s28 + $0x230] sm:$0xf]  ;;  %317 = vst [vmem:[%s4238_s29 + $0x110] sm:$0xf] %v316_v4 }
  0x44   : > { %319 = vst [vmem:[%s4238_s29 + $0x114] sm:$0xf] %v318_v5  ;;  %321 = vst [vmem:[%s4238_s29 + $0x118] sm:$0xf] %v320_v6  ;;  %v322_v7 = vld [vmem:[%s4231_s28 + $0x238] sm:$0xf] }
  0x45   : > { %v324_v8 = vld [vmem:[%s4231_s28 + $0x240] sm:$0xf]  ;;  %v326_v9 = vld [vmem:[%s4231_s28 + $0x248] sm:$0xf]  ;;  %323 = vst [vmem:[%s4238_s29 + $0x11c] sm:$0xf] %v322_v7 }
  0x46   : > { %325 = vst [vmem:[%s4238_s29 + $0x120] sm:$0xf] %v324_v8  ;;  %327 = vst [vmem:[%s4238_s29 + $0x124] sm:$0xf] %v326_v9  ;;  %v328_v10 = vld [vmem:[%s4231_s28 + $0x250] sm:$0xf] }
  0x47   : > { %v330_v11 = vld [vmem:[%s4231_s28 + $0x258] sm:$0xf]  ;;  %v332_v12 = vld [vmem:[%s4231_s28 + $0x260] sm:$0xf]  ;;  %329 = vst [vmem:[%s4238_s29 + $0x128] sm:$0xf] %v328_v10 }
  0x48   : > { %331 = vst [vmem:[%s4238_s29 + $0x12c] sm:$0xf] %v330_v11  ;;  %333 = vst [vmem:[%s4238_s29 + $0x130] sm:$0xf] %v332_v12  ;;  %v334_v13 = vld [vmem:[%s4231_s28 + $0x268] sm:$0xf] }
  0x49   : > { %v336_v14 = vld [vmem:[%s4231_s28 + $0x270] sm:$0xf]  ;;  %v338_v15 = vld [vmem:[%s4231_s28 + $0x278] sm:$0xf]  ;;  %335 = vst [vmem:[%s4238_s29 + $0x134] sm:$0xf] %v334_v13 }
  0x4a   : > { %337 = vst [vmem:[%s4238_s29 + $0x138] sm:$0xf] %v336_v14  ;;  %339 = vst [vmem:[%s4238_s29 + $0x13c] sm:$0xf] %v338_v15  ;;  %v340_v16 = vld [vmem:[%s4231_s28 + $0x280] sm:$0xf] }
  0x4b   : > { %v342_v17 = vld [vmem:[%s4231_s28 + $0x288] sm:$0xf]  ;;  %v344_v18 = vld [vmem:[%s4231_s28 + $0x290] sm:$0xf]  ;;  %341 = vst [vmem:[%s4238_s29 + $0x140] sm:$0xf] %v340_v16 }
  0x4c   : > { %343 = vst [vmem:[%s4238_s29 + $0x144] sm:$0xf] %v342_v17  ;;  %345 = vst [vmem:[%s4238_s29 + $0x148] sm:$0xf] %v344_v18  ;;  %v346_v19 = vld [vmem:[%s4231_s28 + $0x298] sm:$0xf] }
  0x4d   : > { %v348_v20 = vld [vmem:[%s4231_s28 + $0x2a0] sm:$0xf]  ;;  %v350_v21 = vld [vmem:[%s4231_s28 + $0x2a8] sm:$0xf]  ;;  %347 = vst [vmem:[%s4238_s29 + $0x14c] sm:$0xf] %v346_v19 }
  0x4e   : > { %349 = vst [vmem:[%s4238_s29 + $0x150] sm:$0xf] %v348_v20  ;;  %351 = vst [vmem:[%s4238_s29 + $0x154] sm:$0xf] %v350_v21  ;;  %v352_v22 = vld [vmem:[%s4231_s28 + $0x2b0] sm:$0xf] }
  0x4f   : > { %v354_v23 = vld [vmem:[%s4231_s28 + $0x2b8] sm:$0xf]  ;;  %v356_v24 = vld [vmem:[%s4231_s28 + $0x2c0] sm:$0xf]  ;;  %353 = vst [vmem:[%s4238_s29 + $0x158] sm:$0xf] %v352_v22 }
  0x50   : > { %355 = vst [vmem:[%s4238_s29 + $0x15c] sm:$0xf] %v354_v23  ;;  %357 = vst [vmem:[%s4238_s29 + $0x160] sm:$0xf] %v356_v24  ;;  %v358_v25 = vld [vmem:[%s4231_s28 + $0x2c8] sm:$0xf] }
  0x51   : > { %v360_v26 = vld [vmem:[%s4231_s28 + $0x2d0] sm:$0xf]  ;;  %v362_v27 = vld [vmem:[%s4231_s28 + $0x2d8] sm:$0xf]  ;;  %359 = vst [vmem:[%s4238_s29 + $0x164] sm:$0xf] %v358_v25 }
  0x52   : > { %361 = vst [vmem:[%s4238_s29 + $0x168] sm:$0xf] %v360_v26  ;;  %363 = vst [vmem:[%s4238_s29 + $0x16c] sm:$0xf] %v362_v27  ;;  %v364_v28 = vld [vmem:[%s4231_s28 + $0x2e0] sm:$0xf] }
  0x53   : > { %v366_v29 = vld [vmem:[%s4231_s28 + $0x2e8] sm:$0xf]  ;;  %v368_v30 = vld [vmem:[%s4231_s28 + $0x2f0] sm:$0xf]  ;;  %365 = vst [vmem:[%s4238_s29 + $0x170] sm:$0xf] %v364_v28 }
  0x54   : > { %367 = vst [vmem:[%s4238_s29 + $0x174] sm:$0xf] %v366_v29  ;;  %369 = vst [vmem:[%s4238_s29 + $0x178] sm:$0xf] %v368_v30  ;;  %v370_v31 = vld [vmem:[%s4231_s28 + $0x2f8] sm:$0xf] }
  0x55   : > { %v372_v32 = vld [vmem:[%s4231_s28 + $0x300] sm:$0xf]  ;;  %v374_v33 = vld [vmem:[%s4231_s28 + $0x308] sm:$0xf]  ;;  %371 = vst [vmem:[%s4238_s29 + $0x17c] sm:$0xf] %v370_v31 }
  0x56   : > { %373 = vst [vmem:[%s4238_s29 + $0x180] sm:$0xf] %v372_v32  ;;  %375 = vst [vmem:[%s4238_s29 + $0x184] sm:$0xf] %v374_v33  ;;  %v376_v34 = vld [vmem:[%s4231_s28 + $0x310] sm:$0xf] }
  0x57   : > { %v378_v35 = vld [vmem:[%s4231_s28 + $0x318] sm:$0xf]  ;;  %v380_v36 = vld [vmem:[%s4231_s28 + $0x320] sm:$0xf]  ;;  %377 = vst [vmem:[%s4238_s29 + $0x188] sm:$0xf] %v376_v34 }
  0x58   : > { %379 = vst [vmem:[%s4238_s29 + $0x18c] sm:$0xf] %v378_v35  ;;  %381 = vst [vmem:[%s4238_s29 + $0x190] sm:$0xf] %v380_v36  ;;  %v382_v37 = vld [vmem:[%s4231_s28 + $0x328] sm:$0xf] }
  0x59   : > { %v384_v38 = vld [vmem:[%s4231_s28 + $0x330] sm:$0xf]  ;;  %v386_v39 = vld [vmem:[%s4231_s28 + $0x338] sm:$0xf]  ;;  %383 = vst [vmem:[%s4238_s29 + $0x194] sm:$0xf] %v382_v37 }
  0x5a   : > { %385 = vst [vmem:[%s4238_s29 + $0x198] sm:$0xf] %v384_v38  ;;  %387 = vst [vmem:[%s4238_s29 + $0x19c] sm:$0xf] %v386_v39  ;;  %v388_v40 = vld [vmem:[%s4231_s28 + $0x340] sm:$0xf] }
  0x5b   : > { %v390_v41 = vld [vmem:[%s4231_s28 + $0x348] sm:$0xf]  ;;  %v392_v42 = vld [vmem:[%s4231_s28 + $0x350] sm:$0xf]  ;;  %389 = vst [vmem:[%s4238_s29 + $0x1a0] sm:$0xf] %v388_v40 }
  0x5c   : > { %391 = vst [vmem:[%s4238_s29 + $0x1a4] sm:$0xf] %v390_v41  ;;  %393 = vst [vmem:[%s4238_s29 + $0x1a8] sm:$0xf] %v392_v42  ;;  %v394_v43 = vld [vmem:[%s4231_s28 + $0x358] sm:$0xf] }
  0x5d   : > { %v396_v44 = vld [vmem:[%s4231_s28 + $0x360] sm:$0xf]  ;;  %v398_v45 = vld [vmem:[%s4231_s28 + $0x368] sm:$0xf]  ;;  %395 = vst [vmem:[%s4238_s29 + $0x1ac] sm:$0xf] %v394_v43 }
  0x5e   : > { %397 = vst [vmem:[%s4238_s29 + $0x1b0] sm:$0xf] %v396_v44  ;;  %399 = vst [vmem:[%s4238_s29 + $0x1b4] sm:$0xf] %v398_v45  ;;  %v400_v46 = vld [vmem:[%s4231_s28 + $0x370] sm:$0xf] }
  0x5f   : > { %v402_v47 = vld [vmem:[%s4231_s28 + $0x378] sm:$0xf]  ;;  %v404_v48 = vld [vmem:[%s4231_s28 + $0x380] sm:$0xf]  ;;  %401 = vst [vmem:[%s4238_s29 + $0x1b8] sm:$0xf] %v400_v46 }
  0x60   : > { %403 = vst [vmem:[%s4238_s29 + $0x1bc] sm:$0xf] %v402_v47  ;;  %405 = vst [vmem:[%s4238_s29 + $0x1c0] sm:$0xf] %v404_v48  ;;  %v406_v49 = vld [vmem:[%s4231_s28 + $0x388] sm:$0xf] }
  0x61   : > { %v408_v50 = vld [vmem:[%s4231_s28 + $0x390] sm:$0xf]  ;;  %v410_v51 = vld [vmem:[%s4231_s28 + $0x398] sm:$0xf]  ;;  %407 = vst [vmem:[%s4238_s29 + $0x1c4] sm:$0xf] %v406_v49 }
  0x62   : > { %409 = vst [vmem:[%s4238_s29 + $0x1c8] sm:$0xf] %v408_v50  ;;  %411 = vst [vmem:[%s4238_s29 + $0x1cc] sm:$0xf] %v410_v51  ;;  %v412_v52 = vld [vmem:[%s4231_s28 + $0x3a0] sm:$0xf] }
  0x63   : > { %v414_v53 = vld [vmem:[%s4231_s28 + $0x3a8] sm:$0xf]  ;;  %v416_v54 = vld [vmem:[%s4231_s28 + $0x3b0] sm:$0xf]  ;;  %413 = vst [vmem:[%s4238_s29 + $0x1d0] sm:$0xf] %v412_v52 }
  0x64   : > { %415 = vst [vmem:[%s4238_s29 + $0x1d4] sm:$0xf] %v414_v53  ;;  %417 = vst [vmem:[%s4238_s29 + $0x1d8] sm:$0xf] %v416_v54  ;;  %v418_v55 = vld [vmem:[%s4231_s28 + $0x3b8] sm:$0xf] }
  0x65   : > { %v420_v56 = vld [vmem:[%s4231_s28 + $0x3c0] sm:$0xf]  ;;  %v422_v57 = vld [vmem:[%s4231_s28 + $0x3c8] sm:$0xf]  ;;  %419 = vst [vmem:[%s4238_s29 + $0x1dc] sm:$0xf] %v418_v55 }
  0x66   : > { %421 = vst [vmem:[%s4238_s29 + $0x1e0] sm:$0xf] %v420_v56  ;;  %423 = vst [vmem:[%s4238_s29 + $0x1e4] sm:$0xf] %v422_v57  ;;  %v424_v58 = vld [vmem:[%s4231_s28 + $0x3d0] sm:$0xf] }
  0x67   : > { %v426_v59 = vld [vmem:[%s4231_s28 + $0x3d8] sm:$0xf]  ;;  %v428_v60 = vld [vmem:[%s4231_s28 + $0x3e0] sm:$0xf]  ;;  %425 = vst [vmem:[%s4238_s29 + $0x1e8] sm:$0xf] %v424_v58 }
  0x68   : > { %427 = vst [vmem:[%s4238_s29 + $0x1ec] sm:$0xf] %v426_v59  ;;  %429 = vst [vmem:[%s4238_s29 + $0x1f0] sm:$0xf] %v428_v60  ;;  %v430_v61 = vld [vmem:[%s4231_s28 + $0x3e8] sm:$0xf] }
  0x69   : > { %v432_v62 = vld [vmem:[%s4231_s28 + $0x3f0] sm:$0xf]  ;;  %v434_v63 = vld [vmem:[%s4231_s28 + $0x3f8] sm:$0xf]  ;;  %431 = vst [vmem:[%s4238_s29 + $0x1f4] sm:$0xf] %v430_v61 }
  0x6a   : > { %433 = vst [vmem:[%s4238_s29 + $0x1f8] sm:$0xf] %v432_v62  ;;  %435 = vst [vmem:[%s4238_s29 + $0x1fc] sm:$0xf] %v434_v63  ;;  %v436_v0 = vld [vmem:[%s4231_s28 + $0x400] sm:$0xf] }
  0x6b   : > { %v438_v1 = vld [vmem:[%s4231_s28 + $0x408] sm:$0xf]  ;;  %v440_v2 = vld [vmem:[%s4231_s28 + $0x410] sm:$0xf]  ;;  %437 = vst [vmem:[%s4238_s29 + $0x200] sm:$0xf] %v436_v0 }
  0x6c   : > { %439 = vst [vmem:[%s4238_s29 + $0x204] sm:$0xf] %v438_v1  ;;  %441 = vst [vmem:[%s4238_s29 + $0x208] sm:$0xf] %v440_v2  ;;  %v442_v3 = vld [vmem:[%s4231_s28 + $0x418] sm:$0xf] }
  0x6d   : > { %v444_v4 = vld [vmem:[%s4231_s28 + $0x420] sm:$0xf]  ;;  %v446_v5 = vld [vmem:[%s4231_s28 + $0x428] sm:$0xf]  ;;  %443 = vst [vmem:[%s4238_s29 + $0x20c] sm:$0xf] %v442_v3 }
  0x6e   : > { %445 = vst [vmem:[%s4238_s29 + $0x210] sm:$0xf] %v444_v4  ;;  %447 = vst [vmem:[%s4238_s29 + $0x214] sm:$0xf] %v446_v5  ;;  %v448_v6 = vld [vmem:[%s4231_s28 + $0x430] sm:$0xf] }
  0x6f   : > { %v450_v7 = vld [vmem:[%s4231_s28 + $0x438] sm:$0xf]  ;;  %v452_v8 = vld [vmem:[%s4231_s28 + $0x440] sm:$0xf]  ;;  %449 = vst [vmem:[%s4238_s29 + $0x218] sm:$0xf] %v448_v6 }
  0x70   : > { %451 = vst [vmem:[%s4238_s29 + $0x21c] sm:$0xf] %v450_v7  ;;  %453 = vst [vmem:[%s4238_s29 + $0x220] sm:$0xf] %v452_v8  ;;  %v454_v9 = vld [vmem:[%s4231_s28 + $0x448] sm:$0xf] }
  0x71   : > { %v456_v10 = vld [vmem:[%s4231_s28 + $0x450] sm:$0xf]  ;;  %v458_v11 = vld [vmem:[%s4231_s28 + $0x458] sm:$0xf]  ;;  %455 = vst [vmem:[%s4238_s29 + $0x224] sm:$0xf] %v454_v9 }
  0x72   : > { %457 = vst [vmem:[%s4238_s29 + $0x228] sm:$0xf] %v456_v10  ;;  %459 = vst [vmem:[%s4238_s29 + $0x22c] sm:$0xf] %v458_v11  ;;  %v460_v12 = vld [vmem:[%s4231_s28 + $0x460] sm:$0xf] }
  0x73   : > { %v462_v13 = vld [vmem:[%s4231_s28 + $0x468] sm:$0xf]  ;;  %v464_v14 = vld [vmem:[%s4231_s28 + $0x470] sm:$0xf]  ;;  %461 = vst [vmem:[%s4238_s29 + $0x230] sm:$0xf] %v460_v12 }
  0x74   : > { %463 = vst [vmem:[%s4238_s29 + $0x234] sm:$0xf] %v462_v13  ;;  %465 = vst [vmem:[%s4238_s29 + $0x238] sm:$0xf] %v464_v14  ;;  %v466_v15 = vld [vmem:[%s4231_s28 + $0x478] sm:$0xf] }
  0x75   : > { %v468_v16 = vld [vmem:[%s4231_s28 + $0x480] sm:$0xf]  ;;  %v470_v17 = vld [vmem:[%s4231_s28 + $0x488] sm:$0xf]  ;;  %467 = vst [vmem:[%s4238_s29 + $0x23c] sm:$0xf] %v466_v15 }
  0x76   : > { %469 = vst [vmem:[%s4238_s29 + $0x240] sm:$0xf] %v468_v16  ;;  %471 = vst [vmem:[%s4238_s29 + $0x244] sm:$0xf] %v470_v17  ;;  %v472_v18 = vld [vmem:[%s4231_s28 + $0x490] sm:$0xf] }
  0x77   : > { %v474_v19 = vld [vmem:[%s4231_s28 + $0x498] sm:$0xf]  ;;  %v476_v20 = vld [vmem:[%s4231_s28 + $0x4a0] sm:$0xf]  ;;  %473 = vst [vmem:[%s4238_s29 + $0x248] sm:$0xf] %v472_v18 }
  0x78   : > { %475 = vst [vmem:[%s4238_s29 + $0x24c] sm:$0xf] %v474_v19  ;;  %477 = vst [vmem:[%s4238_s29 + $0x250] sm:$0xf] %v476_v20  ;;  %v478_v21 = vld [vmem:[%s4231_s28 + $0x4a8] sm:$0xf] }
  0x79   : > { %v480_v22 = vld [vmem:[%s4231_s28 + $0x4b0] sm:$0xf]  ;;  %v482_v23 = vld [vmem:[%s4231_s28 + $0x4b8] sm:$0xf]  ;;  %479 = vst [vmem:[%s4238_s29 + $0x254] sm:$0xf] %v478_v21 }
  0x7a   : > { %481 = vst [vmem:[%s4238_s29 + $0x258] sm:$0xf] %v480_v22  ;;  %483 = vst [vmem:[%s4238_s29 + $0x25c] sm:$0xf] %v482_v23  ;;  %v484_v24 = vld [vmem:[%s4231_s28 + $0x4c0] sm:$0xf] }
  0x7b   : > { %v486_v25 = vld [vmem:[%s4231_s28 + $0x4c8] sm:$0xf]  ;;  %v488_v26 = vld [vmem:[%s4231_s28 + $0x4d0] sm:$0xf]  ;;  %485 = vst [vmem:[%s4238_s29 + $0x260] sm:$0xf] %v484_v24 }
  0x7c   : > { %487 = vst [vmem:[%s4238_s29 + $0x264] sm:$0xf] %v486_v25  ;;  %489 = vst [vmem:[%s4238_s29 + $0x268] sm:$0xf] %v488_v26  ;;  %v490_v27 = vld [vmem:[%s4231_s28 + $0x4d8] sm:$0xf] }
  0x7d   : > { %v492_v28 = vld [vmem:[%s4231_s28 + $0x4e0] sm:$0xf]  ;;  %v494_v29 = vld [vmem:[%s4231_s28 + $0x4e8] sm:$0xf]  ;;  %491 = vst [vmem:[%s4238_s29 + $0x26c] sm:$0xf] %v490_v27 }
  0x7e   : > { %493 = vst [vmem:[%s4238_s29 + $0x270] sm:$0xf] %v492_v28  ;;  %495 = vst [vmem:[%s4238_s29 + $0x274] sm:$0xf] %v494_v29  ;;  %v496_v30 = vld [vmem:[%s4231_s28 + $0x4f0] sm:$0xf] }
  0x7f   : > { %v498_v31 = vld [vmem:[%s4231_s28 + $0x4f8] sm:$0xf]  ;;  %v500_v32 = vld [vmem:[%s4231_s28 + $0x500] sm:$0xf]  ;;  %497 = vst [vmem:[%s4238_s29 + $0x278] sm:$0xf] %v496_v30 }
  0x80   : > { %499 = vst [vmem:[%s4238_s29 + $0x27c] sm:$0xf] %v498_v31  ;;  %501 = vst [vmem:[%s4238_s29 + $0x280] sm:$0xf] %v500_v32  ;;  %v502_v33 = vld [vmem:[%s4231_s28 + $0x508] sm:$0xf] }
  0x81   : > { %v504_v34 = vld [vmem:[%s4231_s28 + $0x510] sm:$0xf]  ;;  %v506_v35 = vld [vmem:[%s4231_s28 + $0x518] sm:$0xf]  ;;  %503 = vst [vmem:[%s4238_s29 + $0x284] sm:$0xf] %v502_v33 }
  0x82   : > { %505 = vst [vmem:[%s4238_s29 + $0x288] sm:$0xf] %v504_v34  ;;  %507 = vst [vmem:[%s4238_s29 + $0x28c] sm:$0xf] %v506_v35  ;;  %v508_v36 = vld [vmem:[%s4231_s28 + $0x520] sm:$0xf] }
  0x83   : > { %v510_v37 = vld [vmem:[%s4231_s28 + $0x528] sm:$0xf]  ;;  %v512_v38 = vld [vmem:[%s4231_s28 + $0x530] sm:$0xf]  ;;  %509 = vst [vmem:[%s4238_s29 + $0x290] sm:$0xf] %v508_v36 }
  0x84   : > { %511 = vst [vmem:[%s4238_s29 + $0x294] sm:$0xf] %v510_v37  ;;  %513 = vst [vmem:[%s4238_s29 + $0x298] sm:$0xf] %v512_v38  ;;  %v514_v39 = vld [vmem:[%s4231_s28 + $0x538] sm:$0xf] }
  0x85   : > { %v516_v40 = vld [vmem:[%s4231_s28 + $0x540] sm:$0xf]  ;;  %v518_v41 = vld [vmem:[%s4231_s28 + $0x548] sm:$0xf]  ;;  %515 = vst [vmem:[%s4238_s29 + $0x29c] sm:$0xf] %v514_v39 }
  0x86   : > { %517 = vst [vmem:[%s4238_s29 + $0x2a0] sm:$0xf] %v516_v40  ;;  %519 = vst [vmem:[%s4238_s29 + $0x2a4] sm:$0xf] %v518_v41  ;;  %v520_v42 = vld [vmem:[%s4231_s28 + $0x550] sm:$0xf] }
  0x87   : > { %v522_v43 = vld [vmem:[%s4231_s28 + $0x558] sm:$0xf]  ;;  %v524_v44 = vld [vmem:[%s4231_s28 + $0x560] sm:$0xf]  ;;  %521 = vst [vmem:[%s4238_s29 + $0x2a8] sm:$0xf] %v520_v42 }
  0x88   : > { %523 = vst [vmem:[%s4238_s29 + $0x2ac] sm:$0xf] %v522_v43  ;;  %525 = vst [vmem:[%s4238_s29 + $0x2b0] sm:$0xf] %v524_v44  ;;  %v526_v45 = vld [vmem:[%s4231_s28 + $0x568] sm:$0xf] }
  0x89   : > { %v528_v46 = vld [vmem:[%s4231_s28 + $0x570] sm:$0xf]  ;;  %v530_v47 = vld [vmem:[%s4231_s28 + $0x578] sm:$0xf]  ;;  %527 = vst [vmem:[%s4238_s29 + $0x2b4] sm:$0xf] %v526_v45 }
  0x8a   : > { %529 = vst [vmem:[%s4238_s29 + $0x2b8] sm:$0xf] %v528_v46  ;;  %531 = vst [vmem:[%s4238_s29 + $0x2bc] sm:$0xf] %v530_v47  ;;  %v532_v48 = vld [vmem:[%s4231_s28 + $0x580] sm:$0xf] }
  0x8b   : > { %v534_v49 = vld [vmem:[%s4231_s28 + $0x588] sm:$0xf]  ;;  %v536_v50 = vld [vmem:[%s4231_s28 + $0x590] sm:$0xf]  ;;  %533 = vst [vmem:[%s4238_s29 + $0x2c0] sm:$0xf] %v532_v48 }
  0x8c   : > { %535 = vst [vmem:[%s4238_s29 + $0x2c4] sm:$0xf] %v534_v49  ;;  %537 = vst [vmem:[%s4238_s29 + $0x2c8] sm:$0xf] %v536_v50  ;;  %v538_v51 = vld [vmem:[%s4231_s28 + $0x598] sm:$0xf] }
  0x8d   : > { %v540_v52 = vld [vmem:[%s4231_s28 + $0x5a0] sm:$0xf]  ;;  %v542_v53 = vld [vmem:[%s4231_s28 + $0x5a8] sm:$0xf]  ;;  %539 = vst [vmem:[%s4238_s29 + $0x2cc] sm:$0xf] %v538_v51 }
  0x8e   : > { %541 = vst [vmem:[%s4238_s29 + $0x2d0] sm:$0xf] %v540_v52  ;;  %543 = vst [vmem:[%s4238_s29 + $0x2d4] sm:$0xf] %v542_v53  ;;  %v544_v54 = vld [vmem:[%s4231_s28 + $0x5b0] sm:$0xf] }
  0x8f   : > { %v546_v55 = vld [vmem:[%s4231_s28 + $0x5b8] sm:$0xf]  ;;  %v548_v56 = vld [vmem:[%s4231_s28 + $0x5c0] sm:$0xf]  ;;  %545 = vst [vmem:[%s4238_s29 + $0x2d8] sm:$0xf] %v544_v54 }
  0x90   : > { %547 = vst [vmem:[%s4238_s29 + $0x2dc] sm:$0xf] %v546_v55  ;;  %549 = vst [vmem:[%s4238_s29 + $0x2e0] sm:$0xf] %v548_v56  ;;  %v550_v57 = vld [vmem:[%s4231_s28 + $0x5c8] sm:$0xf] }
  0x91   : > { %v552_v58 = vld [vmem:[%s4231_s28 + $0x5d0] sm:$0xf]  ;;  %v554_v59 = vld [vmem:[%s4231_s28 + $0x5d8] sm:$0xf]  ;;  %551 = vst [vmem:[%s4238_s29 + $0x2e4] sm:$0xf] %v550_v57 }
  0x92   : > { %553 = vst [vmem:[%s4238_s29 + $0x2e8] sm:$0xf] %v552_v58  ;;  %555 = vst [vmem:[%s4238_s29 + $0x2ec] sm:$0xf] %v554_v59  ;;  %v556_v60 = vld [vmem:[%s4231_s28 + $0x5e0] sm:$0xf] }
  0x93   : > { %v558_v61 = vld [vmem:[%s4231_s28 + $0x5e8] sm:$0xf]  ;;  %v560_v62 = vld [vmem:[%s4231_s28 + $0x5f0] sm:$0xf]  ;;  %557 = vst [vmem:[%s4238_s29 + $0x2f0] sm:$0xf] %v556_v60 }
  0x94   : > { %559 = vst [vmem:[%s4238_s29 + $0x2f4] sm:$0xf] %v558_v61  ;;  %561 = vst [vmem:[%s4238_s29 + $0x2f8] sm:$0xf] %v560_v62  ;;  %v562_v63 = vld [vmem:[%s4231_s28 + $0x5f8] sm:$0xf] }
  0x95   : > { %v564_v0 = vld [vmem:[%s4231_s28 + $0x600] sm:$0xf]  ;;  %v566_v1 = vld [vmem:[%s4231_s28 + $0x608] sm:$0xf]  ;;  %563 = vst [vmem:[%s4238_s29 + $0x2fc] sm:$0xf] %v562_v63 }
  0x96   : > { %565 = vst [vmem:[%s4238_s29 + $0x300] sm:$0xf] %v564_v0  ;;  %567 = vst [vmem:[%s4238_s29 + $0x304] sm:$0xf] %v566_v1  ;;  %v568_v2 = vld [vmem:[%s4231_s28 + $0x610] sm:$0xf] }
  0x97   : > { %v570_v3 = vld [vmem:[%s4231_s28 + $0x618] sm:$0xf]  ;;  %v572_v4 = vld [vmem:[%s4231_s28 + $0x620] sm:$0xf]  ;;  %569 = vst [vmem:[%s4238_s29 + $0x308] sm:$0xf] %v568_v2 }
  0x98   : > { %571 = vst [vmem:[%s4238_s29 + $0x30c] sm:$0xf] %v570_v3  ;;  %573 = vst [vmem:[%s4238_s29 + $0x310] sm:$0xf] %v572_v4  ;;  %v574_v5 = vld [vmem:[%s4231_s28 + $0x628] sm:$0xf] }
  0x99   : > { %v576_v6 = vld [vmem:[%s4231_s28 + $0x630] sm:$0xf]  ;;  %v578_v7 = vld [vmem:[%s4231_s28 + $0x638] sm:$0xf]  ;;  %575 = vst [vmem:[%s4238_s29 + $0x314] sm:$0xf] %v574_v5 }
  0x9a   : > { %577 = vst [vmem:[%s4238_s29 + $0x318] sm:$0xf] %v576_v6  ;;  %579 = vst [vmem:[%s4238_s29 + $0x31c] sm:$0xf] %v578_v7  ;;  %v580_v8 = vld [vmem:[%s4231_s28 + $0x640] sm:$0xf] }
  0x9b   : > { %v582_v9 = vld [vmem:[%s4231_s28 + $0x648] sm:$0xf]  ;;  %v584_v10 = vld [vmem:[%s4231_s28 + $0x650] sm:$0xf]  ;;  %581 = vst [vmem:[%s4238_s29 + $0x320] sm:$0xf] %v580_v8 }
  0x9c   : > { %583 = vst [vmem:[%s4238_s29 + $0x324] sm:$0xf] %v582_v9  ;;  %585 = vst [vmem:[%s4238_s29 + $0x328] sm:$0xf] %v584_v10  ;;  %v586_v11 = vld [vmem:[%s4231_s28 + $0x658] sm:$0xf] }
  0x9d   : > { %v588_v12 = vld [vmem:[%s4231_s28 + $0x660] sm:$0xf]  ;;  %v590_v13 = vld [vmem:[%s4231_s28 + $0x668] sm:$0xf]  ;;  %587 = vst [vmem:[%s4238_s29 + $0x32c] sm:$0xf] %v586_v11 }
  0x9e   : > { %589 = vst [vmem:[%s4238_s29 + $0x330] sm:$0xf] %v588_v12  ;;  %591 = vst [vmem:[%s4238_s29 + $0x334] sm:$0xf] %v590_v13  ;;  %v592_v14 = vld [vmem:[%s4231_s28 + $0x670] sm:$0xf] }
  0x9f   : > { %v594_v15 = vld [vmem:[%s4231_s28 + $0x678] sm:$0xf]  ;;  %v596_v16 = vld [vmem:[%s4231_s28 + $0x680] sm:$0xf]  ;;  %593 = vst [vmem:[%s4238_s29 + $0x338] sm:$0xf] %v592_v14 }
  0xa0   : > { %595 = vst [vmem:[%s4238_s29 + $0x33c] sm:$0xf] %v594_v15  ;;  %597 = vst [vmem:[%s4238_s29 + $0x340] sm:$0xf] %v596_v16  ;;  %v598_v17 = vld [vmem:[%s4231_s28 + $0x688] sm:$0xf] }
  0xa1   : > { %v600_v18 = vld [vmem:[%s4231_s28 + $0x690] sm:$0xf]  ;;  %v602_v19 = vld [vmem:[%s4231_s28 + $0x698] sm:$0xf]  ;;  %599 = vst [vmem:[%s4238_s29 + $0x344] sm:$0xf] %v598_v17 }
  0xa2   : > { %601 = vst [vmem:[%s4238_s29 + $0x348] sm:$0xf] %v600_v18  ;;  %603 = vst [vmem:[%s4238_s29 + $0x34c] sm:$0xf] %v602_v19  ;;  %v604_v20 = vld [vmem:[%s4231_s28 + $0x6a0] sm:$0xf] }
  0xa3   : > { %v606_v21 = vld [vmem:[%s4231_s28 + $0x6a8] sm:$0xf]  ;;  %v608_v22 = vld [vmem:[%s4231_s28 + $0x6b0] sm:$0xf]  ;;  %605 = vst [vmem:[%s4238_s29 + $0x350] sm:$0xf] %v604_v20 }
  0xa4   : > { %607 = vst [vmem:[%s4238_s29 + $0x354] sm:$0xf] %v606_v21  ;;  %609 = vst [vmem:[%s4238_s29 + $0x358] sm:$0xf] %v608_v22  ;;  %v610_v23 = vld [vmem:[%s4231_s28 + $0x6b8] sm:$0xf] }
  0xa5   : > { %v612_v24 = vld [vmem:[%s4231_s28 + $0x6c0] sm:$0xf]  ;;  %v614_v25 = vld [vmem:[%s4231_s28 + $0x6c8] sm:$0xf]  ;;  %611 = vst [vmem:[%s4238_s29 + $0x35c] sm:$0xf] %v610_v23 }
  0xa6   : > { %613 = vst [vmem:[%s4238_s29 + $0x360] sm:$0xf] %v612_v24  ;;  %615 = vst [vmem:[%s4238_s29 + $0x364] sm:$0xf] %v614_v25  ;;  %v616_v26 = vld [vmem:[%s4231_s28 + $0x6d0] sm:$0xf] }
  0xa7   : > { %v618_v27 = vld [vmem:[%s4231_s28 + $0x6d8] sm:$0xf]  ;;  %v620_v28 = vld [vmem:[%s4231_s28 + $0x6e0] sm:$0xf]  ;;  %617 = vst [vmem:[%s4238_s29 + $0x368] sm:$0xf] %v616_v26 }
  0xa8   : > { %619 = vst [vmem:[%s4238_s29 + $0x36c] sm:$0xf] %v618_v27  ;;  %621 = vst [vmem:[%s4238_s29 + $0x370] sm:$0xf] %v620_v28  ;;  %v622_v29 = vld [vmem:[%s4231_s28 + $0x6e8] sm:$0xf] }
  0xa9   : > { %v624_v30 = vld [vmem:[%s4231_s28 + $0x6f0] sm:$0xf]  ;;  %v626_v31 = vld [vmem:[%s4231_s28 + $0x6f8] sm:$0xf]  ;;  %623 = vst [vmem:[%s4238_s29 + $0x374] sm:$0xf] %v622_v29 }
  0xaa   : > { %625 = vst [vmem:[%s4238_s29 + $0x378] sm:$0xf] %v624_v30  ;;  %627 = vst [vmem:[%s4238_s29 + $0x37c] sm:$0xf] %v626_v31  ;;  %v628_v32 = vld [vmem:[%s4231_s28 + $0x700] sm:$0xf] }
  0xab   : > { %v630_v33 = vld [vmem:[%s4231_s28 + $0x708] sm:$0xf]  ;;  %v632_v34 = vld [vmem:[%s4231_s28 + $0x710] sm:$0xf]  ;;  %629 = vst [vmem:[%s4238_s29 + $0x380] sm:$0xf] %v628_v32 }
  0xac   : > { %631 = vst [vmem:[%s4238_s29 + $0x384] sm:$0xf] %v630_v33  ;;  %633 = vst [vmem:[%s4238_s29 + $0x388] sm:$0xf] %v632_v34  ;;  %v634_v35 = vld [vmem:[%s4231_s28 + $0x718] sm:$0xf] }
  0xad   : > { %v636_v36 = vld [vmem:[%s4231_s28 + $0x720] sm:$0xf]  ;;  %v638_v37 = vld [vmem:[%s4231_s28 + $0x728] sm:$0xf]  ;;  %635 = vst [vmem:[%s4238_s29 + $0x38c] sm:$0xf] %v634_v35 }
  0xae   : > { %637 = vst [vmem:[%s4238_s29 + $0x390] sm:$0xf] %v636_v36  ;;  %639 = vst [vmem:[%s4238_s29 + $0x394] sm:$0xf] %v638_v37  ;;  %v640_v38 = vld [vmem:[%s4231_s28 + $0x730] sm:$0xf] }
  0xaf   : > { %v642_v39 = vld [vmem:[%s4231_s28 + $0x738] sm:$0xf]  ;;  %v644_v40 = vld [vmem:[%s4231_s28 + $0x740] sm:$0xf]  ;;  %641 = vst [vmem:[%s4238_s29 + $0x398] sm:$0xf] %v640_v38 }
  0xb0   : > { %643 = vst [vmem:[%s4238_s29 + $0x39c] sm:$0xf] %v642_v39  ;;  %645 = vst [vmem:[%s4238_s29 + $0x3a0] sm:$0xf] %v644_v40  ;;  %v646_v41 = vld [vmem:[%s4231_s28 + $0x748] sm:$0xf] }
  0xb1   : > { %v648_v42 = vld [vmem:[%s4231_s28 + $0x750] sm:$0xf]  ;;  %v650_v43 = vld [vmem:[%s4231_s28 + $0x758] sm:$0xf]  ;;  %647 = vst [vmem:[%s4238_s29 + $0x3a4] sm:$0xf] %v646_v41 }
  0xb2   : > { %649 = vst [vmem:[%s4238_s29 + $0x3a8] sm:$0xf] %v648_v42  ;;  %651 = vst [vmem:[%s4238_s29 + $0x3ac] sm:$0xf] %v650_v43  ;;  %v652_v44 = vld [vmem:[%s4231_s28 + $0x760] sm:$0xf] }
  0xb3   : > { %v654_v45 = vld [vmem:[%s4231_s28 + $0x768] sm:$0xf]  ;;  %v656_v46 = vld [vmem:[%s4231_s28 + $0x770] sm:$0xf]  ;;  %653 = vst [vmem:[%s4238_s29 + $0x3b0] sm:$0xf] %v652_v44 }
  0xb4   : > { %655 = vst [vmem:[%s4238_s29 + $0x3b4] sm:$0xf] %v654_v45  ;;  %657 = vst [vmem:[%s4238_s29 + $0x3b8] sm:$0xf] %v656_v46  ;;  %v658_v47 = vld [vmem:[%s4231_s28 + $0x778] sm:$0xf] }
  0xb5   : > { %v660_v48 = vld [vmem:[%s4231_s28 + $0x780] sm:$0xf]  ;;  %v662_v49 = vld [vmem:[%s4231_s28 + $0x788] sm:$0xf]  ;;  %659 = vst [vmem:[%s4238_s29 + $0x3bc] sm:$0xf] %v658_v47 }
  0xb6   : > { %661 = vst [vmem:[%s4238_s29 + $0x3c0] sm:$0xf] %v660_v48  ;;  %663 = vst [vmem:[%s4238_s29 + $0x3c4] sm:$0xf] %v662_v49  ;;  %v664_v50 = vld [vmem:[%s4231_s28 + $0x790] sm:$0xf] }
  0xb7   : > { %v666_v51 = vld [vmem:[%s4231_s28 + $0x798] sm:$0xf]  ;;  %v668_v52 = vld [vmem:[%s4231_s28 + $0x7a0] sm:$0xf]  ;;  %665 = vst [vmem:[%s4238_s29 + $0x3c8] sm:$0xf] %v664_v50 }
  0xb8   : > { %667 = vst [vmem:[%s4238_s29 + $0x3cc] sm:$0xf] %v666_v51  ;;  %669 = vst [vmem:[%s4238_s29 + $0x3d0] sm:$0xf] %v668_v52  ;;  %v670_v53 = vld [vmem:[%s4231_s28 + $0x7a8] sm:$0xf] }
  0xb9   : > { %v672_v54 = vld [vmem:[%s4231_s28 + $0x7b0] sm:$0xf]  ;;  %v674_v55 = vld [vmem:[%s4231_s28 + $0x7b8] sm:$0xf]  ;;  %671 = vst [vmem:[%s4238_s29 + $0x3d4] sm:$0xf] %v670_v53 }
  0xba   : > { %673 = vst [vmem:[%s4238_s29 + $0x3d8] sm:$0xf] %v672_v54  ;;  %675 = vst [vmem:[%s4238_s29 + $0x3dc] sm:$0xf] %v674_v55  ;;  %v676_v56 = vld [vmem:[%s4231_s28 + $0x7c0] sm:$0xf] }
  0xbb   : > { %v678_v57 = vld [vmem:[%s4231_s28 + $0x7c8] sm:$0xf]  ;;  %v680_v58 = vld [vmem:[%s4231_s28 + $0x7d0] sm:$0xf]  ;;  %677 = vst [vmem:[%s4238_s29 + $0x3e0] sm:$0xf] %v676_v56 }
  0xbc   : > { %679 = vst [vmem:[%s4238_s29 + $0x3e4] sm:$0xf] %v678_v57  ;;  %681 = vst [vmem:[%s4238_s29 + $0x3e8] sm:$0xf] %v680_v58  ;;  %v682_v59 = vld [vmem:[%s4231_s28 + $0x7d8] sm:$0xf] }
  0xbd   : > { %v684_v60 = vld [vmem:[%s4231_s28 + $0x7e0] sm:$0xf]  ;;  %v686_v61 = vld [vmem:[%s4231_s28 + $0x7e8] sm:$0xf]  ;;  %683 = vst [vmem:[%s4238_s29 + $0x3ec] sm:$0xf] %v682_v59 }
  0xbe   : > { %685 = vst [vmem:[%s4238_s29 + $0x3f0] sm:$0xf] %v684_v60  ;;  %687 = vst [vmem:[%s4238_s29 + $0x3f4] sm:$0xf] %v686_v61  ;;  %v688_v62 = vld [vmem:[%s4231_s28 + $0x7f0] sm:$0xf] }
  0xbf   : > { %v690_v63 = vld [vmem:[%s4231_s28 + $0x7f8] sm:$0xf]  ;;  %v692_v0 = vld [vmem:[%s4231_s28 + $0x800] sm:$0xf]  ;;  %689 = vst [vmem:[%s4238_s29 + $0x3f8] sm:$0xf] %v688_v62 }
  0xc0   : > { %691 = vst [vmem:[%s4238_s29 + $0x3fc] sm:$0xf] %v690_v63  ;;  %693 = vst [vmem:[%s4238_s29 + $0x400] sm:$0xf] %v692_v0  ;;  %v694_v1 = vld [vmem:[%s4231_s28 + $0x808] sm:$0xf] }
  0xc1   : > { %v696_v2 = vld [vmem:[%s4231_s28 + $0x810] sm:$0xf]  ;;  %v698_v3 = vld [vmem:[%s4231_s28 + $0x818] sm:$0xf]  ;;  %695 = vst [vmem:[%s4238_s29 + $0x404] sm:$0xf] %v694_v1 }
  0xc2   : > { %697 = vst [vmem:[%s4238_s29 + $0x408] sm:$0xf] %v696_v2  ;;  %699 = vst [vmem:[%s4238_s29 + $0x40c] sm:$0xf] %v698_v3  ;;  %v700_v4 = vld [vmem:[%s4231_s28 + $0x820] sm:$0xf] }
  0xc3   : > { %v702_v5 = vld [vmem:[%s4231_s28 + $0x828] sm:$0xf]  ;;  %v704_v6 = vld [vmem:[%s4231_s28 + $0x830] sm:$0xf]  ;;  %701 = vst [vmem:[%s4238_s29 + $0x410] sm:$0xf] %v700_v4 }
  0xc4   : > { %703 = vst [vmem:[%s4238_s29 + $0x414] sm:$0xf] %v702_v5  ;;  %705 = vst [vmem:[%s4238_s29 + $0x418] sm:$0xf] %v704_v6  ;;  %v706_v7 = vld [vmem:[%s4231_s28 + $0x838] sm:$0xf] }
  0xc5   : > { %v708_v8 = vld [vmem:[%s4231_s28 + $0x840] sm:$0xf]  ;;  %v710_v9 = vld [vmem:[%s4231_s28 + $0x848] sm:$0xf]  ;;  %707 = vst [vmem:[%s4238_s29 + $0x41c] sm:$0xf] %v706_v7 }
  0xc6   : > { %709 = vst [vmem:[%s4238_s29 + $0x420] sm:$0xf] %v708_v8  ;;  %711 = vst [vmem:[%s4238_s29 + $0x424] sm:$0xf] %v710_v9  ;;  %v712_v10 = vld [vmem:[%s4231_s28 + $0x850] sm:$0xf] }
  0xc7   : > { %v714_v11 = vld [vmem:[%s4231_s28 + $0x858] sm:$0xf]  ;;  %v716_v12 = vld [vmem:[%s4231_s28 + $0x860] sm:$0xf]  ;;  %713 = vst [vmem:[%s4238_s29 + $0x428] sm:$0xf] %v712_v10 }
  0xc8   : > { %715 = vst [vmem:[%s4238_s29 + $0x42c] sm:$0xf] %v714_v11  ;;  %717 = vst [vmem:[%s4238_s29 + $0x430] sm:$0xf] %v716_v12  ;;  %v718_v13 = vld [vmem:[%s4231_s28 + $0x868] sm:$0xf] }
  0xc9   : > { %v720_v14 = vld [vmem:[%s4231_s28 + $0x870] sm:$0xf]  ;;  %v722_v15 = vld [vmem:[%s4231_s28 + $0x878] sm:$0xf]  ;;  %719 = vst [vmem:[%s4238_s29 + $0x434] sm:$0xf] %v718_v13 }
  0xca   : > { %721 = vst [vmem:[%s4238_s29 + $0x438] sm:$0xf] %v720_v14  ;;  %723 = vst [vmem:[%s4238_s29 + $0x43c] sm:$0xf] %v722_v15  ;;  %v724_v16 = vld [vmem:[%s4231_s28 + $0x880] sm:$0xf] }
  0xcb   : > { %v726_v17 = vld [vmem:[%s4231_s28 + $0x888] sm:$0xf]  ;;  %v728_v18 = vld [vmem:[%s4231_s28 + $0x890] sm:$0xf]  ;;  %725 = vst [vmem:[%s4238_s29 + $0x440] sm:$0xf] %v724_v16 }
  0xcc   : > { %727 = vst [vmem:[%s4238_s29 + $0x444] sm:$0xf] %v726_v17  ;;  %729 = vst [vmem:[%s4238_s29 + $0x448] sm:$0xf] %v728_v18  ;;  %v730_v19 = vld [vmem:[%s4231_s28 + $0x898] sm:$0xf] }
  0xcd   : > { %v732_v20 = vld [vmem:[%s4231_s28 + $0x8a0] sm:$0xf]  ;;  %v734_v21 = vld [vmem:[%s4231_s28 + $0x8a8] sm:$0xf]  ;;  %731 = vst [vmem:[%s4238_s29 + $0x44c] sm:$0xf] %v730_v19 }
  0xce   : > { %733 = vst [vmem:[%s4238_s29 + $0x450] sm:$0xf] %v732_v20  ;;  %735 = vst [vmem:[%s4238_s29 + $0x454] sm:$0xf] %v734_v21  ;;  %v736_v22 = vld [vmem:[%s4231_s28 + $0x8b0] sm:$0xf] }
  0xcf   : > { %v738_v23 = vld [vmem:[%s4231_s28 + $0x8b8] sm:$0xf]  ;;  %v740_v24 = vld [vmem:[%s4231_s28 + $0x8c0] sm:$0xf]  ;;  %737 = vst [vmem:[%s4238_s29 + $0x458] sm:$0xf] %v736_v22 }
  0xd0   : > { %739 = vst [vmem:[%s4238_s29 + $0x45c] sm:$0xf] %v738_v23  ;;  %741 = vst [vmem:[%s4238_s29 + $0x460] sm:$0xf] %v740_v24  ;;  %v742_v25 = vld [vmem:[%s4231_s28 + $0x8c8] sm:$0xf] }
  0xd1   : > { %v744_v26 = vld [vmem:[%s4231_s28 + $0x8d0] sm:$0xf]  ;;  %v746_v27 = vld [vmem:[%s4231_s28 + $0x8d8] sm:$0xf]  ;;  %743 = vst [vmem:[%s4238_s29 + $0x464] sm:$0xf] %v742_v25 }
  0xd2   : > { %745 = vst [vmem:[%s4238_s29 + $0x468] sm:$0xf] %v744_v26  ;;  %747 = vst [vmem:[%s4238_s29 + $0x46c] sm:$0xf] %v746_v27  ;;  %v748_v28 = vld [vmem:[%s4231_s28 + $0x8e0] sm:$0xf] }
  0xd3   : > { %v750_v29 = vld [vmem:[%s4231_s28 + $0x8e8] sm:$0xf]  ;;  %v752_v30 = vld [vmem:[%s4231_s28 + $0x8f0] sm:$0xf]  ;;  %749 = vst [vmem:[%s4238_s29 + $0x470] sm:$0xf] %v748_v28 }
  0xd4   : > { %751 = vst [vmem:[%s4238_s29 + $0x474] sm:$0xf] %v750_v29  ;;  %753 = vst [vmem:[%s4238_s29 + $0x478] sm:$0xf] %v752_v30  ;;  %v754_v31 = vld [vmem:[%s4231_s28 + $0x8f8] sm:$0xf] }
  0xd5   : > { %755 = vst [vmem:[%s4238_s29 + $0x47c] sm:$0xf] %v754_v31 }
  0xd6 PF: > { %p3409_p8 = scmp.ge.s32.totalorder %s4161_s16, 1  ;;  %p1359_p9 = scmp.lt.s32.totalorder %s4161_s16, 3 }
  0xd8   : > { %p1360_p10 = pnand %p3409_p8, %p1359_p9 }
  0xd9   : > { %s1366_s30 = sand.u32 (!%p1360_p10), 1, %s4145_s12   ;;  %v3959_v32 = vld [vmem:[%s5098_s0 + $0x4] ss:$72 sps:$4 sm:$0xff] (!%p1360_p10)   ;;  %v3957_v0 = vld [vmem:[%s5098_s0] ss:$72 sps:$4 sm:$0xff] (!%p1360_p10)   ;;  %p1404_p11 = scmp.lt.s32.totalorder (!%p1360_p10), %s4153_s14, 1 }
  0xda   : > { %1363 = sbr.rel (%p1360_p10) target bundleno = 618 (0x26a), region = 69  ;;  %v3962_v33 = vld [vmem:[%s5098_s0 + $0xc] ss:$72 sps:$4 sm:$0xff] (!%p1360_p10)   ;;  %2816 = vmatprep.mubr.bf16.mxu0 (!%p1360_p10), %v3959_v32  ;;  %v3960_v2 = vld [vmem:[%s5098_s0 + $0x8] ss:$72 sps:$4 sm:$0xff] (!%p1360_p10)   ;;  %s3410_s19 = sshll.u32 (!%p1360_p10), %s1366_s30, 4 }
  0xdb   : > { %s3884_s4 = smul.u32 (!%p1360_p10), 1152, %s1366_s30  ;;  %2865 = vmatprep.mubr.bf16.mxu1 (!%p1360_p10), %v3962_v33  ;;  %v3983_v4 = vld [vmem:[%s5098_s0 + $0x94] ss:$72 sps:$4 sm:$0xff] (!%p1360_p10)   ;;  %v3985_v11 = vld [vmem:[%s5098_s0 + $0x90] ss:$72 sps:$4 sm:$0xff] (!%p1360_p10)   ;;  %s1396_s20 = scalar_lea.vmem (!%p1360_p10), [#allocation3], %s3410_s19 }
  0xdc   : > { %v3988_v28 = vld [vmem:[%s5098_s0 + $0x9c] ss:$72 sps:$4 sm:$0xff] (!%p1360_p10)   ;;  %v3992_v31 = vld [vmem:[%s5098_s0 + $0x98] ss:$72 sps:$4 sm:$0xff] (!%p1360_p10)  }
  0xdd   : > { %s4822_s9 = scalar_lea.vmem (!%p1360_p10), [#allocation2], %s3884_s4 }
  0xde   : > { %v3925_v34 = vld [vmem:[%s4822_s9 + $0x40] sm:$0xff] (!%p1360_p10)   ;;  %v3929_v38 = vld [vmem:[%s4822_s9 + $0x48] sm:$0xff] (!%p1360_p10)   ;;  %v3933_v42 = vld [vmem:[%s4822_s9 + $0x50] sm:$0xff] (!%p1360_p10)  }
  0xdf   : > { %v3926_v35 = vld [vmem:[%s4822_s9 + $0xc0] sm:$0xff] (!%p1360_p10)   ;;  %3615 = vmatprep.subr.bf16.mxu0 (!%p1360_p10), %v3925_v34  ;;  %v3930_v39 = vld [vmem:[%s4822_s9 + $0xc8] sm:$0xff] (!%p1360_p10)   ;;  %v3934_v43 = vld [vmem:[%s4822_s9 + $0xd0] sm:$0xff] (!%p1360_p10)  }
  0xe0   : > { %v3927_v36 = vld [vmem:[%s4822_s9] sm:$0xff] (!%p1360_p10)   ;;  %3643 = vmatprep.subr.bf16.mxu1 (!%p1360_p10), %v3926_v35  ;;  %v3931_v40 = vld [vmem:[%s4822_s9 + $0x8] sm:$0xff] (!%p1360_p10)   ;;  %v3935_v44 = vld [vmem:[%s4822_s9 + $0x10] sm:$0xff] (!%p1360_p10)  }
  0xe1   : > { %v3928_v37 = vld [vmem:[%s4822_s9 + $0x80] sm:$0xff]   ;;  %3616 = vmatpush3.bf16.msra.mxu0 %v3927_v36  ;;  %v3932_v41 = vld [vmem:[%s4822_s9 + $0x88] sm:$0xff]   ;;  %v3936_v45 = vld [vmem:[%s4822_s9 + $0x90] sm:$0xff]   ;;  %s1405_s10 = scalar_select %p1404_p11, %s4153_s14, 1 }
  0xe2   : > { %3644 = vmatpush3.bf16.msra.mxu1 %v3928_v37  ;;  %3617 = vmatprep.subr.bf16.mxu0 %v3929_v38  ;;  %v3937_v46 = vld [vmem:[%s4822_s9 + $0x58] sm:$0xff]   ;;  %v3941_v50 = vld [vmem:[%s4822_s9 + $0x60] sm:$0xff]   ;;  %v3945_v54 = vld [vmem:[%s4822_s9 + $0x68] sm:$0xff]   ;;  %s3597_s23 = sshll.u32 (%p4218_p6), %s4153_s14, 2 }
  0xe3   : > { %3645 = vmatprep.subr.bf16.mxu1 %v3930_v39  ;;  %v3938_v47 = vld [vmem:[%s4822_s9 + $0xd8] sm:$0xff]   ;;  %v3942_v51 = vld [vmem:[%s4822_s9 + $0xe0] sm:$0xff]   ;;  %v3946_v55 = vld [vmem:[%s4822_s9 + $0xe8] sm:$0xff]   ;;  %s3260_s24 = scalar_lea.vmem (%p4218_p6), %s5101_s3, %s3597_s23 }
  0xe4   : > { %v3939_v48 = vld [vmem:[%s4822_s9 + $0x18] sm:$0xff]   ;;  %v3943_v52 = vld [vmem:[%s4822_s9 + $0x20] sm:$0xff]   ;;  %v3947_v56 = vld [vmem:[%s4822_s9 + $0x28] sm:$0xff]  }
  0xe5   : > { %3618 = vmatpush3.bf16.msra.mxu0 %v3931_v40  ;;  %v3940_v49 = vld [vmem:[%s4822_s9 + $0x98] sm:$0xff]   ;;  %v3944_v53 = vld [vmem:[%s4822_s9 + $0xa0] sm:$0xff]   ;;  %v3948_v57 = vld [vmem:[%s4822_s9 + $0xa8] sm:$0xff]  }
  0xe6   : > { %3646 = vmatpush3.bf16.msra.mxu1 %v3932_v41  ;;  %3619 = vmatprep.subr.bf16.mxu0 %v3933_v42  ;;  %v3949_v58 = vld [vmem:[%s4822_s9 + $0x70] sm:$0xff]   ;;  %v3953_v62 = vld [vmem:[%s4822_s9 + $0x78] sm:$0xff]   ;;  %v3963_v5 = vld [vmem:[%s4822_s9 + $0x140] sm:$0xff]  }
  0xe7   : > { %3647 = vmatprep.subr.bf16.mxu1 %v3934_v43  ;;  %v3950_v59 = vld [vmem:[%s4822_s9 + $0xf0] sm:$0xff]   ;;  %v3954_v63 = vld [vmem:[%s4822_s9 + $0xf8] sm:$0xff]   ;;  %v3964_v6 = vld [vmem:[%s4822_s9 + $0x1c0] sm:$0xff]  }
  0xe8   : > { %v3951_v60 = vld [vmem:[%s4822_s9 + $0x30] sm:$0xff]   ;;  %v3955_v1 = vld [vmem:[%s4822_s9 + $0x38] sm:$0xff]   ;;  %v3965_v7 = vld [vmem:[%s4822_s9 + $0x100] sm:$0xff]  }
  0xe9   : > { %3620 = vmatpush3.bf16.msra.mxu0 %v3935_v44  ;;  %v3952_v61 = vld [vmem:[%s4822_s9 + $0xb0] sm:$0xff]   ;;  %v3956_v3 = vld [vmem:[%s4822_s9 + $0xb8] sm:$0xff]   ;;  %v3966_v8 = vld [vmem:[%s4822_s9 + $0x180] sm:$0xff]  }
  0xea   : > { %3648 = vmatpush3.bf16.msra.mxu1 %v3936_v45  ;;  %3621 = vmatprep.subr.bf16.mxu0 %v3937_v46  ;;  %v3967_v9 = vld [vmem:[%s4822_s9 + $0x148] sm:$0xff]   ;;  %v3971_v14 = vld [vmem:[%s4822_s9 + $0x150] sm:$0xff]   ;;  %v3975_v18 = vld [vmem:[%s4822_s9 + $0x158] sm:$0xff]  }
  0xeb   : > { %3649 = vmatprep.subr.bf16.mxu1 %v3938_v47  ;;  %v3968_v10 = vld [vmem:[%s4822_s9 + $0x1c8] sm:$0xff]   ;;  %v3972_v15 = vld [vmem:[%s4822_s9 + $0x1d0] sm:$0xff]   ;;  %v3976_v19 = vld [vmem:[%s4822_s9 + $0x1d8] sm:$0xff]  }
  0xec   : > { %v3969_v12 = vld [vmem:[%s4822_s9 + $0x108] sm:$0xff]   ;;  %v3973_v16 = vld [vmem:[%s4822_s9 + $0x110] sm:$0xff]   ;;  %v3977_v20 = vld [vmem:[%s4822_s9 + $0x118] sm:$0xff]  }
  0xed   : > { %3622 = vmatpush3.bf16.msra.mxu0 %v3939_v48  ;;  %v3970_v13 = vld [vmem:[%s4822_s9 + $0x188] sm:$0xff]   ;;  %v3974_v17 = vld [vmem:[%s4822_s9 + $0x190] sm:$0xff]   ;;  %v3978_v21 = vld [vmem:[%s4822_s9 + $0x198] sm:$0xff]  }
  0xee   : > { %3650 = vmatpush3.bf16.msra.mxu1 %v3940_v49  ;;  %3623 = vmatprep.subr.bf16.mxu0 %v3941_v50  ;;  %v3979_v22 = vld [vmem:[%s4822_s9 + $0x160] sm:$0xff]   ;;  %v3986_v26 = vld [vmem:[%s4822_s9 + $0x168] sm:$0xff]   ;;  %v3993_v32 = vld [vmem:[%s4822_s9 + $0x170] sm:$0xff]  }
  0xef   : > { %3651 = vmatprep.subr.bf16.mxu1 %v3942_v51  ;;  %v3980_v23 = vld [vmem:[%s4822_s9 + $0x1e0] sm:$0xff]   ;;  %v3987_v27 = vld [vmem:[%s4822_s9 + $0x1e8] sm:$0xff]   ;;  %v3994_v33 = vld [vmem:[%s4822_s9 + $0x1f0] sm:$0xff]  }
  0xf0   : > { %v3981_v24 = vld [vmem:[%s4822_s9 + $0x120] sm:$0xff]   ;;  %v3990_v29 = vld [vmem:[%s4822_s9 + $0x128] sm:$0xff]   ;;  %v3995_v34 = vld [vmem:[%s4822_s9 + $0x130] sm:$0xff]  }
  0xf1   : > { %3624 = vmatpush3.bf16.msra.mxu0 %v3943_v52  ;;  %v3982_v25 = vld [vmem:[%s4822_s9 + $0x1a0] sm:$0xff]   ;;  %v3991_v30 = vld [vmem:[%s4822_s9 + $0x1a8] sm:$0xff]   ;;  %v3996_v35 = vld [vmem:[%s4822_s9 + $0x1b0] sm:$0xff]  }
  0xf2   : > { %3652 = vmatpush3.bf16.msra.mxu1 %v3944_v53  ;;  %3625 = vmatprep.subr.bf16.mxu0 %v3945_v54  ;;  %v3997_v36 = vld [vmem:[%s4822_s9 + $0x178] sm:$0xff]   ;;  %v4007_v44 = vld [vmem:[%s4822_s9 + $0x240] sm:$0xff]   ;;  %v4011_v48 = vld [vmem:[%s4822_s9 + $0x248] sm:$0xff]  }
  0xf3   : > { %3653 = vmatprep.subr.bf16.mxu1 %v3946_v55  ;;  %v3998_v37 = vld [vmem:[%s4822_s9 + $0x1f8] sm:$0xff]   ;;  %v4008_v45 = vld [vmem:[%s4822_s9 + $0x2c0] sm:$0xff]   ;;  %v4012_v49 = vld [vmem:[%s4822_s9 + $0x2c8] sm:$0xff]  }
  0xf4   : > { %v3999_v38 = vld [vmem:[%s4822_s9 + $0x138] sm:$0xff]   ;;  %v4009_v46 = vld [vmem:[%s4822_s9 + $0x200] sm:$0xff]   ;;  %v4013_v50 = vld [vmem:[%s4822_s9 + $0x208] sm:$0xff]  }
  0xf5   : > { %3626 = vmatpush3.bf16.msra.mxu0 %v3947_v56  ;;  %v4000_v39 = vld [vmem:[%s4822_s9 + $0x1b8] sm:$0xff]   ;;  %v4010_v47 = vld [vmem:[%s4822_s9 + $0x280] sm:$0xff]   ;;  %v4014_v51 = vld [vmem:[%s4822_s9 + $0x288] sm:$0xff]  }
  0xf6   : > { %3654 = vmatpush3.bf16.msra.mxu1 %v3948_v57  ;;  %3627 = vmatprep.subr.bf16.mxu0 %v3949_v58  ;;  %v4001_v40 = vld [vmem:[%s5098_s0 + $0x10] ss:$72 sps:$4 sm:$0xff]   ;;  %v4003_v41 = vld [vmem:[%s5098_s0 + $0x14] ss:$72 sps:$4 sm:$0xff]   ;;  %v4015_v52 = vld [vmem:[%s5098_s0 + $0xa4] ss:$72 sps:$4 sm:$0xff]  }
  0xf7   : > { %3655 = vmatprep.subr.bf16.mxu1 %v3950_v59  ;;  %v4004_v42 = vld [vmem:[%s5098_s0 + $0x18] ss:$72 sps:$4 sm:$0xff]   ;;  %v4006_v43 = vld [vmem:[%s5098_s0 + $0x1c] ss:$72 sps:$4 sm:$0xff]   ;;  %v4018_v54 = vld [vmem:[%s4822_s9 + $0x250] sm:$0xff]  }
  0xf8   : > { %v4017_v53 = vld [vmem:[%s5098_s0 + $0xa0] ss:$72 sps:$4 sm:$0xff]   ;;  %v4019_v55 = vld [vmem:[%s4822_s9 + $0x2d0] sm:$0xff]  }
  0xf9   : > { %3628 = vmatpush3.bf16.msra.mxu0 %v3951_v60  ;;  %v4020_v56 = vld [vmem:[%s5098_s0 + $0xac] ss:$72 sps:$4 sm:$0xff]   ;;  %v4024_v59 = vld [vmem:[%s5098_s0 + $0xa8] ss:$72 sps:$4 sm:$0xff]   ;;  %v4025_v60 = vld [vmem:[%s4822_s9 + $0x258] sm:$0xff]  }
  0xfa   : > { %3656 = vmatpush3.bf16.msra.mxu1 %v3952_v61  ;;  %3629 = vmatprep.subr.bf16.mxu0 %v3953_v62  ;;  %v4022_v57 = vld [vmem:[%s4822_s9 + $0x210] sm:$0xff]   ;;  %v4026_v61 = vld [vmem:[%s4822_s9 + $0x2d8] sm:$0xff]  }
  0xfb   : > { %3657 = vmatprep.subr.bf16.mxu1 %v3954_v63  ;;  %v4023_v58 = vld [vmem:[%s4822_s9 + $0x290] sm:$0xff]   ;;  %v4027_v62 = vld [vmem:[%s4822_s9 + $0x218] sm:$0xff]  }
  0xfc   : > { %v4028_v63 = vld [vmem:[%s4822_s9 + $0x298] sm:$0xff]  }
  0xfd   : > { %3630 = vmatpush3.bf16.msra.mxu0 %v3955_v1  ;;  %v4030_v1 = vld [vmem:[%s4822_s9 + $0x2e0] sm:$0xff]  }
  0xfe   : > { %3658 = vmatpush3.bf16.msra.mxu1 %v3956_v3  ;;  %3671 = vmatprep.subr.bf16.mxu0 %v3963_v5  ;;  %v4032_v3 = vld [vmem:[%s4822_s9 + $0x2a0] sm:$0xff]   ;;  %v4034_v5 = vld [vmem:[%s4822_s9 + $0x2e8] sm:$0xff]  }
  0xff   : > { %3699 = vmatprep.subr.bf16.mxu1 %v3964_v6  ;;  %v4035_v6 = vld [vmem:[%s4822_s9 + $0x228] sm:$0xff]  }
 0x100   : > { %2817 = vmatmul.mubr.bf16.vlgmr.msra.gmra.mrb[0].mxu0 %v3957_v0  ;;  %v4029_v0 = vld [vmem:[%s4822_s9 + $0x260] sm:$0xff]  }
 0x101   : > { %2866 = vmatmul.mubr.bf16.vlgmr.msra.gmra.mrb[0].mxu1 %v3960_v2  ;;  %3672 = vmatpush3.bf16.msra.mxu0 %v3965_v7  ;;  %v4031_v2 = vld [vmem:[%s4822_s9 + $0x220] sm:$0xff]   ;;  %v4036_v7 = vld [vmem:[%s4822_s9 + $0x2a8] sm:$0xff]  }
 0x102   : > { %3700 = vmatpush3.bf16.msra.mxu1 %v3966_v8  ;;  %2824 = vmatprep.mubr.bf16.mxu0 %v3983_v4  ;;  %v4033_v4 = vld [vmem:[%s4822_s9 + $0x268] sm:$0xff]   ;;  %v4037_v8 = vld [vmem:[%s4822_s9 + $0x270] sm:$0xff]  }
 0x103   : > { %3673 = vmatprep.subr.bf16.mxu0 %v3967_v9  ;;  %3701 = vmatprep.subr.bf16.mxu1 %v3968_v10  ;;  %v4038_v9 = vld [vmem:[%s4822_s9 + $0x2f0] sm:$0xff]  }
 0x104   : > { %2873 = vmatprep.mubr.bf16.mxu1 %v3988_v28  ;;  %v4039_v10 = vld [vmem:[%s4822_s9 + $0x230] sm:$0xff]  }
 0x105   : > { %3674 = vmatpush3.bf16.msra.mxu0 %v3969_v12  ;;  %v4041_v12 = vld [vmem:[%s4822_s9 + $0x278] sm:$0xff]  }
 0x106   : > { %3702 = vmatpush3.bf16.msra.mxu1 %v3970_v13  ;;  %3675 = vmatprep.subr.bf16.mxu0 %v3971_v14  ;;  %v4042_v13 = vld [vmem:[%s4822_s9 + $0x2f8] sm:$0xff]  }
 0x107   : > { %3703 = vmatprep.subr.bf16.mxu1 %v3972_v15  ;;  %v4043_v14 = vld [vmem:[%s4822_s9 + $0x238] sm:$0xff]  }
 0x108   : > { %2825 = vmatmul.mubr.bf16.gmra.mrb[4].mxu0 %v3985_v11  ;;  %v4040_v11 = vld [vmem:[%s4822_s9 + $0x2b0] sm:$0xff]   ;;  %v4044_v15 = vld [vmem:[%s4822_s9 + $0x2b8] sm:$0xff]  }
 0x109   : > { %3676 = vmatpush3.bf16.msra.mxu0 %v3973_v16  ;;  %2874 = vmatmul.mubr.bf16.gmra.mrb[4].mxu1 %v3992_v31  ;;  %v4045_v16 = vld [vmem:[%s5098_s0 + $0x20] ss:$72 sps:$4 sm:$0xff]   ;;  %v4059_v28 = vld [vmem:[%s5098_s0 + $0xb4] ss:$72 sps:$4 sm:$0xff]  }
 0x10a   : > { %3704 = vmatpush3.bf16.msra.mxu1 %v3974_v17  ;;  %3677 = vmatprep.subr.bf16.mxu0 %v3975_v18  ;;  %v4047_v17 = vld [vmem:[%s5098_s0 + $0x24] ss:$72 sps:$4 sm:$0xff]   ;;  %v4048_v18 = vld [vmem:[%s5098_s0 + $0x28] ss:$72 sps:$4 sm:$0xff]  }
 0x10b   : > { %3705 = vmatprep.subr.bf16.mxu1 %v3976_v19  ;;  %2914 = vmatprep.mubr.bf16.mxu0 %v4003_v41  ;;  %v4050_v19 = vld [vmem:[%s5098_s0 + $0x2c] ss:$72 sps:$4 sm:$0xff]   ;;  %v4074_v41 = vld [vmem:[%s4822_s9 + $0x3e0] sm:$0xff]  }
 0x10c   : > { %2963 = vmatprep.mubr.bf16.mxu1 %v4006_v43  ;;  %v4063_v31 = vld [vmem:[%s4822_s9 + $0x3d0] sm:$0xff]   ;;  %v4076_v43 = vld [vmem:[%s4822_s9 + $0x3a0] sm:$0xff]  }
 0x10d   : > { %3678 = vmatpush3.bf16.msra.mxu0 %v3977_v20  ;;  %v4051_v20 = vld [vmem:[%s4822_s9 + $0x340] sm:$0xff]  }
 0x10e   : > { %3706 = vmatpush3.bf16.msra.mxu1 %v3978_v21  ;;  %3679 = vmatprep.subr.bf16.mxu0 %v3979_v22  ;;  %v4052_v21 = vld [vmem:[%s4822_s9 + $0x3c0] sm:$0xff]  }
 0x10f   : > { %3707 = vmatprep.subr.bf16.mxu1 %v3980_v23  ;;  %v4053_v22 = vld [vmem:[%s4822_s9 + $0x300] sm:$0xff]  }
 0x110   : > { %v4054_v23 = vld [vmem:[%s4822_s9 + $0x380] sm:$0xff]  }
 0x111   : > { %3680 = vmatpush3.bf16.msra.mxu0 %v3981_v24  ;;  %v4055_v24 = vld [vmem:[%s4822_s9 + $0x348] sm:$0xff]  }
 0x112   : > { %3708 = vmatpush3.bf16.msra.mxu1 %v3982_v25  ;;  %3681 = vmatprep.subr.bf16.mxu0 %v3986_v26  ;;  %v4056_v25 = vld [vmem:[%s4822_s9 + $0x3c8] sm:$0xff]  }
 0x113   : > { %3709 = vmatprep.subr.bf16.mxu1 %v3987_v27  ;;  %v4057_v26 = vld [vmem:[%s4822_s9 + $0x308] sm:$0xff]  }
 0x114   : > { %v4058_v27 = vld [vmem:[%s4822_s9 + $0x388] sm:$0xff]  }
 0x115   : > { %3682 = vmatpush3.bf16.msra.mxu0 %v3990_v29  ;;  %v4061_v29 = vld [vmem:[%s5098_s0 + $0xb0] ss:$72 sps:$4 sm:$0xff]  }
 0x116   : > { %3710 = vmatpush3.bf16.msra.mxu1 %v3991_v30  ;;  %3683 = vmatprep.subr.bf16.mxu0 %v3993_v32  ;;  %v4062_v30 = vld [vmem:[%s4822_s9 + $0x350] sm:$0xff]   ;;  %v4064_v32 = vld [vmem:[%s5098_s0 + $0xbc] ss:$72 sps:$4 sm:$0xff]  }
 0x117   : > { %3711 = vmatprep.subr.bf16.mxu1 %v3994_v33  ;;  %v4066_v33 = vld [vmem:[%s4822_s9 + $0x310] sm:$0xff]  }
 0x119   : > { %3684 = vmatpush3.bf16.msra.mxu0 %v3995_v34  ;;  %v4067_v34 = vld [vmem:[%s4822_s9 + $0x390] sm:$0xff]  }
 0x11a   : > { %3712 = vmatpush3.bf16.msra.mxu1 %v3996_v35  ;;  %3685 = vmatprep.subr.bf16.mxu0 %v3997_v36  ;;  %v4068_v35 = vld [vmem:[%s5098_s0 + $0xb8] ss:$72 sps:$4 sm:$0xff]  }
 0x11b   : > { %3713 = vmatprep.subr.bf16.mxu1 %v3998_v37  ;;  %v4069_v36 = vld [vmem:[%s4822_s9 + $0x358] sm:$0xff]  }
 0x11c   : > { %v4070_v37 = vld [vmem:[%s4822_s9 + $0x3d8] sm:$0xff]  }
 0x11d   : > { %3686 = vmatpush3.bf16.msra.mxu0 %v3999_v38  ;;  %v4071_v38 = vld [vmem:[%s4822_s9 + $0x318] sm:$0xff]  }
 0x11e   : > { %3714 = vmatpush3.bf16.msra.mxu1 %v4000_v39  ;;  %3727 = vmatprep.subr.bf16.mxu0 %v4007_v44  ;;  %v4072_v39 = vld [vmem:[%s4822_s9 + $0x398] sm:$0xff]   ;;  %v4077_v44 = vld [vmem:[%s4822_s9 + $0x368] sm:$0xff]  }
 0x11f   : > { %3755 = vmatprep.subr.bf16.mxu1 %v4008_v45  ;;  %v4078_v45 = vld [vmem:[%s4822_s9 + $0x3e8] sm:$0xff]  }
 0x120   : > { %2915 = vmatmul.mubr.bf16.vlgmr.msra.gmra.mrb[8].mxu0 %v4001_v40  ;;  %v4073_v40 = vld [vmem:[%s4822_s9 + $0x360] sm:$0xff]  }
 0x121   : > { %2964 = vmatmul.mubr.bf16.vlgmr.msra.gmra.mrb[8].mxu1 %v4004_v42  ;;  %3728 = vmatpush3.bf16.msra.mxu0 %v4009_v46  ;;  %v4075_v42 = vld [vmem:[%s4822_s9 + $0x320] sm:$0xff]   ;;  %v4079_v46 = vld [vmem:[%s4822_s9 + $0x328] sm:$0xff]  }
 0x122   : > { %3756 = vmatpush3.bf16.msra.mxu1 %v4010_v47  ;;  %3729 = vmatprep.subr.bf16.mxu0 %v4011_v48  ;;  %v4080_v47 = vld [vmem:[%s4822_s9 + $0x3a8] sm:$0xff]   ;;  %v4081_v48 = vld [vmem:[%s4822_s9 + $0x370] sm:$0xff]  }
 0x123   : > { %3757 = vmatprep.subr.bf16.mxu1 %v4012_v49  ;;  %2922 = vmatprep.mubr.bf16.mxu0 %v4015_v52  ;;  %v4082_v49 = vld [vmem:[%s4822_s9 + $0x3f0] sm:$0xff]   ;;  %v4085_v52 = vld [vmem:[%s4822_s9 + $0x378] sm:$0xff]  }
 0x124   : > { %2971 = vmatprep.mubr.bf16.mxu1 %v4020_v56  ;;  %v4089_v56 = vld [vmem:[%s5098_s0 + $0x30] ss:$72 sps:$4 sm:$0xff]  }
 0x125   : > { %3730 = vmatpush3.bf16.msra.mxu0 %v4013_v50  ;;  %v4083_v50 = vld [vmem:[%s4822_s9 + $0x330] sm:$0xff]  }
 0x126   : > { %3758 = vmatpush3.bf16.msra.mxu1 %v4014_v51  ;;  %3731 = vmatprep.subr.bf16.mxu0 %v4018_v54  ;;  %v4084_v51 = vld [vmem:[%s4822_s9 + $0x3b0] sm:$0xff]   ;;  %v4087_v54 = vld [vmem:[%s4822_s9 + $0x338] sm:$0xff]  }
 0x127   : > { %3759 = vmatprep.subr.bf16.mxu1 %v4019_v55  ;;  %v4088_v55 = vld [vmem:[%s4822_s9 + $0x3b8] sm:$0xff]  }
 0x128   : > { %2923 = vmatmul.mubr.bf16.gmra.mrb[12].mxu0 %v4017_v53  ;;  %v4086_v53 = vld [vmem:[%s4822_s9 + $0x3f8] sm:$0xff]  }
 0x129   : > { %3732 = vmatpush3.bf16.msra.mxu0 %v4022_v57  ;;  %2972 = vmatmul.mubr.bf16.gmra.mrb[12].mxu1 %v4024_v59  ;;  %v4091_v57 = vld [vmem:[%s5098_s0 + $0x34] ss:$72 sps:$4 sm:$0xff]  }
 0x12a   : > { %3760 = vmatpush3.bf16.msra.mxu1 %v4023_v58  ;;  %3733 = vmatprep.subr.bf16.mxu0 %v4025_v60  ;;  %v4092_v58 = vld [vmem:[%s5098_s0 + $0x38] ss:$72 sps:$4 sm:$0xff]   ;;  %v4094_v59 = vld [vmem:[%s5098_s0 + $0x3c] ss:$72 sps:$4 sm:$0xff]  }
 0x12b   : > { %3761 = vmatprep.subr.bf16.mxu1 %v4026_v61  ;;  %3012 = vmatprep.mubr.bf16.mxu0 %v4047_v17  ;;  %v4095_v60 = vld [vmem:[%s4822_s9 + $0x440] sm:$0xff]   ;;  %v4116_v17 = vld [vmem:[%s4822_s9 + $0x438] sm:$0xff]  }
 0x12c   : > { %3061 = vmatprep.mubr.bf16.mxu1 %v4050_v19  ;;  %v4096_v61 = vld [vmem:[%s4822_s9 + $0x400] sm:$0xff]   ;;  %v4120_v19 = vld [vmem:[%s5098_s0 + $0xd0] ss:$72 sps:$4 sm:$0xff]  }
 0x12d   : > { %3734 = vmatpush3.bf16.msra.mxu0 %v4027_v62  ;;  %v4097_v62 = vld [vmem:[%s4822_s9 + $0x448] sm:$0xff]  }
 0x12e   : > { %3762 = vmatpush3.bf16.msra.mxu1 %v4028_v63  ;;  %3735 = vmatprep.subr.bf16.mxu0 %v4029_v0  ;;  %v4098_v63 = vld [vmem:[%s4822_s9 + $0x408] sm:$0xff]  }
 0x12f   : > { %3763 = vmatprep.subr.bf16.mxu1 %v4030_v1  ;;  %v4099_v0 = vld [vmem:[%s5098_s0 + $0xc4] ss:$72 sps:$4 sm:$0xff]   ;;  %v4101_v1 = vld [vmem:[%s5098_s0 + $0xc0] ss:$72 sps:$4 sm:$0xff]  }
 0x131   : > { %3736 = vmatpush3.bf16.msra.mxu0 %v4031_v2  ;;  %v4102_v2 = vld [vmem:[%s4822_s9 + $0x450] sm:$0xff]  }
 0x132   : > { %3764 = vmatpush3.bf16.msra.mxu1 %v4032_v3  ;;  %3737 = vmatprep.subr.bf16.mxu0 %v4033_v4  ;;  %v4103_v3 = vld [vmem:[%s5098_s0 + $0xcc] ss:$72 sps:$4 sm:$0xff]  }
 0x133   : > { %3765 = vmatprep.subr.bf16.mxu1 %v4034_v5  ;;  %v4105_v4 = vld [vmem:[%s4822_s9 + $0x410] sm:$0xff]  }
 0x134   : > { %v4106_v5 = vld [vmem:[%s5098_s0 + $0xc8] ss:$72 sps:$4 sm:$0xff]  }
 0x135   : > { %3738 = vmatpush3.bf16.msra.mxu0 %v4035_v6  ;;  %v4107_v6 = vld [vmem:[%s4822_s9 + $0x458] sm:$0xff]  }
 0x136   : > { %3766 = vmatpush3.bf16.msra.mxu1 %v4036_v7  ;;  %3739 = vmatprep.subr.bf16.mxu0 %v4037_v8  ;;  %v4108_v7 = vld [vmem:[%s4822_s9 + $0x418] sm:$0xff]   ;;  %v4109_v8 = vld [vmem:[%s4822_s9 + $0x460] sm:$0xff]  }
 0x137   : > { %3767 = vmatprep.subr.bf16.mxu1 %v4038_v9  ;;  %v4110_v9 = vld [vmem:[%s4822_s9 + $0x420] sm:$0xff]  }
 0x139   : > { %3740 = vmatpush3.bf16.msra.mxu0 %v4039_v10  ;;  %v4111_v10 = vld [vmem:[%s4822_s9 + $0x468] sm:$0xff]  }
 0x13a   : > { %3768 = vmatpush3.bf16.msra.mxu1 %v4040_v11  ;;  %3741 = vmatprep.subr.bf16.mxu0 %v4041_v12  ;;  %v4112_v11 = vld [vmem:[%s4822_s9 + $0x428] sm:$0xff]  }
 0x13b   : > { %3769 = vmatprep.subr.bf16.mxu1 %v4042_v13  ;;  %v4119_v12 = vld [vmem:[%s5098_s0 + $0x44] ss:$72 sps:$4 sm:$0xff]   ;;  %v4113_v13 = vld [vmem:[%s4822_s9 + $0x470] sm:$0xff]  }
 0x13d   : > { %3742 = vmatpush3.bf16.msra.mxu0 %v4043_v14  ;;  %v4122_v14 = vld [vmem:[%s5098_s0 + $0xd4] ss:$72 sps:$4 sm:$0xff]  }
 0x13e   : > { %3770 = vmatpush3.bf16.msra.mxu1 %v4044_v15  ;;  %3783 = vmatprep.subr.bf16.mxu0 %v4051_v20  ;;  %v4114_v15 = vld [vmem:[%s4822_s9 + $0x430] sm:$0xff]  }
 0x13f   : > { %3811 = vmatprep.subr.bf16.mxu1 %v4052_v21 }
 0x140   : > { %3013 = vmatmul.mubr.bf16.vlgmr.msra.gmra.mrb[16].mxu0 %v4045_v16  ;;  %v4115_v16 = vld [vmem:[%s4822_s9 + $0x478] sm:$0xff]   ;;  %s1406_s9 = scalar_lea.vmem %s5100_s2, %s1405_s10 }
 0x141   : > { %3062 = vmatmul.mubr.bf16.vlgmr.msra.gmra.mrb[16].mxu1 %v4048_v18  ;;  %3784 = vmatpush3.bf16.msra.mxu0 %v4053_v22  ;;  %v4117_v18 = vld [vmem:[%s5098_s0 + $0x40] ss:$72 sps:$4 sm:$0xff]  }
 0x142   : > { %3812 = vmatpush3.bf16.msra.mxu1 %v4054_v23  ;;  %3785 = vmatprep.subr.bf16.mxu0 %v4055_v24  ;;  %v3411_v22 = vld [vmem:[%s1406_s9] ss:$0 sm:$0xff] }
 0x143   : > { %3813 = vmatprep.subr.bf16.mxu1 %v4056_v25  ;;  %3020 = vmatprep.mubr.bf16.mxu0 %v4059_v28 }
 0x144   : > { %3069 = vmatprep.mubr.bf16.mxu1 %v4064_v32 }
 0x145   : > { %3786 = vmatpush3.bf16.msra.mxu0 %v4057_v26 }
 0x146   : > { %3814 = vmatpush3.bf16.msra.mxu1 %v4058_v27  ;;  %3787 = vmatprep.subr.bf16.mxu0 %v4062_v30 }
 0x147   : > { %3815 = vmatprep.subr.bf16.mxu1 %v4063_v31 }
 0x148   : > { %3021 = vmatmul.mubr.bf16.gmra.mrb[20].mxu0 %v4061_v29 }
 0x149   : > { %3788 = vmatpush3.bf16.msra.mxu0 %v4066_v33  ;;  %3070 = vmatmul.mubr.bf16.gmra.mrb[20].mxu1 %v4068_v35 }
 0x14a   : > { %3816 = vmatpush3.bf16.msra.mxu1 %v4067_v34  ;;  %3789 = vmatprep.subr.bf16.mxu0 %v4069_v36 }
 0x14b   : > { %3817 = vmatprep.subr.bf16.mxu1 %v4070_v37  ;;  %3110 = vmatprep.mubr.bf16.mxu0 %v4091_v57 }
 0x14c   : > { %3159 = vmatprep.mubr.bf16.mxu1 %v4094_v59 }
 0x14d   : > { %3790 = vmatpush3.bf16.msra.mxu0 %v4071_v38 }
 0x14e   : > { %3818 = vmatpush3.bf16.msra.mxu1 %v4072_v39  ;;  %3791 = vmatprep.subr.bf16.mxu0 %v4073_v40 }
 0x14f   : > { %3819 = vmatprep.subr.bf16.mxu1 %v4074_v41 }
 0x151   : > { %3792 = vmatpush3.bf16.msra.mxu0 %v4075_v42 }
 0x152   : > { %3820 = vmatpush3.bf16.msra.mxu1 %v4076_v43  ;;  %3793 = vmatprep.subr.bf16.mxu0 %v4077_v44 }
 0x153   : > { %3821 = vmatprep.subr.bf16.mxu1 %v4078_v45 }
 0x155   : > { %3794 = vmatpush3.bf16.msra.mxu0 %v4079_v46 }
 0x156   : > { %3822 = vmatpush3.bf16.msra.mxu1 %v4080_v47  ;;  %3795 = vmatprep.subr.bf16.mxu0 %v4081_v48 }
 0x157   : > { %3823 = vmatprep.subr.bf16.mxu1 %v4082_v49 }
 0x159   : > { %3796 = vmatpush3.bf16.msra.mxu0 %v4083_v50 }
 0x15a   : > { %3824 = vmatpush3.bf16.msra.mxu1 %v4084_v51  ;;  %3797 = vmatprep.subr.bf16.mxu0 %v4085_v52 }
 0x15b   : > { %3825 = vmatprep.subr.bf16.mxu1 %v4086_v53 }
 0x15d   : > { %3798 = vmatpush3.bf16.msra.mxu0 %v4087_v54 }
 0x15e   : > { %3826 = vmatpush3.bf16.msra.mxu1 %v4088_v55  ;;  %3839 = vmatprep.subr.bf16.mxu0 %v4095_v60 }
 0x15f   : > { %3867 = vmatprep.subr.bf16.mxu1 %v4095_v60 }
 0x160   : > { %3111 = vmatmul.mubr.bf16.vlgmr.msra.gmra.mrb[24].mxu0 %v4089_v56 }
 0x161   : > { %3160 = vmatmul.mubr.bf16.vlgmr.msra.gmra.mrb[24].mxu1 %v4092_v58  ;;  %3840 = vmatpush3.bf16.msra.mxu0 %v4096_v61 }
 0x162   : > { %3875 = vmatpush3.bf16.msra.mxu1 %v4096_v61  ;;  %3841 = vmatprep.subr.bf16.mxu0 %v4097_v62 }
 0x163   : > { %3868 = vmatprep.subr.bf16.mxu1 %v4097_v62  ;;  %3118 = vmatprep.mubr.bf16.mxu0 %v4099_v0 }
 0x164   : > { %3167 = vmatprep.mubr.bf16.mxu1 %v4103_v3 }
 0x165   : > { %3842 = vmatpush3.bf16.msra.mxu0 %v4098_v63 }
 0x166   : > { %3876 = vmatpush3.bf16.msra.mxu1 %v4098_v63  ;;  %3843 = vmatprep.subr.bf16.mxu0 %v4102_v2 }
 0x167   : > { %3869 = vmatprep.subr.bf16.mxu1 %v4102_v2 }
 0x168   : > { %3119 = vmatmul.mubr.bf16.gmra.mrb[28].mxu0 %v4101_v1 }
 0x169   : > { %3844 = vmatpush3.bf16.msra.mxu0 %v4105_v4  ;;  %3168 = vmatmul.mubr.bf16.gmra.mrb[28].mxu1 %v4106_v5 }
 0x16a   : > { %3877 = vmatpush3.bf16.msra.mxu1 %v4105_v4  ;;  %3845 = vmatprep.subr.bf16.mxu0 %v4107_v6 }
 0x16b   : > { %3870 = vmatprep.subr.bf16.mxu1 %v4107_v6  ;;  %3208 = vmatprep.mubr.bf16.mxu0 %v4119_v12 }
 0x16c   : > { %3216 = vmatprep.mubr.bf16.mxu1 %v4122_v14 }
 0x16d   : > { %3846 = vmatpush3.bf16.msra.mxu0 %v4108_v7 }
 0x16e   : > { %3878 = vmatpush3.bf16.msra.mxu1 %v4108_v7  ;;  %3847 = vmatprep.subr.bf16.mxu0 %v4109_v8 }
 0x16f   : > { %3871 = vmatprep.subr.bf16.mxu1 %v4109_v8 }
 0x171   : > { %3848 = vmatpush3.bf16.msra.mxu0 %v4110_v9 }
 0x172   : > { %3879 = vmatpush3.bf16.msra.mxu1 %v4110_v9  ;;  %3849 = vmatprep.subr.bf16.mxu0 %v4111_v10 }
 0x173   : > { %3872 = vmatprep.subr.bf16.mxu1 %v4111_v10 }
 0x175   : > { %3850 = vmatpush3.bf16.msra.mxu0 %v4112_v11 }
 0x176   : > { %3880 = vmatpush3.bf16.msra.mxu1 %v4112_v11  ;;  %3851 = vmatprep.subr.bf16.mxu0 %v4113_v13 }
 0x177   : > { %3873 = vmatprep.subr.bf16.mxu1 %v4113_v13 }
 0x179   : > { %3852 = vmatpush3.bf16.msra.mxu0 %v4114_v15 }
 0x17a   : > { %3881 = vmatpush3.bf16.msra.mxu1 %v4114_v15  ;;  %3853 = vmatprep.subr.bf16.mxu0 %v4115_v16 }
 0x17b   : > { %3874 = vmatprep.subr.bf16.mxu1 %v4115_v16 }
 0x17d   : > { %3854 = vmatpush3.bf16.msra.mxu0 %v4116_v17 }
 0x17e   : > { %3882 = vmatpush3.bf16.msra.mxu1 %v4116_v17 }
 0x180   : > { %3209 = vmatmul.mubr.bf16.vlgmr.msra.gmra.mrb[32].mxu0 %v4117_v18 }
 0x181   : > { %3217 = vmatmul.mubr.bf16.vlgmr.msra.gmra.mrb[32].mxu1 %v4120_v19 }
 0x1d3   : > { %v3631_v20 = vpop.f32.mrb[0].mxu0 }
 0x1d4   : > { %v3659_v21 = vpop.f32.mrb[0].mxu1  ;;  %v3632_v23 = vpop.f32.mrb[1].mxu0 }
 0x1d5   : > { %v3633_v24 = vadd.f32 %v3632_v23, %v3631_v20  ;;  %v3660_v25 = vpop.f32.mrb[1].mxu1  ;;  %v3634_v26 = vpop.f32.mrb[2].mxu0 }
 0x1d6   : > { %v3661_v27 = vadd.f32 %v3660_v25, %v3659_v21  ;;  %v3662_v28 = vpop.f32.mrb[2].mxu1  ;;  %v3635_v29 = vpop.f32.mrb[3].mxu0 }
 0x1d7   : > { %v2819_v30 = vadd.f32 %v3633_v24, %v3411_v22  ;;  %v3636_v31 = vadd.f32 %v3635_v29, %v3634_v26  ;;  %v3663_v32 = vpop.f32.mrb[3].mxu1 }
 0x1d8   : > { %v3664_v33 = vadd.f32 %v3663_v32, %v3662_v28 }
 0x1d9   : > { %v2868_v34 = vadd.f32 %v3661_v27, %v2819_v30  ;;  %v2822_v35 = vadd.f32 %v3636_v31, %v3411_v22 }
 0x1db   : > { %v2871_v36 = vadd.f32 %v3664_v33, %v2822_v35  ;;  %v3637_v37 = vpop.f32.mrb[4].mxu0 }
 0x1dc   : > { %v3638_v38 = vpop.f32.mrb[5].mxu0  ;;  %v3665_v44 = vpop.f32.mrb[4].mxu1 }
 0x1dd   : > { %v3639_v39 = vadd.f32 %v3638_v38, %v3637_v37  ;;  %v3640_v40 = vpop.f32.mrb[6].mxu0  ;;  %v3666_v45 = vpop.f32.mrb[5].mxu1 }
 0x1de   : > { %v3641_v41 = vpop.f32.mrb[7].mxu0  ;;  %v3667_v47 = vadd.f32 %v3666_v45, %v3665_v44  ;;  %v3668_v48 = vpop.f32.mrb[6].mxu1 }
 0x1df   : > { %v3642_v42 = vadd.f32 %v3641_v41, %v3640_v40  ;;  %v2827_v43 = vadd.f32 %v3639_v39, %v3411_v22  ;;  %v3669_v49 = vpop.f32.mrb[7].mxu1 }
 0x1e0   : > { %v3670_v51 = vadd.f32 %v3669_v49, %v3668_v48 }
 0x1e1   : > { %v2830_v46 = vadd.f32 %v3642_v42, %v3411_v22  ;;  %v2876_v50 = vadd.f32 %v3667_v47, %v2827_v43 }
 0x1e3   : > { %v2879_v52 = vadd.f32 %v3670_v51, %v2830_v46 }
 0x1f3   : > { %v3687_v53 = vpop.f32.mrb[8].mxu0 }
 0x1f4   : > { %v3715_v54 = vpop.f32.mrb[8].mxu1  ;;  %v3688_v55 = vpop.f32.mrb[9].mxu0 }
 0x1f5   : > { %v3689_v56 = vadd.f32 %v3688_v55, %v3687_v53  ;;  %v3716_v57 = vpop.f32.mrb[9].mxu1  ;;  %v3690_v58 = vpop.f32.mrb[10].mxu0 }
 0x1f6   : > { %v3717_v59 = vadd.f32 %v3716_v57, %v3715_v54  ;;  %v3718_v60 = vpop.f32.mrb[10].mxu1  ;;  %v3691_v61 = vpop.f32.mrb[11].mxu0 }
 0x1f7   : > { %v2917_v62 = vadd.f32 %v3689_v56, %v2868_v34  ;;  %v3692_v63 = vadd.f32 %v3691_v61, %v3690_v58  ;;  %v3719_v0 = vpop.f32.mrb[11].mxu1 }
 0x1f8   : > { %v3720_v1 = vadd.f32 %v3719_v0, %v3718_v60 }
 0x1f9   : > { %v2966_v2 = vadd.f32 %v3717_v59, %v2917_v62  ;;  %v2920_v3 = vadd.f32 %v3692_v63, %v2871_v36 }
 0x1fb   : > { %v2969_v4 = vadd.f32 %v3720_v1, %v2920_v3  ;;  %v3693_v5 = vpop.f32.mrb[12].mxu0 }
 0x1fc   : > { %v3694_v6 = vpop.f32.mrb[13].mxu0  ;;  %v3721_v12 = vpop.f32.mrb[12].mxu1 }
 0x1fd   : > { %v3695_v7 = vadd.f32 %v3694_v6, %v3693_v5  ;;  %v3696_v8 = vpop.f32.mrb[14].mxu0  ;;  %v3722_v14 = vpop.f32.mrb[13].mxu1 }
 0x1fe   : > { %v3697_v9 = vpop.f32.mrb[15].mxu0  ;;  %v3723_v15 = vadd.f32 %v3722_v14, %v3721_v12  ;;  %v3724_v16 = vpop.f32.mrb[14].mxu1 }
 0x1ff   : > { %v2925_v10 = vadd.f32 %v3695_v7, %v2876_v50  ;;  %v3698_v11 = vadd.f32 %v3697_v9, %v3696_v8  ;;  %v3725_v17 = vpop.f32.mrb[15].mxu1 }
 0x200   : > { %v3726_v19 = vadd.f32 %v3725_v17, %v3724_v16 }
 0x201   : > { %v2928_v13 = vadd.f32 %v3698_v11, %v2879_v52  ;;  %v2974_v18 = vadd.f32 %v3723_v15, %v2925_v10 }
 0x203   : > { %v2977_v20 = vadd.f32 %v3726_v19, %v2928_v13 }
 0x213   : > { %v3743_v21 = vpop.f32.mrb[16].mxu0 }
 0x214   : > { %v3744_v22 = vpop.f32.mrb[17].mxu0  ;;  %v3771_v23 = vpop.f32.mrb[16].mxu1 }
 0x215   : > { %v3745_v24 = vadd.f32 %v3744_v22, %v3743_v21  ;;  %v3746_v25 = vpop.f32.mrb[18].mxu0  ;;  %v3772_v26 = vpop.f32.mrb[17].mxu1 }
 0x216   : > { %v3747_v27 = vpop.f32.mrb[19].mxu0  ;;  %v3773_v29 = vadd.f32 %v3772_v26, %v3771_v23  ;;  %v3774_v30 = vpop.f32.mrb[18].mxu1 }
 0x217   : > { %v3015_v28 = vadd.f32 %v3745_v24, %v2966_v2  ;;  %v3748_v31 = vadd.f32 %v3747_v27, %v3746_v25  ;;  %v3775_v32 = vpop.f32.mrb[19].mxu1 }
 0x218   : > { %v3776_v35 = vadd.f32 %v3775_v32, %v3774_v30 }
 0x219   : > { %v3064_v33 = vadd.f32 %v3773_v29, %v3015_v28  ;;  %v3018_v34 = vadd.f32 %v3748_v31, %v2969_v4 }
 0x21b   : > { %v3067_v36 = vadd.f32 %v3776_v35, %v3018_v34  ;;  %v3749_v37 = vpop.f32.mrb[20].mxu0 }
 0x21c   : > { %v3750_v38 = vpop.f32.mrb[21].mxu0  ;;  %v3777_v44 = vpop.f32.mrb[20].mxu1 }
 0x21d   : > { %v3751_v39 = vadd.f32 %v3750_v38, %v3749_v37  ;;  %v3752_v40 = vpop.f32.mrb[22].mxu0  ;;  %v3778_v46 = vpop.f32.mrb[21].mxu1 }
 0x21e   : > { %v3753_v41 = vpop.f32.mrb[23].mxu0  ;;  %v3779_v47 = vadd.f32 %v3778_v46, %v3777_v44  ;;  %v3780_v48 = vpop.f32.mrb[22].mxu1 }
 0x21f   : > { %v3023_v42 = vadd.f32 %v3751_v39, %v2974_v18  ;;  %v3754_v43 = vadd.f32 %v3753_v41, %v3752_v40  ;;  %v3781_v49 = vpop.f32.mrb[23].mxu1 }
 0x220   : > { %v3782_v51 = vadd.f32 %v3781_v49, %v3780_v48 }
 0x221   : > { %v3026_v45 = vadd.f32 %v3754_v43, %v2977_v20  ;;  %v3072_v50 = vadd.f32 %v3779_v47, %v3023_v42 }
 0x223   : > { %v3075_v52 = vadd.f32 %v3782_v51, %v3026_v45 }
 0x233   : > { %v3799_v53 = vpop.f32.mrb[24].mxu0 }
 0x234   : > { %v3827_v54 = vpop.f32.mrb[24].mxu1  ;;  %v3800_v55 = vpop.f32.mrb[25].mxu0 }
 0x235   : > { %v3801_v56 = vadd.f32 %v3800_v55, %v3799_v53  ;;  %v3828_v57 = vpop.f32.mrb[25].mxu1  ;;  %v3802_v58 = vpop.f32.mrb[26].mxu0 }
 0x236   : > { %v3829_v59 = vadd.f32 %v3828_v57, %v3827_v54  ;;  %v3830_v60 = vpop.f32.mrb[26].mxu1  ;;  %v3803_v61 = vpop.f32.mrb[27].mxu0 }
 0x237   : > { %v3113_v62 = vadd.f32 %v3801_v56, %v3064_v33  ;;  %v3804_v63 = vadd.f32 %v3803_v61, %v3802_v58  ;;  %v3831_v0 = vpop.f32.mrb[27].mxu1 }
 0x238   : > { %v3832_v1 = vadd.f32 %v3831_v0, %v3830_v60 }
 0x239   : > { %v3162_v2 = vadd.f32 %v3829_v59, %v3113_v62  ;;  %v3116_v3 = vadd.f32 %v3804_v63, %v3067_v36 }
 0x23b   : > { %v3165_v4 = vadd.f32 %v3832_v1, %v3116_v3  ;;  %v3805_v5 = vpop.f32.mrb[28].mxu0 }
 0x23c   : > { %v3806_v6 = vpop.f32.mrb[29].mxu0  ;;  %v3833_v9 = vpop.f32.mrb[28].mxu1 }
 0x23d   : > { %v3807_v7 = vadd.f32 %v3806_v6, %v3805_v5  ;;  %v3808_v8 = vpop.f32.mrb[30].mxu0  ;;  %v3834_v11 = vpop.f32.mrb[29].mxu1 }
 0x23e   : > { %v3809_v10 = vpop.f32.mrb[31].mxu0  ;;  %v3835_v14 = vadd.f32 %v3834_v11, %v3833_v9  ;;  %v3836_v15 = vpop.f32.mrb[30].mxu1 }
 0x23f   : > { %v3121_v12 = vadd.f32 %v3807_v7, %v3072_v50  ;;  %v3810_v13 = vadd.f32 %v3809_v10, %v3808_v8  ;;  %v3837_v16 = vpop.f32.mrb[31].mxu1 }
 0x240   : > { %v3838_v19 = vadd.f32 %v3837_v16, %v3836_v15 }
 0x241   : > { %v3124_v17 = vadd.f32 %v3810_v13, %v3075_v52  ;;  %v3170_v18 = vadd.f32 %v3835_v14, %v3121_v12 }
 0x243   : > { %v3173_v20 = vadd.f32 %v3838_v19, %v3124_v17 }
 0x253   : > { %v3855_v21 = vpop.f32.mrb[32].mxu0 }
 0x254   : > { %v3861_v22 = vpop.f32.mrb[32].mxu1  ;;  %v3856_v23 = vpop.f32.mrb[33].mxu0 }
 0x255   : > { %v3857_v24 = vadd.f32 %v3856_v23, %v3855_v21  ;;  %v3862_v25 = vpop.f32.mrb[33].mxu1  ;;  %v3858_v26 = vpop.f32.mrb[34].mxu0 }
 0x256   : > { %v3863_v27 = vadd.f32 %v3862_v25, %v3861_v22  ;;  %v3864_v28 = vpop.f32.mrb[34].mxu1  ;;  %v3859_v29 = vpop.f32.mrb[35].mxu0 }
 0x257   : > { %v3211_v30 = vadd.f32 %v3857_v24, %v3162_v2  ;;  %v3860_v31 = vadd.f32 %v3859_v29, %v3858_v26  ;;  %v3865_v32 = vpop.f32.mrb[35].mxu1 }
 0x258   : > { %v3219_v33 = vadd.f32 %v3863_v27, %v3170_v18  ;;  %v3866_v34 = vadd.f32 %v3865_v32, %v3864_v28 }
 0x259   : > { %v3214_v35 = vadd.f32 %v3860_v31, %v3165_v4  ;;  %v3225_v37 = vmax.f32 %v3211_v30, 0.0 }
 0x25a   : > { %v3222_v36 = vadd.f32 %v3866_v34, %v3173_v20  ;;  %v3227_v39 = vmax.f32 %v3219_v33, 0.0  ;;  %3255 = sbr.rel (!%p4218_p6) target bundleno = 618 (0x26a), region = 77 }
 0x25b   : > { %v3226_v38 = vmax.f32 %v3214_v35, 0.0 }
 0x25c   : > { %v3228_v40 = vmax.f32 %v3222_v36, 0.0 }
 0x25d   : > { %v3607_v41 = vpack.c.bf16 %v3226_v38, %v3225_v37 }
 0x25e   : > { %v3612_v42 = vpack.c.bf16 %v3228_v40, %v3227_v39 }
 0x25f   : > { %3608 = vst [vmem:[%s1396_s20] sm:$0xff] %v3607_v41  }
 0x260   : > { %3614 = vst [vmem:[%s1396_s20 + $0x8] sm:$0xff] %v3612_v42  }
 0x266   : > { %v3276_v43 = vld [vmem:[%s1396_s20] sm:$0xf]  ;;  %v3278_v44 = vld [vmem:[%s1396_s20 + $0x4] sm:$0xf] }
 0x267   : > { %v3280_v45 = vld [vmem:[%s1396_s20 + $0x8] sm:$0xf]  ;;  %v3282_v46 = vld [vmem:[%s1396_s20 + $0xc] sm:$0xf]  ;;  %3277 = vst [vmem:[%s3260_s24] sm:$0xf] %v3276_v43 }
 0x268   : > { %3279 = vst [vmem:[%s3260_s24 + $0x8] sm:$0xf] %v3278_v44  ;;  %3281 = vst [vmem:[%s3260_s24 + $0x10] sm:$0xf] %v3280_v45 }
 0x269   : > { %3283 = vst [vmem:[%s3260_s24 + $0x18] sm:$0xf] %v3282_v46 }
 0x26a PF: > { %s13_s16 = sadd.s32 1, %s4161_s16   ;;  %s5103_s12 = smov %s4149_s13 }
 0x26b   : > { %p10_p12 = scmp.ge.s32.totalorder %s13_s16, 4   ;;  %s5104_s13 = smov %s4223_s22 }
 0x26c   : > { %s5105_s14 = smov %s4157_s15  ;;  %s5106_s15 = smov %s5108_s17 }
 0x26d   :  { %12 = sbr.rel (!%p10_p12) target bundleno = 3 (0x3), region = 155 }

// kernel: alexnet_forward.13
= control target key start
LH: loop header
LB: loop body
LE: loop exit
PB: predicated region body
PF: predicated region fallthrough
CT: control target
= control target key end

     0   :  { %v155_v0 = vlaneseq  ;;  %v391_v4 = vmov 1935823168   ;;  %v392_v6 = vmov 1966171168   ;;  %vm281_vm0 = vcmask 1041409   ;;  %s495_s0 = inlined_call_operand.vmem [shape: bf16[4,2,2,2,256], index: 0, kind: input, shape index: {}]   ;;  %s496_s1 = inlined_call_operand.vmem [shape: bf16[4,2,256], index: 1, kind: output, shape index: {}]  }
   0x1   :  { %v8_v1 = vld [vmem:[%s495_s0] sm:$0x3]  ;;  %v9_v2 = vld [vmem:[%s495_s0 + $0x2] sm:$0x3]  ;;  %v10_v3 = vld [vmem:[%s495_s0 + $0x4] sm:$0x3]  ;;  %v153_v5 = vunpack.c.l.s4 %v391_v4  ;;  %v302_v7 = vunpack.c.l.s4 %v392_v6 }
   0x2   :  { %v11_v8 = vld [vmem:[%s495_s0 + $0x6] sm:$0x3]  ;;  %v25_v9 = vshrl.u32 %v8_v1, 16  ;;  %v30_v10 = vshrl.u32 %v9_v2, 16  ;;  %v81_v11 = vshrl.u32 %v10_v3, 16  ;;  %v156_v12 = vshrl.u32 %v155_v0, 7 }
   0x3   :  { %v86_v13 = vshrl.u32 %v11_v8, 16  ;;  %v154_v14 = vunpack.c.0.s8 %v153_v5  ;;  %v303_v15 = vunpack.c.0.s8 %v302_v7  ;;  %v12_v16 = vld [vmem:[%s495_s0 + $0x8] sm:$0x3]  ;;  %v13_v17 = vld [vmem:[%s495_s0 + $0xa] sm:$0x3] }
   0x4   :  { %v72_v18 = vmax.bf16 %v25_v9, %v8_v1  ;;  %v73_v19 = vmax.bf16 %v30_v10, %v9_v2  ;;  %v128_v20 = vmax.bf16 %v81_v11, %v10_v3  ;;  %v14_v21 = vld [vmem:[%s495_s0 + $0xc] sm:$0x3]  ;;  %v15_v22 = vld [vmem:[%s495_s0 + $0xe] sm:$0x3]  ;;  %v35_v23 = vshrl.u32 %v12_v16, 16 }
   0x5   :  { %v129_v24 = vmax.bf16 %v86_v13, %v11_v8  ;;  %v427_v25 = vsub.s32 %v154_v14, %v156_v12  ;;  %v429_v26 = vsub.s32 %v303_v15, %v156_v12  ;;  %v40_v27 = vshrl.u32 %v13_v17, 16  ;;  %v16_v28 = vld [vmem:[%s495_s0 + $0x10] sm:$0x3]  ;;  %v17_v29 = vld [vmem:[%s495_s0 + $0x12] sm:$0x3] }
   0x6   :  { %v136_v30 = vmax.bf16 %v128_v20, %v72_v18  ;;  %v74_v31 = vmax.bf16 %v35_v23, %v12_v16  ;;  %v91_v32 = vshrl.u32 %v14_v21, 16  ;;  %v96_v33 = vshrl.u32 %v15_v22, 16  ;;  %v18_v34 = vld [vmem:[%s495_s0 + $0x14] sm:$0x3]  ;;  %v19_v35 = vld [vmem:[%s495_s0 + $0x16] sm:$0x3] }
   0x7   :  { %v137_v36 = vmax.bf16 %v129_v24, %v73_v19  ;;  %v75_v37 = vmax.bf16 %v40_v27, %v13_v17  ;;  %v45_v38 = vshrl.u32 %v16_v28, 16  ;;  %v50_v39 = vshrl.u32 %v17_v29, 16  ;;  %v20_v44 = vld [vmem:[%s495_s0 + $0x18] sm:$0x3]  ;;  %v21_v45 = vld [vmem:[%s495_s0 + $0x1a] sm:$0x3] }
   0x8   :  { %v158_v40 = vrot.slane %v136_v30, %v427_v25  ;;  %v130_v41 = vmax.bf16 %v91_v32, %v14_v21  ;;  %v131_v42 = vmax.bf16 %v96_v33, %v15_v22  ;;  %v101_v43 = vshrl.u32 %v18_v34, 16  ;;  %v22_v10 = vld [vmem:[%s495_s0 + $0x1c] sm:$0x3]  ;;  %v23_v19 = vld [vmem:[%s495_s0 + $0x1e] sm:$0x3] }
   0x9   :  { %v172_v46 = vrot.slane %v137_v36, %v427_v25  ;;  %v76_v47 = vmax.bf16 %v45_v38, %v16_v28  ;;  %v77_v48 = vmax.bf16 %v50_v39, %v17_v29  ;;  %v106_v49 = vshrl.u32 %v19_v35, 16 }
   0xa   :  { %v165_v50 = vrot.slane %v158_v40, %v427_v25  ;;  %v138_v51 = vmax.bf16 %v130_v41, %v74_v31  ;;  %v139_v52 = vmax.bf16 %v131_v42, %v75_v37  ;;  %v132_v53 = vmax.bf16 %v101_v43, %v18_v34 }
   0xb   :  { %v179_v54 = vrot.slane %v172_v46, %v427_v25  ;;  %v133_v55 = vmax.bf16 %v106_v49, %v19_v35  ;;  %v55_v56 = vshrl.u32 %v20_v44, 16  ;;  %v60_v57 = vshrl.u32 %v21_v45, 16 }
   0xc   :  { %v264_v58 = vunpack.c.l.b16 %v165_v50  ;;  %v265_v59 = vunpack.c.h.b16 %v165_v50  ;;  %v186_v60 = vrot.slane %v138_v51, %v427_v25  ;;  %v200_v61 = vrot.slane %v139_v52, %v427_v25 }
   0xd   :  { %v266_v62 = vunpack.c.l.b16 %v179_v54  ;;  %v267_v63 = vunpack.c.h.b16 %v179_v54  ;;  %v140_v0 = vmax.bf16 %v132_v53, %v76_v47  ;;  %v141_v1 = vmax.bf16 %v133_v55, %v77_v48 }
   0xe   :  { %v193_v2 = vrot.slane %v186_v60, %v427_v25  ;;  %v207_v3 = vrot.slane %v200_v61, %v427_v25  ;;  %v78_v4 = vmax.bf16 %v55_v56, %v20_v44  ;;  %v79_v5 = vmax.bf16 %v60_v57, %v21_v45 }
   0xf   :  { %v280_v6 = vrot.slane %v266_v62, 7  ;;  %v283_v7 = vrot.slane %v267_v63, 7  ;;  %v214_v8 = vrot.slane %v140_v0, %v427_v25  ;;  %v228_v9 = vrot.slane %v141_v1, %v427_v25 }
  0x10   :  { %v268_v11 = vunpack.c.l.b16 %v193_v2  ;;  %v269_v12 = vunpack.c.h.b16 %v193_v2  ;;  %v270_v13 = vunpack.c.l.b16 %v207_v3  ;;  %v271_v14 = vunpack.c.h.b16 %v207_v3 }
  0x11   :  { %v282_v15 = vsel %vm281_vm0, %v280_v6, %v264_v58  ;;  %v284_v16 = vsel %vm281_vm0, %v283_v7, %v265_v59  ;;  %v221_v17 = vrot.slane %v214_v8, %v427_v25  ;;  %v235_v18 = vrot.slane %v228_v9, %v427_v25 }
  0x12   :  { %v297_v20 = vpack.c.b16 %v284_v16, %v282_v15  ;;  %v285_v21 = vrot.slane %v270_v13, 7  ;;  %v287_v22 = vrot.slane %v271_v14, 7  ;;  %v111_v23 = vshrl.u32 %v22_v10, 16 }
  0x13   :  { %v272_v24 = vunpack.c.l.b16 %v221_v17  ;;  %v273_v27 = vunpack.c.h.b16 %v221_v17  ;;  %v274_v28 = vunpack.c.l.b16 %v235_v18  ;;  %v275_v29 = vunpack.c.h.b16 %v235_v18 }
  0x14   :  { %v307_v30 = vrot.slane %v297_v20, %v429_v26  ;;  %v286_v31 = vsel %vm281_vm0, %v285_v21, %v268_v11  ;;  %v288_v32 = vsel %vm281_vm0, %v287_v22, %v269_v12  ;;  %v116_v33 = vshrl.u32 %v23_v19, 16 }
  0x15   :  { %v298_v34 = vpack.c.b16 %v288_v32, %v286_v31  ;;  %v289_v35 = vrot.slane %v274_v28, 7  ;;  %v291_v36 = vrot.slane %v275_v29, 7  ;;  %v134_v37 = vmax.bf16 %v111_v23, %v22_v10 }
  0x16   :  { %385 = vst.sshfl [vmem:[%s496_s1] sm:$0x5 pattern:$0x73625140] %v307_v30  ;;  %v135_v38 = vmax.bf16 %v116_v33, %v23_v19 }
  0x17   :  { %v321_v39 = vrot.slane %v298_v34, %v429_v26  ;;  %v290_v40 = vsel %vm281_vm0, %v289_v35, %v272_v24  ;;  %v292_v41 = vsel %vm281_vm0, %v291_v36, %v273_v27  ;;  %v142_v42 = vmax.bf16 %v134_v37, %v78_v4 }
  0x18   :  { %v299_v43 = vpack.c.b16 %v292_v41, %v290_v40  ;;  %v143_v44 = vmax.bf16 %v135_v38, %v79_v5 }
  0x19   :  { %386 = vst.sshfl [vmem:[%s496_s1 + $0x2] sm:$0x5 pattern:$0x73625140] %v321_v39  ;;  %v242_v45 = vrot.slane %v142_v42, %v427_v25 }
  0x1a   :  { %v335_v46 = vrot.slane %v299_v43, %v429_v26  ;;  %v256_v47 = vrot.slane %v143_v44, %v427_v25 }
  0x1b   :  { %v249_v48 = vrot.slane %v242_v45, %v427_v25 }
  0x1c   :  { %387 = vst.sshfl [vmem:[%s496_s1 + $0x4] sm:$0x5 pattern:$0x73625140] %v335_v46  ;;  %v263_v49 = vrot.slane %v256_v47, %v427_v25 }
  0x1d   :  { %v276_v50 = vunpack.c.l.b16 %v249_v48  ;;  %v277_v51 = vunpack.c.h.b16 %v249_v48 }
  0x1e   :  { %v278_v52 = vunpack.c.l.b16 %v263_v49  ;;  %v279_v53 = vunpack.c.h.b16 %v263_v49 }
  0x20   :  { %v293_v54 = vrot.slane %v278_v52, 7  ;;  %v295_v55 = vrot.slane %v279_v53, 7 }
  0x22   :  { %v294_v56 = vsel %vm281_vm0, %v293_v54, %v276_v50  ;;  %v296_v57 = vsel %vm281_vm0, %v295_v55, %v277_v51 }
  0x23   :  { %v300_v58 = vpack.c.b16 %v296_v57, %v294_v56 }
  0x25   :  { %v349_v59 = vrot.slane %v300_v58, %v429_v26 }
  0x27   :  { %388 = vst.sshfl [vmem:[%s496_s1 + $0x6] sm:$0x5 pattern:$0x73625140] %v349_v59 }

// kernel: alexnet_forward.11
= control target key start
LH: loop header
LB: loop body
LE: loop exit
PB: predicated region body
PF: predicated region fallthrough
CT: control target
= control target key end

     0   :  { %s6006_s12 = smov 0   ;;  %s6008_s13 = smov 0   ;;  %s7335_s0 = inlined_call_operand.vmem [shape: bf16[32,3456], index: 0, kind: input, shape index: {}]   ;;  %s7336_s1 = inlined_call_operand.vmem [shape: bf16[3456,256], index: 1, kind: input, shape index: {}]   ;;  %s7337_s2 = inlined_call_operand.vmem [shape: f32[1,256], index: 2, kind: input, shape index: {}]   ;;  %s7338_s3 = inlined_call_operand.vmem [shape: bf16[32,256], index: 3, kind: output, shape index: {}]  }
   0x1   :  { %s6010_s14 = smov 0   ;;  %s6012_s15 = smov 0  }
   0x2   :  { %s6014_s16 = smov 0  }
   0x3 LB: > { %s22_s17 = sadd.s32 1, %s5980_s15  ;;  %s4912_s18 = sadd.s32 4294967295, %s5984_s16   ;;  %s5984_s16 = sphi %s6014_s16, %s13_s16   ;;  %s5980_s15 = sphi %s6012_s15, %s7343_s15   ;;  %s5976_s14 = sphi %s6010_s14, %s7342_s14   ;;  %s5972_s13 = sphi %s6008_s13, %s7341_s13   ;;  %s5968_s12 = sphi %s6006_s12, %s7340_s12  }
   0x4   : > { %p23_p0 = scmp.ge.s32.totalorder %s22_s17, 2  ;;  %p65_p1 = scmp.ne.s32.totalorder %s5972_s13, %s5968_s12 }
   0x5   : > { %p66_p2 = scmp.eq.s32.totalorder %s5984_s16, 0  ;;  %p123_p4 = scmp.eq.s32.totalorder %s4912_s18, 1 }
   0x6   : > { %s7345_s17 = smov (%p23_p0, %s22_s17), 0  ;;  %s58_s20 = sadd.s32 1, %s5972_s13 }
   0x7   : > { %p67_p3 = por %p66_p2, %p65_p1  ;;  %s55_s19 = ssub.s32 %s5980_s15, %s7345_s17 }
   0x8   : > { %p56_p5 = scmp.eq.s32.totalorder %s55_s19, 0  ;;  %p6041_p6 = por %p123_p4, %p65_p1 }
   0x9   : > { %p4916_p7 = scmp.ge.s32.totalorder %s5984_s16, 2 }
   0xa   : > { %s6046_s22 = scalar_select %p56_p5, %s5972_s13, %s58_s20  }
   0xb   : > { %155 = sbr.rel (%p4916_p7) target bundleno = 310 (0x136), region = 20 }
  0x12   : > { %158 = sbr.rel (!%p67_p3) target bundleno = 310 (0x136), region = 24  ;;  %s160_s23 = sand.u32 (%p67_p3), 1, %s5972_s13  }
  0x13   : > { %s4917_s24 = sshll.u32 (%p67_p3), %s5980_s15, 2  ;;  %s5608_s25 = smul.u32 (%p67_p3), 1728, %s160_s23 }
  0x14   : > { %s6054_s28 = scalar_lea.vmem (%p67_p3), %s7336_s1, %s4917_s24 }
  0x15   : > { %v180_v0 = vld [vmem:[%s6054_s28] sm:$0xf] (%p67_p3)  ;;  %v182_v1 = vld [vmem:[%s6054_s28 + $0x8] sm:$0xf] (%p67_p3)  ;;  %v184_v2 = vld [vmem:[%s6054_s28 + $0x10] sm:$0xf] (%p67_p3) }
  0x16   : > { %v186_v3 = vld [vmem:[%s6054_s28 + $0x18] sm:$0xf] (%p67_p3)  ;;  %v188_v4 = vld [vmem:[%s6054_s28 + $0x20] sm:$0xf] (%p67_p3)  ;;  %s6061_s29 = scalar_lea.vmem (%p67_p3), [#allocation2], %s5608_s25 }
  0x17   : > { %181 = vst [vmem:[%s6061_s29] sm:$0xf] (%p67_p3), %v180_v0  ;;  %183 = vst [vmem:[%s6061_s29 + $0x4] sm:$0xf] (%p67_p3), %v182_v1  ;;  %v190_v5 = vld [vmem:[%s6054_s28 + $0x28] sm:$0xf] (%p67_p3) }
  0x18   : > { %185 = vst [vmem:[%s6061_s29 + $0x8] sm:$0xf] (%p67_p3), %v184_v2  ;;  %187 = vst [vmem:[%s6061_s29 + $0xc] sm:$0xf] (%p67_p3), %v186_v3  ;;  %v192_v6 = vld [vmem:[%s6054_s28 + $0x30] sm:$0xf] (%p67_p3) }
  0x19   : > { %189 = vst [vmem:[%s6061_s29 + $0x10] sm:$0xf] %v188_v4  ;;  %v194_v7 = vld [vmem:[%s6054_s28 + $0x38] sm:$0xf]  ;;  %191 = vst [vmem:[%s6061_s29 + $0x14] sm:$0xf] %v190_v5 }
  0x1a   : > { %193 = vst [vmem:[%s6061_s29 + $0x18] sm:$0xf] %v192_v6  ;;  %195 = vst [vmem:[%s6061_s29 + $0x1c] sm:$0xf] %v194_v7  ;;  %v196_v8 = vld [vmem:[%s6054_s28 + $0x40] sm:$0xf] }
  0x1b   : > { %v198_v9 = vld [vmem:[%s6054_s28 + $0x48] sm:$0xf]  ;;  %v200_v10 = vld [vmem:[%s6054_s28 + $0x50] sm:$0xf]  ;;  %197 = vst [vmem:[%s6061_s29 + $0x20] sm:$0xf] %v196_v8 }
  0x1c   : > { %199 = vst [vmem:[%s6061_s29 + $0x24] sm:$0xf] %v198_v9  ;;  %201 = vst [vmem:[%s6061_s29 + $0x28] sm:$0xf] %v200_v10  ;;  %v202_v11 = vld [vmem:[%s6054_s28 + $0x58] sm:$0xf] }
  0x1d   : > { %v204_v12 = vld [vmem:[%s6054_s28 + $0x60] sm:$0xf]  ;;  %v206_v13 = vld [vmem:[%s6054_s28 + $0x68] sm:$0xf]  ;;  %203 = vst [vmem:[%s6061_s29 + $0x2c] sm:$0xf] %v202_v11 }
  0x1e   : > { %205 = vst [vmem:[%s6061_s29 + $0x30] sm:$0xf] %v204_v12  ;;  %207 = vst [vmem:[%s6061_s29 + $0x34] sm:$0xf] %v206_v13  ;;  %v208_v14 = vld [vmem:[%s6054_s28 + $0x70] sm:$0xf] }
  0x1f   : > { %v210_v15 = vld [vmem:[%s6054_s28 + $0x78] sm:$0xf]  ;;  %v212_v16 = vld [vmem:[%s6054_s28 + $0x80] sm:$0xf]  ;;  %209 = vst [vmem:[%s6061_s29 + $0x38] sm:$0xf] %v208_v14 }
  0x20   : > { %211 = vst [vmem:[%s6061_s29 + $0x3c] sm:$0xf] %v210_v15  ;;  %213 = vst [vmem:[%s6061_s29 + $0x40] sm:$0xf] %v212_v16  ;;  %v214_v17 = vld [vmem:[%s6054_s28 + $0x88] sm:$0xf] }
  0x21   : > { %v216_v18 = vld [vmem:[%s6054_s28 + $0x90] sm:$0xf]  ;;  %v218_v19 = vld [vmem:[%s6054_s28 + $0x98] sm:$0xf]  ;;  %215 = vst [vmem:[%s6061_s29 + $0x44] sm:$0xf] %v214_v17 }
  0x22   : > { %217 = vst [vmem:[%s6061_s29 + $0x48] sm:$0xf] %v216_v18  ;;  %219 = vst [vmem:[%s6061_s29 + $0x4c] sm:$0xf] %v218_v19  ;;  %v220_v20 = vld [vmem:[%s6054_s28 + $0xa0] sm:$0xf] }
  0x23   : > { %v222_v21 = vld [vmem:[%s6054_s28 + $0xa8] sm:$0xf]  ;;  %v224_v22 = vld [vmem:[%s6054_s28 + $0xb0] sm:$0xf]  ;;  %221 = vst [vmem:[%s6061_s29 + $0x50] sm:$0xf] %v220_v20 }
  0x24   : > { %223 = vst [vmem:[%s6061_s29 + $0x54] sm:$0xf] %v222_v21  ;;  %225 = vst [vmem:[%s6061_s29 + $0x58] sm:$0xf] %v224_v22  ;;  %v226_v23 = vld [vmem:[%s6054_s28 + $0xb8] sm:$0xf] }
  0x25   : > { %v228_v24 = vld [vmem:[%s6054_s28 + $0xc0] sm:$0xf]  ;;  %v230_v25 = vld [vmem:[%s6054_s28 + $0xc8] sm:$0xf]  ;;  %227 = vst [vmem:[%s6061_s29 + $0x5c] sm:$0xf] %v226_v23 }
  0x26   : > { %229 = vst [vmem:[%s6061_s29 + $0x60] sm:$0xf] %v228_v24  ;;  %231 = vst [vmem:[%s6061_s29 + $0x64] sm:$0xf] %v230_v25  ;;  %v232_v26 = vld [vmem:[%s6054_s28 + $0xd0] sm:$0xf] }
  0x27   : > { %v234_v27 = vld [vmem:[%s6054_s28 + $0xd8] sm:$0xf]  ;;  %v236_v28 = vld [vmem:[%s6054_s28 + $0xe0] sm:$0xf]  ;;  %233 = vst [vmem:[%s6061_s29 + $0x68] sm:$0xf] %v232_v26 }
  0x28   : > { %235 = vst [vmem:[%s6061_s29 + $0x6c] sm:$0xf] %v234_v27  ;;  %237 = vst [vmem:[%s6061_s29 + $0x70] sm:$0xf] %v236_v28  ;;  %v238_v29 = vld [vmem:[%s6054_s28 + $0xe8] sm:$0xf] }
  0x29   : > { %v240_v30 = vld [vmem:[%s6054_s28 + $0xf0] sm:$0xf]  ;;  %v242_v31 = vld [vmem:[%s6054_s28 + $0xf8] sm:$0xf]  ;;  %239 = vst [vmem:[%s6061_s29 + $0x74] sm:$0xf] %v238_v29 }
  0x2a   : > { %241 = vst [vmem:[%s6061_s29 + $0x78] sm:$0xf] %v240_v30  ;;  %243 = vst [vmem:[%s6061_s29 + $0x7c] sm:$0xf] %v242_v31  ;;  %v244_v32 = vld [vmem:[%s6054_s28 + $0x100] sm:$0xf] }
  0x2b   : > { %v246_v33 = vld [vmem:[%s6054_s28 + $0x108] sm:$0xf]  ;;  %v248_v34 = vld [vmem:[%s6054_s28 + $0x110] sm:$0xf]  ;;  %245 = vst [vmem:[%s6061_s29 + $0x80] sm:$0xf] %v244_v32 }
  0x2c   : > { %247 = vst [vmem:[%s6061_s29 + $0x84] sm:$0xf] %v246_v33  ;;  %249 = vst [vmem:[%s6061_s29 + $0x88] sm:$0xf] %v248_v34  ;;  %v250_v35 = vld [vmem:[%s6054_s28 + $0x118] sm:$0xf] }
  0x2d   : > { %v252_v36 = vld [vmem:[%s6054_s28 + $0x120] sm:$0xf]  ;;  %v254_v37 = vld [vmem:[%s6054_s28 + $0x128] sm:$0xf]  ;;  %251 = vst [vmem:[%s6061_s29 + $0x8c] sm:$0xf] %v250_v35 }
  0x2e   : > { %253 = vst [vmem:[%s6061_s29 + $0x90] sm:$0xf] %v252_v36  ;;  %255 = vst [vmem:[%s6061_s29 + $0x94] sm:$0xf] %v254_v37  ;;  %v256_v38 = vld [vmem:[%s6054_s28 + $0x130] sm:$0xf] }
  0x2f   : > { %v258_v39 = vld [vmem:[%s6054_s28 + $0x138] sm:$0xf]  ;;  %v260_v40 = vld [vmem:[%s6054_s28 + $0x140] sm:$0xf]  ;;  %257 = vst [vmem:[%s6061_s29 + $0x98] sm:$0xf] %v256_v38 }
  0x30   : > { %259 = vst [vmem:[%s6061_s29 + $0x9c] sm:$0xf] %v258_v39  ;;  %261 = vst [vmem:[%s6061_s29 + $0xa0] sm:$0xf] %v260_v40  ;;  %v262_v41 = vld [vmem:[%s6054_s28 + $0x148] sm:$0xf] }
  0x31   : > { %v264_v42 = vld [vmem:[%s6054_s28 + $0x150] sm:$0xf]  ;;  %v266_v43 = vld [vmem:[%s6054_s28 + $0x158] sm:$0xf]  ;;  %263 = vst [vmem:[%s6061_s29 + $0xa4] sm:$0xf] %v262_v41 }
  0x32   : > { %265 = vst [vmem:[%s6061_s29 + $0xa8] sm:$0xf] %v264_v42  ;;  %267 = vst [vmem:[%s6061_s29 + $0xac] sm:$0xf] %v266_v43  ;;  %v268_v44 = vld [vmem:[%s6054_s28 + $0x160] sm:$0xf] }
  0x33   : > { %v270_v45 = vld [vmem:[%s6054_s28 + $0x168] sm:$0xf]  ;;  %v272_v46 = vld [vmem:[%s6054_s28 + $0x170] sm:$0xf]  ;;  %269 = vst [vmem:[%s6061_s29 + $0xb0] sm:$0xf] %v268_v44 }
  0x34   : > { %271 = vst [vmem:[%s6061_s29 + $0xb4] sm:$0xf] %v270_v45  ;;  %273 = vst [vmem:[%s6061_s29 + $0xb8] sm:$0xf] %v272_v46  ;;  %v274_v47 = vld [vmem:[%s6054_s28 + $0x178] sm:$0xf] }
  0x35   : > { %v276_v48 = vld [vmem:[%s6054_s28 + $0x180] sm:$0xf]  ;;  %v278_v49 = vld [vmem:[%s6054_s28 + $0x188] sm:$0xf]  ;;  %275 = vst [vmem:[%s6061_s29 + $0xbc] sm:$0xf] %v274_v47 }
  0x36   : > { %277 = vst [vmem:[%s6061_s29 + $0xc0] sm:$0xf] %v276_v48  ;;  %279 = vst [vmem:[%s6061_s29 + $0xc4] sm:$0xf] %v278_v49  ;;  %v280_v50 = vld [vmem:[%s6054_s28 + $0x190] sm:$0xf] }
  0x37   : > { %v282_v51 = vld [vmem:[%s6054_s28 + $0x198] sm:$0xf]  ;;  %v284_v52 = vld [vmem:[%s6054_s28 + $0x1a0] sm:$0xf]  ;;  %281 = vst [vmem:[%s6061_s29 + $0xc8] sm:$0xf] %v280_v50 }
  0x38   : > { %283 = vst [vmem:[%s6061_s29 + $0xcc] sm:$0xf] %v282_v51  ;;  %285 = vst [vmem:[%s6061_s29 + $0xd0] sm:$0xf] %v284_v52  ;;  %v286_v53 = vld [vmem:[%s6054_s28 + $0x1a8] sm:$0xf] }
  0x39   : > { %v288_v54 = vld [vmem:[%s6054_s28 + $0x1b0] sm:$0xf]  ;;  %v290_v55 = vld [vmem:[%s6054_s28 + $0x1b8] sm:$0xf]  ;;  %287 = vst [vmem:[%s6061_s29 + $0xd4] sm:$0xf] %v286_v53 }
  0x3a   : > { %289 = vst [vmem:[%s6061_s29 + $0xd8] sm:$0xf] %v288_v54  ;;  %291 = vst [vmem:[%s6061_s29 + $0xdc] sm:$0xf] %v290_v55  ;;  %v292_v56 = vld [vmem:[%s6054_s28 + $0x1c0] sm:$0xf] }
  0x3b   : > { %v294_v57 = vld [vmem:[%s6054_s28 + $0x1c8] sm:$0xf]  ;;  %v296_v58 = vld [vmem:[%s6054_s28 + $0x1d0] sm:$0xf]  ;;  %293 = vst [vmem:[%s6061_s29 + $0xe0] sm:$0xf] %v292_v56 }
  0x3c   : > { %295 = vst [vmem:[%s6061_s29 + $0xe4] sm:$0xf] %v294_v57  ;;  %297 = vst [vmem:[%s6061_s29 + $0xe8] sm:$0xf] %v296_v58  ;;  %v298_v59 = vld [vmem:[%s6054_s28 + $0x1d8] sm:$0xf] }
  0x3d   : > { %v300_v60 = vld [vmem:[%s6054_s28 + $0x1e0] sm:$0xf]  ;;  %v302_v61 = vld [vmem:[%s6054_s28 + $0x1e8] sm:$0xf]  ;;  %299 = vst [vmem:[%s6061_s29 + $0xec] sm:$0xf] %v298_v59 }
  0x3e   : > { %301 = vst [vmem:[%s6061_s29 + $0xf0] sm:$0xf] %v300_v60  ;;  %303 = vst [vmem:[%s6061_s29 + $0xf4] sm:$0xf] %v302_v61  ;;  %v304_v62 = vld [vmem:[%s6054_s28 + $0x1f0] sm:$0xf] }
  0x3f   : > { %v306_v63 = vld [vmem:[%s6054_s28 + $0x1f8] sm:$0xf]  ;;  %v308_v0 = vld [vmem:[%s6054_s28 + $0x200] sm:$0xf]  ;;  %305 = vst [vmem:[%s6061_s29 + $0xf8] sm:$0xf] %v304_v62 }
  0x40   : > { %307 = vst [vmem:[%s6061_s29 + $0xfc] sm:$0xf] %v306_v63  ;;  %309 = vst [vmem:[%s6061_s29 + $0x100] sm:$0xf] %v308_v0  ;;  %v310_v1 = vld [vmem:[%s6054_s28 + $0x208] sm:$0xf] }
  0x41   : > { %v312_v2 = vld [vmem:[%s6054_s28 + $0x210] sm:$0xf]  ;;  %v314_v3 = vld [vmem:[%s6054_s28 + $0x218] sm:$0xf]  ;;  %311 = vst [vmem:[%s6061_s29 + $0x104] sm:$0xf] %v310_v1 }
  0x42   : > { %313 = vst [vmem:[%s6061_s29 + $0x108] sm:$0xf] %v312_v2  ;;  %315 = vst [vmem:[%s6061_s29 + $0x10c] sm:$0xf] %v314_v3  ;;  %v316_v4 = vld [vmem:[%s6054_s28 + $0x220] sm:$0xf] }
  0x43   : > { %v318_v5 = vld [vmem:[%s6054_s28 + $0x228] sm:$0xf]  ;;  %v320_v6 = vld [vmem:[%s6054_s28 + $0x230] sm:$0xf]  ;;  %317 = vst [vmem:[%s6061_s29 + $0x110] sm:$0xf] %v316_v4 }
  0x44   : > { %319 = vst [vmem:[%s6061_s29 + $0x114] sm:$0xf] %v318_v5  ;;  %321 = vst [vmem:[%s6061_s29 + $0x118] sm:$0xf] %v320_v6  ;;  %v322_v7 = vld [vmem:[%s6054_s28 + $0x238] sm:$0xf] }
  0x45   : > { %v324_v8 = vld [vmem:[%s6054_s28 + $0x240] sm:$0xf]  ;;  %v326_v9 = vld [vmem:[%s6054_s28 + $0x248] sm:$0xf]  ;;  %323 = vst [vmem:[%s6061_s29 + $0x11c] sm:$0xf] %v322_v7 }
  0x46   : > { %325 = vst [vmem:[%s6061_s29 + $0x120] sm:$0xf] %v324_v8  ;;  %327 = vst [vmem:[%s6061_s29 + $0x124] sm:$0xf] %v326_v9  ;;  %v328_v10 = vld [vmem:[%s6054_s28 + $0x250] sm:$0xf] }
  0x47   : > { %v330_v11 = vld [vmem:[%s6054_s28 + $0x258] sm:$0xf]  ;;  %v332_v12 = vld [vmem:[%s6054_s28 + $0x260] sm:$0xf]  ;;  %329 = vst [vmem:[%s6061_s29 + $0x128] sm:$0xf] %v328_v10 }
  0x48   : > { %331 = vst [vmem:[%s6061_s29 + $0x12c] sm:$0xf] %v330_v11  ;;  %333 = vst [vmem:[%s6061_s29 + $0x130] sm:$0xf] %v332_v12  ;;  %v334_v13 = vld [vmem:[%s6054_s28 + $0x268] sm:$0xf] }
  0x49   : > { %v336_v14 = vld [vmem:[%s6054_s28 + $0x270] sm:$0xf]  ;;  %v338_v15 = vld [vmem:[%s6054_s28 + $0x278] sm:$0xf]  ;;  %335 = vst [vmem:[%s6061_s29 + $0x134] sm:$0xf] %v334_v13 }
  0x4a   : > { %337 = vst [vmem:[%s6061_s29 + $0x138] sm:$0xf] %v336_v14  ;;  %339 = vst [vmem:[%s6061_s29 + $0x13c] sm:$0xf] %v338_v15  ;;  %v340_v16 = vld [vmem:[%s6054_s28 + $0x280] sm:$0xf] }
  0x4b   : > { %v342_v17 = vld [vmem:[%s6054_s28 + $0x288] sm:$0xf]  ;;  %v344_v18 = vld [vmem:[%s6054_s28 + $0x290] sm:$0xf]  ;;  %341 = vst [vmem:[%s6061_s29 + $0x140] sm:$0xf] %v340_v16 }
  0x4c   : > { %343 = vst [vmem:[%s6061_s29 + $0x144] sm:$0xf] %v342_v17  ;;  %345 = vst [vmem:[%s6061_s29 + $0x148] sm:$0xf] %v344_v18  ;;  %v346_v19 = vld [vmem:[%s6054_s28 + $0x298] sm:$0xf] }
  0x4d   : > { %v348_v20 = vld [vmem:[%s6054_s28 + $0x2a0] sm:$0xf]  ;;  %v350_v21 = vld [vmem:[%s6054_s28 + $0x2a8] sm:$0xf]  ;;  %347 = vst [vmem:[%s6061_s29 + $0x14c] sm:$0xf] %v346_v19 }
  0x4e   : > { %349 = vst [vmem:[%s6061_s29 + $0x150] sm:$0xf] %v348_v20  ;;  %351 = vst [vmem:[%s6061_s29 + $0x154] sm:$0xf] %v350_v21  ;;  %v352_v22 = vld [vmem:[%s6054_s28 + $0x2b0] sm:$0xf] }
  0x4f   : > { %v354_v23 = vld [vmem:[%s6054_s28 + $0x2b8] sm:$0xf]  ;;  %v356_v24 = vld [vmem:[%s6054_s28 + $0x2c0] sm:$0xf]  ;;  %353 = vst [vmem:[%s6061_s29 + $0x158] sm:$0xf] %v352_v22 }
  0x50   : > { %355 = vst [vmem:[%s6061_s29 + $0x15c] sm:$0xf] %v354_v23  ;;  %357 = vst [vmem:[%s6061_s29 + $0x160] sm:$0xf] %v356_v24  ;;  %v358_v25 = vld [vmem:[%s6054_s28 + $0x2c8] sm:$0xf] }
  0x51   : > { %v360_v26 = vld [vmem:[%s6054_s28 + $0x2d0] sm:$0xf]  ;;  %v362_v27 = vld [vmem:[%s6054_s28 + $0x2d8] sm:$0xf]  ;;  %359 = vst [vmem:[%s6061_s29 + $0x164] sm:$0xf] %v358_v25 }
  0x52   : > { %361 = vst [vmem:[%s6061_s29 + $0x168] sm:$0xf] %v360_v26  ;;  %363 = vst [vmem:[%s6061_s29 + $0x16c] sm:$0xf] %v362_v27  ;;  %v364_v28 = vld [vmem:[%s6054_s28 + $0x2e0] sm:$0xf] }
  0x53   : > { %v366_v29 = vld [vmem:[%s6054_s28 + $0x2e8] sm:$0xf]  ;;  %v368_v30 = vld [vmem:[%s6054_s28 + $0x2f0] sm:$0xf]  ;;  %365 = vst [vmem:[%s6061_s29 + $0x170] sm:$0xf] %v364_v28 }
  0x54   : > { %367 = vst [vmem:[%s6061_s29 + $0x174] sm:$0xf] %v366_v29  ;;  %369 = vst [vmem:[%s6061_s29 + $0x178] sm:$0xf] %v368_v30  ;;  %v370_v31 = vld [vmem:[%s6054_s28 + $0x2f8] sm:$0xf] }
  0x55   : > { %v372_v32 = vld [vmem:[%s6054_s28 + $0x300] sm:$0xf]  ;;  %v374_v33 = vld [vmem:[%s6054_s28 + $0x308] sm:$0xf]  ;;  %371 = vst [vmem:[%s6061_s29 + $0x17c] sm:$0xf] %v370_v31 }
  0x56   : > { %373 = vst [vmem:[%s6061_s29 + $0x180] sm:$0xf] %v372_v32  ;;  %375 = vst [vmem:[%s6061_s29 + $0x184] sm:$0xf] %v374_v33  ;;  %v376_v34 = vld [vmem:[%s6054_s28 + $0x310] sm:$0xf] }
  0x57   : > { %v378_v35 = vld [vmem:[%s6054_s28 + $0x318] sm:$0xf]  ;;  %v380_v36 = vld [vmem:[%s6054_s28 + $0x320] sm:$0xf]  ;;  %377 = vst [vmem:[%s6061_s29 + $0x188] sm:$0xf] %v376_v34 }
  0x58   : > { %379 = vst [vmem:[%s6061_s29 + $0x18c] sm:$0xf] %v378_v35  ;;  %381 = vst [vmem:[%s6061_s29 + $0x190] sm:$0xf] %v380_v36  ;;  %v382_v37 = vld [vmem:[%s6054_s28 + $0x328] sm:$0xf] }
  0x59   : > { %v384_v38 = vld [vmem:[%s6054_s28 + $0x330] sm:$0xf]  ;;  %v386_v39 = vld [vmem:[%s6054_s28 + $0x338] sm:$0xf]  ;;  %383 = vst [vmem:[%s6061_s29 + $0x194] sm:$0xf] %v382_v37 }
  0x5a   : > { %385 = vst [vmem:[%s6061_s29 + $0x198] sm:$0xf] %v384_v38  ;;  %387 = vst [vmem:[%s6061_s29 + $0x19c] sm:$0xf] %v386_v39  ;;  %v388_v40 = vld [vmem:[%s6054_s28 + $0x340] sm:$0xf] }
  0x5b   : > { %v390_v41 = vld [vmem:[%s6054_s28 + $0x348] sm:$0xf]  ;;  %v392_v42 = vld [vmem:[%s6054_s28 + $0x350] sm:$0xf]  ;;  %389 = vst [vmem:[%s6061_s29 + $0x1a0] sm:$0xf] %v388_v40 }
  0x5c   : > { %391 = vst [vmem:[%s6061_s29 + $0x1a4] sm:$0xf] %v390_v41  ;;  %393 = vst [vmem:[%s6061_s29 + $0x1a8] sm:$0xf] %v392_v42  ;;  %v394_v43 = vld [vmem:[%s6054_s28 + $0x358] sm:$0xf] }
  0x5d   : > { %v396_v44 = vld [vmem:[%s6054_s28 + $0x360] sm:$0xf]  ;;  %v398_v45 = vld [vmem:[%s6054_s28 + $0x368] sm:$0xf]  ;;  %395 = vst [vmem:[%s6061_s29 + $0x1ac] sm:$0xf] %v394_v43 }
  0x5e   : > { %397 = vst [vmem:[%s6061_s29 + $0x1b0] sm:$0xf] %v396_v44  ;;  %399 = vst [vmem:[%s6061_s29 + $0x1b4] sm:$0xf] %v398_v45  ;;  %v400_v46 = vld [vmem:[%s6054_s28 + $0x370] sm:$0xf] }
  0x5f   : > { %v402_v47 = vld [vmem:[%s6054_s28 + $0x378] sm:$0xf]  ;;  %v404_v48 = vld [vmem:[%s6054_s28 + $0x380] sm:$0xf]  ;;  %401 = vst [vmem:[%s6061_s29 + $0x1b8] sm:$0xf] %v400_v46 }
  0x60   : > { %403 = vst [vmem:[%s6061_s29 + $0x1bc] sm:$0xf] %v402_v47  ;;  %405 = vst [vmem:[%s6061_s29 + $0x1c0] sm:$0xf] %v404_v48  ;;  %v406_v49 = vld [vmem:[%s6054_s28 + $0x388] sm:$0xf] }
  0x61   : > { %v408_v50 = vld [vmem:[%s6054_s28 + $0x390] sm:$0xf]  ;;  %v410_v51 = vld [vmem:[%s6054_s28 + $0x398] sm:$0xf]  ;;  %407 = vst [vmem:[%s6061_s29 + $0x1c4] sm:$0xf] %v406_v49 }
  0x62   : > { %409 = vst [vmem:[%s6061_s29 + $0x1c8] sm:$0xf] %v408_v50  ;;  %411 = vst [vmem:[%s6061_s29 + $0x1cc] sm:$0xf] %v410_v51  ;;  %v412_v52 = vld [vmem:[%s6054_s28 + $0x3a0] sm:$0xf] }
  0x63   : > { %v414_v53 = vld [vmem:[%s6054_s28 + $0x3a8] sm:$0xf]  ;;  %v416_v54 = vld [vmem:[%s6054_s28 + $0x3b0] sm:$0xf]  ;;  %413 = vst [vmem:[%s6061_s29 + $0x1d0] sm:$0xf] %v412_v52 }
  0x64   : > { %415 = vst [vmem:[%s6061_s29 + $0x1d4] sm:$0xf] %v414_v53  ;;  %417 = vst [vmem:[%s6061_s29 + $0x1d8] sm:$0xf] %v416_v54  ;;  %v418_v55 = vld [vmem:[%s6054_s28 + $0x3b8] sm:$0xf] }
  0x65   : > { %v420_v56 = vld [vmem:[%s6054_s28 + $0x3c0] sm:$0xf]  ;;  %v422_v57 = vld [vmem:[%s6054_s28 + $0x3c8] sm:$0xf]  ;;  %419 = vst [vmem:[%s6061_s29 + $0x1dc] sm:$0xf] %v418_v55 }
  0x66   : > { %421 = vst [vmem:[%s6061_s29 + $0x1e0] sm:$0xf] %v420_v56  ;;  %423 = vst [vmem:[%s6061_s29 + $0x1e4] sm:$0xf] %v422_v57  ;;  %v424_v58 = vld [vmem:[%s6054_s28 + $0x3d0] sm:$0xf] }
  0x67   : > { %v426_v59 = vld [vmem:[%s6054_s28 + $0x3d8] sm:$0xf]  ;;  %v428_v60 = vld [vmem:[%s6054_s28 + $0x3e0] sm:$0xf]  ;;  %425 = vst [vmem:[%s6061_s29 + $0x1e8] sm:$0xf] %v424_v58 }
  0x68   : > { %427 = vst [vmem:[%s6061_s29 + $0x1ec] sm:$0xf] %v426_v59  ;;  %429 = vst [vmem:[%s6061_s29 + $0x1f0] sm:$0xf] %v428_v60  ;;  %v430_v61 = vld [vmem:[%s6054_s28 + $0x3e8] sm:$0xf] }
  0x69   : > { %v432_v62 = vld [vmem:[%s6054_s28 + $0x3f0] sm:$0xf]  ;;  %v434_v63 = vld [vmem:[%s6054_s28 + $0x3f8] sm:$0xf]  ;;  %431 = vst [vmem:[%s6061_s29 + $0x1f4] sm:$0xf] %v430_v61 }
  0x6a   : > { %433 = vst [vmem:[%s6061_s29 + $0x1f8] sm:$0xf] %v432_v62  ;;  %435 = vst [vmem:[%s6061_s29 + $0x1fc] sm:$0xf] %v434_v63  ;;  %v436_v0 = vld [vmem:[%s6054_s28 + $0x400] sm:$0xf] }
  0x6b   : > { %v438_v1 = vld [vmem:[%s6054_s28 + $0x408] sm:$0xf]  ;;  %v440_v2 = vld [vmem:[%s6054_s28 + $0x410] sm:$0xf]  ;;  %437 = vst [vmem:[%s6061_s29 + $0x200] sm:$0xf] %v436_v0 }
  0x6c   : > { %439 = vst [vmem:[%s6061_s29 + $0x204] sm:$0xf] %v438_v1  ;;  %441 = vst [vmem:[%s6061_s29 + $0x208] sm:$0xf] %v440_v2  ;;  %v442_v3 = vld [vmem:[%s6054_s28 + $0x418] sm:$0xf] }
  0x6d   : > { %v444_v4 = vld [vmem:[%s6054_s28 + $0x420] sm:$0xf]  ;;  %v446_v5 = vld [vmem:[%s6054_s28 + $0x428] sm:$0xf]  ;;  %443 = vst [vmem:[%s6061_s29 + $0x20c] sm:$0xf] %v442_v3 }
  0x6e   : > { %445 = vst [vmem:[%s6061_s29 + $0x210] sm:$0xf] %v444_v4  ;;  %447 = vst [vmem:[%s6061_s29 + $0x214] sm:$0xf] %v446_v5  ;;  %v448_v6 = vld [vmem:[%s6054_s28 + $0x430] sm:$0xf] }
  0x6f   : > { %v450_v7 = vld [vmem:[%s6054_s28 + $0x438] sm:$0xf]  ;;  %v452_v8 = vld [vmem:[%s6054_s28 + $0x440] sm:$0xf]  ;;  %449 = vst [vmem:[%s6061_s29 + $0x218] sm:$0xf] %v448_v6 }
  0x70   : > { %451 = vst [vmem:[%s6061_s29 + $0x21c] sm:$0xf] %v450_v7  ;;  %453 = vst [vmem:[%s6061_s29 + $0x220] sm:$0xf] %v452_v8  ;;  %v454_v9 = vld [vmem:[%s6054_s28 + $0x448] sm:$0xf] }
  0x71   : > { %v456_v10 = vld [vmem:[%s6054_s28 + $0x450] sm:$0xf]  ;;  %v458_v11 = vld [vmem:[%s6054_s28 + $0x458] sm:$0xf]  ;;  %455 = vst [vmem:[%s6061_s29 + $0x224] sm:$0xf] %v454_v9 }
  0x72   : > { %457 = vst [vmem:[%s6061_s29 + $0x228] sm:$0xf] %v456_v10  ;;  %459 = vst [vmem:[%s6061_s29 + $0x22c] sm:$0xf] %v458_v11  ;;  %v460_v12 = vld [vmem:[%s6054_s28 + $0x460] sm:$0xf] }
  0x73   : > { %v462_v13 = vld [vmem:[%s6054_s28 + $0x468] sm:$0xf]  ;;  %v464_v14 = vld [vmem:[%s6054_s28 + $0x470] sm:$0xf]  ;;  %461 = vst [vmem:[%s6061_s29 + $0x230] sm:$0xf] %v460_v12 }
  0x74   : > { %463 = vst [vmem:[%s6061_s29 + $0x234] sm:$0xf] %v462_v13  ;;  %465 = vst [vmem:[%s6061_s29 + $0x238] sm:$0xf] %v464_v14  ;;  %v466_v15 = vld [vmem:[%s6054_s28 + $0x478] sm:$0xf] }
  0x75   : > { %v468_v16 = vld [vmem:[%s6054_s28 + $0x480] sm:$0xf]  ;;  %v470_v17 = vld [vmem:[%s6054_s28 + $0x488] sm:$0xf]  ;;  %467 = vst [vmem:[%s6061_s29 + $0x23c] sm:$0xf] %v466_v15 }
  0x76   : > { %469 = vst [vmem:[%s6061_s29 + $0x240] sm:$0xf] %v468_v16  ;;  %471 = vst [vmem:[%s6061_s29 + $0x244] sm:$0xf] %v470_v17  ;;  %v472_v18 = vld [vmem:[%s6054_s28 + $0x490] sm:$0xf] }
  0x77   : > { %v474_v19 = vld [vmem:[%s6054_s28 + $0x498] sm:$0xf]  ;;  %v476_v20 = vld [vmem:[%s6054_s28 + $0x4a0] sm:$0xf]  ;;  %473 = vst [vmem:[%s6061_s29 + $0x248] sm:$0xf] %v472_v18 }
  0x78   : > { %475 = vst [vmem:[%s6061_s29 + $0x24c] sm:$0xf] %v474_v19  ;;  %477 = vst [vmem:[%s6061_s29 + $0x250] sm:$0xf] %v476_v20  ;;  %v478_v21 = vld [vmem:[%s6054_s28 + $0x4a8] sm:$0xf] }
  0x79   : > { %v480_v22 = vld [vmem:[%s6054_s28 + $0x4b0] sm:$0xf]  ;;  %v482_v23 = vld [vmem:[%s6054_s28 + $0x4b8] sm:$0xf]  ;;  %479 = vst [vmem:[%s6061_s29 + $0x254] sm:$0xf] %v478_v21 }
  0x7a   : > { %481 = vst [vmem:[%s6061_s29 + $0x258] sm:$0xf] %v480_v22  ;;  %483 = vst [vmem:[%s6061_s29 + $0x25c] sm:$0xf] %v482_v23  ;;  %v484_v24 = vld [vmem:[%s6054_s28 + $0x4c0] sm:$0xf] }
  0x7b   : > { %v486_v25 = vld [vmem:[%s6054_s28 + $0x4c8] sm:$0xf]  ;;  %v488_v26 = vld [vmem:[%s6054_s28 + $0x4d0] sm:$0xf]  ;;  %485 = vst [vmem:[%s6061_s29 + $0x260] sm:$0xf] %v484_v24 }
  0x7c   : > { %487 = vst [vmem:[%s6061_s29 + $0x264] sm:$0xf] %v486_v25  ;;  %489 = vst [vmem:[%s6061_s29 + $0x268] sm:$0xf] %v488_v26  ;;  %v490_v27 = vld [vmem:[%s6054_s28 + $0x4d8] sm:$0xf] }
  0x7d   : > { %v492_v28 = vld [vmem:[%s6054_s28 + $0x4e0] sm:$0xf]  ;;  %v494_v29 = vld [vmem:[%s6054_s28 + $0x4e8] sm:$0xf]  ;;  %491 = vst [vmem:[%s6061_s29 + $0x26c] sm:$0xf] %v490_v27 }
  0x7e   : > { %493 = vst [vmem:[%s6061_s29 + $0x270] sm:$0xf] %v492_v28  ;;  %495 = vst [vmem:[%s6061_s29 + $0x274] sm:$0xf] %v494_v29  ;;  %v496_v30 = vld [vmem:[%s6054_s28 + $0x4f0] sm:$0xf] }
  0x7f   : > { %v498_v31 = vld [vmem:[%s6054_s28 + $0x4f8] sm:$0xf]  ;;  %v500_v32 = vld [vmem:[%s6054_s28 + $0x500] sm:$0xf]  ;;  %497 = vst [vmem:[%s6061_s29 + $0x278] sm:$0xf] %v496_v30 }
  0x80   : > { %499 = vst [vmem:[%s6061_s29 + $0x27c] sm:$0xf] %v498_v31  ;;  %501 = vst [vmem:[%s6061_s29 + $0x280] sm:$0xf] %v500_v32  ;;  %v502_v33 = vld [vmem:[%s6054_s28 + $0x508] sm:$0xf] }
  0x81   : > { %v504_v34 = vld [vmem:[%s6054_s28 + $0x510] sm:$0xf]  ;;  %v506_v35 = vld [vmem:[%s6054_s28 + $0x518] sm:$0xf]  ;;  %503 = vst [vmem:[%s6061_s29 + $0x284] sm:$0xf] %v502_v33 }
  0x82   : > { %505 = vst [vmem:[%s6061_s29 + $0x288] sm:$0xf] %v504_v34  ;;  %507 = vst [vmem:[%s6061_s29 + $0x28c] sm:$0xf] %v506_v35  ;;  %v508_v36 = vld [vmem:[%s6054_s28 + $0x520] sm:$0xf] }
  0x83   : > { %v510_v37 = vld [vmem:[%s6054_s28 + $0x528] sm:$0xf]  ;;  %v512_v38 = vld [vmem:[%s6054_s28 + $0x530] sm:$0xf]  ;;  %509 = vst [vmem:[%s6061_s29 + $0x290] sm:$0xf] %v508_v36 }
  0x84   : > { %511 = vst [vmem:[%s6061_s29 + $0x294] sm:$0xf] %v510_v37  ;;  %513 = vst [vmem:[%s6061_s29 + $0x298] sm:$0xf] %v512_v38  ;;  %v514_v39 = vld [vmem:[%s6054_s28 + $0x538] sm:$0xf] }
  0x85   : > { %v516_v40 = vld [vmem:[%s6054_s28 + $0x540] sm:$0xf]  ;;  %v518_v41 = vld [vmem:[%s6054_s28 + $0x548] sm:$0xf]  ;;  %515 = vst [vmem:[%s6061_s29 + $0x29c] sm:$0xf] %v514_v39 }
  0x86   : > { %517 = vst [vmem:[%s6061_s29 + $0x2a0] sm:$0xf] %v516_v40  ;;  %519 = vst [vmem:[%s6061_s29 + $0x2a4] sm:$0xf] %v518_v41  ;;  %v520_v42 = vld [vmem:[%s6054_s28 + $0x550] sm:$0xf] }
  0x87   : > { %v522_v43 = vld [vmem:[%s6054_s28 + $0x558] sm:$0xf]  ;;  %v524_v44 = vld [vmem:[%s6054_s28 + $0x560] sm:$0xf]  ;;  %521 = vst [vmem:[%s6061_s29 + $0x2a8] sm:$0xf] %v520_v42 }
  0x88   : > { %523 = vst [vmem:[%s6061_s29 + $0x2ac] sm:$0xf] %v522_v43  ;;  %525 = vst [vmem:[%s6061_s29 + $0x2b0] sm:$0xf] %v524_v44  ;;  %v526_v45 = vld [vmem:[%s6054_s28 + $0x568] sm:$0xf] }
  0x89   : > { %v528_v46 = vld [vmem:[%s6054_s28 + $0x570] sm:$0xf]  ;;  %v530_v47 = vld [vmem:[%s6054_s28 + $0x578] sm:$0xf]  ;;  %527 = vst [vmem:[%s6061_s29 + $0x2b4] sm:$0xf] %v526_v45 }
  0x8a   : > { %529 = vst [vmem:[%s6061_s29 + $0x2b8] sm:$0xf] %v528_v46  ;;  %531 = vst [vmem:[%s6061_s29 + $0x2bc] sm:$0xf] %v530_v47  ;;  %v532_v48 = vld [vmem:[%s6054_s28 + $0x580] sm:$0xf] }
  0x8b   : > { %v534_v49 = vld [vmem:[%s6054_s28 + $0x588] sm:$0xf]  ;;  %v536_v50 = vld [vmem:[%s6054_s28 + $0x590] sm:$0xf]  ;;  %533 = vst [vmem:[%s6061_s29 + $0x2c0] sm:$0xf] %v532_v48 }
  0x8c   : > { %535 = vst [vmem:[%s6061_s29 + $0x2c4] sm:$0xf] %v534_v49  ;;  %537 = vst [vmem:[%s6061_s29 + $0x2c8] sm:$0xf] %v536_v50  ;;  %v538_v51 = vld [vmem:[%s6054_s28 + $0x598] sm:$0xf] }
  0x8d   : > { %v540_v52 = vld [vmem:[%s6054_s28 + $0x5a0] sm:$0xf]  ;;  %v542_v53 = vld [vmem:[%s6054_s28 + $0x5a8] sm:$0xf]  ;;  %539 = vst [vmem:[%s6061_s29 + $0x2cc] sm:$0xf] %v538_v51 }
  0x8e   : > { %541 = vst [vmem:[%s6061_s29 + $0x2d0] sm:$0xf] %v540_v52  ;;  %543 = vst [vmem:[%s6061_s29 + $0x2d4] sm:$0xf] %v542_v53  ;;  %v544_v54 = vld [vmem:[%s6054_s28 + $0x5b0] sm:$0xf] }
  0x8f   : > { %v546_v55 = vld [vmem:[%s6054_s28 + $0x5b8] sm:$0xf]  ;;  %v548_v56 = vld [vmem:[%s6054_s28 + $0x5c0] sm:$0xf]  ;;  %545 = vst [vmem:[%s6061_s29 + $0x2d8] sm:$0xf] %v544_v54 }
  0x90   : > { %547 = vst [vmem:[%s6061_s29 + $0x2dc] sm:$0xf] %v546_v55  ;;  %549 = vst [vmem:[%s6061_s29 + $0x2e0] sm:$0xf] %v548_v56  ;;  %v550_v57 = vld [vmem:[%s6054_s28 + $0x5c8] sm:$0xf] }
  0x91   : > { %v552_v58 = vld [vmem:[%s6054_s28 + $0x5d0] sm:$0xf]  ;;  %v554_v59 = vld [vmem:[%s6054_s28 + $0x5d8] sm:$0xf]  ;;  %551 = vst [vmem:[%s6061_s29 + $0x2e4] sm:$0xf] %v550_v57 }
  0x92   : > { %553 = vst [vmem:[%s6061_s29 + $0x2e8] sm:$0xf] %v552_v58  ;;  %555 = vst [vmem:[%s6061_s29 + $0x2ec] sm:$0xf] %v554_v59  ;;  %v556_v60 = vld [vmem:[%s6054_s28 + $0x5e0] sm:$0xf] }
  0x93   : > { %v558_v61 = vld [vmem:[%s6054_s28 + $0x5e8] sm:$0xf]  ;;  %v560_v62 = vld [vmem:[%s6054_s28 + $0x5f0] sm:$0xf]  ;;  %557 = vst [vmem:[%s6061_s29 + $0x2f0] sm:$0xf] %v556_v60 }
  0x94   : > { %559 = vst [vmem:[%s6061_s29 + $0x2f4] sm:$0xf] %v558_v61  ;;  %561 = vst [vmem:[%s6061_s29 + $0x2f8] sm:$0xf] %v560_v62  ;;  %v562_v63 = vld [vmem:[%s6054_s28 + $0x5f8] sm:$0xf] }
  0x95   : > { %v564_v0 = vld [vmem:[%s6054_s28 + $0x600] sm:$0xf]  ;;  %v566_v1 = vld [vmem:[%s6054_s28 + $0x608] sm:$0xf]  ;;  %563 = vst [vmem:[%s6061_s29 + $0x2fc] sm:$0xf] %v562_v63 }
  0x96   : > { %565 = vst [vmem:[%s6061_s29 + $0x300] sm:$0xf] %v564_v0  ;;  %567 = vst [vmem:[%s6061_s29 + $0x304] sm:$0xf] %v566_v1  ;;  %v568_v2 = vld [vmem:[%s6054_s28 + $0x610] sm:$0xf] }
  0x97   : > { %v570_v3 = vld [vmem:[%s6054_s28 + $0x618] sm:$0xf]  ;;  %v572_v4 = vld [vmem:[%s6054_s28 + $0x620] sm:$0xf]  ;;  %569 = vst [vmem:[%s6061_s29 + $0x308] sm:$0xf] %v568_v2 }
  0x98   : > { %571 = vst [vmem:[%s6061_s29 + $0x30c] sm:$0xf] %v570_v3  ;;  %573 = vst [vmem:[%s6061_s29 + $0x310] sm:$0xf] %v572_v4  ;;  %v574_v5 = vld [vmem:[%s6054_s28 + $0x628] sm:$0xf] }
  0x99   : > { %v576_v6 = vld [vmem:[%s6054_s28 + $0x630] sm:$0xf]  ;;  %v578_v7 = vld [vmem:[%s6054_s28 + $0x638] sm:$0xf]  ;;  %575 = vst [vmem:[%s6061_s29 + $0x314] sm:$0xf] %v574_v5 }
  0x9a   : > { %577 = vst [vmem:[%s6061_s29 + $0x318] sm:$0xf] %v576_v6  ;;  %579 = vst [vmem:[%s6061_s29 + $0x31c] sm:$0xf] %v578_v7  ;;  %v580_v8 = vld [vmem:[%s6054_s28 + $0x640] sm:$0xf] }
  0x9b   : > { %v582_v9 = vld [vmem:[%s6054_s28 + $0x648] sm:$0xf]  ;;  %v584_v10 = vld [vmem:[%s6054_s28 + $0x650] sm:$0xf]  ;;  %581 = vst [vmem:[%s6061_s29 + $0x320] sm:$0xf] %v580_v8 }
  0x9c   : > { %583 = vst [vmem:[%s6061_s29 + $0x324] sm:$0xf] %v582_v9  ;;  %585 = vst [vmem:[%s6061_s29 + $0x328] sm:$0xf] %v584_v10  ;;  %v586_v11 = vld [vmem:[%s6054_s28 + $0x658] sm:$0xf] }
  0x9d   : > { %v588_v12 = vld [vmem:[%s6054_s28 + $0x660] sm:$0xf]  ;;  %v590_v13 = vld [vmem:[%s6054_s28 + $0x668] sm:$0xf]  ;;  %587 = vst [vmem:[%s6061_s29 + $0x32c] sm:$0xf] %v586_v11 }
  0x9e   : > { %589 = vst [vmem:[%s6061_s29 + $0x330] sm:$0xf] %v588_v12  ;;  %591 = vst [vmem:[%s6061_s29 + $0x334] sm:$0xf] %v590_v13  ;;  %v592_v14 = vld [vmem:[%s6054_s28 + $0x670] sm:$0xf] }
  0x9f   : > { %v594_v15 = vld [vmem:[%s6054_s28 + $0x678] sm:$0xf]  ;;  %v596_v16 = vld [vmem:[%s6054_s28 + $0x680] sm:$0xf]  ;;  %593 = vst [vmem:[%s6061_s29 + $0x338] sm:$0xf] %v592_v14 }
  0xa0   : > { %595 = vst [vmem:[%s6061_s29 + $0x33c] sm:$0xf] %v594_v15  ;;  %597 = vst [vmem:[%s6061_s29 + $0x340] sm:$0xf] %v596_v16  ;;  %v598_v17 = vld [vmem:[%s6054_s28 + $0x688] sm:$0xf] }
  0xa1   : > { %v600_v18 = vld [vmem:[%s6054_s28 + $0x690] sm:$0xf]  ;;  %v602_v19 = vld [vmem:[%s6054_s28 + $0x698] sm:$0xf]  ;;  %599 = vst [vmem:[%s6061_s29 + $0x344] sm:$0xf] %v598_v17 }
  0xa2   : > { %601 = vst [vmem:[%s6061_s29 + $0x348] sm:$0xf] %v600_v18  ;;  %603 = vst [vmem:[%s6061_s29 + $0x34c] sm:$0xf] %v602_v19  ;;  %v604_v20 = vld [vmem:[%s6054_s28 + $0x6a0] sm:$0xf] }
  0xa3   : > { %v606_v21 = vld [vmem:[%s6054_s28 + $0x6a8] sm:$0xf]  ;;  %v608_v22 = vld [vmem:[%s6054_s28 + $0x6b0] sm:$0xf]  ;;  %605 = vst [vmem:[%s6061_s29 + $0x350] sm:$0xf] %v604_v20 }
  0xa4   : > { %607 = vst [vmem:[%s6061_s29 + $0x354] sm:$0xf] %v606_v21  ;;  %609 = vst [vmem:[%s6061_s29 + $0x358] sm:$0xf] %v608_v22  ;;  %v610_v23 = vld [vmem:[%s6054_s28 + $0x6b8] sm:$0xf] }
  0xa5   : > { %v612_v24 = vld [vmem:[%s6054_s28 + $0x6c0] sm:$0xf]  ;;  %v614_v25 = vld [vmem:[%s6054_s28 + $0x6c8] sm:$0xf]  ;;  %611 = vst [vmem:[%s6061_s29 + $0x35c] sm:$0xf] %v610_v23 }
  0xa6   : > { %613 = vst [vmem:[%s6061_s29 + $0x360] sm:$0xf] %v612_v24  ;;  %615 = vst [vmem:[%s6061_s29 + $0x364] sm:$0xf] %v614_v25  ;;  %v616_v26 = vld [vmem:[%s6054_s28 + $0x6d0] sm:$0xf] }
  0xa7   : > { %v618_v27 = vld [vmem:[%s6054_s28 + $0x6d8] sm:$0xf]  ;;  %v620_v28 = vld [vmem:[%s6054_s28 + $0x6e0] sm:$0xf]  ;;  %617 = vst [vmem:[%s6061_s29 + $0x368] sm:$0xf] %v616_v26 }
  0xa8   : > { %619 = vst [vmem:[%s6061_s29 + $0x36c] sm:$0xf] %v618_v27  ;;  %621 = vst [vmem:[%s6061_s29 + $0x370] sm:$0xf] %v620_v28  ;;  %v622_v29 = vld [vmem:[%s6054_s28 + $0x6e8] sm:$0xf] }
  0xa9   : > { %v624_v30 = vld [vmem:[%s6054_s28 + $0x6f0] sm:$0xf]  ;;  %v626_v31 = vld [vmem:[%s6054_s28 + $0x6f8] sm:$0xf]  ;;  %623 = vst [vmem:[%s6061_s29 + $0x374] sm:$0xf] %v622_v29 }
  0xaa   : > { %625 = vst [vmem:[%s6061_s29 + $0x378] sm:$0xf] %v624_v30  ;;  %627 = vst [vmem:[%s6061_s29 + $0x37c] sm:$0xf] %v626_v31  ;;  %v628_v32 = vld [vmem:[%s6054_s28 + $0x700] sm:$0xf] }
  0xab   : > { %v630_v33 = vld [vmem:[%s6054_s28 + $0x708] sm:$0xf]  ;;  %v632_v34 = vld [vmem:[%s6054_s28 + $0x710] sm:$0xf]  ;;  %629 = vst [vmem:[%s6061_s29 + $0x380] sm:$0xf] %v628_v32 }
  0xac   : > { %631 = vst [vmem:[%s6061_s29 + $0x384] sm:$0xf] %v630_v33  ;;  %633 = vst [vmem:[%s6061_s29 + $0x388] sm:$0xf] %v632_v34  ;;  %v634_v35 = vld [vmem:[%s6054_s28 + $0x718] sm:$0xf] }
  0xad   : > { %v636_v36 = vld [vmem:[%s6054_s28 + $0x720] sm:$0xf]  ;;  %v638_v37 = vld [vmem:[%s6054_s28 + $0x728] sm:$0xf]  ;;  %635 = vst [vmem:[%s6061_s29 + $0x38c] sm:$0xf] %v634_v35 }
  0xae   : > { %637 = vst [vmem:[%s6061_s29 + $0x390] sm:$0xf] %v636_v36  ;;  %639 = vst [vmem:[%s6061_s29 + $0x394] sm:$0xf] %v638_v37  ;;  %v640_v38 = vld [vmem:[%s6054_s28 + $0x730] sm:$0xf] }
  0xaf   : > { %v642_v39 = vld [vmem:[%s6054_s28 + $0x738] sm:$0xf]  ;;  %v644_v40 = vld [vmem:[%s6054_s28 + $0x740] sm:$0xf]  ;;  %641 = vst [vmem:[%s6061_s29 + $0x398] sm:$0xf] %v640_v38 }
  0xb0   : > { %643 = vst [vmem:[%s6061_s29 + $0x39c] sm:$0xf] %v642_v39  ;;  %645 = vst [vmem:[%s6061_s29 + $0x3a0] sm:$0xf] %v644_v40  ;;  %v646_v41 = vld [vmem:[%s6054_s28 + $0x748] sm:$0xf] }
  0xb1   : > { %v648_v42 = vld [vmem:[%s6054_s28 + $0x750] sm:$0xf]  ;;  %v650_v43 = vld [vmem:[%s6054_s28 + $0x758] sm:$0xf]  ;;  %647 = vst [vmem:[%s6061_s29 + $0x3a4] sm:$0xf] %v646_v41 }
  0xb2   : > { %649 = vst [vmem:[%s6061_s29 + $0x3a8] sm:$0xf] %v648_v42  ;;  %651 = vst [vmem:[%s6061_s29 + $0x3ac] sm:$0xf] %v650_v43  ;;  %v652_v44 = vld [vmem:[%s6054_s28 + $0x760] sm:$0xf] }
  0xb3   : > { %v654_v45 = vld [vmem:[%s6054_s28 + $0x768] sm:$0xf]  ;;  %v656_v46 = vld [vmem:[%s6054_s28 + $0x770] sm:$0xf]  ;;  %653 = vst [vmem:[%s6061_s29 + $0x3b0] sm:$0xf] %v652_v44 }
  0xb4   : > { %655 = vst [vmem:[%s6061_s29 + $0x3b4] sm:$0xf] %v654_v45  ;;  %657 = vst [vmem:[%s6061_s29 + $0x3b8] sm:$0xf] %v656_v46  ;;  %v658_v47 = vld [vmem:[%s6054_s28 + $0x778] sm:$0xf] }
  0xb5   : > { %v660_v48 = vld [vmem:[%s6054_s28 + $0x780] sm:$0xf]  ;;  %v662_v49 = vld [vmem:[%s6054_s28 + $0x788] sm:$0xf]  ;;  %659 = vst [vmem:[%s6061_s29 + $0x3bc] sm:$0xf] %v658_v47 }
  0xb6   : > { %661 = vst [vmem:[%s6061_s29 + $0x3c0] sm:$0xf] %v660_v48  ;;  %663 = vst [vmem:[%s6061_s29 + $0x3c4] sm:$0xf] %v662_v49  ;;  %v664_v50 = vld [vmem:[%s6054_s28 + $0x790] sm:$0xf] }
  0xb7   : > { %v666_v51 = vld [vmem:[%s6054_s28 + $0x798] sm:$0xf]  ;;  %v668_v52 = vld [vmem:[%s6054_s28 + $0x7a0] sm:$0xf]  ;;  %665 = vst [vmem:[%s6061_s29 + $0x3c8] sm:$0xf] %v664_v50 }
  0xb8   : > { %667 = vst [vmem:[%s6061_s29 + $0x3cc] sm:$0xf] %v666_v51  ;;  %669 = vst [vmem:[%s6061_s29 + $0x3d0] sm:$0xf] %v668_v52  ;;  %v670_v53 = vld [vmem:[%s6054_s28 + $0x7a8] sm:$0xf] }
  0xb9   : > { %v672_v54 = vld [vmem:[%s6054_s28 + $0x7b0] sm:$0xf]  ;;  %v674_v55 = vld [vmem:[%s6054_s28 + $0x7b8] sm:$0xf]  ;;  %671 = vst [vmem:[%s6061_s29 + $0x3d4] sm:$0xf] %v670_v53 }
  0xba   : > { %673 = vst [vmem:[%s6061_s29 + $0x3d8] sm:$0xf] %v672_v54  ;;  %675 = vst [vmem:[%s6061_s29 + $0x3dc] sm:$0xf] %v674_v55  ;;  %v676_v56 = vld [vmem:[%s6054_s28 + $0x7c0] sm:$0xf] }
  0xbb   : > { %v678_v57 = vld [vmem:[%s6054_s28 + $0x7c8] sm:$0xf]  ;;  %v680_v58 = vld [vmem:[%s6054_s28 + $0x7d0] sm:$0xf]  ;;  %677 = vst [vmem:[%s6061_s29 + $0x3e0] sm:$0xf] %v676_v56 }
  0xbc   : > { %679 = vst [vmem:[%s6061_s29 + $0x3e4] sm:$0xf] %v678_v57  ;;  %681 = vst [vmem:[%s6061_s29 + $0x3e8] sm:$0xf] %v680_v58  ;;  %v682_v59 = vld [vmem:[%s6054_s28 + $0x7d8] sm:$0xf] }
  0xbd   : > { %v684_v60 = vld [vmem:[%s6054_s28 + $0x7e0] sm:$0xf]  ;;  %v686_v61 = vld [vmem:[%s6054_s28 + $0x7e8] sm:$0xf]  ;;  %683 = vst [vmem:[%s6061_s29 + $0x3ec] sm:$0xf] %v682_v59 }
  0xbe   : > { %685 = vst [vmem:[%s6061_s29 + $0x3f0] sm:$0xf] %v684_v60  ;;  %687 = vst [vmem:[%s6061_s29 + $0x3f4] sm:$0xf] %v686_v61  ;;  %v688_v62 = vld [vmem:[%s6054_s28 + $0x7f0] sm:$0xf] }
  0xbf   : > { %v690_v63 = vld [vmem:[%s6054_s28 + $0x7f8] sm:$0xf]  ;;  %v692_v0 = vld [vmem:[%s6054_s28 + $0x800] sm:$0xf]  ;;  %689 = vst [vmem:[%s6061_s29 + $0x3f8] sm:$0xf] %v688_v62 }
  0xc0   : > { %691 = vst [vmem:[%s6061_s29 + $0x3fc] sm:$0xf] %v690_v63  ;;  %693 = vst [vmem:[%s6061_s29 + $0x400] sm:$0xf] %v692_v0  ;;  %v694_v1 = vld [vmem:[%s6054_s28 + $0x808] sm:$0xf] }
  0xc1   : > { %v696_v2 = vld [vmem:[%s6054_s28 + $0x810] sm:$0xf]  ;;  %v698_v3 = vld [vmem:[%s6054_s28 + $0x818] sm:$0xf]  ;;  %695 = vst [vmem:[%s6061_s29 + $0x404] sm:$0xf] %v694_v1 }
  0xc2   : > { %697 = vst [vmem:[%s6061_s29 + $0x408] sm:$0xf] %v696_v2  ;;  %699 = vst [vmem:[%s6061_s29 + $0x40c] sm:$0xf] %v698_v3  ;;  %v700_v4 = vld [vmem:[%s6054_s28 + $0x820] sm:$0xf] }
  0xc3   : > { %v702_v5 = vld [vmem:[%s6054_s28 + $0x828] sm:$0xf]  ;;  %v704_v6 = vld [vmem:[%s6054_s28 + $0x830] sm:$0xf]  ;;  %701 = vst [vmem:[%s6061_s29 + $0x410] sm:$0xf] %v700_v4 }
  0xc4   : > { %703 = vst [vmem:[%s6061_s29 + $0x414] sm:$0xf] %v702_v5  ;;  %705 = vst [vmem:[%s6061_s29 + $0x418] sm:$0xf] %v704_v6  ;;  %v706_v7 = vld [vmem:[%s6054_s28 + $0x838] sm:$0xf] }
  0xc5   : > { %v708_v8 = vld [vmem:[%s6054_s28 + $0x840] sm:$0xf]  ;;  %v710_v9 = vld [vmem:[%s6054_s28 + $0x848] sm:$0xf]  ;;  %707 = vst [vmem:[%s6061_s29 + $0x41c] sm:$0xf] %v706_v7 }
  0xc6   : > { %709 = vst [vmem:[%s6061_s29 + $0x420] sm:$0xf] %v708_v8  ;;  %711 = vst [vmem:[%s6061_s29 + $0x424] sm:$0xf] %v710_v9  ;;  %v712_v10 = vld [vmem:[%s6054_s28 + $0x850] sm:$0xf] }
  0xc7   : > { %v714_v11 = vld [vmem:[%s6054_s28 + $0x858] sm:$0xf]  ;;  %v716_v12 = vld [vmem:[%s6054_s28 + $0x860] sm:$0xf]  ;;  %713 = vst [vmem:[%s6061_s29 + $0x428] sm:$0xf] %v712_v10 }
  0xc8   : > { %715 = vst [vmem:[%s6061_s29 + $0x42c] sm:$0xf] %v714_v11  ;;  %717 = vst [vmem:[%s6061_s29 + $0x430] sm:$0xf] %v716_v12  ;;  %v718_v13 = vld [vmem:[%s6054_s28 + $0x868] sm:$0xf] }
  0xc9   : > { %v720_v14 = vld [vmem:[%s6054_s28 + $0x870] sm:$0xf]  ;;  %v722_v15 = vld [vmem:[%s6054_s28 + $0x878] sm:$0xf]  ;;  %719 = vst [vmem:[%s6061_s29 + $0x434] sm:$0xf] %v718_v13 }
  0xca   : > { %721 = vst [vmem:[%s6061_s29 + $0x438] sm:$0xf] %v720_v14  ;;  %723 = vst [vmem:[%s6061_s29 + $0x43c] sm:$0xf] %v722_v15  ;;  %v724_v16 = vld [vmem:[%s6054_s28 + $0x880] sm:$0xf] }
  0xcb   : > { %v726_v17 = vld [vmem:[%s6054_s28 + $0x888] sm:$0xf]  ;;  %v728_v18 = vld [vmem:[%s6054_s28 + $0x890] sm:$0xf]  ;;  %725 = vst [vmem:[%s6061_s29 + $0x440] sm:$0xf] %v724_v16 }
  0xcc   : > { %727 = vst [vmem:[%s6061_s29 + $0x444] sm:$0xf] %v726_v17  ;;  %729 = vst [vmem:[%s6061_s29 + $0x448] sm:$0xf] %v728_v18  ;;  %v730_v19 = vld [vmem:[%s6054_s28 + $0x898] sm:$0xf] }
  0xcd   : > { %v732_v20 = vld [vmem:[%s6054_s28 + $0x8a0] sm:$0xf]  ;;  %v734_v21 = vld [vmem:[%s6054_s28 + $0x8a8] sm:$0xf]  ;;  %731 = vst [vmem:[%s6061_s29 + $0x44c] sm:$0xf] %v730_v19 }
  0xce   : > { %733 = vst [vmem:[%s6061_s29 + $0x450] sm:$0xf] %v732_v20  ;;  %735 = vst [vmem:[%s6061_s29 + $0x454] sm:$0xf] %v734_v21  ;;  %v736_v22 = vld [vmem:[%s6054_s28 + $0x8b0] sm:$0xf] }
  0xcf   : > { %v738_v23 = vld [vmem:[%s6054_s28 + $0x8b8] sm:$0xf]  ;;  %v740_v24 = vld [vmem:[%s6054_s28 + $0x8c0] sm:$0xf]  ;;  %737 = vst [vmem:[%s6061_s29 + $0x458] sm:$0xf] %v736_v22 }
  0xd0   : > { %739 = vst [vmem:[%s6061_s29 + $0x45c] sm:$0xf] %v738_v23  ;;  %741 = vst [vmem:[%s6061_s29 + $0x460] sm:$0xf] %v740_v24  ;;  %v742_v25 = vld [vmem:[%s6054_s28 + $0x8c8] sm:$0xf] }
  0xd1   : > { %v744_v26 = vld [vmem:[%s6054_s28 + $0x8d0] sm:$0xf]  ;;  %v746_v27 = vld [vmem:[%s6054_s28 + $0x8d8] sm:$0xf]  ;;  %743 = vst [vmem:[%s6061_s29 + $0x464] sm:$0xf] %v742_v25 }
  0xd2   : > { %745 = vst [vmem:[%s6061_s29 + $0x468] sm:$0xf] %v744_v26  ;;  %747 = vst [vmem:[%s6061_s29 + $0x46c] sm:$0xf] %v746_v27  ;;  %v748_v28 = vld [vmem:[%s6054_s28 + $0x8e0] sm:$0xf] }
  0xd3   : > { %v750_v29 = vld [vmem:[%s6054_s28 + $0x8e8] sm:$0xf]  ;;  %v752_v30 = vld [vmem:[%s6054_s28 + $0x8f0] sm:$0xf]  ;;  %749 = vst [vmem:[%s6061_s29 + $0x470] sm:$0xf] %v748_v28 }
  0xd4   : > { %751 = vst [vmem:[%s6061_s29 + $0x474] sm:$0xf] %v750_v29  ;;  %753 = vst [vmem:[%s6061_s29 + $0x478] sm:$0xf] %v752_v30  ;;  %v754_v31 = vld [vmem:[%s6054_s28 + $0x8f8] sm:$0xf] }
  0xd5   : > { %v756_v32 = vld [vmem:[%s6054_s28 + $0x900] sm:$0xf]  ;;  %v758_v33 = vld [vmem:[%s6054_s28 + $0x908] sm:$0xf]  ;;  %755 = vst [vmem:[%s6061_s29 + $0x47c] sm:$0xf] %v754_v31 }
  0xd6   : > { %757 = vst [vmem:[%s6061_s29 + $0x480] sm:$0xf] %v756_v32  ;;  %759 = vst [vmem:[%s6061_s29 + $0x484] sm:$0xf] %v758_v33  ;;  %v760_v34 = vld [vmem:[%s6054_s28 + $0x910] sm:$0xf] }
  0xd7   : > { %v762_v35 = vld [vmem:[%s6054_s28 + $0x918] sm:$0xf]  ;;  %v764_v36 = vld [vmem:[%s6054_s28 + $0x920] sm:$0xf]  ;;  %761 = vst [vmem:[%s6061_s29 + $0x488] sm:$0xf] %v760_v34 }
  0xd8   : > { %763 = vst [vmem:[%s6061_s29 + $0x48c] sm:$0xf] %v762_v35  ;;  %765 = vst [vmem:[%s6061_s29 + $0x490] sm:$0xf] %v764_v36  ;;  %v766_v37 = vld [vmem:[%s6054_s28 + $0x928] sm:$0xf] }
  0xd9   : > { %v768_v38 = vld [vmem:[%s6054_s28 + $0x930] sm:$0xf]  ;;  %v770_v39 = vld [vmem:[%s6054_s28 + $0x938] sm:$0xf]  ;;  %767 = vst [vmem:[%s6061_s29 + $0x494] sm:$0xf] %v766_v37 }
  0xda   : > { %769 = vst [vmem:[%s6061_s29 + $0x498] sm:$0xf] %v768_v38  ;;  %771 = vst [vmem:[%s6061_s29 + $0x49c] sm:$0xf] %v770_v39  ;;  %v772_v40 = vld [vmem:[%s6054_s28 + $0x940] sm:$0xf] }
  0xdb   : > { %v774_v41 = vld [vmem:[%s6054_s28 + $0x948] sm:$0xf]  ;;  %v776_v42 = vld [vmem:[%s6054_s28 + $0x950] sm:$0xf]  ;;  %773 = vst [vmem:[%s6061_s29 + $0x4a0] sm:$0xf] %v772_v40 }
  0xdc   : > { %775 = vst [vmem:[%s6061_s29 + $0x4a4] sm:$0xf] %v774_v41  ;;  %777 = vst [vmem:[%s6061_s29 + $0x4a8] sm:$0xf] %v776_v42  ;;  %v778_v43 = vld [vmem:[%s6054_s28 + $0x958] sm:$0xf] }
  0xdd   : > { %v780_v44 = vld [vmem:[%s6054_s28 + $0x960] sm:$0xf]  ;;  %v782_v45 = vld [vmem:[%s6054_s28 + $0x968] sm:$0xf]  ;;  %779 = vst [vmem:[%s6061_s29 + $0x4ac] sm:$0xf] %v778_v43 }
  0xde   : > { %781 = vst [vmem:[%s6061_s29 + $0x4b0] sm:$0xf] %v780_v44  ;;  %783 = vst [vmem:[%s6061_s29 + $0x4b4] sm:$0xf] %v782_v45  ;;  %v784_v46 = vld [vmem:[%s6054_s28 + $0x970] sm:$0xf] }
  0xdf   : > { %v786_v47 = vld [vmem:[%s6054_s28 + $0x978] sm:$0xf]  ;;  %v788_v48 = vld [vmem:[%s6054_s28 + $0x980] sm:$0xf]  ;;  %785 = vst [vmem:[%s6061_s29 + $0x4b8] sm:$0xf] %v784_v46 }
  0xe0   : > { %787 = vst [vmem:[%s6061_s29 + $0x4bc] sm:$0xf] %v786_v47  ;;  %789 = vst [vmem:[%s6061_s29 + $0x4c0] sm:$0xf] %v788_v48  ;;  %v790_v49 = vld [vmem:[%s6054_s28 + $0x988] sm:$0xf] }
  0xe1   : > { %v792_v50 = vld [vmem:[%s6054_s28 + $0x990] sm:$0xf]  ;;  %v794_v51 = vld [vmem:[%s6054_s28 + $0x998] sm:$0xf]  ;;  %791 = vst [vmem:[%s6061_s29 + $0x4c4] sm:$0xf] %v790_v49 }
  0xe2   : > { %793 = vst [vmem:[%s6061_s29 + $0x4c8] sm:$0xf] %v792_v50  ;;  %795 = vst [vmem:[%s6061_s29 + $0x4cc] sm:$0xf] %v794_v51  ;;  %v796_v52 = vld [vmem:[%s6054_s28 + $0x9a0] sm:$0xf] }
  0xe3   : > { %v798_v53 = vld [vmem:[%s6054_s28 + $0x9a8] sm:$0xf]  ;;  %v800_v54 = vld [vmem:[%s6054_s28 + $0x9b0] sm:$0xf]  ;;  %797 = vst [vmem:[%s6061_s29 + $0x4d0] sm:$0xf] %v796_v52 }
  0xe4   : > { %799 = vst [vmem:[%s6061_s29 + $0x4d4] sm:$0xf] %v798_v53  ;;  %801 = vst [vmem:[%s6061_s29 + $0x4d8] sm:$0xf] %v800_v54  ;;  %v802_v55 = vld [vmem:[%s6054_s28 + $0x9b8] sm:$0xf] }
  0xe5   : > { %v804_v56 = vld [vmem:[%s6054_s28 + $0x9c0] sm:$0xf]  ;;  %v806_v57 = vld [vmem:[%s6054_s28 + $0x9c8] sm:$0xf]  ;;  %803 = vst [vmem:[%s6061_s29 + $0x4dc] sm:$0xf] %v802_v55 }
  0xe6   : > { %805 = vst [vmem:[%s6061_s29 + $0x4e0] sm:$0xf] %v804_v56  ;;  %807 = vst [vmem:[%s6061_s29 + $0x4e4] sm:$0xf] %v806_v57  ;;  %v808_v58 = vld [vmem:[%s6054_s28 + $0x9d0] sm:$0xf] }
  0xe7   : > { %v810_v59 = vld [vmem:[%s6054_s28 + $0x9d8] sm:$0xf]  ;;  %v812_v60 = vld [vmem:[%s6054_s28 + $0x9e0] sm:$0xf]  ;;  %809 = vst [vmem:[%s6061_s29 + $0x4e8] sm:$0xf] %v808_v58 }
  0xe8   : > { %811 = vst [vmem:[%s6061_s29 + $0x4ec] sm:$0xf] %v810_v59  ;;  %813 = vst [vmem:[%s6061_s29 + $0x4f0] sm:$0xf] %v812_v60  ;;  %v814_v61 = vld [vmem:[%s6054_s28 + $0x9e8] sm:$0xf] }
  0xe9   : > { %v816_v62 = vld [vmem:[%s6054_s28 + $0x9f0] sm:$0xf]  ;;  %v818_v63 = vld [vmem:[%s6054_s28 + $0x9f8] sm:$0xf]  ;;  %815 = vst [vmem:[%s6061_s29 + $0x4f4] sm:$0xf] %v814_v61 }
  0xea   : > { %817 = vst [vmem:[%s6061_s29 + $0x4f8] sm:$0xf] %v816_v62  ;;  %819 = vst [vmem:[%s6061_s29 + $0x4fc] sm:$0xf] %v818_v63  ;;  %v820_v0 = vld [vmem:[%s6054_s28 + $0xa00] sm:$0xf] }
  0xeb   : > { %v822_v1 = vld [vmem:[%s6054_s28 + $0xa08] sm:$0xf]  ;;  %v824_v2 = vld [vmem:[%s6054_s28 + $0xa10] sm:$0xf]  ;;  %821 = vst [vmem:[%s6061_s29 + $0x500] sm:$0xf] %v820_v0 }
  0xec   : > { %823 = vst [vmem:[%s6061_s29 + $0x504] sm:$0xf] %v822_v1  ;;  %825 = vst [vmem:[%s6061_s29 + $0x508] sm:$0xf] %v824_v2  ;;  %v826_v3 = vld [vmem:[%s6054_s28 + $0xa18] sm:$0xf] }
  0xed   : > { %v828_v4 = vld [vmem:[%s6054_s28 + $0xa20] sm:$0xf]  ;;  %v830_v5 = vld [vmem:[%s6054_s28 + $0xa28] sm:$0xf]  ;;  %827 = vst [vmem:[%s6061_s29 + $0x50c] sm:$0xf] %v826_v3 }
  0xee   : > { %829 = vst [vmem:[%s6061_s29 + $0x510] sm:$0xf] %v828_v4  ;;  %831 = vst [vmem:[%s6061_s29 + $0x514] sm:$0xf] %v830_v5  ;;  %v832_v6 = vld [vmem:[%s6054_s28 + $0xa30] sm:$0xf] }
  0xef   : > { %v834_v7 = vld [vmem:[%s6054_s28 + $0xa38] sm:$0xf]  ;;  %v836_v8 = vld [vmem:[%s6054_s28 + $0xa40] sm:$0xf]  ;;  %833 = vst [vmem:[%s6061_s29 + $0x518] sm:$0xf] %v832_v6 }
  0xf0   : > { %835 = vst [vmem:[%s6061_s29 + $0x51c] sm:$0xf] %v834_v7  ;;  %837 = vst [vmem:[%s6061_s29 + $0x520] sm:$0xf] %v836_v8  ;;  %v838_v9 = vld [vmem:[%s6054_s28 + $0xa48] sm:$0xf] }
  0xf1   : > { %v840_v10 = vld [vmem:[%s6054_s28 + $0xa50] sm:$0xf]  ;;  %v842_v11 = vld [vmem:[%s6054_s28 + $0xa58] sm:$0xf]  ;;  %839 = vst [vmem:[%s6061_s29 + $0x524] sm:$0xf] %v838_v9 }
  0xf2   : > { %841 = vst [vmem:[%s6061_s29 + $0x528] sm:$0xf] %v840_v10  ;;  %843 = vst [vmem:[%s6061_s29 + $0x52c] sm:$0xf] %v842_v11  ;;  %v844_v12 = vld [vmem:[%s6054_s28 + $0xa60] sm:$0xf] }
  0xf3   : > { %v846_v13 = vld [vmem:[%s6054_s28 + $0xa68] sm:$0xf]  ;;  %v848_v14 = vld [vmem:[%s6054_s28 + $0xa70] sm:$0xf]  ;;  %845 = vst [vmem:[%s6061_s29 + $0x530] sm:$0xf] %v844_v12 }
  0xf4   : > { %847 = vst [vmem:[%s6061_s29 + $0x534] sm:$0xf] %v846_v13  ;;  %849 = vst [vmem:[%s6061_s29 + $0x538] sm:$0xf] %v848_v14  ;;  %v850_v15 = vld [vmem:[%s6054_s28 + $0xa78] sm:$0xf] }
  0xf5   : > { %v852_v16 = vld [vmem:[%s6054_s28 + $0xa80] sm:$0xf]  ;;  %v854_v17 = vld [vmem:[%s6054_s28 + $0xa88] sm:$0xf]  ;;  %851 = vst [vmem:[%s6061_s29 + $0x53c] sm:$0xf] %v850_v15 }
  0xf6   : > { %853 = vst [vmem:[%s6061_s29 + $0x540] sm:$0xf] %v852_v16  ;;  %855 = vst [vmem:[%s6061_s29 + $0x544] sm:$0xf] %v854_v17  ;;  %v856_v18 = vld [vmem:[%s6054_s28 + $0xa90] sm:$0xf] }
  0xf7   : > { %v858_v19 = vld [vmem:[%s6054_s28 + $0xa98] sm:$0xf]  ;;  %v860_v20 = vld [vmem:[%s6054_s28 + $0xaa0] sm:$0xf]  ;;  %857 = vst [vmem:[%s6061_s29 + $0x548] sm:$0xf] %v856_v18 }
  0xf8   : > { %859 = vst [vmem:[%s6061_s29 + $0x54c] sm:$0xf] %v858_v19  ;;  %861 = vst [vmem:[%s6061_s29 + $0x550] sm:$0xf] %v860_v20  ;;  %v862_v21 = vld [vmem:[%s6054_s28 + $0xaa8] sm:$0xf] }
  0xf9   : > { %v864_v22 = vld [vmem:[%s6054_s28 + $0xab0] sm:$0xf]  ;;  %v866_v23 = vld [vmem:[%s6054_s28 + $0xab8] sm:$0xf]  ;;  %863 = vst [vmem:[%s6061_s29 + $0x554] sm:$0xf] %v862_v21 }
  0xfa   : > { %865 = vst [vmem:[%s6061_s29 + $0x558] sm:$0xf] %v864_v22  ;;  %867 = vst [vmem:[%s6061_s29 + $0x55c] sm:$0xf] %v866_v23  ;;  %v868_v24 = vld [vmem:[%s6054_s28 + $0xac0] sm:$0xf] }
  0xfb   : > { %v870_v25 = vld [vmem:[%s6054_s28 + $0xac8] sm:$0xf]  ;;  %v872_v26 = vld [vmem:[%s6054_s28 + $0xad0] sm:$0xf]  ;;  %869 = vst [vmem:[%s6061_s29 + $0x560] sm:$0xf] %v868_v24 }
  0xfc   : > { %871 = vst [vmem:[%s6061_s29 + $0x564] sm:$0xf] %v870_v25  ;;  %873 = vst [vmem:[%s6061_s29 + $0x568] sm:$0xf] %v872_v26  ;;  %v874_v27 = vld [vmem:[%s6054_s28 + $0xad8] sm:$0xf] }
  0xfd   : > { %v876_v28 = vld [vmem:[%s6054_s28 + $0xae0] sm:$0xf]  ;;  %v878_v29 = vld [vmem:[%s6054_s28 + $0xae8] sm:$0xf]  ;;  %875 = vst [vmem:[%s6061_s29 + $0x56c] sm:$0xf] %v874_v27 }
  0xfe   : > { %877 = vst [vmem:[%s6061_s29 + $0x570] sm:$0xf] %v876_v28  ;;  %879 = vst [vmem:[%s6061_s29 + $0x574] sm:$0xf] %v878_v29  ;;  %v880_v30 = vld [vmem:[%s6054_s28 + $0xaf0] sm:$0xf] }
  0xff   : > { %v882_v31 = vld [vmem:[%s6054_s28 + $0xaf8] sm:$0xf]  ;;  %v884_v32 = vld [vmem:[%s6054_s28 + $0xb00] sm:$0xf]  ;;  %881 = vst [vmem:[%s6061_s29 + $0x578] sm:$0xf] %v880_v30 }
 0x100   : > { %883 = vst [vmem:[%s6061_s29 + $0x57c] sm:$0xf] %v882_v31  ;;  %885 = vst [vmem:[%s6061_s29 + $0x580] sm:$0xf] %v884_v32  ;;  %v886_v33 = vld [vmem:[%s6054_s28 + $0xb08] sm:$0xf] }
 0x101   : > { %v888_v34 = vld [vmem:[%s6054_s28 + $0xb10] sm:$0xf]  ;;  %v890_v35 = vld [vmem:[%s6054_s28 + $0xb18] sm:$0xf]  ;;  %887 = vst [vmem:[%s6061_s29 + $0x584] sm:$0xf] %v886_v33 }
 0x102   : > { %889 = vst [vmem:[%s6061_s29 + $0x588] sm:$0xf] %v888_v34  ;;  %891 = vst [vmem:[%s6061_s29 + $0x58c] sm:$0xf] %v890_v35  ;;  %v892_v36 = vld [vmem:[%s6054_s28 + $0xb20] sm:$0xf] }
 0x103   : > { %v894_v37 = vld [vmem:[%s6054_s28 + $0xb28] sm:$0xf]  ;;  %v896_v38 = vld [vmem:[%s6054_s28 + $0xb30] sm:$0xf]  ;;  %893 = vst [vmem:[%s6061_s29 + $0x590] sm:$0xf] %v892_v36 }
 0x104   : > { %895 = vst [vmem:[%s6061_s29 + $0x594] sm:$0xf] %v894_v37  ;;  %897 = vst [vmem:[%s6061_s29 + $0x598] sm:$0xf] %v896_v38  ;;  %v898_v39 = vld [vmem:[%s6054_s28 + $0xb38] sm:$0xf] }
 0x105   : > { %v900_v40 = vld [vmem:[%s6054_s28 + $0xb40] sm:$0xf]  ;;  %v902_v41 = vld [vmem:[%s6054_s28 + $0xb48] sm:$0xf]  ;;  %899 = vst [vmem:[%s6061_s29 + $0x59c] sm:$0xf] %v898_v39 }
 0x106   : > { %901 = vst [vmem:[%s6061_s29 + $0x5a0] sm:$0xf] %v900_v40  ;;  %903 = vst [vmem:[%s6061_s29 + $0x5a4] sm:$0xf] %v902_v41  ;;  %v904_v42 = vld [vmem:[%s6054_s28 + $0xb50] sm:$0xf] }
 0x107   : > { %v906_v43 = vld [vmem:[%s6054_s28 + $0xb58] sm:$0xf]  ;;  %v908_v44 = vld [vmem:[%s6054_s28 + $0xb60] sm:$0xf]  ;;  %905 = vst [vmem:[%s6061_s29 + $0x5a8] sm:$0xf] %v904_v42 }
 0x108   : > { %907 = vst [vmem:[%s6061_s29 + $0x5ac] sm:$0xf] %v906_v43  ;;  %909 = vst [vmem:[%s6061_s29 + $0x5b0] sm:$0xf] %v908_v44  ;;  %v910_v45 = vld [vmem:[%s6054_s28 + $0xb68] sm:$0xf] }
 0x109   : > { %v912_v46 = vld [vmem:[%s6054_s28 + $0xb70] sm:$0xf]  ;;  %v914_v47 = vld [vmem:[%s6054_s28 + $0xb78] sm:$0xf]  ;;  %911 = vst [vmem:[%s6061_s29 + $0x5b4] sm:$0xf] %v910_v45 }
 0x10a   : > { %913 = vst [vmem:[%s6061_s29 + $0x5b8] sm:$0xf] %v912_v46  ;;  %915 = vst [vmem:[%s6061_s29 + $0x5bc] sm:$0xf] %v914_v47  ;;  %v916_v48 = vld [vmem:[%s6054_s28 + $0xb80] sm:$0xf] }
 0x10b   : > { %v918_v49 = vld [vmem:[%s6054_s28 + $0xb88] sm:$0xf]  ;;  %v920_v50 = vld [vmem:[%s6054_s28 + $0xb90] sm:$0xf]  ;;  %917 = vst [vmem:[%s6061_s29 + $0x5c0] sm:$0xf] %v916_v48 }
 0x10c   : > { %919 = vst [vmem:[%s6061_s29 + $0x5c4] sm:$0xf] %v918_v49  ;;  %921 = vst [vmem:[%s6061_s29 + $0x5c8] sm:$0xf] %v920_v50  ;;  %v922_v51 = vld [vmem:[%s6054_s28 + $0xb98] sm:$0xf] }
 0x10d   : > { %v924_v52 = vld [vmem:[%s6054_s28 + $0xba0] sm:$0xf]  ;;  %v926_v53 = vld [vmem:[%s6054_s28 + $0xba8] sm:$0xf]  ;;  %923 = vst [vmem:[%s6061_s29 + $0x5cc] sm:$0xf] %v922_v51 }
 0x10e   : > { %925 = vst [vmem:[%s6061_s29 + $0x5d0] sm:$0xf] %v924_v52  ;;  %927 = vst [vmem:[%s6061_s29 + $0x5d4] sm:$0xf] %v926_v53  ;;  %v928_v54 = vld [vmem:[%s6054_s28 + $0xbb0] sm:$0xf] }
 0x10f   : > { %v930_v55 = vld [vmem:[%s6054_s28 + $0xbb8] sm:$0xf]  ;;  %v932_v56 = vld [vmem:[%s6054_s28 + $0xbc0] sm:$0xf]  ;;  %929 = vst [vmem:[%s6061_s29 + $0x5d8] sm:$0xf] %v928_v54 }
 0x110   : > { %931 = vst [vmem:[%s6061_s29 + $0x5dc] sm:$0xf] %v930_v55  ;;  %933 = vst [vmem:[%s6061_s29 + $0x5e0] sm:$0xf] %v932_v56  ;;  %v934_v57 = vld [vmem:[%s6054_s28 + $0xbc8] sm:$0xf] }
 0x111   : > { %v936_v58 = vld [vmem:[%s6054_s28 + $0xbd0] sm:$0xf]  ;;  %v938_v59 = vld [vmem:[%s6054_s28 + $0xbd8] sm:$0xf]  ;;  %935 = vst [vmem:[%s6061_s29 + $0x5e4] sm:$0xf] %v934_v57 }
 0x112   : > { %937 = vst [vmem:[%s6061_s29 + $0x5e8] sm:$0xf] %v936_v58  ;;  %939 = vst [vmem:[%s6061_s29 + $0x5ec] sm:$0xf] %v938_v59  ;;  %v940_v60 = vld [vmem:[%s6054_s28 + $0xbe0] sm:$0xf] }
 0x113   : > { %v942_v61 = vld [vmem:[%s6054_s28 + $0xbe8] sm:$0xf]  ;;  %v944_v62 = vld [vmem:[%s6054_s28 + $0xbf0] sm:$0xf]  ;;  %941 = vst [vmem:[%s6061_s29 + $0x5f0] sm:$0xf] %v940_v60 }
 0x114   : > { %943 = vst [vmem:[%s6061_s29 + $0x5f4] sm:$0xf] %v942_v61  ;;  %945 = vst [vmem:[%s6061_s29 + $0x5f8] sm:$0xf] %v944_v62  ;;  %v946_v63 = vld [vmem:[%s6054_s28 + $0xbf8] sm:$0xf] }
 0x115   : > { %v948_v0 = vld [vmem:[%s6054_s28 + $0xc00] sm:$0xf]  ;;  %v950_v1 = vld [vmem:[%s6054_s28 + $0xc08] sm:$0xf]  ;;  %947 = vst [vmem:[%s6061_s29 + $0x5fc] sm:$0xf] %v946_v63 }
 0x116   : > { %949 = vst [vmem:[%s6061_s29 + $0x600] sm:$0xf] %v948_v0  ;;  %951 = vst [vmem:[%s6061_s29 + $0x604] sm:$0xf] %v950_v1  ;;  %v952_v2 = vld [vmem:[%s6054_s28 + $0xc10] sm:$0xf] }
 0x117   : > { %v954_v3 = vld [vmem:[%s6054_s28 + $0xc18] sm:$0xf]  ;;  %v956_v4 = vld [vmem:[%s6054_s28 + $0xc20] sm:$0xf]  ;;  %953 = vst [vmem:[%s6061_s29 + $0x608] sm:$0xf] %v952_v2 }
 0x118   : > { %955 = vst [vmem:[%s6061_s29 + $0x60c] sm:$0xf] %v954_v3  ;;  %957 = vst [vmem:[%s6061_s29 + $0x610] sm:$0xf] %v956_v4  ;;  %v958_v5 = vld [vmem:[%s6054_s28 + $0xc28] sm:$0xf] }
 0x119   : > { %v960_v6 = vld [vmem:[%s6054_s28 + $0xc30] sm:$0xf]  ;;  %v962_v7 = vld [vmem:[%s6054_s28 + $0xc38] sm:$0xf]  ;;  %959 = vst [vmem:[%s6061_s29 + $0x614] sm:$0xf] %v958_v5 }
 0x11a   : > { %961 = vst [vmem:[%s6061_s29 + $0x618] sm:$0xf] %v960_v6  ;;  %963 = vst [vmem:[%s6061_s29 + $0x61c] sm:$0xf] %v962_v7  ;;  %v964_v8 = vld [vmem:[%s6054_s28 + $0xc40] sm:$0xf] }
 0x11b   : > { %v966_v9 = vld [vmem:[%s6054_s28 + $0xc48] sm:$0xf]  ;;  %v968_v10 = vld [vmem:[%s6054_s28 + $0xc50] sm:$0xf]  ;;  %965 = vst [vmem:[%s6061_s29 + $0x620] sm:$0xf] %v964_v8 }
 0x11c   : > { %967 = vst [vmem:[%s6061_s29 + $0x624] sm:$0xf] %v966_v9  ;;  %969 = vst [vmem:[%s6061_s29 + $0x628] sm:$0xf] %v968_v10  ;;  %v970_v11 = vld [vmem:[%s6054_s28 + $0xc58] sm:$0xf] }
 0x11d   : > { %v972_v12 = vld [vmem:[%s6054_s28 + $0xc60] sm:$0xf]  ;;  %v974_v13 = vld [vmem:[%s6054_s28 + $0xc68] sm:$0xf]  ;;  %971 = vst [vmem:[%s6061_s29 + $0x62c] sm:$0xf] %v970_v11 }
 0x11e   : > { %973 = vst [vmem:[%s6061_s29 + $0x630] sm:$0xf] %v972_v12  ;;  %975 = vst [vmem:[%s6061_s29 + $0x634] sm:$0xf] %v974_v13  ;;  %v976_v14 = vld [vmem:[%s6054_s28 + $0xc70] sm:$0xf] }
 0x11f   : > { %v978_v15 = vld [vmem:[%s6054_s28 + $0xc78] sm:$0xf]  ;;  %v980_v16 = vld [vmem:[%s6054_s28 + $0xc80] sm:$0xf]  ;;  %977 = vst [vmem:[%s6061_s29 + $0x638] sm:$0xf] %v976_v14 }
 0x120   : > { %979 = vst [vmem:[%s6061_s29 + $0x63c] sm:$0xf] %v978_v15  ;;  %981 = vst [vmem:[%s6061_s29 + $0x640] sm:$0xf] %v980_v16  ;;  %v982_v17 = vld [vmem:[%s6054_s28 + $0xc88] sm:$0xf] }
 0x121   : > { %v984_v18 = vld [vmem:[%s6054_s28 + $0xc90] sm:$0xf]  ;;  %v986_v19 = vld [vmem:[%s6054_s28 + $0xc98] sm:$0xf]  ;;  %983 = vst [vmem:[%s6061_s29 + $0x644] sm:$0xf] %v982_v17 }
 0x122   : > { %985 = vst [vmem:[%s6061_s29 + $0x648] sm:$0xf] %v984_v18  ;;  %987 = vst [vmem:[%s6061_s29 + $0x64c] sm:$0xf] %v986_v19  ;;  %v988_v20 = vld [vmem:[%s6054_s28 + $0xca0] sm:$0xf] }
 0x123   : > { %v990_v21 = vld [vmem:[%s6054_s28 + $0xca8] sm:$0xf]  ;;  %v992_v22 = vld [vmem:[%s6054_s28 + $0xcb0] sm:$0xf]  ;;  %989 = vst [vmem:[%s6061_s29 + $0x650] sm:$0xf] %v988_v20 }
 0x124   : > { %991 = vst [vmem:[%s6061_s29 + $0x654] sm:$0xf] %v990_v21  ;;  %993 = vst [vmem:[%s6061_s29 + $0x658] sm:$0xf] %v992_v22  ;;  %v994_v23 = vld [vmem:[%s6054_s28 + $0xcb8] sm:$0xf] }
 0x125   : > { %v996_v24 = vld [vmem:[%s6054_s28 + $0xcc0] sm:$0xf]  ;;  %v998_v25 = vld [vmem:[%s6054_s28 + $0xcc8] sm:$0xf]  ;;  %995 = vst [vmem:[%s6061_s29 + $0x65c] sm:$0xf] %v994_v23 }
 0x126   : > { %997 = vst [vmem:[%s6061_s29 + $0x660] sm:$0xf] %v996_v24  ;;  %999 = vst [vmem:[%s6061_s29 + $0x664] sm:$0xf] %v998_v25  ;;  %v1000_v26 = vld [vmem:[%s6054_s28 + $0xcd0] sm:$0xf] }
 0x127   : > { %v1002_v27 = vld [vmem:[%s6054_s28 + $0xcd8] sm:$0xf]  ;;  %v1004_v28 = vld [vmem:[%s6054_s28 + $0xce0] sm:$0xf]  ;;  %1001 = vst [vmem:[%s6061_s29 + $0x668] sm:$0xf] %v1000_v26 }
 0x128   : > { %1003 = vst [vmem:[%s6061_s29 + $0x66c] sm:$0xf] %v1002_v27  ;;  %1005 = vst [vmem:[%s6061_s29 + $0x670] sm:$0xf] %v1004_v28  ;;  %v1006_v29 = vld [vmem:[%s6054_s28 + $0xce8] sm:$0xf] }
 0x129   : > { %v1008_v30 = vld [vmem:[%s6054_s28 + $0xcf0] sm:$0xf]  ;;  %v1010_v31 = vld [vmem:[%s6054_s28 + $0xcf8] sm:$0xf]  ;;  %1007 = vst [vmem:[%s6061_s29 + $0x674] sm:$0xf] %v1006_v29 }
 0x12a   : > { %1009 = vst [vmem:[%s6061_s29 + $0x678] sm:$0xf] %v1008_v30  ;;  %1011 = vst [vmem:[%s6061_s29 + $0x67c] sm:$0xf] %v1010_v31  ;;  %v1012_v32 = vld [vmem:[%s6054_s28 + $0xd00] sm:$0xf] }
 0x12b   : > { %v1014_v33 = vld [vmem:[%s6054_s28 + $0xd08] sm:$0xf]  ;;  %v1016_v34 = vld [vmem:[%s6054_s28 + $0xd10] sm:$0xf]  ;;  %1013 = vst [vmem:[%s6061_s29 + $0x680] sm:$0xf] %v1012_v32 }
 0x12c   : > { %1015 = vst [vmem:[%s6061_s29 + $0x684] sm:$0xf] %v1014_v33  ;;  %1017 = vst [vmem:[%s6061_s29 + $0x688] sm:$0xf] %v1016_v34  ;;  %v1018_v35 = vld [vmem:[%s6054_s28 + $0xd18] sm:$0xf] }
 0x12d   : > { %v1020_v36 = vld [vmem:[%s6054_s28 + $0xd20] sm:$0xf]  ;;  %v1022_v37 = vld [vmem:[%s6054_s28 + $0xd28] sm:$0xf]  ;;  %1019 = vst [vmem:[%s6061_s29 + $0x68c] sm:$0xf] %v1018_v35 }
 0x12e   : > { %1021 = vst [vmem:[%s6061_s29 + $0x690] sm:$0xf] %v1020_v36  ;;  %1023 = vst [vmem:[%s6061_s29 + $0x694] sm:$0xf] %v1022_v37  ;;  %v1024_v38 = vld [vmem:[%s6054_s28 + $0xd30] sm:$0xf] }
 0x12f   : > { %v1026_v39 = vld [vmem:[%s6054_s28 + $0xd38] sm:$0xf]  ;;  %v1028_v40 = vld [vmem:[%s6054_s28 + $0xd40] sm:$0xf]  ;;  %1025 = vst [vmem:[%s6061_s29 + $0x698] sm:$0xf] %v1024_v38 }
 0x130   : > { %1027 = vst [vmem:[%s6061_s29 + $0x69c] sm:$0xf] %v1026_v39  ;;  %1029 = vst [vmem:[%s6061_s29 + $0x6a0] sm:$0xf] %v1028_v40  ;;  %v1030_v41 = vld [vmem:[%s6054_s28 + $0xd48] sm:$0xf] }
 0x131   : > { %v1032_v42 = vld [vmem:[%s6054_s28 + $0xd50] sm:$0xf]  ;;  %v1034_v43 = vld [vmem:[%s6054_s28 + $0xd58] sm:$0xf]  ;;  %1031 = vst [vmem:[%s6061_s29 + $0x6a4] sm:$0xf] %v1030_v41 }
 0x132   : > { %1033 = vst [vmem:[%s6061_s29 + $0x6a8] sm:$0xf] %v1032_v42  ;;  %1035 = vst [vmem:[%s6061_s29 + $0x6ac] sm:$0xf] %v1034_v43  ;;  %v1036_v44 = vld [vmem:[%s6054_s28 + $0xd60] sm:$0xf] }
 0x133   : > { %v1038_v45 = vld [vmem:[%s6054_s28 + $0xd68] sm:$0xf]  ;;  %v1040_v46 = vld [vmem:[%s6054_s28 + $0xd70] sm:$0xf]  ;;  %1037 = vst [vmem:[%s6061_s29 + $0x6b0] sm:$0xf] %v1036_v44 }
 0x134   : > { %1039 = vst [vmem:[%s6061_s29 + $0x6b4] sm:$0xf] %v1038_v45  ;;  %1041 = vst [vmem:[%s6061_s29 + $0x6b8] sm:$0xf] %v1040_v46  ;;  %v1042_v47 = vld [vmem:[%s6054_s28 + $0xd78] sm:$0xf] }
 0x135   : > { %1043 = vst [vmem:[%s6061_s29 + $0x6bc] sm:$0xf] %v1042_v47 }
 0x136 PF: > { %p4918_p8 = scmp.ge.s32.totalorder %s5984_s16, 1  ;;  %p1935_p9 = scmp.lt.s32.totalorder %s5984_s16, 3 }
 0x138   : > { %p1936_p10 = pnand %p4918_p8, %p1935_p9 }
 0x139   : > { %s1942_s30 = sand.u32 (!%p1936_p10), 1, %s5968_s12   ;;  %v5683_v48 = vld [vmem:[%s7335_s0 + $0x4] ss:$108 sps:$4 sm:$0xff] (!%p1936_p10)   ;;  %v5688_v49 = vld [vmem:[%s7335_s0 + $0xc] ss:$108 sps:$4 sm:$0xff] (!%p1936_p10)   ;;  %p1980_p11 = scmp.lt.s32.totalorder (!%p1936_p10), %s5976_s14, 1 }
 0x13a   : > { %1939 = sbr.rel (%p1936_p10) target bundleno = 785 (0x311), region = 69  ;;  %4080 = vmatprep.mubr.bf16.mxu0 (!%p1936_p10), %v5683_v48  ;;  %4129 = vmatprep.mubr.bf16.mxu1 (!%p1936_p10), %v5688_v49  ;;  %v5681_v15 = vld [vmem:[%s7335_s0] ss:$108 sps:$4 sm:$0xff] (!%p1936_p10)   ;;  %v5709_v17 = vld [vmem:[%s7335_s0 + $0xdc] ss:$108 sps:$4 sm:$0xff] (!%p1936_p10)   ;;  %s4919_s23 = sshll.u32 (!%p1936_p10), %s1942_s30, 4 }
 0x13b   : > { %s5609_s4 = smul.u32 (!%p1936_p10), 1728, %s1942_s30  ;;  %v5686_v19 = vld [vmem:[%s7335_s0 + $0x8] ss:$108 sps:$4 sm:$0xff] (!%p1936_p10)   ;;  %v5712_v26 = vld [vmem:[%s7335_s0 + $0xd8] ss:$108 sps:$4 sm:$0xff] (!%p1936_p10)   ;;  %s1972_s24 = scalar_lea.vmem (!%p1936_p10), [#allocation3], %s4919_s23 }
 0x13c   : > { %v5714_v45 = vld [vmem:[%s7335_s0 + $0xe4] ss:$108 sps:$4 sm:$0xff] (!%p1936_p10)   ;;  %v5717_v47 = vld [vmem:[%s7335_s0 + $0xe0] ss:$108 sps:$4 sm:$0xff] (!%p1936_p10)  }
 0x13d   : > { %s6933_s9 = scalar_lea.vmem (!%p1936_p10), [#allocation2], %s5609_s4 }
 0x13e   : > { %v5650_v50 = vld [vmem:[%s6933_s9 + $0x40] sm:$0xff] (!%p1936_p10)   ;;  %v5654_v54 = vld [vmem:[%s6933_s9 + $0x48] sm:$0xff] (!%p1936_p10)   ;;  %v5658_v58 = vld [vmem:[%s6933_s9 + $0x50] sm:$0xff] (!%p1936_p10)  }
 0x13f   : > { %v5651_v51 = vld [vmem:[%s6933_s9] sm:$0xff] (!%p1936_p10)   ;;  %5214 = vmatprep.subr.bf16.mxu0 (!%p1936_p10), %v5650_v50  ;;  %v5655_v55 = vld [vmem:[%s6933_s9 + $0x8] sm:$0xff] (!%p1936_p10)   ;;  %v5659_v59 = vld [vmem:[%s6933_s9 + $0x10] sm:$0xff] (!%p1936_p10)  }
 0x140   : > { %v5652_v52 = vld [vmem:[%s6933_s9 + $0xc0] sm:$0xff] (!%p1936_p10)   ;;  %5215 = vmatpush3.bf16.msra.mxu0 (!%p1936_p10), %v5651_v51  ;;  %v5656_v56 = vld [vmem:[%s6933_s9 + $0xc8] sm:$0xff] (!%p1936_p10)   ;;  %v5660_v60 = vld [vmem:[%s6933_s9 + $0xd0] sm:$0xff] (!%p1936_p10)  }
 0x141   : > { %v5653_v53 = vld [vmem:[%s6933_s9 + $0x80] sm:$0xff]   ;;  %5242 = vmatprep.subr.bf16.mxu1 %v5652_v52  ;;  %5216 = vmatprep.subr.bf16.mxu0 %v5654_v54  ;;  %v5657_v57 = vld [vmem:[%s6933_s9 + $0x88] sm:$0xff]   ;;  %v5661_v61 = vld [vmem:[%s6933_s9 + $0x90] sm:$0xff]   ;;  %s1981_s25 = scalar_select %p1980_p11, %s5976_s14, 1 }
 0x142   : > { %5243 = vmatpush3.bf16.msra.mxu1 %v5653_v53  ;;  %v5662_v62 = vld [vmem:[%s6933_s9 + $0x58] sm:$0xff]   ;;  %v5666_v2 = vld [vmem:[%s6933_s9 + $0x60] sm:$0xff]   ;;  %v5670_v6 = vld [vmem:[%s6933_s9 + $0x68] sm:$0xff]   ;;  %s5196_s12 = sshll.u32 (%p6041_p6), %s5976_s14, 2 }
 0x143   : > { %5244 = vmatprep.subr.bf16.mxu1 %v5656_v56  ;;  %v5663_v63 = vld [vmem:[%s6933_s9 + $0x18] sm:$0xff]   ;;  %v5667_v3 = vld [vmem:[%s6933_s9 + $0x20] sm:$0xff]   ;;  %v5671_v7 = vld [vmem:[%s6933_s9 + $0x28] sm:$0xff]   ;;  %s1982_s4 = scalar_lea.vmem %s7337_s2, %s1981_s25  ;;  %s4769_s26 = scalar_lea.vmem (%p6041_p6), %s7338_s3, %s5196_s12 }
 0x144   : > { %5217 = vmatpush3.bf16.msra.mxu0 %v5655_v55  ;;  %v5664_v0 = vld [vmem:[%s6933_s9 + $0xd8] sm:$0xff]   ;;  %v5668_v4 = vld [vmem:[%s6933_s9 + $0xe0] sm:$0xff]   ;;  %v5672_v8 = vld [vmem:[%s6933_s9 + $0xe8] sm:$0xff]  }
 0x145   : > { %5218 = vmatprep.subr.bf16.mxu0 %v5658_v58  ;;  %v5665_v1 = vld [vmem:[%s6933_s9 + $0x98] sm:$0xff]   ;;  %v5669_v5 = vld [vmem:[%s6933_s9 + $0xa0] sm:$0xff]   ;;  %v5673_v9 = vld [vmem:[%s6933_s9 + $0xa8] sm:$0xff]  }
 0x146   : > { %5245 = vmatpush3.bf16.msra.mxu1 %v5657_v57  ;;  %v5674_v10 = vld [vmem:[%s6933_s9 + $0x70] sm:$0xff]   ;;  %v5678_v14 = vld [vmem:[%s6933_s9 + $0x78] sm:$0xff]   ;;  %v5685_v21 = vld [vmem:[%s6933_s9 + $0x140] sm:$0xff]  }
 0x147   : > { %5246 = vmatprep.subr.bf16.mxu1 %v5660_v60  ;;  %v5675_v11 = vld [vmem:[%s6933_s9 + $0x30] sm:$0xff]   ;;  %v5679_v16 = vld [vmem:[%s6933_s9 + $0x38] sm:$0xff]   ;;  %v5689_v22 = vld [vmem:[%s6933_s9 + $0x100] sm:$0xff]  }
 0x148   : > { %5219 = vmatpush3.bf16.msra.mxu0 %v5659_v59  ;;  %v5676_v12 = vld [vmem:[%s6933_s9 + $0xf0] sm:$0xff]   ;;  %v5680_v18 = vld [vmem:[%s6933_s9 + $0xf8] sm:$0xff]   ;;  %v5690_v23 = vld [vmem:[%s6933_s9 + $0x1c0] sm:$0xff]  }
 0x149   : > { %5220 = vmatprep.subr.bf16.mxu0 %v5662_v62  ;;  %v5677_v13 = vld [vmem:[%s6933_s9 + $0xb0] sm:$0xff]   ;;  %v5684_v20 = vld [vmem:[%s6933_s9 + $0xb8] sm:$0xff]   ;;  %v5691_v24 = vld [vmem:[%s6933_s9 + $0x180] sm:$0xff]  }
 0x14a   : > { %5247 = vmatpush3.bf16.msra.mxu1 %v5661_v61  ;;  %v5692_v25 = vld [vmem:[%s6933_s9 + $0x148] sm:$0xff]   ;;  %v5696_v30 = vld [vmem:[%s6933_s9 + $0x150] sm:$0xff]   ;;  %v5700_v34 = vld [vmem:[%s6933_s9 + $0x158] sm:$0xff]  }
 0x14b   : > { %5248 = vmatprep.subr.bf16.mxu1 %v5664_v0  ;;  %v5693_v27 = vld [vmem:[%s6933_s9 + $0x108] sm:$0xff]   ;;  %v5697_v31 = vld [vmem:[%s6933_s9 + $0x110] sm:$0xff]   ;;  %v5701_v35 = vld [vmem:[%s6933_s9 + $0x118] sm:$0xff]  }
 0x14c   : > { %5221 = vmatpush3.bf16.msra.mxu0 %v5663_v63  ;;  %v5694_v28 = vld [vmem:[%s6933_s9 + $0x1c8] sm:$0xff]   ;;  %v5698_v32 = vld [vmem:[%s6933_s9 + $0x1d0] sm:$0xff]   ;;  %v5702_v36 = vld [vmem:[%s6933_s9 + $0x1d8] sm:$0xff]  }
 0x14d   : > { %5222 = vmatprep.subr.bf16.mxu0 %v5666_v2  ;;  %v5695_v29 = vld [vmem:[%s6933_s9 + $0x188] sm:$0xff]   ;;  %v5699_v33 = vld [vmem:[%s6933_s9 + $0x190] sm:$0xff]   ;;  %v5703_v37 = vld [vmem:[%s6933_s9 + $0x198] sm:$0xff]  }
 0x14e   : > { %5249 = vmatpush3.bf16.msra.mxu1 %v5665_v1  ;;  %v5704_v38 = vld [vmem:[%s6933_s9 + $0x160] sm:$0xff]   ;;  %v5708_v42 = vld [vmem:[%s6933_s9 + $0x168] sm:$0xff]   ;;  %v5718_v48 = vld [vmem:[%s6933_s9 + $0x170] sm:$0xff]  }
 0x14f   : > { %5250 = vmatprep.subr.bf16.mxu1 %v5668_v4  ;;  %v5705_v39 = vld [vmem:[%s6933_s9 + $0x120] sm:$0xff]   ;;  %v5711_v43 = vld [vmem:[%s6933_s9 + $0x128] sm:$0xff]   ;;  %v5719_v49 = vld [vmem:[%s6933_s9 + $0x130] sm:$0xff]  }
 0x150   : > { %5223 = vmatpush3.bf16.msra.mxu0 %v5667_v3  ;;  %v5706_v40 = vld [vmem:[%s6933_s9 + $0x1e0] sm:$0xff]   ;;  %v5713_v44 = vld [vmem:[%s6933_s9 + $0x1e8] sm:$0xff]   ;;  %v5720_v50 = vld [vmem:[%s6933_s9 + $0x1f0] sm:$0xff]  }
 0x151   : > { %5224 = vmatprep.subr.bf16.mxu0 %v5670_v6  ;;  %v5707_v41 = vld [vmem:[%s6933_s9 + $0x1a0] sm:$0xff]   ;;  %v5716_v46 = vld [vmem:[%s6933_s9 + $0x1a8] sm:$0xff]   ;;  %v5721_v51 = vld [vmem:[%s6933_s9 + $0x1b0] sm:$0xff]  }
 0x152   : > { %5251 = vmatpush3.bf16.msra.mxu1 %v5669_v5  ;;  %v5722_v52 = vld [vmem:[%s6933_s9 + $0x178] sm:$0xff]   ;;  %v5727_v56 = vld [vmem:[%s7335_s0 + $0x14] ss:$108 sps:$4 sm:$0xff]   ;;  %v5736_v0 = vld [vmem:[%s6933_s9 + $0x248] sm:$0xff]  }
 0x153   : > { %5252 = vmatprep.subr.bf16.mxu1 %v5672_v8  ;;  %v5723_v53 = vld [vmem:[%s6933_s9 + $0x138] sm:$0xff]   ;;  %v5729_v58 = vld [vmem:[%s6933_s9 + $0x240] sm:$0xff]   ;;  %v5737_v1 = vld [vmem:[%s6933_s9 + $0x208] sm:$0xff]  }
 0x154   : > { %5225 = vmatpush3.bf16.msra.mxu0 %v5671_v7  ;;  %v5724_v54 = vld [vmem:[%s6933_s9 + $0x1f8] sm:$0xff]   ;;  %v5733_v61 = vld [vmem:[%s6933_s9 + $0x200] sm:$0xff]   ;;  %v5738_v2 = vld [vmem:[%s6933_s9 + $0x2c8] sm:$0xff]  }
 0x155   : > { %5226 = vmatprep.subr.bf16.mxu0 %v5674_v10  ;;  %v5725_v55 = vld [vmem:[%s7335_s0 + $0x10] ss:$108 sps:$4 sm:$0xff]   ;;  %v5730_v59 = vld [vmem:[%s7335_s0 + $0x18] ss:$108 sps:$4 sm:$0xff]   ;;  %v5741_v4 = vld [vmem:[%s6933_s9 + $0x288] sm:$0xff]  }
 0x156   : > { %5253 = vmatpush3.bf16.msra.mxu1 %v5673_v9  ;;  %v5728_v57 = vld [vmem:[%s6933_s9 + $0x1b8] sm:$0xff]   ;;  %v5734_v62 = vld [vmem:[%s6933_s9 + $0x2c0] sm:$0xff]   ;;  %v5742_v5 = vld [vmem:[%s7335_s0 + $0xe8] ss:$108 sps:$4 sm:$0xff]  }
 0x157   : > { %5254 = vmatprep.subr.bf16.mxu1 %v5676_v12  ;;  %v5732_v60 = vld [vmem:[%s7335_s0 + $0x1c] ss:$108 sps:$4 sm:$0xff]   ;;  %v5735_v63 = vld [vmem:[%s6933_s9 + $0x280] sm:$0xff]   ;;  %v5739_v3 = vld [vmem:[%s7335_s0 + $0xec] ss:$108 sps:$4 sm:$0xff]  }
 0x158   : > { %5227 = vmatpush3.bf16.msra.mxu0 %v5675_v11  ;;  %v5743_v6 = vld [vmem:[%s6933_s9 + $0x250] sm:$0xff]   ;;  %v5750_v12 = vld [vmem:[%s6933_s9 + $0x258] sm:$0xff]  }
 0x159   : > { %5228 = vmatprep.subr.bf16.mxu0 %v5678_v14  ;;  %v5744_v7 = vld [vmem:[%s7335_s0 + $0xf4] ss:$108 sps:$4 sm:$0xff]   ;;  %v5747_v9 = vld [vmem:[%s7335_s0 + $0xf0] ss:$108 sps:$4 sm:$0xff]  }
 0x15a   : > { %5255 = vmatpush3.bf16.msra.mxu1 %v5677_v13  ;;  %v5746_v8 = vld [vmem:[%s6933_s9 + $0x210] sm:$0xff]   ;;  %v5751_v13 = vld [vmem:[%s6933_s9 + $0x218] sm:$0xff]  }
 0x15b   : > { %5256 = vmatprep.subr.bf16.mxu1 %v5680_v18  ;;  %v5748_v10 = vld [vmem:[%s6933_s9 + $0x2d0] sm:$0xff]   ;;  %v5752_v14 = vld [vmem:[%s6933_s9 + $0x2d8] sm:$0xff]   ;;  %v5756_v18 = vld [vmem:[%s6933_s9 + $0x2e0] sm:$0xff]  }
 0x15c   : > { %5229 = vmatpush3.bf16.msra.mxu0 %v5679_v16  ;;  %v5749_v11 = vld [vmem:[%s6933_s9 + $0x290] sm:$0xff]   ;;  %v5754_v16 = vld [vmem:[%s6933_s9 + $0x260] sm:$0xff]  }
 0x15d   : > { %5270 = vmatprep.subr.bf16.mxu0 %v5685_v21  ;;  %v5759_v21 = vld [vmem:[%s6933_s9 + $0x228] sm:$0xff]  }
 0x15e   : > { %5257 = vmatpush3.bf16.msra.mxu1 %v5684_v20  ;;  %v5758_v20 = vld [vmem:[%s6933_s9 + $0x268] sm:$0xff]  }
 0x15f   : > { %4081 = vmatmul.mubr.bf16.vlgmr.msra.gmra.mrb[0].mxu0 %v5681_v15  ;;  %5298 = vmatprep.subr.bf16.mxu1 %v5690_v23  ;;  %v5753_v15 = vld [vmem:[%s6933_s9 + $0x298] sm:$0xff]   ;;  %v5761_v23 = vld [vmem:[%s6933_s9 + $0x2a8] sm:$0xff]  }
 0x160   : > { %5271 = vmatpush3.bf16.msra.mxu0 %v5689_v22  ;;  %4088 = vmatprep.mubr.bf16.mxu0 %v5709_v17  ;;  %v5755_v17 = vld [vmem:[%s6933_s9 + $0x220] sm:$0xff]   ;;  %v5760_v22 = vld [vmem:[%s6933_s9 + $0x2e8] sm:$0xff]  }
 0x161   : > { %4130 = vmatmul.mubr.bf16.vlgmr.msra.gmra.mrb[0].mxu1 %v5686_v19  ;;  %5272 = vmatprep.subr.bf16.mxu0 %v5692_v25  ;;  %v5757_v19 = vld [vmem:[%s6933_s9 + $0x2a0] sm:$0xff]   ;;  %v5763_v25 = vld [vmem:[%s6933_s9 + $0x230] sm:$0xff]  }
 0x162   : > { %5299 = vmatpush3.bf16.msra.mxu1 %v5691_v24  ;;  %4137 = vmatprep.mubr.bf16.mxu1 %v5714_v45  ;;  %v5762_v24 = vld [vmem:[%s6933_s9 + $0x270] sm:$0xff]   ;;  %v5786_v45 = vld [vmem:[%s7335_s0 + $0xf8] ss:$108 sps:$4 sm:$0xff]  }
 0x163   : > { %5300 = vmatprep.subr.bf16.mxu1 %v5694_v28  ;;  %v5766_v28 = vld [vmem:[%s6933_s9 + $0x278] sm:$0xff]  }
 0x164   : > { %5273 = vmatpush3.bf16.msra.mxu0 %v5693_v27  ;;  %v5765_v27 = vld [vmem:[%s6933_s9 + $0x2b0] sm:$0xff]  }
 0x165   : > { %5274 = vmatprep.subr.bf16.mxu0 %v5696_v30  ;;  %v5768_v30 = vld [vmem:[%s6933_s9 + $0x2f8] sm:$0xff]  }
 0x166   : > { %5301 = vmatpush3.bf16.msra.mxu1 %v5695_v29  ;;  %v5767_v29 = vld [vmem:[%s6933_s9 + $0x238] sm:$0xff]  }
 0x167   : > { %4089 = vmatmul.mubr.bf16.gmra.mrb[4].mxu0 %v5712_v26  ;;  %5302 = vmatprep.subr.bf16.mxu1 %v5698_v32  ;;  %v5764_v26 = vld [vmem:[%s6933_s9 + $0x2f0] sm:$0xff]  }
 0x168   : > { %5275 = vmatpush3.bf16.msra.mxu0 %v5697_v31  ;;  %4178 = vmatprep.mubr.bf16.mxu0 %v5727_v56  ;;  %v5769_v31 = vld [vmem:[%s7335_s0 + $0x20] ss:$108 sps:$4 sm:$0xff]   ;;  %v5771_v32 = vld [vmem:[%s7335_s0 + $0x24] ss:$108 sps:$4 sm:$0xff]  }
 0x169   : > { %5276 = vmatprep.subr.bf16.mxu0 %v5700_v34  ;;  %4138 = vmatmul.mubr.bf16.gmra.mrb[4].mxu1 %v5717_v47  ;;  %v5773_v34 = vld [vmem:[%s6933_s9 + $0x340] sm:$0xff]  }
 0x16a   : > { %5303 = vmatpush3.bf16.msra.mxu1 %v5699_v33  ;;  %4227 = vmatprep.mubr.bf16.mxu1 %v5732_v60  ;;  %v5772_v33 = vld [vmem:[%s6933_s9 + $0x2b8] sm:$0xff]   ;;  %v5788_v47 = vld [vmem:[%s7335_s0 + $0x104] ss:$108 sps:$4 sm:$0xff]   ;;  %v5802_v60 = vld [vmem:[%s6933_s9 + $0x368] sm:$0xff]  }
 0x16b   : > { %5304 = vmatprep.subr.bf16.mxu1 %v5702_v36  ;;  %v5776_v36 = vld [vmem:[%s7335_s0 + $0x2c] ss:$108 sps:$4 sm:$0xff]   ;;  %v5798_v56 = vld [vmem:[%s6933_s9 + $0x360] sm:$0xff]  }
 0x16c   : > { %5277 = vmatpush3.bf16.msra.mxu0 %v5701_v35  ;;  %v5774_v35 = vld [vmem:[%s7335_s0 + $0x28] ss:$108 sps:$4 sm:$0xff]  }
 0x16d   : > { %5278 = vmatprep.subr.bf16.mxu0 %v5704_v38  ;;  %v5778_v38 = vld [vmem:[%s6933_s9 + $0x3c0] sm:$0xff]  }
 0x16e   : > { %5305 = vmatpush3.bf16.msra.mxu1 %v5703_v37  ;;  %v5777_v37 = vld [vmem:[%s6933_s9 + $0x300] sm:$0xff]  }
 0x16f   : > { %5306 = vmatprep.subr.bf16.mxu1 %v5706_v40  ;;  %v5780_v40 = vld [vmem:[%s6933_s9 + $0x348] sm:$0xff]  }
 0x170   : > { %5279 = vmatpush3.bf16.msra.mxu0 %v5705_v39  ;;  %v5779_v39 = vld [vmem:[%s6933_s9 + $0x380] sm:$0xff]  }
 0x171   : > { %5280 = vmatprep.subr.bf16.mxu0 %v5708_v42  ;;  %v5782_v42 = vld [vmem:[%s6933_s9 + $0x3c8] sm:$0xff]  }
 0x172   : > { %5307 = vmatpush3.bf16.msra.mxu1 %v5707_v41  ;;  %v5781_v41 = vld [vmem:[%s6933_s9 + $0x308] sm:$0xff]  }
 0x173   : > { %5308 = vmatprep.subr.bf16.mxu1 %v5713_v44  ;;  %v5785_v44 = vld [vmem:[%s6933_s9 + $0x388] sm:$0xff]  }
 0x174   : > { %5281 = vmatpush3.bf16.msra.mxu0 %v5711_v43  ;;  %v5783_v43 = vld [vmem:[%s7335_s0 + $0xfc] ss:$108 sps:$4 sm:$0xff]  }
 0x175   : > { %5282 = vmatprep.subr.bf16.mxu0 %v5718_v48  ;;  %v5790_v48 = vld [vmem:[%s6933_s9 + $0x310] sm:$0xff]  }
 0x176   : > { %5309 = vmatpush3.bf16.msra.mxu1 %v5716_v46  ;;  %v5787_v46 = vld [vmem:[%s6933_s9 + $0x350] sm:$0xff]  }
 0x177   : > { %5310 = vmatprep.subr.bf16.mxu1 %v5720_v50  ;;  %v5792_v50 = vld [vmem:[%s6933_s9 + $0x3d0] sm:$0xff]  }
 0x178   : > { %5283 = vmatpush3.bf16.msra.mxu0 %v5719_v49  ;;  %v5791_v49 = vld [vmem:[%s7335_s0 + $0x100] ss:$108 sps:$4 sm:$0xff]  }
 0x179   : > { %5284 = vmatprep.subr.bf16.mxu0 %v5722_v52  ;;  %v5794_v52 = vld [vmem:[%s6933_s9 + $0x358] sm:$0xff]  }
 0x17a   : > { %5311 = vmatpush3.bf16.msra.mxu1 %v5721_v51  ;;  %v5793_v51 = vld [vmem:[%s6933_s9 + $0x390] sm:$0xff]  }
 0x17b   : > { %5312 = vmatprep.subr.bf16.mxu1 %v5724_v54  ;;  %v5796_v54 = vld [vmem:[%s6933_s9 + $0x3d8] sm:$0xff]  }
 0x17c   : > { %5285 = vmatpush3.bf16.msra.mxu0 %v5723_v53  ;;  %v5795_v53 = vld [vmem:[%s6933_s9 + $0x318] sm:$0xff]  }
 0x17d   : > { %5326 = vmatprep.subr.bf16.mxu0 %v5729_v58  ;;  %v5800_v58 = vld [vmem:[%s6933_s9 + $0x3e0] sm:$0xff]  }
 0x17e   : > { %5313 = vmatpush3.bf16.msra.mxu1 %v5728_v57  ;;  %v5799_v57 = vld [vmem:[%s6933_s9 + $0x320] sm:$0xff]  }
 0x17f   : > { %4179 = vmatmul.mubr.bf16.vlgmr.msra.gmra.mrb[8].mxu0 %v5725_v55  ;;  %5354 = vmatprep.subr.bf16.mxu1 %v5734_v62  ;;  %v5797_v55 = vld [vmem:[%s6933_s9 + $0x398] sm:$0xff]   ;;  %v5804_v62 = vld [vmem:[%s6933_s9 + $0x3e8] sm:$0xff]  }
 0x180   : > { %5327 = vmatpush3.bf16.msra.mxu0 %v5733_v61  ;;  %4186 = vmatprep.mubr.bf16.mxu0 %v5739_v3  ;;  %v5803_v61 = vld [vmem:[%s6933_s9 + $0x328] sm:$0xff]   ;;  %v5809_v3 = vld [vmem:[%s6933_s9 + $0x3b0] sm:$0xff]  }
 0x181   : > { %4228 = vmatmul.mubr.bf16.vlgmr.msra.gmra.mrb[8].mxu1 %v5730_v59  ;;  %5328 = vmatprep.subr.bf16.mxu0 %v5736_v0  ;;  %v5801_v59 = vld [vmem:[%s6933_s9 + $0x3a0] sm:$0xff]   ;;  %v5806_v0 = vld [vmem:[%s6933_s9 + $0x370] sm:$0xff]  }
 0x182   : > { %5355 = vmatpush3.bf16.msra.mxu1 %v5735_v63  ;;  %4235 = vmatprep.mubr.bf16.mxu1 %v5744_v7  ;;  %v5805_v63 = vld [vmem:[%s6933_s9 + $0x3a8] sm:$0xff]   ;;  %v5813_v7 = vld [vmem:[%s7335_s0 + $0x30] ss:$108 sps:$4 sm:$0xff]  }
 0x183   : > { %5356 = vmatprep.subr.bf16.mxu1 %v5738_v2  ;;  %v5808_v2 = vld [vmem:[%s6933_s9 + $0x3f0] sm:$0xff]  }
 0x184   : > { %5329 = vmatpush3.bf16.msra.mxu0 %v5737_v1  ;;  %v5807_v1 = vld [vmem:[%s6933_s9 + $0x330] sm:$0xff]  }
 0x185   : > { %5330 = vmatprep.subr.bf16.mxu0 %v5743_v6  ;;  %v5812_v6 = vld [vmem:[%s6933_s9 + $0x3f8] sm:$0xff]  }
 0x186   : > { %5357 = vmatpush3.bf16.msra.mxu1 %v5741_v4  ;;  %v5810_v4 = vld [vmem:[%s6933_s9 + $0x378] sm:$0xff]  }
 0x187   : > { %4187 = vmatmul.mubr.bf16.gmra.mrb[12].mxu0 %v5742_v5  ;;  %5358 = vmatprep.subr.bf16.mxu1 %v5748_v10  ;;  %v5811_v5 = vld [vmem:[%s6933_s9 + $0x338] sm:$0xff]   ;;  %v5817_v10 = vld [vmem:[%s6933_s9 + $0x440] sm:$0xff]  }
 0x188   : > { %5331 = vmatpush3.bf16.msra.mxu0 %v5746_v8  ;;  %4276 = vmatprep.mubr.bf16.mxu0 %v5771_v32  ;;  %v5815_v8 = vld [vmem:[%s7335_s0 + $0x34] ss:$108 sps:$4 sm:$0xff]  }
 0x189   : > { %4236 = vmatmul.mubr.bf16.gmra.mrb[12].mxu1 %v5747_v9  ;;  %5332 = vmatprep.subr.bf16.mxu0 %v5750_v12  ;;  %v5816_v9 = vld [vmem:[%s6933_s9 + $0x3b8] sm:$0xff]   ;;  %v5842_v32 = vld [vmem:[%s6933_s9 + $0x460] sm:$0xff]  }
 0x18a   : > { %5359 = vmatpush3.bf16.msra.mxu1 %v5749_v11  ;;  %4325 = vmatprep.mubr.bf16.mxu1 %v5776_v36  ;;  %v5818_v11 = vld [vmem:[%s7335_s0 + $0x38] ss:$108 sps:$4 sm:$0xff]   ;;  %v5820_v12 = vld [vmem:[%s7335_s0 + $0x3c] ss:$108 sps:$4 sm:$0xff]  }
 0x18b   : > { %5360 = vmatprep.subr.bf16.mxu1 %v5752_v14  ;;  %v5822_v14 = vld [vmem:[%s6933_s9 + $0x4c0] sm:$0xff]   ;;  %v5846_v36 = vld [vmem:[%s6933_s9 + $0x468] sm:$0xff]  }
 0x18c   : > { %5333 = vmatpush3.bf16.msra.mxu0 %v5751_v13  ;;  %v5821_v13 = vld [vmem:[%s6933_s9 + $0x400] sm:$0xff]  }
 0x18d   : > { %5334 = vmatprep.subr.bf16.mxu0 %v5754_v16  ;;  %v5824_v16 = vld [vmem:[%s6933_s9 + $0x448] sm:$0xff]  }
 0x18e   : > { %5361 = vmatpush3.bf16.msra.mxu1 %v5753_v15  ;;  %v5823_v15 = vld [vmem:[%s6933_s9 + $0x480] sm:$0xff]  }
 0x18f   : > { %5362 = vmatprep.subr.bf16.mxu1 %v5756_v18  ;;  %v5826_v18 = vld [vmem:[%s6933_s9 + $0x4c8] sm:$0xff]  }
 0x190   : > { %5335 = vmatpush3.bf16.msra.mxu0 %v5755_v17  ;;  %v5825_v17 = vld [vmem:[%s6933_s9 + $0x408] sm:$0xff]  }
 0x191   : > { %5336 = vmatprep.subr.bf16.mxu0 %v5758_v20  ;;  %v5829_v20 = vld [vmem:[%s6933_s9 + $0x488] sm:$0xff]  }
 0x192   : > { %5363 = vmatpush3.bf16.msra.mxu1 %v5757_v19  ;;  %v5827_v19 = vld [vmem:[%s7335_s0 + $0x10c] ss:$108 sps:$4 sm:$0xff]  }
 0x193   : > { %5364 = vmatprep.subr.bf16.mxu1 %v5760_v22  ;;  %v5831_v22 = vld [vmem:[%s6933_s9 + $0x450] sm:$0xff]  }
 0x194   : > { %5337 = vmatpush3.bf16.msra.mxu0 %v5759_v21  ;;  %v5830_v21 = vld [vmem:[%s7335_s0 + $0x108] ss:$108 sps:$4 sm:$0xff]  }
 0x195   : > { %5338 = vmatprep.subr.bf16.mxu0 %v5762_v24  ;;  %v5834_v24 = vld [vmem:[%s6933_s9 + $0x410] sm:$0xff]  }
 0x196   : > { %5365 = vmatpush3.bf16.msra.mxu1 %v5761_v23  ;;  %v5832_v23 = vld [vmem:[%s7335_s0 + $0x114] ss:$108 sps:$4 sm:$0xff]  }
 0x197   : > { %5366 = vmatprep.subr.bf16.mxu1 %v5764_v26  ;;  %v5836_v26 = vld [vmem:[%s6933_s9 + $0x4d0] sm:$0xff]  }
 0x198   : > { %5339 = vmatpush3.bf16.msra.mxu0 %v5763_v25  ;;  %v5835_v25 = vld [vmem:[%s7335_s0 + $0x110] ss:$108 sps:$4 sm:$0xff]  }
 0x199   : > { %5340 = vmatprep.subr.bf16.mxu0 %v5766_v28  ;;  %v5838_v28 = vld [vmem:[%s6933_s9 + $0x458] sm:$0xff]  }
 0x19a   : > { %5367 = vmatpush3.bf16.msra.mxu1 %v5765_v27  ;;  %v5837_v27 = vld [vmem:[%s6933_s9 + $0x490] sm:$0xff]  }
 0x19b   : > { %5368 = vmatprep.subr.bf16.mxu1 %v5768_v30  ;;  %v5840_v30 = vld [vmem:[%s6933_s9 + $0x4d8] sm:$0xff]  }
 0x19c   : > { %5341 = vmatpush3.bf16.msra.mxu0 %v5767_v29  ;;  %v5839_v29 = vld [vmem:[%s6933_s9 + $0x418] sm:$0xff]  }
 0x19d   : > { %5382 = vmatprep.subr.bf16.mxu0 %v5773_v34  ;;  %v5844_v34 = vld [vmem:[%s6933_s9 + $0x4e0] sm:$0xff]  }
 0x19e   : > { %5369 = vmatpush3.bf16.msra.mxu1 %v5772_v33  ;;  %v5843_v33 = vld [vmem:[%s6933_s9 + $0x420] sm:$0xff]  }
 0x19f   : > { %4277 = vmatmul.mubr.bf16.vlgmr.msra.gmra.mrb[16].mxu0 %v5769_v31  ;;  %5410 = vmatprep.subr.bf16.mxu1 %v5778_v38  ;;  %v5841_v31 = vld [vmem:[%s6933_s9 + $0x498] sm:$0xff]   ;;  %v5848_v38 = vld [vmem:[%s6933_s9 + $0x4e8] sm:$0xff]  }
 0x1a0   : > { %5383 = vmatpush3.bf16.msra.mxu0 %v5777_v37  ;;  %4284 = vmatprep.mubr.bf16.mxu0 %v5783_v43  ;;  %v5847_v37 = vld [vmem:[%s6933_s9 + $0x428] sm:$0xff]   ;;  %v5853_v43 = vld [vmem:[%s6933_s9 + $0x4b0] sm:$0xff]  }
 0x1a1   : > { %4326 = vmatmul.mubr.bf16.vlgmr.msra.gmra.mrb[16].mxu1 %v5774_v35  ;;  %5384 = vmatprep.subr.bf16.mxu0 %v5780_v40  ;;  %v5845_v35 = vld [vmem:[%s6933_s9 + $0x4a0] sm:$0xff]   ;;  %v5850_v40 = vld [vmem:[%s6933_s9 + $0x470] sm:$0xff]  }
 0x1a2   : > { %5411 = vmatpush3.bf16.msra.mxu1 %v5779_v39  ;;  %4333 = vmatprep.mubr.bf16.mxu1 %v5788_v47  ;;  %v5849_v39 = vld [vmem:[%s6933_s9 + $0x4a8] sm:$0xff]  }
 0x1a3   : > { %5412 = vmatprep.subr.bf16.mxu1 %v5782_v42  ;;  %v5852_v42 = vld [vmem:[%s6933_s9 + $0x4f0] sm:$0xff]   ;;  %v5857_v47 = vld [vmem:[%s7335_s0 + $0x40] ss:$108 sps:$4 sm:$0xff]  }
 0x1a4   : > { %5385 = vmatpush3.bf16.msra.mxu0 %v5781_v41  ;;  %v5851_v41 = vld [vmem:[%s6933_s9 + $0x430] sm:$0xff]  }
 0x1a5   : > { %5386 = vmatprep.subr.bf16.mxu0 %v5787_v46  ;;  %v5856_v46 = vld [vmem:[%s6933_s9 + $0x4f8] sm:$0xff]  }
 0x1a6   : > { %5413 = vmatpush3.bf16.msra.mxu1 %v5785_v44  ;;  %v5854_v44 = vld [vmem:[%s6933_s9 + $0x478] sm:$0xff]  }
 0x1a7   : > { %4285 = vmatmul.mubr.bf16.gmra.mrb[20].mxu0 %v5786_v45  ;;  %5414 = vmatprep.subr.bf16.mxu1 %v5792_v50  ;;  %v5855_v45 = vld [vmem:[%s6933_s9 + $0x438] sm:$0xff]   ;;  %v5861_v50 = vld [vmem:[%s6933_s9 + $0x540] sm:$0xff]  }
 0x1a8   : > { %5387 = vmatpush3.bf16.msra.mxu0 %v5790_v48  ;;  %4374 = vmatprep.mubr.bf16.mxu0 %v5815_v8  ;;  %v5859_v48 = vld [vmem:[%s7335_s0 + $0x44] ss:$108 sps:$4 sm:$0xff]  }
 0x1a9   : > { %4334 = vmatmul.mubr.bf16.gmra.mrb[20].mxu1 %v5791_v49  ;;  %5388 = vmatprep.subr.bf16.mxu0 %v5794_v52  ;;  %v5860_v49 = vld [vmem:[%s6933_s9 + $0x4b8] sm:$0xff]   ;;  %v5886_v8 = vld [vmem:[%s6933_s9 + $0x560] sm:$0xff]  }
 0x1aa   : > { %5415 = vmatpush3.bf16.msra.mxu1 %v5793_v51  ;;  %4423 = vmatprep.mubr.bf16.mxu1 %v5820_v12  ;;  %v5862_v51 = vld [vmem:[%s7335_s0 + $0x48] ss:$108 sps:$4 sm:$0xff]   ;;  %v5864_v52 = vld [vmem:[%s7335_s0 + $0x4c] ss:$108 sps:$4 sm:$0xff]  }
 0x1ab   : > { %5416 = vmatprep.subr.bf16.mxu1 %v5796_v54  ;;  %v5866_v54 = vld [vmem:[%s6933_s9 + $0x5c0] sm:$0xff]   ;;  %v5890_v12 = vld [vmem:[%s6933_s9 + $0x568] sm:$0xff]  }
 0x1ac   : > { %5389 = vmatpush3.bf16.msra.mxu0 %v5795_v53  ;;  %v5865_v53 = vld [vmem:[%s6933_s9 + $0x500] sm:$0xff]  }
 0x1ad   : > { %5390 = vmatprep.subr.bf16.mxu0 %v5798_v56  ;;  %v5868_v56 = vld [vmem:[%s6933_s9 + $0x548] sm:$0xff]  }
 0x1ae   : > { %5417 = vmatpush3.bf16.msra.mxu1 %v5797_v55  ;;  %v5867_v55 = vld [vmem:[%s6933_s9 + $0x580] sm:$0xff]  }
 0x1af   : > { %5418 = vmatprep.subr.bf16.mxu1 %v5800_v58  ;;  %v5870_v58 = vld [vmem:[%s6933_s9 + $0x5c8] sm:$0xff]  }
 0x1b0   : > { %5391 = vmatpush3.bf16.msra.mxu0 %v5799_v57  ;;  %v5869_v57 = vld [vmem:[%s6933_s9 + $0x508] sm:$0xff]  }
 0x1b1   : > { %5392 = vmatprep.subr.bf16.mxu0 %v5802_v60  ;;  %v5873_v60 = vld [vmem:[%s6933_s9 + $0x588] sm:$0xff]  }
 0x1b2   : > { %5419 = vmatpush3.bf16.msra.mxu1 %v5801_v59  ;;  %v5871_v59 = vld [vmem:[%s7335_s0 + $0x11c] ss:$108 sps:$4 sm:$0xff]  }
 0x1b3   : > { %5420 = vmatprep.subr.bf16.mxu1 %v5804_v62  ;;  %v5875_v62 = vld [vmem:[%s6933_s9 + $0x550] sm:$0xff]  }
 0x1b4   : > { %5393 = vmatpush3.bf16.msra.mxu0 %v5803_v61  ;;  %v5874_v61 = vld [vmem:[%s7335_s0 + $0x118] ss:$108 sps:$4 sm:$0xff]  }
 0x1b5   : > { %5394 = vmatprep.subr.bf16.mxu0 %v5806_v0  ;;  %v5878_v0 = vld [vmem:[%s6933_s9 + $0x510] sm:$0xff]  }
 0x1b6   : > { %5421 = vmatpush3.bf16.msra.mxu1 %v5805_v63  ;;  %v5876_v63 = vld [vmem:[%s7335_s0 + $0x124] ss:$108 sps:$4 sm:$0xff]  }
 0x1b7   : > { %5422 = vmatprep.subr.bf16.mxu1 %v5808_v2  ;;  %v5880_v2 = vld [vmem:[%s6933_s9 + $0x5d0] sm:$0xff]  }
 0x1b8   : > { %5395 = vmatpush3.bf16.msra.mxu0 %v5807_v1  ;;  %v5879_v1 = vld [vmem:[%s7335_s0 + $0x120] ss:$108 sps:$4 sm:$0xff]  }
 0x1b9   : > { %5396 = vmatprep.subr.bf16.mxu0 %v5810_v4  ;;  %v5882_v4 = vld [vmem:[%s6933_s9 + $0x558] sm:$0xff]  }
 0x1ba   : > { %5423 = vmatpush3.bf16.msra.mxu1 %v5809_v3  ;;  %v5881_v3 = vld [vmem:[%s6933_s9 + $0x590] sm:$0xff]  }
 0x1bb   : > { %5424 = vmatprep.subr.bf16.mxu1 %v5812_v6  ;;  %v5884_v6 = vld [vmem:[%s6933_s9 + $0x5d8] sm:$0xff]  }
 0x1bc   : > { %5397 = vmatpush3.bf16.msra.mxu0 %v5811_v5  ;;  %v5883_v5 = vld [vmem:[%s6933_s9 + $0x518] sm:$0xff]  }
 0x1bd   : > { %5438 = vmatprep.subr.bf16.mxu0 %v5817_v10  ;;  %v5888_v10 = vld [vmem:[%s6933_s9 + $0x5e0] sm:$0xff]  }
 0x1be   : > { %5425 = vmatpush3.bf16.msra.mxu1 %v5816_v9  ;;  %v5887_v9 = vld [vmem:[%s6933_s9 + $0x520] sm:$0xff]  }
 0x1bf   : > { %4375 = vmatmul.mubr.bf16.vlgmr.msra.gmra.mrb[24].mxu0 %v5813_v7  ;;  %5466 = vmatprep.subr.bf16.mxu1 %v5822_v14  ;;  %v5885_v7 = vld [vmem:[%s6933_s9 + $0x598] sm:$0xff]   ;;  %v5892_v14 = vld [vmem:[%s6933_s9 + $0x5e8] sm:$0xff]  }
 0x1c0   : > { %5439 = vmatpush3.bf16.msra.mxu0 %v5821_v13  ;;  %4382 = vmatprep.mubr.bf16.mxu0 %v5827_v19  ;;  %v5891_v13 = vld [vmem:[%s6933_s9 + $0x528] sm:$0xff]   ;;  %v5897_v19 = vld [vmem:[%s6933_s9 + $0x5b0] sm:$0xff]  }
 0x1c1   : > { %4424 = vmatmul.mubr.bf16.vlgmr.msra.gmra.mrb[24].mxu1 %v5818_v11  ;;  %5440 = vmatprep.subr.bf16.mxu0 %v5824_v16  ;;  %v5889_v11 = vld [vmem:[%s6933_s9 + $0x5a0] sm:$0xff]   ;;  %v5894_v16 = vld [vmem:[%s6933_s9 + $0x570] sm:$0xff]  }
 0x1c2   : > { %5467 = vmatpush3.bf16.msra.mxu1 %v5823_v15  ;;  %4431 = vmatprep.mubr.bf16.mxu1 %v5832_v23  ;;  %v5893_v15 = vld [vmem:[%s6933_s9 + $0x5a8] sm:$0xff]   ;;  %v5901_v23 = vld [vmem:[%s7335_s0 + $0x50] ss:$108 sps:$4 sm:$0xff]  }
 0x1c3   : > { %5468 = vmatprep.subr.bf16.mxu1 %v5826_v18  ;;  %v5896_v18 = vld [vmem:[%s6933_s9 + $0x5f0] sm:$0xff]  }
 0x1c4   : > { %5441 = vmatpush3.bf16.msra.mxu0 %v5825_v17  ;;  %v5895_v17 = vld [vmem:[%s6933_s9 + $0x530] sm:$0xff]  }
 0x1c5   : > { %5442 = vmatprep.subr.bf16.mxu0 %v5831_v22  ;;  %v5900_v22 = vld [vmem:[%s6933_s9 + $0x5f8] sm:$0xff]  }
 0x1c6   : > { %5469 = vmatpush3.bf16.msra.mxu1 %v5829_v20  ;;  %v5898_v20 = vld [vmem:[%s6933_s9 + $0x578] sm:$0xff]  }
 0x1c7   : > { %4383 = vmatmul.mubr.bf16.gmra.mrb[28].mxu0 %v5830_v21  ;;  %5470 = vmatprep.subr.bf16.mxu1 %v5836_v26  ;;  %v5899_v21 = vld [vmem:[%s6933_s9 + $0x538] sm:$0xff]   ;;  %v5905_v26 = vld [vmem:[%s6933_s9 + $0x640] sm:$0xff]  }
 0x1c8   : > { %5443 = vmatpush3.bf16.msra.mxu0 %v5834_v24  ;;  %4472 = vmatprep.mubr.bf16.mxu0 %v5859_v48  ;;  %v5903_v24 = vld [vmem:[%s7335_s0 + $0x54] ss:$108 sps:$4 sm:$0xff]   ;;  %v5930_v48 = vld [vmem:[%s6933_s9 + $0x628] sm:$0xff]  }
 0x1c9   : > { %4432 = vmatmul.mubr.bf16.gmra.mrb[28].mxu1 %v5835_v25  ;;  %5444 = vmatprep.subr.bf16.mxu0 %v5838_v28  ;;  %v5904_v25 = vld [vmem:[%s6933_s9 + $0x5b8] sm:$0xff]  }
 0x1ca   : > { %5471 = vmatpush3.bf16.msra.mxu1 %v5837_v27  ;;  %4521 = vmatprep.mubr.bf16.mxu1 %v5864_v52  ;;  %v5906_v27 = vld [vmem:[%s7335_s0 + $0x58] ss:$108 sps:$4 sm:$0xff]   ;;  %v5908_v28 = vld [vmem:[%s7335_s0 + $0x5c] ss:$108 sps:$4 sm:$0xff]   ;;  %v5935_v52 = vld [vmem:[%s6933_s9 + $0x6b0] sm:$0xff]  }
 0x1cb   : > { %5472 = vmatprep.subr.bf16.mxu1 %v5840_v30  ;;  %v5910_v30 = vld [vmem:[%s6933_s9 + $0x648] sm:$0xff]  }
 0x1cc   : > { %5445 = vmatpush3.bf16.msra.mxu0 %v5839_v29  ;;  %v5909_v29 = vld [vmem:[%s6933_s9 + $0x600] sm:$0xff]  }
 0x1cd   : > { %5446 = vmatprep.subr.bf16.mxu0 %v5842_v32  ;;  %v5912_v32 = vld [vmem:[%s6933_s9 + $0x608] sm:$0xff]  }
 0x1ce   : > { %5473 = vmatpush3.bf16.msra.mxu1 %v5841_v31  ;;  %v5911_v31 = vld [vmem:[%s6933_s9 + $0x680] sm:$0xff]  }
 0x1cf   : > { %5474 = vmatprep.subr.bf16.mxu1 %v5844_v34  ;;  %v5915_v34 = vld [vmem:[%s7335_s0 + $0x128] ss:$108 sps:$4 sm:$0xff]  }
 0x1d0   : > { %5447 = vmatpush3.bf16.msra.mxu0 %v5843_v33  ;;  %v5913_v33 = vld [vmem:[%s7335_s0 + $0x12c] ss:$108 sps:$4 sm:$0xff]  }
 0x1d1   : > { %5448 = vmatprep.subr.bf16.mxu0 %v5846_v36  ;;  %v5917_v36 = vld [vmem:[%s6933_s9 + $0x688] sm:$0xff]  }
 0x1d2   : > { %5475 = vmatpush3.bf16.msra.mxu1 %v5845_v35  ;;  %v5916_v35 = vld [vmem:[%s6933_s9 + $0x650] sm:$0xff]  }
 0x1d3   : > { %5476 = vmatprep.subr.bf16.mxu1 %v5848_v38  ;;  %v5920_v38 = vld [vmem:[%s6933_s9 + $0x610] sm:$0xff]  }
 0x1d4   : > { %5449 = vmatpush3.bf16.msra.mxu0 %v5847_v37  ;;  %v5918_v37 = vld [vmem:[%s7335_s0 + $0x134] ss:$108 sps:$4 sm:$0xff]  }
 0x1d5   : > { %5450 = vmatprep.subr.bf16.mxu0 %v5850_v40  ;;  %v5922_v40 = vld [vmem:[%s6933_s9 + $0x658] sm:$0xff]  }
 0x1d6   : > { %5477 = vmatpush3.bf16.msra.mxu1 %v5849_v39  ;;  %v5921_v39 = vld [vmem:[%s7335_s0 + $0x130] ss:$108 sps:$4 sm:$0xff]  }
 0x1d7   : > { %5478 = vmatprep.subr.bf16.mxu1 %v5852_v42  ;;  %v5924_v42 = vld [vmem:[%s6933_s9 + $0x618] sm:$0xff]  }
 0x1d8   : > { %5451 = vmatpush3.bf16.msra.mxu0 %v5851_v41  ;;  %v5923_v41 = vld [vmem:[%s6933_s9 + $0x690] sm:$0xff]  }
 0x1d9   : > { %5452 = vmatprep.subr.bf16.mxu0 %v5854_v44  ;;  %v5926_v44 = vld [vmem:[%s6933_s9 + $0x698] sm:$0xff]  }
 0x1da   : > { %5479 = vmatpush3.bf16.msra.mxu1 %v5853_v43  ;;  %v5925_v43 = vld [vmem:[%s6933_s9 + $0x660] sm:$0xff]  }
 0x1db   : > { %5480 = vmatprep.subr.bf16.mxu1 %v5856_v46  ;;  %v5928_v46 = vld [vmem:[%s6933_s9 + $0x668] sm:$0xff]  }
 0x1dc   : > { %5453 = vmatpush3.bf16.msra.mxu0 %v5855_v45  ;;  %v5927_v45 = vld [vmem:[%s6933_s9 + $0x620] sm:$0xff]  }
 0x1dd   : > { %5494 = vmatprep.subr.bf16.mxu0 %v5861_v50  ;;  %v5932_v50 = vld [vmem:[%s6933_s9 + $0x6a8] sm:$0xff]  }
 0x1de   : > { %5481 = vmatpush3.bf16.msra.mxu1 %v5860_v49  ;;  %v5931_v49 = vld [vmem:[%s6933_s9 + $0x670] sm:$0xff]  }
 0x1df   : > { %4473 = vmatmul.mubr.bf16.vlgmr.msra.gmra.mrb[32].mxu0 %v5857_v47  ;;  %5522 = vmatprep.subr.bf16.mxu1 %v5866_v54  ;;  %v5929_v47 = vld [vmem:[%s6933_s9 + $0x6a0] sm:$0xff]   ;;  %v5936_v54 = vld [vmem:[%s6933_s9 + $0x638] sm:$0xff]  }
 0x1e0   : > { %5495 = vmatpush3.bf16.msra.mxu0 %v5865_v53  ;;  %4480 = vmatprep.mubr.bf16.mxu0 %v5871_v59  ;;  %v5934_v53 = vld [vmem:[%s6933_s9 + $0x678] sm:$0xff]  }
 0x1e1   : > { %4522 = vmatmul.mubr.bf16.vlgmr.msra.gmra.mrb[32].mxu1 %v5862_v51  ;;  %5496 = vmatprep.subr.bf16.mxu0 %v5868_v56  ;;  %v5933_v51 = vld [vmem:[%s6933_s9 + $0x630] sm:$0xff]   ;;  %v5940_v56 = vld [vmem:[%s6933_s9 + $0x6b8] sm:$0xff]  }
 0x1e2   : > { %5523 = vmatpush3.bf16.msra.mxu1 %v5867_v55  ;;  %4529 = vmatprep.mubr.bf16.mxu1 %v5876_v63  ;;  %v5939_v55 = vld [vmem:[%s7335_s0 + $0x64] ss:$108 sps:$4 sm:$0xff]  }
 0x1e3   : > { %5524 = vmatprep.subr.bf16.mxu1 %v5870_v58  ;;  %v5941_v58 = vld [vmem:[%s7335_s0 + $0x68] ss:$108 sps:$4 sm:$0xff]  }
 0x1e4   : > { %5497 = vmatpush3.bf16.msra.mxu0 %v5869_v57 }
 0x1e5   : > { %5498 = vmatprep.subr.bf16.mxu0 %v5875_v62  ;;  %v4920_v62 = vld [vmem:[%s1982_s4] ss:$0 sm:$0xff] }
 0x1e6   : > { %5525 = vmatpush3.bf16.msra.mxu1 %v5873_v60 }
 0x1e7   : > { %4481 = vmatmul.mubr.bf16.gmra.mrb[36].mxu0 %v5874_v61  ;;  %5526 = vmatprep.subr.bf16.mxu1 %v5880_v2  ;;  %v5937_v61 = vld [vmem:[%s7335_s0 + $0x60] ss:$108 sps:$4 sm:$0xff]  }
 0x1e8   : > { %5499 = vmatpush3.bf16.msra.mxu0 %v5878_v0  ;;  %4570 = vmatprep.mubr.bf16.mxu0 %v5903_v24  ;;  %v5943_v0 = vld [vmem:[%s7335_s0 + $0x13c] ss:$108 sps:$4 sm:$0xff]  }
 0x1e9   : > { %4530 = vmatmul.mubr.bf16.gmra.mrb[36].mxu1 %v5879_v1  ;;  %5500 = vmatprep.subr.bf16.mxu0 %v5882_v4 }
 0x1ea   : > { %5527 = vmatpush3.bf16.msra.mxu1 %v5881_v3  ;;  %4619 = vmatprep.mubr.bf16.mxu1 %v5908_v28 }
 0x1eb   : > { %5528 = vmatprep.subr.bf16.mxu1 %v5884_v6 }
 0x1ec   : > { %5501 = vmatpush3.bf16.msra.mxu0 %v5883_v5 }
 0x1ed   : > { %5502 = vmatprep.subr.bf16.mxu0 %v5886_v8 }
 0x1ee   : > { %5529 = vmatpush3.bf16.msra.mxu1 %v5885_v7  ;;  %v5942_v7 = vld [vmem:[%s7335_s0 + $0x140] ss:$108 sps:$4 sm:$0xff]  }
 0x1ef   : > { %5530 = vmatprep.subr.bf16.mxu1 %v5888_v10 }
 0x1f0   : > { %5503 = vmatpush3.bf16.msra.mxu0 %v5887_v9 }
 0x1f1   : > { %5504 = vmatprep.subr.bf16.mxu0 %v5890_v12 }
 0x1f2   : > { %5531 = vmatpush3.bf16.msra.mxu1 %v5889_v11 }
 0x1f3   : > { %5532 = vmatprep.subr.bf16.mxu1 %v5892_v14 }
 0x1f4   : > { %5505 = vmatpush3.bf16.msra.mxu0 %v5891_v13 }
 0x1f5   : > { %5506 = vmatprep.subr.bf16.mxu0 %v5894_v16 }
 0x1f6   : > { %5533 = vmatpush3.bf16.msra.mxu1 %v5893_v15 }
 0x1f7   : > { %5534 = vmatprep.subr.bf16.mxu1 %v5896_v18  ;;  %v5945_v18 = vld [vmem:[%s7335_s0 + $0x138] ss:$108 sps:$4 sm:$0xff]  }
 0x1f8   : > { %5507 = vmatpush3.bf16.msra.mxu0 %v5895_v17 }
 0x1f9   : > { %5508 = vmatprep.subr.bf16.mxu0 %v5898_v20 }
 0x1fa   : > { %5535 = vmatpush3.bf16.msra.mxu1 %v5897_v19 }
 0x1fb   : > { %5536 = vmatprep.subr.bf16.mxu1 %v5900_v22 }
 0x1fc   : > { %5509 = vmatpush3.bf16.msra.mxu0 %v5899_v21 }
 0x1fd   : > { %5550 = vmatprep.subr.bf16.mxu0 %v5905_v26 }
 0x1fe   : > { %5537 = vmatpush3.bf16.msra.mxu1 %v5904_v25 }
 0x1ff   : > { %4571 = vmatmul.mubr.bf16.vlgmr.msra.gmra.mrb[40].mxu0 %v5901_v23  ;;  %5588 = vmatprep.subr.bf16.mxu1 %v5911_v31 }
 0x200   : > { %5551 = vmatpush3.bf16.msra.mxu0 %v5909_v29  ;;  %4578 = vmatprep.mubr.bf16.mxu0 %v5913_v33 }
 0x201   : > { %4620 = vmatmul.mubr.bf16.vlgmr.msra.gmra.mrb[40].mxu1 %v5906_v27  ;;  %5552 = vmatprep.subr.bf16.mxu0 %v5910_v30 }
 0x202   : > { %5589 = vmatpush3.bf16.msra.mxu1 %v5911_v31  ;;  %4627 = vmatprep.mubr.bf16.mxu1 %v5918_v37 }
 0x203   : > { %5590 = vmatprep.subr.bf16.mxu1 %v5917_v36 }
 0x204   : > { %5553 = vmatpush3.bf16.msra.mxu0 %v5912_v32 }
 0x205   : > { %5554 = vmatprep.subr.bf16.mxu0 %v5916_v35 }
 0x206   : > { %5591 = vmatpush3.bf16.msra.mxu1 %v5917_v36 }
 0x207   : > { %4579 = vmatmul.mubr.bf16.gmra.mrb[44].mxu0 %v5915_v34  ;;  %5592 = vmatprep.subr.bf16.mxu1 %v5923_v41 }
 0x208   : > { %5555 = vmatpush3.bf16.msra.mxu0 %v5920_v38  ;;  %4668 = vmatprep.mubr.bf16.mxu0 %v5939_v55 }
 0x209   : > { %4628 = vmatmul.mubr.bf16.gmra.mrb[44].mxu1 %v5921_v39  ;;  %5556 = vmatprep.subr.bf16.mxu0 %v5922_v40 }
 0x20a   : > { %5593 = vmatpush3.bf16.msra.mxu1 %v5923_v41  ;;  %5604 = vmatprep.mubr.bf16.mxu1 %v5941_v58 }
 0x20b   : > { %5594 = vmatprep.subr.bf16.mxu1 %v5926_v44 }
 0x20c   : > { %5557 = vmatpush3.bf16.msra.mxu0 %v5924_v42 }
 0x20d   : > { %5558 = vmatprep.subr.bf16.mxu0 %v5925_v43 }
 0x20e   : > { %5595 = vmatpush3.bf16.msra.mxu1 %v5926_v44 }
 0x20f   : > { %5596 = vmatprep.subr.bf16.mxu1 %v5929_v47 }
 0x210   : > { %5559 = vmatpush3.bf16.msra.mxu0 %v5927_v45 }
 0x211   : > { %5560 = vmatprep.subr.bf16.mxu0 %v5928_v46 }
 0x212   : > { %5597 = vmatpush3.bf16.msra.mxu1 %v5929_v47 }
 0x213   : > { %5598 = vmatprep.subr.bf16.mxu1 %v5932_v50 }
 0x214   : > { %5561 = vmatpush3.bf16.msra.mxu0 %v5930_v48 }
 0x215   : > { %5562 = vmatprep.subr.bf16.mxu0 %v5931_v49 }
 0x216   : > { %5599 = vmatpush3.bf16.msra.mxu1 %v5932_v50 }
 0x217   : > { %5600 = vmatprep.subr.bf16.mxu1 %v5935_v52 }
 0x218   : > { %5563 = vmatpush3.bf16.msra.mxu0 %v5933_v51 }
 0x219   : > { %5564 = vmatprep.subr.bf16.mxu0 %v5934_v53 }
 0x21a   : > { %5601 = vmatpush3.bf16.msra.mxu1 %v5935_v52 }
 0x21b   : > { %5602 = vmatprep.subr.bf16.mxu1 %v5940_v56 }
 0x21c   : > { %5565 = vmatpush3.bf16.msra.mxu0 %v5936_v54 }
 0x21e   : > { %5603 = vmatpush3.bf16.msra.mxu1 %v5940_v56 }
 0x21f   : > { %4669 = vmatmul.mubr.bf16.vlgmr.msra.gmra.mrb[48].mxu0 %v5937_v61 }
 0x220   : > { %4676 = vmatprep.mubr.bf16.mxu0 %v5943_v0 }
 0x221   : > { %5605 = vmatmul.mubr.bf16.vlgmr.msra.gmra.mrb[48].mxu1 %v5942_v7 }
 0x227   : > { %4677 = vmatmul.mubr.bf16.gmra.mrb[52].mxu0 %v5945_v18 }
 0x232   : > { %v5230_v57 = vpop.f32.mrb[0].mxu0 }
 0x233   : > { %v5231_v59 = vpop.f32.mrb[1].mxu0 }
 0x234   : > { %v5258_v60 = vpop.f32.mrb[0].mxu1  ;;  %v5232_v63 = vadd.f32 %v5231_v59, %v5230_v57  ;;  %v5233_v1 = vpop.f32.mrb[2].mxu0 }
 0x235   : > { %v5259_v2 = vpop.f32.mrb[1].mxu1  ;;  %v5234_v4 = vpop.f32.mrb[3].mxu0 }
 0x236   : > { %v4083_v3 = vadd.f32 %v5232_v63, %v4920_v62  ;;  %v5260_v5 = vadd.f32 %v5259_v2, %v5258_v60  ;;  %v5261_v6 = vpop.f32.mrb[2].mxu1  ;;  %v5235_v8 = vadd.f32 %v5234_v4, %v5233_v1 }
 0x237   : > { %v5262_v9 = vpop.f32.mrb[3].mxu1 }
 0x238   : > { %v4132_v10 = vadd.f32 %v5260_v5, %v4083_v3  ;;  %v5263_v11 = vadd.f32 %v5262_v9, %v5261_v6  ;;  %v4086_v12 = vadd.f32 %v5235_v8, %v4920_v62 }
 0x23a   : > { %v5236_v13 = vpop.f32.mrb[4].mxu0  ;;  %v4135_v15 = vadd.f32 %v5263_v11, %v4086_v12 }
 0x23b   : > { %v5237_v14 = vpop.f32.mrb[5].mxu0 }
 0x23c   : > { %v5238_v16 = vadd.f32 %v5237_v14, %v5236_v13  ;;  %v5239_v17 = vpop.f32.mrb[6].mxu0  ;;  %v5264_v22 = vpop.f32.mrb[4].mxu1 }
 0x23d   : > { %v5240_v19 = vpop.f32.mrb[7].mxu0  ;;  %v5265_v23 = vpop.f32.mrb[5].mxu1 }
 0x23e   : > { %v5241_v20 = vadd.f32 %v5240_v19, %v5239_v17  ;;  %v4091_v21 = vadd.f32 %v5238_v16, %v4920_v62  ;;  %v5266_v25 = vadd.f32 %v5265_v23, %v5264_v22  ;;  %v5267_v26 = vpop.f32.mrb[6].mxu1 }
 0x23f   : > { %v5268_v27 = vpop.f32.mrb[7].mxu1 }
 0x240   : > { %v4094_v24 = vadd.f32 %v5241_v20, %v4920_v62  ;;  %v4140_v28 = vadd.f32 %v5266_v25, %v4091_v21  ;;  %v5269_v29 = vadd.f32 %v5268_v27, %v5267_v26 }
 0x242   : > { %v4143_v30 = vadd.f32 %v5269_v29, %v4094_v24 }
 0x252   : > { %v5286_v31 = vpop.f32.mrb[8].mxu0 }
 0x253   : > { %v5287_v32 = vpop.f32.mrb[9].mxu0 }
 0x254   : > { %v5288_v33 = vadd.f32 %v5287_v32, %v5286_v31  ;;  %v5289_v34 = vpop.f32.mrb[10].mxu0  ;;  %v5314_v35 = vpop.f32.mrb[8].mxu1 }
 0x255   : > { %v5290_v36 = vpop.f32.mrb[11].mxu0  ;;  %v5315_v39 = vpop.f32.mrb[9].mxu1 }
 0x256   : > { %v4181_v37 = vadd.f32 %v5288_v33, %v4132_v10  ;;  %v5291_v38 = vadd.f32 %v5290_v36, %v5289_v34  ;;  %v5316_v40 = vadd.f32 %v5315_v39, %v5314_v35  ;;  %v5317_v41 = vpop.f32.mrb[10].mxu1 }
 0x257   : > { %v5318_v43 = vpop.f32.mrb[11].mxu1 }
 0x258   : > { %v4184_v42 = vadd.f32 %v5291_v38, %v4135_v15  ;;  %v4230_v44 = vadd.f32 %v5316_v40, %v4181_v37  ;;  %v5319_v45 = vadd.f32 %v5318_v43, %v5317_v41 }
 0x25a   : > { %v4233_v46 = vadd.f32 %v5319_v45, %v4184_v42  ;;  %v5292_v47 = vpop.f32.mrb[12].mxu0 }
 0x25b   : > { %v5293_v48 = vpop.f32.mrb[13].mxu0 }
 0x25c   : > { %v5294_v49 = vadd.f32 %v5293_v48, %v5292_v47  ;;  %v5295_v50 = vpop.f32.mrb[14].mxu0  ;;  %v5320_v51 = vpop.f32.mrb[12].mxu1 }
 0x25d   : > { %v5296_v52 = vpop.f32.mrb[15].mxu0  ;;  %v5321_v55 = vpop.f32.mrb[13].mxu1 }
 0x25e   : > { %v4189_v53 = vadd.f32 %v5294_v49, %v4140_v28  ;;  %v5297_v54 = vadd.f32 %v5296_v52, %v5295_v50  ;;  %v5322_v56 = vadd.f32 %v5321_v55, %v5320_v51  ;;  %v5323_v57 = vpop.f32.mrb[14].mxu1 }
 0x25f   : > { %v5324_v59 = vpop.f32.mrb[15].mxu1 }
 0x260   : > { %v4192_v58 = vadd.f32 %v5297_v54, %v4143_v30  ;;  %v4238_v60 = vadd.f32 %v5322_v56, %v4189_v53  ;;  %v5325_v61 = vadd.f32 %v5324_v59, %v5323_v57 }
 0x262   : > { %v4241_v62 = vadd.f32 %v5325_v61, %v4192_v58 }
 0x272   : > { %v5342_v63 = vpop.f32.mrb[16].mxu0 }
 0x273   : > { %v5343_v0 = vpop.f32.mrb[17].mxu0 }
 0x274   : > { %v5344_v1 = vadd.f32 %v5343_v0, %v5342_v63  ;;  %v5345_v2 = vpop.f32.mrb[18].mxu0  ;;  %v5370_v5 = vpop.f32.mrb[16].mxu1 }
 0x275   : > { %v5346_v3 = vpop.f32.mrb[19].mxu0  ;;  %v5371_v7 = vpop.f32.mrb[17].mxu1 }
 0x276   : > { %v4279_v4 = vadd.f32 %v5344_v1, %v4230_v44  ;;  %v5347_v6 = vadd.f32 %v5346_v3, %v5345_v2  ;;  %v5372_v9 = vadd.f32 %v5371_v7, %v5370_v5  ;;  %v5373_v10 = vpop.f32.mrb[18].mxu1 }
 0x277   : > { %v5374_v11 = vpop.f32.mrb[19].mxu1 }
 0x278   : > { %v4282_v8 = vadd.f32 %v5347_v6, %v4233_v46  ;;  %v4328_v12 = vadd.f32 %v5372_v9, %v4279_v4  ;;  %v5375_v13 = vadd.f32 %v5374_v11, %v5373_v10 }
 0x27a   : > { %v4331_v14 = vadd.f32 %v5375_v13, %v4282_v8  ;;  %v5348_v15 = vpop.f32.mrb[20].mxu0 }
 0x27b   : > { %v5349_v16 = vpop.f32.mrb[21].mxu0 }
 0x27c   : > { %v5350_v17 = vadd.f32 %v5349_v16, %v5348_v15  ;;  %v5351_v18 = vpop.f32.mrb[22].mxu0  ;;  %v5376_v19 = vpop.f32.mrb[20].mxu1 }
 0x27d   : > { %v5352_v20 = vpop.f32.mrb[23].mxu0  ;;  %v5377_v23 = vpop.f32.mrb[21].mxu1 }
 0x27e   : > { %v4287_v21 = vadd.f32 %v5350_v17, %v4238_v60  ;;  %v5353_v22 = vadd.f32 %v5352_v20, %v5351_v18  ;;  %v5378_v24 = vadd.f32 %v5377_v23, %v5376_v19  ;;  %v5379_v25 = vpop.f32.mrb[22].mxu1 }
 0x27f   : > { %v5380_v27 = vpop.f32.mrb[23].mxu1 }
 0x280   : > { %v4290_v26 = vadd.f32 %v5353_v22, %v4241_v62  ;;  %v4336_v28 = vadd.f32 %v5378_v24, %v4287_v21  ;;  %v5381_v29 = vadd.f32 %v5380_v27, %v5379_v25 }
 0x282   : > { %v4339_v30 = vadd.f32 %v5381_v29, %v4290_v26 }
 0x292   : > { %v5398_v31 = vpop.f32.mrb[24].mxu0 }
 0x293   : > { %v5399_v32 = vpop.f32.mrb[25].mxu0 }
 0x294   : > { %v5400_v33 = vadd.f32 %v5399_v32, %v5398_v31  ;;  %v5401_v34 = vpop.f32.mrb[26].mxu0  ;;  %v5426_v35 = vpop.f32.mrb[24].mxu1 }
 0x295   : > { %v5402_v36 = vpop.f32.mrb[27].mxu0  ;;  %v5427_v39 = vpop.f32.mrb[25].mxu1 }
 0x296   : > { %v4377_v37 = vadd.f32 %v5400_v33, %v4328_v12  ;;  %v5403_v38 = vadd.f32 %v5402_v36, %v5401_v34  ;;  %v5428_v40 = vadd.f32 %v5427_v39, %v5426_v35  ;;  %v5429_v41 = vpop.f32.mrb[26].mxu1 }
 0x297   : > { %v5430_v43 = vpop.f32.mrb[27].mxu1 }
 0x298   : > { %v4380_v42 = vadd.f32 %v5403_v38, %v4331_v14  ;;  %v4426_v44 = vadd.f32 %v5428_v40, %v4377_v37  ;;  %v5431_v45 = vadd.f32 %v5430_v43, %v5429_v41 }
 0x29a   : > { %v4429_v46 = vadd.f32 %v5431_v45, %v4380_v42  ;;  %v5404_v47 = vpop.f32.mrb[28].mxu0 }
 0x29b   : > { %v5405_v48 = vpop.f32.mrb[29].mxu0 }
 0x29c   : > { %v5406_v49 = vadd.f32 %v5405_v48, %v5404_v47  ;;  %v5407_v50 = vpop.f32.mrb[30].mxu0  ;;  %v5432_v53 = vpop.f32.mrb[28].mxu1 }
 0x29d   : > { %v5408_v51 = vpop.f32.mrb[31].mxu0  ;;  %v5433_v55 = vpop.f32.mrb[29].mxu1 }
 0x29e   : > { %v4385_v52 = vadd.f32 %v5406_v49, %v4336_v28  ;;  %v5409_v54 = vadd.f32 %v5408_v51, %v5407_v50  ;;  %v5434_v57 = vadd.f32 %v5433_v55, %v5432_v53  ;;  %v5435_v58 = vpop.f32.mrb[30].mxu1 }
 0x29f   : > { %v5436_v59 = vpop.f32.mrb[31].mxu1 }
 0x2a0   : > { %v4388_v56 = vadd.f32 %v5409_v54, %v4339_v30  ;;  %v4434_v60 = vadd.f32 %v5434_v57, %v4385_v52  ;;  %v5437_v61 = vadd.f32 %v5436_v59, %v5435_v58 }
 0x2a2   : > { %v4437_v62 = vadd.f32 %v5437_v61, %v4388_v56 }
 0x2b2   : > { %v5454_v63 = vpop.f32.mrb[32].mxu0 }
 0x2b3   : > { %v5455_v0 = vpop.f32.mrb[33].mxu0 }
 0x2b4   : > { %v5456_v1 = vadd.f32 %v5455_v0, %v5454_v63  ;;  %v5457_v2 = vpop.f32.mrb[34].mxu0  ;;  %v5482_v3 = vpop.f32.mrb[32].mxu1 }
 0x2b5   : > { %v5458_v4 = vpop.f32.mrb[35].mxu0  ;;  %v5483_v7 = vpop.f32.mrb[33].mxu1 }
 0x2b6   : > { %v4475_v5 = vadd.f32 %v5456_v1, %v4426_v44  ;;  %v5459_v6 = vadd.f32 %v5458_v4, %v5457_v2  ;;  %v5484_v8 = vadd.f32 %v5483_v7, %v5482_v3  ;;  %v5485_v9 = vpop.f32.mrb[34].mxu1 }
 0x2b7   : > { %v5486_v11 = vpop.f32.mrb[35].mxu1 }
 0x2b8   : > { %v4478_v10 = vadd.f32 %v5459_v6, %v4429_v46  ;;  %v4524_v12 = vadd.f32 %v5484_v8, %v4475_v5  ;;  %v5487_v13 = vadd.f32 %v5486_v11, %v5485_v9 }
 0x2ba   : > { %v4527_v14 = vadd.f32 %v5487_v13, %v4478_v10  ;;  %v5460_v15 = vpop.f32.mrb[36].mxu0 }
 0x2bb   : > { %v5461_v16 = vpop.f32.mrb[37].mxu0 }
 0x2bc   : > { %v5462_v17 = vadd.f32 %v5461_v16, %v5460_v15  ;;  %v5463_v18 = vpop.f32.mrb[38].mxu0  ;;  %v5488_v19 = vpop.f32.mrb[36].mxu1 }
 0x2bd   : > { %v5464_v20 = vpop.f32.mrb[39].mxu0  ;;  %v5489_v23 = vpop.f32.mrb[37].mxu1 }
 0x2be   : > { %v4483_v21 = vadd.f32 %v5462_v17, %v4434_v60  ;;  %v5465_v22 = vadd.f32 %v5464_v20, %v5463_v18  ;;  %v5490_v24 = vadd.f32 %v5489_v23, %v5488_v19  ;;  %v5491_v25 = vpop.f32.mrb[38].mxu1 }
 0x2bf   : > { %v5492_v27 = vpop.f32.mrb[39].mxu1 }
 0x2c0   : > { %v4486_v26 = vadd.f32 %v5465_v22, %v4437_v62  ;;  %v4532_v28 = vadd.f32 %v5490_v24, %v4483_v21  ;;  %v5493_v29 = vadd.f32 %v5492_v27, %v5491_v25 }
 0x2c2   : > { %v4535_v30 = vadd.f32 %v5493_v29, %v4486_v26 }
 0x2d2   : > { %v5510_v31 = vpop.f32.mrb[40].mxu0 }
 0x2d3   : > { %v5511_v32 = vpop.f32.mrb[41].mxu0 }
 0x2d4   : > { %v5512_v33 = vadd.f32 %v5511_v32, %v5510_v31  ;;  %v5513_v34 = vpop.f32.mrb[42].mxu0  ;;  %v5538_v37 = vpop.f32.mrb[40].mxu1 }
 0x2d5   : > { %v5514_v35 = vpop.f32.mrb[43].mxu0  ;;  %v5539_v39 = vpop.f32.mrb[41].mxu1 }
 0x2d6   : > { %v4573_v36 = vadd.f32 %v5512_v33, %v4524_v12  ;;  %v5515_v38 = vadd.f32 %v5514_v35, %v5513_v34  ;;  %v5540_v41 = vadd.f32 %v5539_v39, %v5538_v37  ;;  %v5541_v42 = vpop.f32.mrb[42].mxu1 }
 0x2d7   : > { %v5542_v43 = vpop.f32.mrb[43].mxu1 }
 0x2d8   : > { %v4576_v40 = vadd.f32 %v5515_v38, %v4527_v14  ;;  %v4622_v44 = vadd.f32 %v5540_v41, %v4573_v36  ;;  %v5543_v45 = vadd.f32 %v5542_v43, %v5541_v42 }
 0x2da   : > { %v5516_v46 = vpop.f32.mrb[44].mxu0  ;;  %v4625_v47 = vadd.f32 %v5543_v45, %v4576_v40 }
 0x2db   : > { %v5517_v48 = vpop.f32.mrb[45].mxu0 }
 0x2dc   : > { %v5518_v49 = vadd.f32 %v5517_v48, %v5516_v46  ;;  %v5519_v50 = vpop.f32.mrb[46].mxu0  ;;  %v5544_v51 = vpop.f32.mrb[44].mxu1 }
 0x2dd   : > { %v5520_v52 = vpop.f32.mrb[47].mxu0  ;;  %v5545_v55 = vpop.f32.mrb[45].mxu1 }
 0x2de   : > { %v4581_v53 = vadd.f32 %v5518_v49, %v4532_v28  ;;  %v5521_v54 = vadd.f32 %v5520_v52, %v5519_v50  ;;  %v5546_v56 = vadd.f32 %v5545_v55, %v5544_v51  ;;  %v5547_v57 = vpop.f32.mrb[46].mxu1 }
 0x2df   : > { %v5548_v59 = vpop.f32.mrb[47].mxu1 }
 0x2e0   : > { %v4584_v58 = vadd.f32 %v5521_v54, %v4535_v30  ;;  %v4630_v60 = vadd.f32 %v5546_v56, %v4581_v53  ;;  %v5549_v61 = vadd.f32 %v5548_v59, %v5547_v57 }
 0x2e2   : > { %v4633_v62 = vadd.f32 %v5549_v61, %v4584_v58 }
 0x2f2   : > { %v5566_v63 = vpop.f32.mrb[48].mxu0 }
 0x2f3   : > { %v5567_v0 = vpop.f32.mrb[49].mxu0 }
 0x2f4   : > { %v5568_v1 = vadd.f32 %v5567_v0, %v5566_v63  ;;  %v5569_v2 = vpop.f32.mrb[50].mxu0  ;;  %v5606_v4 = vpop.f32.mrb[48].mxu1 }
 0x2f5   : > { %v5570_v3 = vpop.f32.mrb[51].mxu0  ;;  %v4719_v7 = vpop.f32.mrb[49].mxu1 }
 0x2f6   : > { %v5571_v5 = vadd.f32 %v5570_v3, %v5569_v2  ;;  %v4671_v6 = vadd.f32 %v5568_v1, %v4622_v44  ;;  %v5607_v8 = vpop.f32.mrb[50].mxu1 }
 0x2f7   : > { %v4722_v11 = vpop.f32.mrb[51].mxu1 }
 0x2f8   : > { %v4720_v9 = vadd.f32 %v4719_v7, %v4671_v6  ;;  %v4674_v10 = vadd.f32 %v5571_v5, %v4625_v47 }
 0x2fa   : > { %v4723_v12 = vadd.f32 %v4722_v11, %v4674_v10  ;;  %v5572_v13 = vpop.f32.mrb[52].mxu0  ;;  %v4734_v15 = vmax.f32 %v4720_v9, 0.0 }
 0x2fb   : > { %v5573_v14 = vpop.f32.mrb[53].mxu0 }
 0x2fc   : > { %v4735_v16 = vmax.f32 %v4723_v12, 0.0  ;;  %v5574_v17 = vadd.f32 %v5573_v14, %v5572_v13  ;;  %v5575_v18 = vpop.f32.mrb[54].mxu0 }
 0x2fd   : > { %v5576_v19 = vpop.f32.mrb[55].mxu0 }
 0x2fe   : > { %v5206_v20 = vpack.c.bf16 %v4735_v16, %v4734_v15  ;;  %v4679_v21 = vadd.f32 %v5574_v17, %v4630_v60  ;;  %v5577_v22 = vadd.f32 %v5576_v19, %v5575_v18 }
 0x300   : > { %5207 = vst [vmem:[%s1972_s24] sm:$0xff] %v5206_v20   ;;  %v4728_v23 = vadd.f32 %v5606_v4, %v4679_v21  ;;  %v4682_v24 = vadd.f32 %v5577_v22, %v4633_v62 }
 0x302   : > { %v4731_v25 = vadd.f32 %v5607_v8, %v4682_v24  ;;  %v4736_v26 = vmax.f32 %v4728_v23, 0.0  ;;  %4764 = sbr.rel (!%p6041_p6) target bundleno = 785 (0x311), region = 77 }
 0x304   : > { %v4737_v27 = vmax.f32 %v4731_v25, 0.0 }
 0x306   : > { %v5211_v28 = vpack.c.bf16 %v4737_v27, %v4736_v26 }
 0x307   : > { %v4785_v29 = vld [vmem:[%s1972_s24] sm:$0xf] (%p6041_p6)  ;;  %v4787_v30 = vld [vmem:[%s1972_s24 + $0x4] sm:$0xf] (%p6041_p6) }
 0x308   : > { %5213 = vst [vmem:[%s1972_s24 + $0x8] sm:$0xff] %v5211_v28   ;;  %4786 = vst [vmem:[%s4769_s26] sm:$0xf] (%p6041_p6), %v4785_v29 }
 0x309   : > { %4788 = vst [vmem:[%s4769_s26 + $0x8] sm:$0xf] %v4787_v30 }
 0x30f   : > { %v4789_v31 = vld [vmem:[%s1972_s24 + $0x8] sm:$0xf]  ;;  %v4791_v32 = vld [vmem:[%s1972_s24 + $0xc] sm:$0xf] }
 0x310   : > { %4790 = vst [vmem:[%s4769_s26 + $0x10] sm:$0xf] %v4789_v31  ;;  %4792 = vst [vmem:[%s4769_s26 + $0x18] sm:$0xf] %v4791_v32 }
 0x311 PF: > { %s13_s16 = sadd.s32 1, %s5984_s16   ;;  %s7340_s12 = smov %s5972_s13 }
 0x312   : > { %p10_p12 = scmp.ge.s32.totalorder %s13_s16, 4   ;;  %s7341_s13 = smov %s6046_s22 }
 0x313   : > { %s7342_s14 = smov %s5980_s15  ;;  %s7343_s15 = smov %s7345_s17 }
 0x314   :  { %12 = sbr.rel (!%p10_p12) target bundleno = 3 (0x3), region = 155 }

</bundles_post_ra>
